<compile_context>
chip_gen: v5e
topology: v5e:2x2
jax: 0.10.0
libtpu: 0.0.40
codegen_flags: <defaults>
</compile_context>

<pallas_src>
import functools

import jax
import jax.numpy as jnp
import numpy as np
from jax import lax
from jax.experimental import pallas as pl
from jax.experimental.pallas import tpu as pltpu


def _round_up(x, m):
    return ((x + m - 1) // m) * m


# --------------------------------------------------------------------------
# Pallas kernel 1: tiled matmul (im2col conv core).
# bf16 operands, f32 VMEM accumulator, optional fused tanh epilogue.
# --------------------------------------------------------------------------
def _mm_kernel(x_ref, w_ref, o_ref, acc_ref, *, activation):
    @pl.when(pl.program_id(1) == 0)
    def _init():
        acc_ref[...] = jnp.zeros_like(acc_ref)

    acc_ref[...] += jnp.dot(x_ref[...], w_ref[...],
                            preferred_element_type=jnp.float32)

    @pl.when(pl.program_id(1) == pl.num_programs(1) - 1)
    def _done():
        acc = acc_ref[...]
        if activation == "tanh":
            acc = jnp.tanh(acc)
        o_ref[...] = acc.astype(o_ref.dtype)


_MAX_SINGLE_K = 4096     # largest K kept as one full-dim block (covers all layers)
_TM_TARGET = 512         # large M tiles -> ~1-D grid over M


def matmul_fused(patches, w_padded, *, activation=None, out_dtype=jnp.bfloat16):
    """patches: (M, K) bf16, w_padded: (K, Np) bf16 with Np % 128 == 0."""
    M, K = patches.shape
    K2, Np = w_padded.shape
    assert K == K2 and Np % 128 == 0

    tm = min(_TM_TARGET, _round_up(M, 16))          # >=16 for bf16 packing
    if K <= _MAX_SINGLE_K:
        tk, nk = K, 1                               # full-K block, no patch pad
    else:                                           # (not hit by this model)
        tk = 2048
        Kp = _round_up(K, tk)
        patches = jnp.pad(patches, ((0, 0), (0, Kp - K)))
        w_padded = jnp.pad(w_padded, ((0, Kp - K), (0, 0)))
        K, nk = Kp, Kp // tk
    nm = pl.cdiv(M, tm)

    out = pl.pallas_call(
        functools.partial(_mm_kernel, activation=activation),
        out_shape=jax.ShapeDtypeStruct((M, Np), out_dtype),
        grid_spec=pltpu.PrefetchScalarGridSpec(
            num_scalar_prefetch=0,
            grid=(nm, nk),
            in_specs=[
                pl.BlockSpec((tm, tk), lambda i, k: (i, k)),
                pl.BlockSpec((tk, Np), lambda i, k: (k, 0)),
            ],
            out_specs=pl.BlockSpec((tm, Np), lambda i, k: (i, 0)),
            scratch_shapes=[pltpu.VMEM((tm, Np), jnp.float32)],
        ),
        compiler_params=pltpu.CompilerParams(
            dimension_semantics=("parallel", "arbitrary"),
            vmem_limit_bytes=32 * 1024 * 1024,
        ),
        cost_estimate=pl.CostEstimate(
            flops=2 * M * Np * K,
            transcendentals=M * Np if activation == "tanh" else 0,
            bytes_accessed=M * K * 2 + K * Np * 2
            + M * Np * np.dtype(out_dtype).itemsize,
        ),
    )(patches, w_padded)
    return out


# --------------------------------------------------------------------------
# Pallas kernels 2+3: InstanceNorm (affine) as a two-pass tiled reduction,
# plus fused residual add / ReLU in the normalize pass.
# --------------------------------------------------------------------------
def _in_stats_kernel(y_ref, s_ref, q_ref):
    @pl.when(pl.program_id(1) == 0)
    def _init():
        s_ref[...] = jnp.zeros_like(s_ref)
        q_ref[...] = jnp.zeros_like(q_ref)

    y = y_ref[0].astype(jnp.float32)                         # (th, C)
    s_ref[0] += jnp.sum(y, axis=0, keepdims=True)            # (1, C)
    q_ref[0] += jnp.sum(y * y, axis=0, keepdims=True)


def _in_apply_kernel(*refs, eps, inv_hw, relu, has_res):
    if has_res:
        y_ref, s_ref, q_ref, g_ref, b_ref, r_ref, o_ref = refs
    else:
        y_ref, s_ref, q_ref, g_ref, b_ref, o_ref = refs
    y = y_ref[0].astype(jnp.float32)                         # (th, C)
    mean = s_ref[0] * inv_hw                                 # (1, C)
    var = q_ref[0] * inv_hw - mean * mean
    out = (y - mean) * lax.rsqrt(var + eps) * g_ref[...] + b_ref[...]
    if has_res:
        out = out + r_ref[0].astype(jnp.float32)
    if relu:
        out = jnp.maximum(out, 0.0)
    o_ref[0] = out.astype(o_ref.dtype)


def _pick_hw_tile(hw, cap=2048):
    if hw <= cap:
        return hw
    for t in (2048, 1024, 512, 256, 128, 64, 32, 16, 8):
        if hw % t == 0:
            return t
    return hw


def instance_norm(y_nhwc, gamma, beta, *, relu, residual=None, eps=1e-5,
                  out_dtype=jnp.bfloat16):
    # TODO(synk): track_running_stats=True running-mean/var buffer updates are a
    # training-time side effect only; normalization uses per-instance statistics
    # (PyTorch training-mode behaviour), which is what the forward output uses.
    B, H, W, C = y_nhwc.shape
    HW = H * W
    th = _pick_hw_tile(HW)
    nt = HW // th
    y = y_nhwc.reshape(B, HW, C)

    s, q = pl.pallas_call(
        _in_stats_kernel,
        out_shape=(jax.ShapeDtypeStruct((B, 1, C), jnp.float32),
                   jax.ShapeDtypeStruct((B, 1, C), jnp.float32)),
        grid_spec=pltpu.PrefetchScalarGridSpec(
            num_scalar_prefetch=0,
            grid=(B, nt),
            in_specs=[pl.BlockSpec((1, th, C), lambda b, t: (b, t, 0))],
            out_specs=(pl.BlockSpec((1, 1, C), lambda b, t: (b, 0, 0)),
                       pl.BlockSpec((1, 1, C), lambda b, t: (b, 0, 0))),
        ),
        compiler_params=pltpu.CompilerParams(
            dimension_semantics=("parallel", "arbitrary")),
    )(y)

    has_res = residual is not None
    args = [y, s, q, gamma, beta]
    in_specs = [
        pl.BlockSpec((1, th, C), lambda b, t: (b, t, 0)),
        pl.BlockSpec((1, 1, C), lambda b, t: (b, 0, 0)),
        pl.BlockSpec((1, 1, C), lambda b, t: (b, 0, 0)),
        pl.BlockSpec((1, C), lambda b, t: (0, 0)),
        pl.BlockSpec((1, C), lambda b, t: (0, 0)),
    ]
    if has_res:
        args.append(residual.reshape(B, HW, C))
        in_specs.append(pl.BlockSpec((1, th, C), lambda b, t: (b, t, 0)))

    out = pl.pallas_call(
        functools.partial(_in_apply_kernel, eps=eps, inv_hw=1.0 / HW,
                          relu=relu, has_res=has_res),
        out_shape=jax.ShapeDtypeStruct((B, HW, C), out_dtype),
        grid_spec=pltpu.PrefetchScalarGridSpec(
            num_scalar_prefetch=0,
            grid=(B, nt),
            in_specs=in_specs,
            out_specs=pl.BlockSpec((1, th, C), lambda b, t: (b, t, 0)),
        ),
        compiler_params=pltpu.CompilerParams(
            dimension_semantics=("parallel", "parallel")),
    )(*args)
    return out.reshape(B, H, W, C)


# --------------------------------------------------------------------------
# Glue: im2col patch extraction (pure data rearrangement, bf16)
# --------------------------------------------------------------------------
def _pad_pairs(pad):
    if isinstance(pad, int):
        return (pad, pad), (pad, pad)
    return tuple(pad[0]), tuple(pad[1])


def im2col(x_nhwc, kh, kw, stride, pad_h, pad_w):
    B, H, W, C = x_nhwc.shape
    xp = jnp.pad(x_nhwc, ((0, 0), pad_h, pad_w, (0, 0)))
    Hp = H + pad_h[0] + pad_h[1]
    Wp = W + pad_w[0] + pad_w[1]
    OH = (Hp - kh) // stride + 1
    OW = (Wp - kw) // stride + 1
    cols = []
    for dy in range(kh):                      # patch feature order: (dy, dx, cin)
        for dx in range(kw):
            sl = xp[:, dy:dy + (OH - 1) * stride + 1:stride,
                       dx:dx + (OW - 1) * stride + 1:stride, :]
            cols.append(sl)
    patches = jnp.concatenate(cols, axis=-1)                 # (B, OH, OW, kh*kw*C)
    return patches.reshape(B * OH * OW, kh * kw * C), (B, OH, OW)


def conv2d(x_nhwc, pw, *, stride, pad, activation=None, out_dtype=jnp.bfloat16):
    """Bias-free conv, NHWC in/out.  pw is a prepared-weight dict."""
    kh, kw = pw["k"]
    pad_h, pad_w = _pad_pairs(pad)
    patches, (B, OH, OW) = im2col(x_nhwc.astype(jnp.bfloat16),
                                  kh, kw, stride, pad_h, pad_w)
    y = matmul_fused(patches, pw["w"], activation=activation, out_dtype=out_dtype)
    cout = pw["cout"]
    if y.shape[1] != cout:
        y = y[:, :cout]
    return y.reshape(B, OH, OW, cout)


def conv_transpose2d(x_nhwc, pw_phases, *, out_dtype=jnp.bfloat16):
    """ConvTranspose2d(k=4, s=2, p=1) via the stride^2 sub-pixel decomposition:
    4 phase convolutions with 2x2 effective kernels interleaved into the output
    (no zero-dilated input, no wasted MACs)."""
    B, H, W, _ = x_nhwc.shape
    cout = pw_phases[0][0]["cout"]
    out = jnp.zeros((B, 2 * H, 2 * W, cout), out_dtype)
    for a in (0, 1):
        for b in (0, 1):
            ph = conv2d(x_nhwc, pw_phases[a][b], stride=1,
                        pad=((1 - a, a), (1 - b, b)), out_dtype=out_dtype)
            out = out.at[:, a::2, b::2, :].set(ph)
    return out


# --------------------------------------------------------------------------
# Parameters (deterministic synthetic init mirroring the nn.Module structure)
# --------------------------------------------------------------------------
def _conv_in_block(key, k, cin, cout, scale=0.05):
    wk, gk, bk = jax.random.split(key, 3)
    return {
        "w": jax.random.normal(wk, (k, k, cin, cout), jnp.float32) * scale,
        "gamma": 1.0 + 0.1 * jax.random.normal(gk, (1, cout), jnp.float32),
        "beta": 0.1 * jax.random.normal(bk, (1, cout), jnp.float32),
    }


def init_generator_params(key, conv_dim, c_dim, repeat_num):
    keys = iter(jax.random.split(key, 4 + 2 + 2 * repeat_num + 2 + 1))
    params = {}
    params["conv_in"] = _conv_in_block(next(keys), 7, 6 + c_dim, conv_dim)
    curr = conv_dim
    params["down"] = []
    for _ in range(2):
        params["down"].append(_conv_in_block(next(keys), 4, curr, curr * 2))
        curr *= 2
    params["res"] = []
    for _ in range(repeat_num):
        params["res"].append({
            "c1": _conv_in_block(next(keys), 3, curr, curr),
            "c2": _conv_in_block(next(keys), 3, curr, curr),
        })
    params["up"] = []
    for _ in range(2):
        # NOTE: ConvTranspose weights are stored in the equivalent-conv HWIO
        # layout (synthetic init); real PyTorch weights would need a spatial
        # flip + I/O transpose first.
        params["up"].append(_conv_in_block(next(keys), 4, curr, curr // 2))
        curr //= 2
    params["conv_out_w"] = (
        jax.random.normal(next(keys), (5, 5, curr, 3), jnp.float32) * 0.05)
    return params


def _prep_conv_w(w_hwio):
    kh, kw, cin, cout = w_hwio.shape
    npad = _round_up(cout, 128)
    wm = w_hwio.astype(jnp.bfloat16).reshape(kh * kw * cin, cout)
    wm = jnp.pad(wm, ((0, 0), (0, npad - cout)))
    return {"w": wm, "k": (kh, kw), "cout": cout}


def prepare_params(params):
    """One-time weight prep: bf16 cast, (K, Np) reshape, N padded to 128, and
    sub-pixel phase decomposition for the transposed convolutions."""
    def prep_block(p):
        return {"w": _prep_conv_w(p["w"]), "gamma": p["gamma"], "beta": p["beta"]}

    prep = {
        "conv_in": prep_block(params["conv_in"]),
        "down": [prep_block(p) for p in params["down"]],
        "res": [{"c1": prep_block(b["c1"]), "c2": prep_block(b["c2"])}
                for b in params["res"]],
        "up": [],
    }
    for p in params["up"]:
        w = p["w"]
        phases = [[_prep_conv_w(w[a::2, b::2]) for b in (0, 1)] for a in (0, 1)]
        prep["up"].append({"phases": phases, "gamma": p["gamma"], "beta": p["beta"]})
    prep["conv_out"] = _prep_conv_w(params["conv_out_w"])
    return prep


# --------------------------------------------------------------------------
# Forward pass (semantics of Generator.forward)
# --------------------------------------------------------------------------
def generator_forward(prep, x_nchw, c_vec, ld_hwc):
    B, _, H, W = x_nchw.shape
    c_dim = c_vec.shape[1]
    c_map = jnp.broadcast_to(c_vec[:, :, None, None], (B, c_dim, H, W))
    ld_map = jnp.broadcast_to(
        jnp.transpose(ld_hwc, (2, 0, 1))[None], (B, ld_hwc.shape[2], H, W))
    h = jnp.concatenate([x_nchw, c_map, ld_map], axis=1)      # (B, 6+c_dim, H, W)
    h = jnp.transpose(h, (0, 2, 3, 1)).astype(jnp.bfloat16)   # NHWC, bf16 once

    p = prep["conv_in"]                                       # 7x7, s1, p3
    h = conv2d(h, p["w"], stride=1, pad=3)
    h = instance_norm(h, p["gamma"], p["beta"], relu=True)

    for p in prep["down"]:                                    # 4x4, s2, p1
        h = conv2d(h, p["w"], stride=2, pad=1)
        h = instance_norm(h, p["gamma"], p["beta"], relu=True)

    for blk in prep["res"]:                                   # residual blocks
        r = conv2d(h, blk["c1"]["w"], stride=1, pad=1)
        r = instance_norm(r, blk["c1"]["gamma"], blk["c1"]["beta"], relu=True)
        r = conv2d(r, blk["c2"]["w"], stride=1, pad=1)
        h = instance_norm(r, blk["c2"]["gamma"], blk["c2"]["beta"],
                          relu=False, residual=h)             # x + main(x)

    for p in prep["up"]:                                      # sub-pixel deconv
        h = conv_transpose2d(h, p["phases"])
        h = instance_norm(h, p["gamma"], p["beta"], relu=True)

    # final 5x5 conv, tanh fused into the matmul epilogue, f32 output
    h = conv2d(h, prep["conv_out"], stride=1, pad=2,
               activation="tanh", out_dtype=jnp.float32)
    return jnp.transpose(h, (0, 3, 1, 2))                     # back to NCHW


# --------------------------------------------------------------------------
# Pure-JAX reference (same bf16 rounding points as the kernel path)
# --------------------------------------------------------------------------
def _ref_conv(x, w, stride, pad, lhs_dilation=(1, 1)):
    return lax.conv_general_dilated(
        x.astype(jnp.bfloat16), w.astype(jnp.bfloat16),
        (stride, stride), [(pad, pad), (pad, pad)],
        lhs_dilation=lhs_dilation,
        dimension_numbers=("NHWC", "HWIO", "NHWC"),
        preferred_element_type=jnp.float32)


def _ref_instnorm(y_f32, gamma, beta, *, relu, residual=None, eps=1e-5):
    y = y_f32.astype(jnp.bfloat16).astype(jnp.float32)   # match bf16 conv writeback
    mean = jnp.mean(y, axis=(1, 2), keepdims=True)
    var = jnp.mean(jnp.square(y - mean), axis=(1, 2), keepdims=True)
    out = (y - mean) * lax.rsqrt(var + eps)
    out = out * gamma.reshape(1, 1, 1, -1) + beta.reshape(1, 1, 1, -1)
    if residual is not None:
        out = out + residual.astype(jnp.float32)
    if relu:
        out = jnp.maximum(out, 0.0)
    return out.astype(jnp.bfloat16)                      # match bf16 IN writeback


def generator_ref(params, x_nchw, c_vec, ld_hwc):
    B, _, H, W = x_nchw.shape
    c_dim = c_vec.shape[1]
    c_map = jnp.broadcast_to(c_vec[:, :, None, None], (B, c_dim, H, W))
    ld_map = jnp.broadcast_to(
        jnp.transpose(ld_hwc, (2, 0, 1))[None], (B, ld_hwc.shape[2], H, W))
    h = jnp.concatenate([x_nchw, c_map, ld_map], axis=1)
    h = jnp.transpose(h, (0, 2, 3, 1)).astype(jnp.bfloat16)

    p = params["conv_in"]
    h = _ref_instnorm(_ref_conv(h, p["w"], 1, 3), p["gamma"], p["beta"], relu=True)
    for p in params["down"]:
        h = _ref_instnorm(_ref_conv(h, p["w"], 2, 1), p["gamma"], p["beta"], relu=True)
    for blk in params["res"]:
        r = _ref_instnorm(_ref_conv(h, blk["c1"]["w"], 1, 1),
                          blk["c1"]["gamma"], blk["c1"]["beta"], relu=True)
        h = _ref_instnorm(_ref_conv(r, blk["c2"]["w"], 1, 1),
                          blk["c2"]["gamma"], blk["c2"]["beta"],
                          relu=False, residual=h)
    for p in params["up"]:
        h = _ref_instnorm(_ref_conv(h, p["w"], 1, 2, lhs_dilation=(2, 2)),
                          p["gamma"], p["beta"], relu=True)
    h = jnp.tanh(_ref_conv(h, params["conv_out_w"], 1, 2))
    return jnp.transpose(h, (0, 3, 1, 2))


if __name__ == "__main__":
    # Small, self-consistent config: image 16x16, conv_dim=8, c_dim=5, repeat_num=2
    image_size, conv_dim, c_dim, repeat_num = 16, 8, 5, 2
    key = jax.random.PRNGKey(0)
    pkey, xkey, ckey, ldkey = jax.random.split(key, 4)
    params = init_generator_params(pkey, conv_dim, c_dim, repeat_num)
    prep = prepare_params(params)

    B = 2
    x = jax.random.normal(xkey, (B, 3, image_size, image_size), jnp.float32)
    c = jax.random.uniform(ckey, (B, c_dim), jnp.float32)
    ld = jax.random.normal(ldkey, (image_size, image_size, 3), jnp.float32)

    fwd = jax.jit(functools.partial(generator_forward, prep))
    out = fwd(x, c, ld)
    jax.block_until_ready(out)

    # Shape contract of the PyTorch Generator
    assert out.shape == (B, 3, image_size, image_size), out.shape

    # Numerical check against the pure-JAX reference (bf16 intermediates in both)
    ref = generator_ref(params, x, c, ld)
    np.testing.assert_allclose(np.asarray(out, dtype=np.float32),
                               np.asarray(ref, dtype=np.float32),
                               rtol=3e-2, atol=3e-2)

    print("KERNEL_OK")
</pallas_src>

<mosaic_0001>
module attributes {stable_mosaic.version = 11 : i64} {
  func.func @_mm_kernel(%arg0: i32, %arg1: i32, %arg2: memref<512x539xbf16, #tpu.memory_space<vmem>>, %arg3: memref<539x128xbf16, #tpu.memory_space<vmem>>, %arg4: memref<512x128xbf16, #tpu.memory_space<vmem>>, %arg5: memref<512x128xf32, #tpu.memory_space<vmem>>) attributes {dimension_semantics = [#tpu.dimension_semantics<parallel>, #tpu.dimension_semantics<arbitrary>], iteration_bounds = array<i64: 1, 1>, scalar_prefetch = 0 : i64, scratch_operands = 1 : i64, tpu.core_type = #tpu.core_type<tc>, window_params = [{transform_indices = @transform_0, window_bounds = array<i64: 512, 539>}, {transform_indices = @transform_1, window_bounds = array<i64: 539, 128>}, {transform_indices = @transform_2, window_bounds = array<i64: 512, 128>}]} {
    %c0_i32 = arith.constant 0 : i32
    %0 = arith.cmpi eq, %arg1, %c0_i32 : i32
    %1 = arith.extui %0 : i1 to i32
    %c0_i32_0 = arith.constant 0 : i32
    %2 = arith.cmpi ne, %1, %c0_i32_0 : i32
    scf.if %2 {
      %cst_10 = arith.constant 0.000000e+00 : f32
      %12 = vector.broadcast %cst_10 : f32 to vector<512x128xf32>
      %c0_11 = arith.constant 0 : index
      %c0_12 = arith.constant 0 : index
      %13 = vector.load %arg5[%c0_11, %c0_12] : memref<512x128xf32, #tpu.memory_space<vmem>>, vector<512x128xf32>
      tpu.vector_store %arg5[%c0_11, %c0_12], %12 {strides = array<i32>} : memref<512x128xf32, #tpu.memory_space<vmem>>, vector<512x128xf32>,
    } else {
    }
    %c0 = arith.constant 0 : index
    %c0_1 = arith.constant 0 : index
    %3 = vector.load %arg5[%c0, %c0_1] : memref<512x128xf32, #tpu.memory_space<vmem>>, vector<512x128xf32>
    %c0_2 = arith.constant 0 : index
    %c0_3 = arith.constant 0 : index
    %4 = vector.load %arg2[%c0_2, %c0_3] : memref<512x539xbf16, #tpu.memory_space<vmem>>, vector<512x539xbf16>
    %c0_4 = arith.constant 0 : index
    %c0_5 = arith.constant 0 : index
    %5 = vector.load %arg3[%c0_4, %c0_5] : memref<539x128xbf16, #tpu.memory_space<vmem>>, vector<539x128xbf16>
    %cst = arith.constant dense<0.000000e+00> : vector<512x128xf32>
    %6 = tpu.matmul %4, %5, %cst {dimension_numbers = #tpu.dot_dimension_numbers<[1], [0], [0], [1], [0, 0, 1, 1], [], []>} : vector<512x539xbf16>, vector<539x128xbf16>, vector<512x128xf32> -> vector<512x128xf32>
    %7 = arith.addf %3, %6 : vector<512x128xf32>
    %c0_6 = arith.constant 0 : index
    %c0_7 = arith.constant 0 : index
    %8 = vector.load %arg5[%c0_6, %c0_7] : memref<512x128xf32, #tpu.memory_space<vmem>>, vector<512x128xf32>
    tpu.vector_store %arg5[%c0_6, %c0_7], %7 {strides = array<i32>} : memref<512x128xf32, #tpu.memory_space<vmem>>, vector<512x128xf32>,
    %c0_i32_8 = arith.constant 0 : i32
    %9 = arith.cmpi eq, %arg1, %c0_i32_8 : i32
    %10 = arith.extui %9 : i1 to i32
    %c0_i32_9 = arith.constant 0 : i32
    %11 = arith.cmpi ne, %10, %c0_i32_9 : i32
    scf.if %11 {
      %c0_10 = arith.constant 0 : index
      %c0_11 = arith.constant 0 : index
      %12 = vector.load %arg5[%c0_10, %c0_11] : memref<512x128xf32, #tpu.memory_space<vmem>>, vector<512x128xf32>
      %13 = arith.truncf %12 : vector<512x128xf32> to vector<512x128xbf16>
      %c0_12 = arith.constant 0 : index
      %c0_13 = arith.constant 0 : index
      %14 = vector.load %arg4[%c0_12, %c0_13] : memref<512x128xbf16, #tpu.memory_space<vmem>>, vector<512x128xbf16>
      tpu.vector_store %arg4[%c0_12, %c0_13], %13 {strides = array<i32>} : memref<512x128xbf16, #tpu.memory_space<vmem>>, vector<512x128xbf16>,
    } else {
    }
    return
  }
  func.func @transform_0(%arg0: i32, %arg1: i32) -> (i32, i32) {
    %c0_i32 = arith.constant 0 : i32
    return %arg0, %arg1 : i32, i32
  }
  func.func @transform_1(%arg0: i32, %arg1: i32) -> (i32, i32) {
    %c0_i32 = arith.constant 0 : i32
    %c0_i32_0 = arith.constant 0 : i32
    return %arg1, %c0_i32 : i32, i32
  }
  func.func @transform_2(%arg0: i32, %arg1: i32) -> (i32, i32) {
    %c0_i32 = arith.constant 0 : i32
    %c0_i32_0 = arith.constant 0 : i32
    return %arg0, %c0_i32 : i32, i32
  }
}

module attributes {stable_mosaic.version = 11 : i64} {
  func.func @_in_stats_kernel(%arg0: i32, %arg1: i32, %arg2: memref<1x256x8xbf16, #tpu.memory_space<vmem>>, %arg3: memref<1x1x8xf32, #tpu.memory_space<vmem>>, %arg4: memref<1x1x8xf32, #tpu.memory_space<vmem>>) attributes {dimension_semantics = [#tpu.dimension_semantics<parallel>, #tpu.dimension_semantics<arbitrary>], iteration_bounds = array<i64: 2, 1>, scalar_prefetch = 0 : i64, scratch_operands = 0 : i64, tpu.core_type = #tpu.core_type<tc>, window_params = [{transform_indices = @transform_0, window_bounds = array<i64: 1, 256, 8>}, {transform_indices = @transform_1, window_bounds = array<i64: 1, 1, 8>}, {transform_indices = @transform_2, window_bounds = array<i64: 1, 1, 8>}]} {
    %c0_i32 = arith.constant 0 : i32
    %0 = arith.cmpi eq, %arg1, %c0_i32 : i32
    %1 = arith.extui %0 : i1 to i32
    %c0_i32_0 = arith.constant 0 : i32
    %2 = arith.cmpi ne, %1, %c0_i32_0 : i32
    scf.if %2 {
      %cst_16 = arith.constant 0.000000e+00 : f32
      %23 = vector.broadcast %cst_16 : f32 to vector<1x1x8xf32>
      %c0_17 = arith.constant 0 : index
      %c0_18 = arith.constant 0 : index
      %c0_19 = arith.constant 0 : index
      %24 = vector.load %arg3[%c0_17, %c0_18, %c0_19] : memref<1x1x8xf32, #tpu.memory_space<vmem>>, vector<1x1x8xf32>
      tpu.vector_store %arg3[%c0_17, %c0_18, %c0_19], %23 {strides = array<i32>} : memref<1x1x8xf32, #tpu.memory_space<vmem>>, vector<1x1x8xf32>,
      %cst_20 = arith.constant 0.000000e+00 : f32
      %25 = vector.broadcast %cst_20 : f32 to vector<1x1x8xf32>
      %c0_21 = arith.constant 0 : index
      %c0_22 = arith.constant 0 : index
      %c0_23 = arith.constant 0 : index
      %26 = vector.load %arg4[%c0_21, %c0_22, %c0_23] : memref<1x1x8xf32, #tpu.memory_space<vmem>>, vector<1x1x8xf32>
      tpu.vector_store %arg4[%c0_21, %c0_22, %c0_23], %25 {strides = array<i32>} : memref<1x1x8xf32, #tpu.memory_space<vmem>>, vector<1x1x8xf32>,
    } else {
    }
    %c0 = arith.constant 0 : index
    %c0_1 = arith.constant 0 : index
    %c0_2 = arith.constant 0 : index
    %3 = vector.load %arg2[%c0, %c0_1, %c0_2] : memref<1x256x8xbf16, #tpu.memory_space<vmem>>, vector<1x256x8xbf16>
    %4 = vector.shape_cast %3 : vector<1x256x8xbf16> to vector<256x8xbf16>
    %5 = arith.extf %4 : vector<256x8xbf16> to vector<256x8xf32>
    %c0_3 = arith.constant 0 : index
    %c0_4 = arith.constant 0 : index
    %c0_5 = arith.constant 0 : index
    %6 = vector.load %arg3[%c0_3, %c0_4, %c0_5] : memref<1x1x8xf32, #tpu.memory_space<vmem>>, vector<1x1x8xf32>
    %7 = vector.shape_cast %6 : vector<1x1x8xf32> to vector<1x8xf32>
    %cst = arith.constant dense<0.000000e+00> : vector<8xf32>
    %8 = vector.multi_reduction <add>, %5, %cst [0] : vector<256x8xf32> to vector<8xf32>
    %9 = vector.shape_cast %8 : vector<8xf32> to vector<1x8xf32>
    %10 = arith.addf %7, %9 : vector<1x8xf32>
    %c0_6 = arith.constant 0 : index
    %c0_7 = arith.constant 0 : index
    %c0_8 = arith.constant 0 : index
    %11 = vector.load %arg3[%c0_6, %c0_7, %c0_8] : memref<1x1x8xf32, #tpu.memory_space<vmem>>, vector<1x1x8xf32>
    %12 = vector.shape_cast %11 : vector<1x1x8xf32> to vector<1x8xf32>
    %13 = vector.shape_cast %10 : vector<1x8xf32> to vector<1x1x8xf32>
    tpu.vector_store %arg3[%c0_6, %c0_7, %c0_8], %13 {strides = array<i32>} : memref<1x1x8xf32, #tpu.memory_space<vmem>>, vector<1x1x8xf32>,
    %c0_9 = arith.constant 0 : index
    %c0_10 = arith.constant 0 : index
    %c0_11 = arith.constant 0 : index
    %14 = vector.load %arg4[%c0_9, %c0_10, %c0_11] : memref<1x1x8xf32, #tpu.memory_space<vmem>>, vector<1x1x8xf32>
    %15 = vector.shape_cast %14 : vector<1x1x8xf32> to vector<1x8xf32>
    %16 = arith.mulf %5, %5 : vector<256x8xf32>
    %cst_12 = arith.constant dense<0.000000e+00> : vector<8xf32>
    %17 = vector.multi_reduction <add>, %16, %cst_12 [0] : vector<256x8xf32> to vector<8xf32>
    %18 = vector.shape_cast %17 : vector<8xf32> to vector<1x8xf32>
    %19 = arith.addf %15, %18 : vector<1x8xf32>
    %c0_13 = arith.constant 0 : index
    %c0_14 = arith.constant 0 : index
    %c0_15 = arith.constant 0 : index
    %20 = vector.load %arg4[%c0_13, %c0_14, %c0_15] : memref<1x1x8xf32, #tpu.memory_space<vmem>>, vector<1x1x8xf32>
    %21 = vector.shape_cast %20 : vector<1x1x8xf32> to vector<1x8xf32>
    %22 = vector.shape_cast %19 : vector<1x8xf32> to vector<1x1x8xf32>
    tpu.vector_store %arg4[%c0_13, %c0_14, %c0_15], %22 {strides = array<i32>} : memref<1x1x8xf32, #tpu.memory_space<vmem>>, vector<1x1x8xf32>,
    return
  }
  func.func @transform_0(%arg0: i32, %arg1: i32) -> (i32, i32, i32) {
    %c0_i32 = arith.constant 0 : i32
    %c0_i32_0 = arith.constant 0 : i32
    return %arg0, %arg1, %c0_i32 : i32, i32, i32
  }
  func.func @transform_1(%arg0: i32, %arg1: i32) -> (i32, i32, i32) {
    %c0_i32 = arith.constant 0 : i32
    %c0_i32_0 = arith.constant 0 : i32
    %c0_i32_1 = arith.constant 0 : i32
    return %arg0, %c0_i32, %c0_i32_0 : i32, i32, i32
  }
  func.func @transform_2(%arg0: i32, %arg1: i32) -> (i32, i32, i32) {
    %c0_i32 = arith.constant 0 : i32
    %c0_i32_0 = arith.constant 0 : i32
    %c0_i32_1 = arith.constant 0 : i32
    return %arg0, %c0_i32, %c0_i32_0 : i32, i32, i32
  }
}

module attributes {stable_mosaic.version = 11 : i64} {
  func.func @_in_apply_kernel(%arg0: i32, %arg1: i32, %arg2: memref<1x256x8xbf16, #tpu.memory_space<vmem>>, %arg3: memref<1x1x8xf32, #tpu.memory_space<vmem>>, %arg4: memref<1x1x8xf32, #tpu.memory_space<vmem>>, %arg5: memref<1x8xf32, #tpu.memory_space<vmem>>, %arg6: memref<1x8xf32, #tpu.memory_space<vmem>>, %arg7: memref<1x256x8xbf16, #tpu.memory_space<vmem>>) attributes {dimension_semantics = [#tpu.dimension_semantics<parallel>, #tpu.dimension_semantics<parallel>], iteration_bounds = array<i64: 2, 1>, scalar_prefetch = 0 : i64, scratch_operands = 0 : i64, tpu.core_type = #tpu.core_type<tc>, window_params = [{transform_indices = @transform_0, window_bounds = array<i64: 1, 256, 8>}, {transform_indices = @transform_1, window_bounds = array<i64: 1, 1, 8>}, {transform_indices = @transform_2, window_bounds = array<i64: 1, 1, 8>}, {pipeline_mode = #tpu.pipeline_mode<synchronous>, transform_indices = @transform_3, window_bounds = array<i64: 1, 8>}, {pipeline_mode = #tpu.pipeline_mode<synchronous>, transform_indices = @transform_4, window_bounds = array<i64: 1, 8>}, {transform_indices = @transform_5, window_bounds = array<i64: 1, 256, 8>}]} {
    %c0 = arith.constant 0 : index
    %c0_0 = arith.constant 0 : index
    %c0_1 = arith.constant 0 : index
    %0 = vector.load %arg2[%c0, %c0_0, %c0_1] : memref<1x256x8xbf16, #tpu.memory_space<vmem>>, vector<1x256x8xbf16>
    %1 = vector.shape_cast %0 : vector<1x256x8xbf16> to vector<256x8xbf16>
    %2 = arith.extf %1 : vector<256x8xbf16> to vector<256x8xf32>
    %c0_2 = arith.constant 0 : index
    %c0_3 = arith.constant 0 : index
    %c0_4 = arith.constant 0 : index
    %3 = vector.load %arg3[%c0_2, %c0_3, %c0_4] : memref<1x1x8xf32, #tpu.memory_space<vmem>>, vector<1x1x8xf32>
    %4 = vector.shape_cast %3 : vector<1x1x8xf32> to vector<1x8xf32>
    %cst = arith.constant 3.906250e-03 : f32
    %5 = vector.broadcast %cst : f32 to vector<1x8xf32>
    %6 = arith.mulf %4, %5 : vector<1x8xf32>
    %c0_5 = arith.constant 0 : index
    %c0_6 = arith.constant 0 : index
    %c0_7 = arith.constant 0 : index
    %7 = vector.load %arg4[%c0_5, %c0_6, %c0_7] : memref<1x1x8xf32, #tpu.memory_space<vmem>>, vector<1x1x8xf32>
    %8 = vector.shape_cast %7 : vector<1x1x8xf32> to vector<1x8xf32>
    %cst_8 = arith.constant 3.906250e-03 : f32
    %9 = vector.broadcast %cst_8 : f32 to vector<1x8xf32>
    %10 = arith.mulf %8, %9 : vector<1x8xf32>
    %11 = arith.mulf %6, %6 : vector<1x8xf32>
    %12 = arith.subf %10, %11 : vector<1x8xf32>
    %13 = vector.broadcast %6 : vector<1x8xf32> to vector<256x8xf32>
    %14 = arith.subf %2, %13 : vector<256x8xf32>
    %cst_9 = arith.constant 9.99999974E-6 : f32
    %15 = vector.broadcast %cst_9 : f32 to vector<1x8xf32>
    %16 = arith.addf %12, %15 : vector<1x8xf32>
    %17 = math.rsqrt %16 : vector<1x8xf32>
    %18 = vector.broadcast %17 : vector<1x8xf32> to vector<256x8xf32>
    %19 = arith.mulf %14, %18 : vector<256x8xf32>
    %c0_10 = arith.constant 0 : index
    %c0_11 = arith.constant 0 : index
    %20 = vector.load %arg5[%c0_10, %c0_11] : memref<1x8xf32, #tpu.memory_space<vmem>>, vector<1x8xf32>
    %21 = vector.broadcast %20 : vector<1x8xf32> to vector<256x8xf32>
    %22 = arith.mulf %19, %21 : vector<256x8xf32>
    %c0_12 = arith.constant 0 : index
    %c0_13 = arith.constant 0 : index
    %23 = vector.load %arg6[%c0_12, %c0_13] : memref<1x8xf32, #tpu.memory_space<vmem>>, vector<1x8xf32>
    %24 = vector.broadcast %23 : vector<1x8xf32> to vector<256x8xf32>
    %25 = arith.addf %22, %24 : vector<256x8xf32>
    %cst_14 = arith.constant 0.000000e+00 : f32
    %26 = vector.broadcast %cst_14 : f32 to vector<256x8xf32>
    %27 = arith.maximumf %25, %26 : vector<256x8xf32>
    %28 = arith.truncf %27 : vector<256x8xf32> to vector<256x8xbf16>
    %c0_15 = arith.constant 0 : index
    %c0_16 = arith.constant 0 : index
    %c0_17 = arith.constant 0 : index
    %29 = vector.load %arg7[%c0_15, %c0_16, %c0_17] : memref<1x256x8xbf16, #tpu.memory_space<vmem>>, vector<1x256x8xbf16>
    %30 = vector.shape_cast %29 : vector<1x256x8xbf16> to vector<256x8xbf16>
    %31 = vector.shape_cast %28 : vector<256x8xbf16> to vector<1x256x8xbf16>
    tpu.vector_store %arg7[%c0_15, %c0_16, %c0_17], %31 {strides = array<i32>} : memref<1x256x8xbf16, #tpu.memory_space<vmem>>, vector<1x256x8xbf16>,
    return
  }
  func.func @transform_0(%arg0: i32, %arg1: i32) -> (i32, i32, i32) {
    %c0_i32 = arith.constant 0 : i32
    %c0_i32_0 = arith.constant 0 : i32
    return %arg0, %arg1, %c0_i32 : i32, i32, i32
  }
  func.func @transform_1(%arg0: i32, %arg1: i32) -> (i32, i32, i32) {
    %c0_i32 = arith.constant 0 : i32
    %c0_i32_0 = arith.constant 0 : i32
    %c0_i32_1 = arith.constant 0 : i32
    return %arg0, %c0_i32, %c0_i32_0 : i32, i32, i32
  }
  func.func @transform_2(%arg0: i32, %arg1: i32) -> (i32, i32, i32) {
    %c0_i32 = arith.constant 0 : i32
    %c0_i32_0 = arith.constant 0 : i32
    %c0_i32_1 = arith.constant 0 : i32
    return %arg0, %c0_i32, %c0_i32_0 : i32, i32, i32
  }
  func.func @transform_3(%arg0: i32, %arg1: i32) -> (i32, i32) {
    %c0_i32 = arith.constant 0 : i32
    %c0_i32_0 = arith.constant 0 : i32
    %c0_i32_1 = arith.constant 0 : i32
    return %c0_i32, %c0_i32_0 : i32, i32
  }
  func.func @transform_4(%arg0: i32, %arg1: i32) -> (i32, i32) {
    %c0_i32 = arith.constant 0 : i32
    %c0_i32_0 = arith.constant 0 : i32
    %c0_i32_1 = arith.constant 0 : i32
    return %c0_i32, %c0_i32_0 : i32, i32
  }
  func.func @transform_5(%arg0: i32, %arg1: i32) -> (i32, i32, i32) {
    %c0_i32 = arith.constant 0 : i32
    %c0_i32_0 = arith.constant 0 : i32
    return %arg0, %arg1, %c0_i32 : i32, i32, i32
  }
}

module attributes {stable_mosaic.version = 11 : i64} {
  func.func @_mm_kernel(%arg0: i32, %arg1: i32, %arg2: memref<128x128xbf16, #tpu.memory_space<vmem>>, %arg3: memref<128x128xbf16, #tpu.memory_space<vmem>>, %arg4: memref<128x128xbf16, #tpu.memory_space<vmem>>, %arg5: memref<128x128xf32, #tpu.memory_space<vmem>>) attributes {dimension_semantics = [#tpu.dimension_semantics<parallel>, #tpu.dimension_semantics<arbitrary>], iteration_bounds = array<i64: 1, 1>, scalar_prefetch = 0 : i64, scratch_operands = 1 : i64, tpu.core_type = #tpu.core_type<tc>, window_params = [{transform_indices = @transform_0, window_bounds = array<i64: 128, 128>}, {transform_indices = @transform_1, window_bounds = array<i64: 128, 128>}, {transform_indices = @transform_2, window_bounds = array<i64: 128, 128>}]} {
    %c0_i32 = arith.constant 0 : i32
    %0 = arith.cmpi eq, %arg1, %c0_i32 : i32
    %1 = arith.extui %0 : i1 to i32
    %c0_i32_0 = arith.constant 0 : i32
    %2 = arith.cmpi ne, %1, %c0_i32_0 : i32
    scf.if %2 {
      %cst_10 = arith.constant 0.000000e+00 : f32
      %12 = vector.broadcast %cst_10 : f32 to vector<128x128xf32>
      %c0_11 = arith.constant 0 : index
      %c0_12 = arith.constant 0 : index
      %13 = vector.load %arg5[%c0_11, %c0_12] : memref<128x128xf32, #tpu.memory_space<vmem>>, vector<128x128xf32>
      tpu.vector_store %arg5[%c0_11, %c0_12], %12 {strides = array<i32>} : memref<128x128xf32, #tpu.memory_space<vmem>>, vector<128x128xf32>,
    } else {
    }
    %c0 = arith.constant 0 : index
    %c0_1 = arith.constant 0 : index
    %3 = vector.load %arg5[%c0, %c0_1] : memref<128x128xf32, #tpu.memory_space<vmem>>, vector<128x128xf32>
    %c0_2 = arith.constant 0 : index
    %c0_3 = arith.constant 0 : index
    %4 = vector.load %arg2[%c0_2, %c0_3] : memref<128x128xbf16, #tpu.memory_space<vmem>>, vector<128x128xbf16>
    %c0_4 = arith.constant 0 : index
    %c0_5 = arith.constant 0 : index
    %5 = vector.load %arg3[%c0_4, %c0_5] : memref<128x128xbf16, #tpu.memory_space<vmem>>, vector<128x128xbf16>
    %cst = arith.constant dense<0.000000e+00> : vector<128x128xf32>
    %6 = tpu.matmul %4, %5, %cst {dimension_numbers = #tpu.dot_dimension_numbers<[1], [0], [0], [1], [0, 0, 1, 1], [], []>} : vector<128x128xbf16>, vector<128x128xbf16>, vector<128x128xf32> -> vector<128x128xf32>
    %7 = arith.addf %3, %6 : vector<128x128xf32>
    %c0_6 = arith.constant 0 : index
    %c0_7 = arith.constant 0 : index
    %8 = vector.load %arg5[%c0_6, %c0_7] : memref<128x128xf32, #tpu.memory_space<vmem>>, vector<128x128xf32>
    tpu.vector_store %arg5[%c0_6, %c0_7], %7 {strides = array<i32>} : memref<128x128xf32, #tpu.memory_space<vmem>>, vector<128x128xf32>,
    %c0_i32_8 = arith.constant 0 : i32
    %9 = arith.cmpi eq, %arg1, %c0_i32_8 : i32
    %10 = arith.extui %9 : i1 to i32
    %c0_i32_9 = arith.constant 0 : i32
    %11 = arith.cmpi ne, %10, %c0_i32_9 : i32
    scf.if %11 {
      %c0_10 = arith.constant 0 : index
      %c0_11 = arith.constant 0 : index
      %12 = vector.load %arg5[%c0_10, %c0_11] : memref<128x128xf32, #tpu.memory_space<vmem>>, vector<128x128xf32>
      %13 = arith.truncf %12 : vector<128x128xf32> to vector<128x128xbf16>
      %c0_12 = arith.constant 0 : index
      %c0_13 = arith.constant 0 : index
      %14 = vector.load %arg4[%c0_12, %c0_13] : memref<128x128xbf16, #tpu.memory_space<vmem>>, vector<128x128xbf16>
      tpu.vector_store %arg4[%c0_12, %c0_13], %13 {strides = array<i32>} : memref<128x128xbf16, #tpu.memory_space<vmem>>, vector<128x128xbf16>,
    } else {
    }
    return
  }
  func.func @transform_0(%arg0: i32, %arg1: i32) -> (i32, i32) {
    %c0_i32 = arith.constant 0 : i32
    return %arg0, %arg1 : i32, i32
  }
  func.func @transform_1(%arg0: i32, %arg1: i32) -> (i32, i32) {
    %c0_i32 = arith.constant 0 : i32
    %c0_i32_0 = arith.constant 0 : i32
    return %arg1, %c0_i32 : i32, i32
  }
  func.func @transform_2(%arg0: i32, %arg1: i32) -> (i32, i32) {
    %c0_i32 = arith.constant 0 : i32
    %c0_i32_0 = arith.constant 0 : i32
    return %arg0, %c0_i32 : i32, i32
  }
}

module attributes {stable_mosaic.version = 11 : i64} {
  func.func @_in_stats_kernel(%arg0: i32, %arg1: i32, %arg2: memref<1x64x16xbf16, #tpu.memory_space<vmem>>, %arg3: memref<1x1x16xf32, #tpu.memory_space<vmem>>, %arg4: memref<1x1x16xf32, #tpu.memory_space<vmem>>) attributes {dimension_semantics = [#tpu.dimension_semantics<parallel>, #tpu.dimension_semantics<arbitrary>], iteration_bounds = array<i64: 2, 1>, scalar_prefetch = 0 : i64, scratch_operands = 0 : i64, tpu.core_type = #tpu.core_type<tc>, window_params = [{transform_indices = @transform_0, window_bounds = array<i64: 1, 64, 16>}, {transform_indices = @transform_1, window_bounds = array<i64: 1, 1, 16>}, {transform_indices = @transform_2, window_bounds = array<i64: 1, 1, 16>}]} {
    %c0_i32 = arith.constant 0 : i32
    %0 = arith.cmpi eq, %arg1, %c0_i32 : i32
    %1 = arith.extui %0 : i1 to i32
    %c0_i32_0 = arith.constant 0 : i32
    %2 = arith.cmpi ne, %1, %c0_i32_0 : i32
    scf.if %2 {
      %cst_16 = arith.constant 0.000000e+00 : f32
      %23 = vector.broadcast %cst_16 : f32 to vector<1x1x16xf32>
      %c0_17 = arith.constant 0 : index
      %c0_18 = arith.constant 0 : index
      %c0_19 = arith.constant 0 : index
      %24 = vector.load %arg3[%c0_17, %c0_18, %c0_19] : memref<1x1x16xf32, #tpu.memory_space<vmem>>, vector<1x1x16xf32>
      tpu.vector_store %arg3[%c0_17, %c0_18, %c0_19], %23 {strides = array<i32>} : memref<1x1x16xf32, #tpu.memory_space<vmem>>, vector<1x1x16xf32>,
      %cst_20 = arith.constant 0.000000e+00 : f32
      %25 = vector.broadcast %cst_20 : f32 to vector<1x1x16xf32>
      %c0_21 = arith.constant 0 : index
      %c0_22 = arith.constant 0 : index
      %c0_23 = arith.constant 0 : index
      %26 = vector.load %arg4[%c0_21, %c0_22, %c0_23] : memref<1x1x16xf32, #tpu.memory_space<vmem>>, vector<1x1x16xf32>
      tpu.vector_store %arg4[%c0_21, %c0_22, %c0_23], %25 {strides = array<i32>} : memref<1x1x16xf32, #tpu.memory_space<vmem>>, vector<1x1x16xf32>,
    } else {
    }
    %c0 = arith.constant 0 : index
    %c0_1 = arith.constant 0 : index
    %c0_2 = arith.constant 0 : index
    %3 = vector.load %arg2[%c0, %c0_1, %c0_2] : memref<1x64x16xbf16, #tpu.memory_space<vmem>>, vector<1x64x16xbf16>
    %4 = vector.shape_cast %3 : vector<1x64x16xbf16> to vector<64x16xbf16>
    %5 = arith.extf %4 : vector<64x16xbf16> to vector<64x16xf32>
    %c0_3 = arith.constant 0 : index
    %c0_4 = arith.constant 0 : index
    %c0_5 = arith.constant 0 : index
    %6 = vector.load %arg3[%c0_3, %c0_4, %c0_5] : memref<1x1x16xf32, #tpu.memory_space<vmem>>, vector<1x1x16xf32>
    %7 = vector.shape_cast %6 : vector<1x1x16xf32> to vector<1x16xf32>
    %cst = arith.constant dense<0.000000e+00> : vector<16xf32>
    %8 = vector.multi_reduction <add>, %5, %cst [0] : vector<64x16xf32> to vector<16xf32>
    %9 = vector.shape_cast %8 : vector<16xf32> to vector<1x16xf32>
    %10 = arith.addf %7, %9 : vector<1x16xf32>
    %c0_6 = arith.constant 0 : index
    %c0_7 = arith.constant 0 : index
    %c0_8 = arith.constant 0 : index
    %11 = vector.load %arg3[%c0_6, %c0_7, %c0_8] : memref<1x1x16xf32, #tpu.memory_space<vmem>>, vector<1x1x16xf32>
    %12 = vector.shape_cast %11 : vector<1x1x16xf32> to vector<1x16xf32>
    %13 = vector.shape_cast %10 : vector<1x16xf32> to vector<1x1x16xf32>
    tpu.vector_store %arg3[%c0_6, %c0_7, %c0_8], %13 {strides = array<i32>} : memref<1x1x16xf32, #tpu.memory_space<vmem>>, vector<1x1x16xf32>,
    %c0_9 = arith.constant 0 : index
    %c0_10 = arith.constant 0 : index
    %c0_11 = arith.constant 0 : index
    %14 = vector.load %arg4[%c0_9, %c0_10, %c0_11] : memref<1x1x16xf32, #tpu.memory_space<vmem>>, vector<1x1x16xf32>
    %15 = vector.shape_cast %14 : vector<1x1x16xf32> to vector<1x16xf32>
    %16 = arith.mulf %5, %5 : vector<64x16xf32>
    %cst_12 = arith.constant dense<0.000000e+00> : vector<16xf32>
    %17 = vector.multi_reduction <add>, %16, %cst_12 [0] : vector<64x16xf32> to vector<16xf32>
    %18 = vector.shape_cast %17 : vector<16xf32> to vector<1x16xf32>
    %19 = arith.addf %15, %18 : vector<1x16xf32>
    %c0_13 = arith.constant 0 : index
    %c0_14 = arith.constant 0 : index
    %c0_15 = arith.constant 0 : index
    %20 = vector.load %arg4[%c0_13, %c0_14, %c0_15] : memref<1x1x16xf32, #tpu.memory_space<vmem>>, vector<1x1x16xf32>
    %21 = vector.shape_cast %20 : vector<1x1x16xf32> to vector<1x16xf32>
    %22 = vector.shape_cast %19 : vector<1x16xf32> to vector<1x1x16xf32>
    tpu.vector_store %arg4[%c0_13, %c0_14, %c0_15], %22 {strides = array<i32>} : memref<1x1x16xf32, #tpu.memory_space<vmem>>, vector<1x1x16xf32>,
    return
  }
  func.func @transform_0(%arg0: i32, %arg1: i32) -> (i32, i32, i32) {
    %c0_i32 = arith.constant 0 : i32
    %c0_i32_0 = arith.constant 0 : i32
    return %arg0, %arg1, %c0_i32 : i32, i32, i32
  }
  func.func @transform_1(%arg0: i32, %arg1: i32) -> (i32, i32, i32) {
    %c0_i32 = arith.constant 0 : i32
    %c0_i32_0 = arith.constant 0 : i32
    %c0_i32_1 = arith.constant 0 : i32
    return %arg0, %c0_i32, %c0_i32_0 : i32, i32, i32
  }
  func.func @transform_2(%arg0: i32, %arg1: i32) -> (i32, i32, i32) {
    %c0_i32 = arith.constant 0 : i32
    %c0_i32_0 = arith.constant 0 : i32
    %c0_i32_1 = arith.constant 0 : i32
    return %arg0, %c0_i32, %c0_i32_0 : i32, i32, i32
  }
}

module attributes {stable_mosaic.version = 11 : i64} {
  func.func @_in_apply_kernel(%arg0: i32, %arg1: i32, %arg2: memref<1x64x16xbf16, #tpu.memory_space<vmem>>, %arg3: memref<1x1x16xf32, #tpu.memory_space<vmem>>, %arg4: memref<1x1x16xf32, #tpu.memory_space<vmem>>, %arg5: memref<1x16xf32, #tpu.memory_space<vmem>>, %arg6: memref<1x16xf32, #tpu.memory_space<vmem>>, %arg7: memref<1x64x16xbf16, #tpu.memory_space<vmem>>) attributes {dimension_semantics = [#tpu.dimension_semantics<parallel>, #tpu.dimension_semantics<parallel>], iteration_bounds = array<i64: 2, 1>, scalar_prefetch = 0 : i64, scratch_operands = 0 : i64, tpu.core_type = #tpu.core_type<tc>, window_params = [{transform_indices = @transform_0, window_bounds = array<i64: 1, 64, 16>}, {transform_indices = @transform_1, window_bounds = array<i64: 1, 1, 16>}, {transform_indices = @transform_2, window_bounds = array<i64: 1, 1, 16>}, {pipeline_mode = #tpu.pipeline_mode<synchronous>, transform_indices = @transform_3, window_bounds = array<i64: 1, 16>}, {pipeline_mode = #tpu.pipeline_mode<synchronous>, transform_indices = @transform_4, window_bounds = array<i64: 1, 16>}, {transform_indices = @transform_5, window_bounds = array<i64: 1, 64, 16>}]} {
    %c0 = arith.constant 0 : index
    %c0_0 = arith.constant 0 : index
    %c0_1 = arith.constant 0 : index
    %0 = vector.load %arg2[%c0, %c0_0, %c0_1] : memref<1x64x16xbf16, #tpu.memory_space<vmem>>, vector<1x64x16xbf16>
    %1 = vector.shape_cast %0 : vector<1x64x16xbf16> to vector<64x16xbf16>
    %2 = arith.extf %1 : vector<64x16xbf16> to vector<64x16xf32>
    %c0_2 = arith.constant 0 : index
    %c0_3 = arith.constant 0 : index
    %c0_4 = arith.constant 0 : index
    %3 = vector.load %arg3[%c0_2, %c0_3, %c0_4] : memref<1x1x16xf32, #tpu.memory_space<vmem>>, vector<1x1x16xf32>
    %4 = vector.shape_cast %3 : vector<1x1x16xf32> to vector<1x16xf32>
    %cst = arith.constant 1.562500e-02 : f32
    %5 = vector.broadcast %cst : f32 to vector<1x16xf32>
    %6 = arith.mulf %4, %5 : vector<1x16xf32>
    %c0_5 = arith.constant 0 : index
    %c0_6 = arith.constant 0 : index
    %c0_7 = arith.constant 0 : index
    %7 = vector.load %arg4[%c0_5, %c0_6, %c0_7] : memref<1x1x16xf32, #tpu.memory_space<vmem>>, vector<1x1x16xf32>
    %8 = vector.shape_cast %7 : vector<1x1x16xf32> to vector<1x16xf32>
    %cst_8 = arith.constant 1.562500e-02 : f32
    %9 = vector.broadcast %cst_8 : f32 to vector<1x16xf32>
    %10 = arith.mulf %8, %9 : vector<1x16xf32>
    %11 = arith.mulf %6, %6 : vector<1x16xf32>
    %12 = arith.subf %10, %11 : vector<1x16xf32>
    %13 = vector.broadcast %6 : vector<1x16xf32> to vector<64x16xf32>
    %14 = arith.subf %2, %13 : vector<64x16xf32>
    %cst_9 = arith.constant 9.99999974E-6 : f32
    %15 = vector.broadcast %cst_9 : f32 to vector<1x16xf32>
    %16 = arith.addf %12, %15 : vector<1x16xf32>
    %17 = math.rsqrt %16 : vector<1x16xf32>
    %18 = vector.broadcast %17 : vector<1x16xf32> to vector<64x16xf32>
    %19 = arith.mulf %14, %18 : vector<64x16xf32>
    %c0_10 = arith.constant 0 : index
    %c0_11 = arith.constant 0 : index
    %20 = vector.load %arg5[%c0_10, %c0_11] : memref<1x16xf32, #tpu.memory_space<vmem>>, vector<1x16xf32>
    %21 = vector.broadcast %20 : vector<1x16xf32> to vector<64x16xf32>
    %22 = arith.mulf %19, %21 : vector<64x16xf32>
    %c0_12 = arith.constant 0 : index
    %c0_13 = arith.constant 0 : index
    %23 = vector.load %arg6[%c0_12, %c0_13] : memref<1x16xf32, #tpu.memory_space<vmem>>, vector<1x16xf32>
    %24 = vector.broadcast %23 : vector<1x16xf32> to vector<64x16xf32>
    %25 = arith.addf %22, %24 : vector<64x16xf32>
    %cst_14 = arith.constant 0.000000e+00 : f32
    %26 = vector.broadcast %cst_14 : f32 to vector<64x16xf32>
    %27 = arith.maximumf %25, %26 : vector<64x16xf32>
    %28 = arith.truncf %27 : vector<64x16xf32> to vector<64x16xbf16>
    %c0_15 = arith.constant 0 : index
    %c0_16 = arith.constant 0 : index
    %c0_17 = arith.constant 0 : index
    %29 = vector.load %arg7[%c0_15, %c0_16, %c0_17] : memref<1x64x16xbf16, #tpu.memory_space<vmem>>, vector<1x64x16xbf16>
    %30 = vector.shape_cast %29 : vector<1x64x16xbf16> to vector<64x16xbf16>
    %31 = vector.shape_cast %28 : vector<64x16xbf16> to vector<1x64x16xbf16>
    tpu.vector_store %arg7[%c0_15, %c0_16, %c0_17], %31 {strides = array<i32>} : memref<1x64x16xbf16, #tpu.memory_space<vmem>>, vector<1x64x16xbf16>,
    return
  }
  func.func @transform_0(%arg0: i32, %arg1: i32) -> (i32, i32, i32) {
    %c0_i32 = arith.constant 0 : i32
    %c0_i32_0 = arith.constant 0 : i32
    return %arg0, %arg1, %c0_i32 : i32, i32, i32
  }
  func.func @transform_1(%arg0: i32, %arg1: i32) -> (i32, i32, i32) {
    %c0_i32 = arith.constant 0 : i32
    %c0_i32_0 = arith.constant 0 : i32
    %c0_i32_1 = arith.constant 0 : i32
    return %arg0, %c0_i32, %c0_i32_0 : i32, i32, i32
  }
  func.func @transform_2(%arg0: i32, %arg1: i32) -> (i32, i32, i32) {
    %c0_i32 = arith.constant 0 : i32
    %c0_i32_0 = arith.constant 0 : i32
    %c0_i32_1 = arith.constant 0 : i32
    return %arg0, %c0_i32, %c0_i32_0 : i32, i32, i32
  }
  func.func @transform_3(%arg0: i32, %arg1: i32) -> (i32, i32) {
    %c0_i32 = arith.constant 0 : i32
    %c0_i32_0 = arith.constant 0 : i32
    %c0_i32_1 = arith.constant 0 : i32
    return %c0_i32, %c0_i32_0 : i32, i32
  }
  func.func @transform_4(%arg0: i32, %arg1: i32) -> (i32, i32) {
    %c0_i32 = arith.constant 0 : i32
    %c0_i32_0 = arith.constant 0 : i32
    %c0_i32_1 = arith.constant 0 : i32
    return %c0_i32, %c0_i32_0 : i32, i32
  }
  func.func @transform_5(%arg0: i32, %arg1: i32) -> (i32, i32, i32) {
    %c0_i32 = arith.constant 0 : i32
    %c0_i32_0 = arith.constant 0 : i32
    return %arg0, %arg1, %c0_i32 : i32, i32, i32
  }
}

module attributes {stable_mosaic.version = 11 : i64} {
  func.func @_in_stats_kernel(%arg0: i32, %arg1: i32, %arg2: memref<1x16x32xbf16, #tpu.memory_space<vmem>>, %arg3: memref<1x1x32xf32, #tpu.memory_space<vmem>>, %arg4: memref<1x1x32xf32, #tpu.memory_space<vmem>>) attributes {dimension_semantics = [#tpu.dimension_semantics<parallel>, #tpu.dimension_semantics<arbitrary>], iteration_bounds = array<i64: 2, 1>, scalar_prefetch = 0 : i64, scratch_operands = 0 : i64, tpu.core_type = #tpu.core_type<tc>, window_params = [{transform_indices = @transform_0, window_bounds = array<i64: 1, 16, 32>}, {transform_indices = @transform_1, window_bounds = array<i64: 1, 1, 32>}, {transform_indices = @transform_2, window_bounds = array<i64: 1, 1, 32>}]} {
    %c0_i32 = arith.constant 0 : i32
    %0 = arith.cmpi eq, %arg1, %c0_i32 : i32
    %1 = arith.extui %0 : i1 to i32
    %c0_i32_0 = arith.constant 0 : i32
    %2 = arith.cmpi ne, %1, %c0_i32_0 : i32
    scf.if %2 {
      %cst_16 = arith.constant 0.000000e+00 : f32
      %23 = vector.broadcast %cst_16 : f32 to vector<1x1x32xf32>
      %c0_17 = arith.constant 0 : index
      %c0_18 = arith.constant 0 : index
      %c0_19 = arith.constant 0 : index
      %24 = vector.load %arg3[%c0_17, %c0_18, %c0_19] : memref<1x1x32xf32, #tpu.memory_space<vmem>>, vector<1x1x32xf32>
      tpu.vector_store %arg3[%c0_17, %c0_18, %c0_19], %23 {strides = array<i32>} : memref<1x1x32xf32, #tpu.memory_space<vmem>>, vector<1x1x32xf32>,
      %cst_20 = arith.constant 0.000000e+00 : f32
      %25 = vector.broadcast %cst_20 : f32 to vector<1x1x32xf32>
      %c0_21 = arith.constant 0 : index
      %c0_22 = arith.constant 0 : index
      %c0_23 = arith.constant 0 : index
      %26 = vector.load %arg4[%c0_21, %c0_22, %c0_23] : memref<1x1x32xf32, #tpu.memory_space<vmem>>, vector<1x1x32xf32>
      tpu.vector_store %arg4[%c0_21, %c0_22, %c0_23], %25 {strides = array<i32>} : memref<1x1x32xf32, #tpu.memory_space<vmem>>, vector<1x1x32xf32>,
    } else {
    }
    %c0 = arith.constant 0 : index
    %c0_1 = arith.constant 0 : index
    %c0_2 = arith.constant 0 : index
    %3 = vector.load %arg2[%c0, %c0_1, %c0_2] : memref<1x16x32xbf16, #tpu.memory_space<vmem>>, vector<1x16x32xbf16>
    %4 = vector.shape_cast %3 : vector<1x16x32xbf16> to vector<16x32xbf16>
    %5 = arith.extf %4 : vector<16x32xbf16> to vector<16x32xf32>
    %c0_3 = arith.constant 0 : index
    %c0_4 = arith.constant 0 : index
    %c0_5 = arith.constant 0 : index
    %6 = vector.load %arg3[%c0_3, %c0_4, %c0_5] : memref<1x1x32xf32, #tpu.memory_space<vmem>>, vector<1x1x32xf32>
    %7 = vector.shape_cast %6 : vector<1x1x32xf32> to vector<1x32xf32>
    %cst = arith.constant dense<0.000000e+00> : vector<32xf32>
    %8 = vector.multi_reduction <add>, %5, %cst [0] : vector<16x32xf32> to vector<32xf32>
    %9 = vector.shape_cast %8 : vector<32xf32> to vector<1x32xf32>
    %10 = arith.addf %7, %9 : vector<1x32xf32>
    %c0_6 = arith.constant 0 : index
    %c0_7 = arith.constant 0 : index
    %c0_8 = arith.constant 0 : index
    %11 = vector.load %arg3[%c0_6, %c0_7, %c0_8] : memref<1x1x32xf32, #tpu.memory_space<vmem>>, vector<1x1x32xf32>
    %12 = vector.shape_cast %11 : vector<1x1x32xf32> to vector<1x32xf32>
    %13 = vector.shape_cast %10 : vector<1x32xf32> to vector<1x1x32xf32>
    tpu.vector_store %arg3[%c0_6, %c0_7, %c0_8], %13 {strides = array<i32>} : memref<1x1x32xf32, #tpu.memory_space<vmem>>, vector<1x1x32xf32>,
    %c0_9 = arith.constant 0 : index
    %c0_10 = arith.constant 0 : index
    %c0_11 = arith.constant 0 : index
    %14 = vector.load %arg4[%c0_9, %c0_10, %c0_11] : memref<1x1x32xf32, #tpu.memory_space<vmem>>, vector<1x1x32xf32>
    %15 = vector.shape_cast %14 : vector<1x1x32xf32> to vector<1x32xf32>
    %16 = arith.mulf %5, %5 : vector<16x32xf32>
    %cst_12 = arith.constant dense<0.000000e+00> : vector<32xf32>
    %17 = vector.multi_reduction <add>, %16, %cst_12 [0] : vector<16x32xf32> to vector<32xf32>
    %18 = vector.shape_cast %17 : vector<32xf32> to vector<1x32xf32>
    %19 = arith.addf %15, %18 : vector<1x32xf32>
    %c0_13 = arith.constant 0 : index
    %c0_14 = arith.constant 0 : index
    %c0_15 = arith.constant 0 : index
    %20 = vector.load %arg4[%c0_13, %c0_14, %c0_15] : memref<1x1x32xf32, #tpu.memory_space<vmem>>, vector<1x1x32xf32>
    %21 = vector.shape_cast %20 : vector<1x1x32xf32> to vector<1x32xf32>
    %22 = vector.shape_cast %19 : vector<1x32xf32> to vector<1x1x32xf32>
    tpu.vector_store %arg4[%c0_13, %c0_14, %c0_15], %22 {strides = array<i32>} : memref<1x1x32xf32, #tpu.memory_space<vmem>>, vector<1x1x32xf32>,
    return
  }
  func.func @transform_0(%arg0: i32, %arg1: i32) -> (i32, i32, i32) {
    %c0_i32 = arith.constant 0 : i32
    %c0_i32_0 = arith.constant 0 : i32
    return %arg0, %arg1, %c0_i32 : i32, i32, i32
  }
  func.func @transform_1(%arg0: i32, %arg1: i32) -> (i32, i32, i32) {
    %c0_i32 = arith.constant 0 : i32
    %c0_i32_0 = arith.constant 0 : i32
    %c0_i32_1 = arith.constant 0 : i32
    return %arg0, %c0_i32, %c0_i32_0 : i32, i32, i32
  }
  func.func @transform_2(%arg0: i32, %arg1: i32) -> (i32, i32, i32) {
    %c0_i32 = arith.constant 0 : i32
    %c0_i32_0 = arith.constant 0 : i32
    %c0_i32_1 = arith.constant 0 : i32
    return %arg0, %c0_i32, %c0_i32_0 : i32, i32, i32
  }
}

module attributes {stable_mosaic.version = 11 : i64} {
  func.func @_in_apply_kernel(%arg0: i32, %arg1: i32, %arg2: memref<1x16x32xbf16, #tpu.memory_space<vmem>>, %arg3: memref<1x1x32xf32, #tpu.memory_space<vmem>>, %arg4: memref<1x1x32xf32, #tpu.memory_space<vmem>>, %arg5: memref<1x32xf32, #tpu.memory_space<vmem>>, %arg6: memref<1x32xf32, #tpu.memory_space<vmem>>, %arg7: memref<1x16x32xbf16, #tpu.memory_space<vmem>>) attributes {dimension_semantics = [#tpu.dimension_semantics<parallel>, #tpu.dimension_semantics<parallel>], iteration_bounds = array<i64: 2, 1>, scalar_prefetch = 0 : i64, scratch_operands = 0 : i64, tpu.core_type = #tpu.core_type<tc>, window_params = [{transform_indices = @transform_0, window_bounds = array<i64: 1, 16, 32>}, {transform_indices = @transform_1, window_bounds = array<i64: 1, 1, 32>}, {transform_indices = @transform_2, window_bounds = array<i64: 1, 1, 32>}, {pipeline_mode = #tpu.pipeline_mode<synchronous>, transform_indices = @transform_3, window_bounds = array<i64: 1, 32>}, {pipeline_mode = #tpu.pipeline_mode<synchronous>, transform_indices = @transform_4, window_bounds = array<i64: 1, 32>}, {transform_indices = @transform_5, window_bounds = array<i64: 1, 16, 32>}]} {
    %c0 = arith.constant 0 : index
    %c0_0 = arith.constant 0 : index
    %c0_1 = arith.constant 0 : index
    %0 = vector.load %arg2[%c0, %c0_0, %c0_1] : memref<1x16x32xbf16, #tpu.memory_space<vmem>>, vector<1x16x32xbf16>
    %1 = vector.shape_cast %0 : vector<1x16x32xbf16> to vector<16x32xbf16>
    %2 = arith.extf %1 : vector<16x32xbf16> to vector<16x32xf32>
    %c0_2 = arith.constant 0 : index
    %c0_3 = arith.constant 0 : index
    %c0_4 = arith.constant 0 : index
    %3 = vector.load %arg3[%c0_2, %c0_3, %c0_4] : memref<1x1x32xf32, #tpu.memory_space<vmem>>, vector<1x1x32xf32>
    %4 = vector.shape_cast %3 : vector<1x1x32xf32> to vector<1x32xf32>
    %cst = arith.constant 6.250000e-02 : f32
    %5 = vector.broadcast %cst : f32 to vector<1x32xf32>
    %6 = arith.mulf %4, %5 : vector<1x32xf32>
    %c0_5 = arith.constant 0 : index
    %c0_6 = arith.constant 0 : index
    %c0_7 = arith.constant 0 : index
    %7 = vector.load %arg4[%c0_5, %c0_6, %c0_7] : memref<1x1x32xf32, #tpu.memory_space<vmem>>, vector<1x1x32xf32>
    %8 = vector.shape_cast %7 : vector<1x1x32xf32> to vector<1x32xf32>
    %cst_8 = arith.constant 6.250000e-02 : f32
    %9 = vector.broadcast %cst_8 : f32 to vector<1x32xf32>
    %10 = arith.mulf %8, %9 : vector<1x32xf32>
    %11 = arith.mulf %6, %6 : vector<1x32xf32>
    %12 = arith.subf %10, %11 : vector<1x32xf32>
    %13 = vector.broadcast %6 : vector<1x32xf32> to vector<16x32xf32>
    %14 = arith.subf %2, %13 : vector<16x32xf32>
    %cst_9 = arith.constant 9.99999974E-6 : f32
    %15 = vector.broadcast %cst_9 : f32 to vector<1x32xf32>
    %16 = arith.addf %12, %15 : vector<1x32xf32>
    %17 = math.rsqrt %16 : vector<1x32xf32>
    %18 = vector.broadcast %17 : vector<1x32xf32> to vector<16x32xf32>
    %19 = arith.mulf %14, %18 : vector<16x32xf32>
    %c0_10 = arith.constant 0 : index
    %c0_11 = arith.constant 0 : index
    %20 = vector.load %arg5[%c0_10, %c0_11] : memref<1x32xf32, #tpu.memory_space<vmem>>, vector<1x32xf32>
    %21 = vector.broadcast %20 : vector<1x32xf32> to vector<16x32xf32>
    %22 = arith.mulf %19, %21 : vector<16x32xf32>
    %c0_12 = arith.constant 0 : index
    %c0_13 = arith.constant 0 : index
    %23 = vector.load %arg6[%c0_12, %c0_13] : memref<1x32xf32, #tpu.memory_space<vmem>>, vector<1x32xf32>
    %24 = vector.broadcast %23 : vector<1x32xf32> to vector<16x32xf32>
    %25 = arith.addf %22, %24 : vector<16x32xf32>
    %cst_14 = arith.constant 0.000000e+00 : f32
    %26 = vector.broadcast %cst_14 : f32 to vector<16x32xf32>
    %27 = arith.maximumf %25, %26 : vector<16x32xf32>
    %28 = arith.truncf %27 : vector<16x32xf32> to vector<16x32xbf16>
    %c0_15 = arith.constant 0 : index
    %c0_16 = arith.constant 0 : index
    %c0_17 = arith.constant 0 : index
    %29 = vector.load %arg7[%c0_15, %c0_16, %c0_17] : memref<1x16x32xbf16, #tpu.memory_space<vmem>>, vector<1x16x32xbf16>
    %30 = vector.shape_cast %29 : vector<1x16x32xbf16> to vector<16x32xbf16>
    %31 = vector.shape_cast %28 : vector<16x32xbf16> to vector<1x16x32xbf16>
    tpu.vector_store %arg7[%c0_15, %c0_16, %c0_17], %31 {strides = array<i32>} : memref<1x16x32xbf16, #tpu.memory_space<vmem>>, vector<1x16x32xbf16>,
    return
  }
  func.func @transform_0(%arg0: i32, %arg1: i32) -> (i32, i32, i32) {
    %c0_i32 = arith.constant 0 : i32
    %c0_i32_0 = arith.constant 0 : i32
    return %arg0, %arg1, %c0_i32 : i32, i32, i32
  }
  func.func @transform_1(%arg0: i32, %arg1: i32) -> (i32, i32, i32) {
    %c0_i32 = arith.constant 0 : i32
    %c0_i32_0 = arith.constant 0 : i32
    %c0_i32_1 = arith.constant 0 : i32
    return %arg0, %c0_i32, %c0_i32_0 : i32, i32, i32
  }
  func.func @transform_2(%arg0: i32, %arg1: i32) -> (i32, i32, i32) {
    %c0_i32 = arith.constant 0 : i32
    %c0_i32_0 = arith.constant 0 : i32
    %c0_i32_1 = arith.constant 0 : i32
    return %arg0, %c0_i32, %c0_i32_0 : i32, i32, i32
  }
  func.func @transform_3(%arg0: i32, %arg1: i32) -> (i32, i32) {
    %c0_i32 = arith.constant 0 : i32
    %c0_i32_0 = arith.constant 0 : i32
    %c0_i32_1 = arith.constant 0 : i32
    return %c0_i32, %c0_i32_0 : i32, i32
  }
  func.func @transform_4(%arg0: i32, %arg1: i32) -> (i32, i32) {
    %c0_i32 = arith.constant 0 : i32
    %c0_i32_0 = arith.constant 0 : i32
    %c0_i32_1 = arith.constant 0 : i32
    return %c0_i32, %c0_i32_0 : i32, i32
  }
  func.func @transform_5(%arg0: i32, %arg1: i32) -> (i32, i32, i32) {
    %c0_i32 = arith.constant 0 : i32
    %c0_i32_0 = arith.constant 0 : i32
    return %arg0, %arg1, %c0_i32 : i32, i32, i32
  }
}

module attributes {stable_mosaic.version = 11 : i64} {
  func.func @_mm_kernel(%arg0: i32, %arg1: i32, %arg2: memref<32x256xbf16, #tpu.memory_space<vmem>>, %arg3: memref<256x128xbf16, #tpu.memory_space<vmem>>, %arg4: memref<32x128xbf16, #tpu.memory_space<vmem>>, %arg5: memref<32x128xf32, #tpu.memory_space<vmem>>) attributes {dimension_semantics = [#tpu.dimension_semantics<parallel>, #tpu.dimension_semantics<arbitrary>], iteration_bounds = array<i64: 1, 1>, scalar_prefetch = 0 : i64, scratch_operands = 1 : i64, tpu.core_type = #tpu.core_type<tc>, window_params = [{transform_indices = @transform_0, window_bounds = array<i64: 32, 256>}, {transform_indices = @transform_1, window_bounds = array<i64: 256, 128>}, {transform_indices = @transform_2, window_bounds = array<i64: 32, 128>}]} {
    %c0_i32 = arith.constant 0 : i32
    %0 = arith.cmpi eq, %arg1, %c0_i32 : i32
    %1 = arith.extui %0 : i1 to i32
    %c0_i32_0 = arith.constant 0 : i32
    %2 = arith.cmpi ne, %1, %c0_i32_0 : i32
    scf.if %2 {
      %cst_10 = arith.constant 0.000000e+00 : f32
      %12 = vector.broadcast %cst_10 : f32 to vector<32x128xf32>
      %c0_11 = arith.constant 0 : index
      %c0_12 = arith.constant 0 : index
      %13 = vector.load %arg5[%c0_11, %c0_12] : memref<32x128xf32, #tpu.memory_space<vmem>>, vector<32x128xf32>
      tpu.vector_store %arg5[%c0_11, %c0_12], %12 {strides = array<i32>} : memref<32x128xf32, #tpu.memory_space<vmem>>, vector<32x128xf32>,
    } else {
    }
    %c0 = arith.constant 0 : index
    %c0_1 = arith.constant 0 : index
    %3 = vector.load %arg5[%c0, %c0_1] : memref<32x128xf32, #tpu.memory_space<vmem>>, vector<32x128xf32>
    %c0_2 = arith.constant 0 : index
    %c0_3 = arith.constant 0 : index
    %4 = vector.load %arg2[%c0_2, %c0_3] : memref<32x256xbf16, #tpu.memory_space<vmem>>, vector<32x256xbf16>
    %c0_4 = arith.constant 0 : index
    %c0_5 = arith.constant 0 : index
    %5 = vector.load %arg3[%c0_4, %c0_5] : memref<256x128xbf16, #tpu.memory_space<vmem>>, vector<256x128xbf16>
    %cst = arith.constant dense<0.000000e+00> : vector<32x128xf32>
    %6 = tpu.matmul %4, %5, %cst {dimension_numbers = #tpu.dot_dimension_numbers<[1], [0], [0], [1], [0, 0, 1, 1], [], []>} : vector<32x256xbf16>, vector<256x128xbf16>, vector<32x128xf32> -> vector<32x128xf32>
    %7 = arith.addf %3, %6 : vector<32x128xf32>
    %c0_6 = arith.constant 0 : index
    %c0_7 = arith.constant 0 : index
    %8 = vector.load %arg5[%c0_6, %c0_7] : memref<32x128xf32, #tpu.memory_space<vmem>>, vector<32x128xf32>
    tpu.vector_store %arg5[%c0_6, %c0_7], %7 {strides = array<i32>} : memref<32x128xf32, #tpu.memory_space<vmem>>, vector<32x128xf32>,
    %c0_i32_8 = arith.constant 0 : i32
    %9 = arith.cmpi eq, %arg1, %c0_i32_8 : i32
    %10 = arith.extui %9 : i1 to i32
    %c0_i32_9 = arith.constant 0 : i32
    %11 = arith.cmpi ne, %10, %c0_i32_9 : i32
    scf.if %11 {
      %c0_10 = arith.constant 0 : index
      %c0_11 = arith.constant 0 : index
      %12 = vector.load %arg5[%c0_10, %c0_11] : memref<32x128xf32, #tpu.memory_space<vmem>>, vector<32x128xf32>
      %13 = arith.truncf %12 : vector<32x128xf32> to vector<32x128xbf16>
      %c0_12 = arith.constant 0 : index
      %c0_13 = arith.constant 0 : index
      %14 = vector.load %arg4[%c0_12, %c0_13] : memref<32x128xbf16, #tpu.memory_space<vmem>>, vector<32x128xbf16>
      tpu.vector_store %arg4[%c0_12, %c0_13], %13 {strides = array<i32>} : memref<32x128xbf16, #tpu.memory_space<vmem>>, vector<32x128xbf16>,
    } else {
    }
    return
  }
  func.func @transform_0(%arg0: i32, %arg1: i32) -> (i32, i32) {
    %c0_i32 = arith.constant 0 : i32
    return %arg0, %arg1 : i32, i32
  }
  func.func @transform_1(%arg0: i32, %arg1: i32) -> (i32, i32) {
    %c0_i32 = arith.constant 0 : i32
    %c0_i32_0 = arith.constant 0 : i32
    return %arg1, %c0_i32 : i32, i32
  }
  func.func @transform_2(%arg0: i32, %arg1: i32) -> (i32, i32) {
    %c0_i32 = arith.constant 0 : i32
    %c0_i32_0 = arith.constant 0 : i32
    return %arg0, %c0_i32 : i32, i32
  }
}

module attributes {stable_mosaic.version = 11 : i64} {
  func.func @_mm_kernel(%arg0: i32, %arg1: i32, %arg2: memref<32x288xbf16, #tpu.memory_space<vmem>>, %arg3: memref<288x128xbf16, #tpu.memory_space<vmem>>, %arg4: memref<32x128xbf16, #tpu.memory_space<vmem>>, %arg5: memref<32x128xf32, #tpu.memory_space<vmem>>) attributes {dimension_semantics = [#tpu.dimension_semantics<parallel>, #tpu.dimension_semantics<arbitrary>], iteration_bounds = array<i64: 1, 1>, scalar_prefetch = 0 : i64, scratch_operands = 1 : i64, tpu.core_type = #tpu.core_type<tc>, window_params = [{transform_indices = @transform_0, window_bounds = array<i64: 32, 288>}, {transform_indices = @transform_1, window_bounds = array<i64: 288, 128>}, {transform_indices = @transform_2, window_bounds = array<i64: 32, 128>}]} {
    %c0_i32 = arith.constant 0 : i32
    %0 = arith.cmpi eq, %arg1, %c0_i32 : i32
    %1 = arith.extui %0 : i1 to i32
    %c0_i32_0 = arith.constant 0 : i32
    %2 = arith.cmpi ne, %1, %c0_i32_0 : i32
    scf.if %2 {
      %cst_10 = arith.constant 0.000000e+00 : f32
      %12 = vector.broadcast %cst_10 : f32 to vector<32x128xf32>
      %c0_11 = arith.constant 0 : index
      %c0_12 = arith.constant 0 : index
      %13 = vector.load %arg5[%c0_11, %c0_12] : memref<32x128xf32, #tpu.memory_space<vmem>>, vector<32x128xf32>
      tpu.vector_store %arg5[%c0_11, %c0_12], %12 {strides = array<i32>} : memref<32x128xf32, #tpu.memory_space<vmem>>, vector<32x128xf32>,
    } else {
    }
    %c0 = arith.constant 0 : index
    %c0_1 = arith.constant 0 : index
    %3 = vector.load %arg5[%c0, %c0_1] : memref<32x128xf32, #tpu.memory_space<vmem>>, vector<32x128xf32>
    %c0_2 = arith.constant 0 : index
    %c0_3 = arith.constant 0 : index
    %4 = vector.load %arg2[%c0_2, %c0_3] : memref<32x288xbf16, #tpu.memory_space<vmem>>, vector<32x288xbf16>
    %c0_4 = arith.constant 0 : index
    %c0_5 = arith.constant 0 : index
    %5 = vector.load %arg3[%c0_4, %c0_5] : memref<288x128xbf16, #tpu.memory_space<vmem>>, vector<288x128xbf16>
    %cst = arith.constant dense<0.000000e+00> : vector<32x128xf32>
    %6 = tpu.matmul %4, %5, %cst {dimension_numbers = #tpu.dot_dimension_numbers<[1], [0], [0], [1], [0, 0, 1, 1], [], []>} : vector<32x288xbf16>, vector<288x128xbf16>, vector<32x128xf32> -> vector<32x128xf32>
    %7 = arith.addf %3, %6 : vector<32x128xf32>
    %c0_6 = arith.constant 0 : index
    %c0_7 = arith.constant 0 : index
    %8 = vector.load %arg5[%c0_6, %c0_7] : memref<32x128xf32, #tpu.memory_space<vmem>>, vector<32x128xf32>
    tpu.vector_store %arg5[%c0_6, %c0_7], %7 {strides = array<i32>} : memref<32x128xf32, #tpu.memory_space<vmem>>, vector<32x128xf32>,
    %c0_i32_8 = arith.constant 0 : i32
    %9 = arith.cmpi eq, %arg1, %c0_i32_8 : i32
    %10 = arith.extui %9 : i1 to i32
    %c0_i32_9 = arith.constant 0 : i32
    %11 = arith.cmpi ne, %10, %c0_i32_9 : i32
    scf.if %11 {
      %c0_10 = arith.constant 0 : index
      %c0_11 = arith.constant 0 : index
      %12 = vector.load %arg5[%c0_10, %c0_11] : memref<32x128xf32, #tpu.memory_space<vmem>>, vector<32x128xf32>
      %13 = arith.truncf %12 : vector<32x128xf32> to vector<32x128xbf16>
      %c0_12 = arith.constant 0 : index
      %c0_13 = arith.constant 0 : index
      %14 = vector.load %arg4[%c0_12, %c0_13] : memref<32x128xbf16, #tpu.memory_space<vmem>>, vector<32x128xbf16>
      tpu.vector_store %arg4[%c0_12, %c0_13], %13 {strides = array<i32>} : memref<32x128xbf16, #tpu.memory_space<vmem>>, vector<32x128xbf16>,
    } else {
    }
    return
  }
  func.func @transform_0(%arg0: i32, %arg1: i32) -> (i32, i32) {
    %c0_i32 = arith.constant 0 : i32
    return %arg0, %arg1 : i32, i32
  }
  func.func @transform_1(%arg0: i32, %arg1: i32) -> (i32, i32) {
    %c0_i32 = arith.constant 0 : i32
    %c0_i32_0 = arith.constant 0 : i32
    return %arg1, %c0_i32 : i32, i32
  }
  func.func @transform_2(%arg0: i32, %arg1: i32) -> (i32, i32) {
    %c0_i32 = arith.constant 0 : i32
    %c0_i32_0 = arith.constant 0 : i32
    return %arg0, %c0_i32 : i32, i32
  }
}

module attributes {stable_mosaic.version = 11 : i64} {
  func.func @_in_apply_kernel(%arg0: i32, %arg1: i32, %arg2: memref<1x16x32xbf16, #tpu.memory_space<vmem>>, %arg3: memref<1x1x32xf32, #tpu.memory_space<vmem>>, %arg4: memref<1x1x32xf32, #tpu.memory_space<vmem>>, %arg5: memref<1x32xf32, #tpu.memory_space<vmem>>, %arg6: memref<1x32xf32, #tpu.memory_space<vmem>>, %arg7: memref<1x16x32xbf16, #tpu.memory_space<vmem>>, %arg8: memref<1x16x32xbf16, #tpu.memory_space<vmem>>) attributes {dimension_semantics = [#tpu.dimension_semantics<parallel>, #tpu.dimension_semantics<parallel>], iteration_bounds = array<i64: 2, 1>, scalar_prefetch = 0 : i64, scratch_operands = 0 : i64, tpu.core_type = #tpu.core_type<tc>, window_params = [{transform_indices = @transform_0, window_bounds = array<i64: 1, 16, 32>}, {transform_indices = @transform_1, window_bounds = array<i64: 1, 1, 32>}, {transform_indices = @transform_2, window_bounds = array<i64: 1, 1, 32>}, {pipeline_mode = #tpu.pipeline_mode<synchronous>, transform_indices = @transform_3, window_bounds = array<i64: 1, 32>}, {pipeline_mode = #tpu.pipeline_mode<synchronous>, transform_indices = @transform_4, window_bounds = array<i64: 1, 32>}, {transform_indices = @transform_5, window_bounds = array<i64: 1, 16, 32>}, {transform_indices = @transform_6, window_bounds = array<i64: 1, 16, 32>}]} {
    %c0 = arith.constant 0 : index
    %c0_0 = arith.constant 0 : index
    %c0_1 = arith.constant 0 : index
    %0 = vector.load %arg2[%c0, %c0_0, %c0_1] : memref<1x16x32xbf16, #tpu.memory_space<vmem>>, vector<1x16x32xbf16>
    %1 = vector.shape_cast %0 : vector<1x16x32xbf16> to vector<16x32xbf16>
    %2 = arith.extf %1 : vector<16x32xbf16> to vector<16x32xf32>
    %c0_2 = arith.constant 0 : index
    %c0_3 = arith.constant 0 : index
    %c0_4 = arith.constant 0 : index
    %3 = vector.load %arg3[%c0_2, %c0_3, %c0_4] : memref<1x1x32xf32, #tpu.memory_space<vmem>>, vector<1x1x32xf32>
    %4 = vector.shape_cast %3 : vector<1x1x32xf32> to vector<1x32xf32>
    %cst = arith.constant 6.250000e-02 : f32
    %5 = vector.broadcast %cst : f32 to vector<1x32xf32>
    %6 = arith.mulf %4, %5 : vector<1x32xf32>
    %c0_5 = arith.constant 0 : index
    %c0_6 = arith.constant 0 : index
    %c0_7 = arith.constant 0 : index
    %7 = vector.load %arg4[%c0_5, %c0_6, %c0_7] : memref<1x1x32xf32, #tpu.memory_space<vmem>>, vector<1x1x32xf32>
    %8 = vector.shape_cast %7 : vector<1x1x32xf32> to vector<1x32xf32>
    %cst_8 = arith.constant 6.250000e-02 : f32
    %9 = vector.broadcast %cst_8 : f32 to vector<1x32xf32>
    %10 = arith.mulf %8, %9 : vector<1x32xf32>
    %11 = arith.mulf %6, %6 : vector<1x32xf32>
    %12 = arith.subf %10, %11 : vector<1x32xf32>
    %13 = vector.broadcast %6 : vector<1x32xf32> to vector<16x32xf32>
    %14 = arith.subf %2, %13 : vector<16x32xf32>
    %cst_9 = arith.constant 9.99999974E-6 : f32
    %15 = vector.broadcast %cst_9 : f32 to vector<1x32xf32>
    %16 = arith.addf %12, %15 : vector<1x32xf32>
    %17 = math.rsqrt %16 : vector<1x32xf32>
    %18 = vector.broadcast %17 : vector<1x32xf32> to vector<16x32xf32>
    %19 = arith.mulf %14, %18 : vector<16x32xf32>
    %c0_10 = arith.constant 0 : index
    %c0_11 = arith.constant 0 : index
    %20 = vector.load %arg5[%c0_10, %c0_11] : memref<1x32xf32, #tpu.memory_space<vmem>>, vector<1x32xf32>
    %21 = vector.broadcast %20 : vector<1x32xf32> to vector<16x32xf32>
    %22 = arith.mulf %19, %21 : vector<16x32xf32>
    %c0_12 = arith.constant 0 : index
    %c0_13 = arith.constant 0 : index
    %23 = vector.load %arg6[%c0_12, %c0_13] : memref<1x32xf32, #tpu.memory_space<vmem>>, vector<1x32xf32>
    %24 = vector.broadcast %23 : vector<1x32xf32> to vector<16x32xf32>
    %25 = arith.addf %22, %24 : vector<16x32xf32>
    %c0_14 = arith.constant 0 : index
    %c0_15 = arith.constant 0 : index
    %c0_16 = arith.constant 0 : index
    %26 = vector.load %arg7[%c0_14, %c0_15, %c0_16] : memref<1x16x32xbf16, #tpu.memory_space<vmem>>, vector<1x16x32xbf16>
    %27 = vector.shape_cast %26 : vector<1x16x32xbf16> to vector<16x32xbf16>
    %28 = arith.extf %27 : vector<16x32xbf16> to vector<16x32xf32>
    %29 = arith.addf %25, %28 : vector<16x32xf32>
    %30 = arith.truncf %29 : vector<16x32xf32> to vector<16x32xbf16>
    %c0_17 = arith.constant 0 : index
    %c0_18 = arith.constant 0 : index
    %c0_19 = arith.constant 0 : index
    %31 = vector.load %arg8[%c0_17, %c0_18, %c0_19] : memref<1x16x32xbf16, #tpu.memory_space<vmem>>, vector<1x16x32xbf16>
    %32 = vector.shape_cast %31 : vector<1x16x32xbf16> to vector<16x32xbf16>
    %33 = vector.shape_cast %30 : vector<16x32xbf16> to vector<1x16x32xbf16>
    tpu.vector_store %arg8[%c0_17, %c0_18, %c0_19], %33 {strides = array<i32>} : memref<1x16x32xbf16, #tpu.memory_space<vmem>>, vector<1x16x32xbf16>,
    return
  }
  func.func @transform_0(%arg0: i32, %arg1: i32) -> (i32, i32, i32) {
    %c0_i32 = arith.constant 0 : i32
    %c0_i32_0 = arith.constant 0 : i32
    return %arg0, %arg1, %c0_i32 : i32, i32, i32
  }
  func.func @transform_1(%arg0: i32, %arg1: i32) -> (i32, i32, i32) {
    %c0_i32 = arith.constant 0 : i32
    %c0_i32_0 = arith.constant 0 : i32
    %c0_i32_1 = arith.constant 0 : i32
    return %arg0, %c0_i32, %c0_i32_0 : i32, i32, i32
  }
  func.func @transform_2(%arg0: i32, %arg1: i32) -> (i32, i32, i32) {
    %c0_i32 = arith.constant 0 : i32
    %c0_i32_0 = arith.constant 0 : i32
    %c0_i32_1 = arith.constant 0 : i32
    return %arg0, %c0_i32, %c0_i32_0 : i32, i32, i32
  }
  func.func @transform_3(%arg0: i32, %arg1: i32) -> (i32, i32) {
    %c0_i32 = arith.constant 0 : i32
    %c0_i32_0 = arith.constant 0 : i32
    %c0_i32_1 = arith.constant 0 : i32
    return %c0_i32, %c0_i32_0 : i32, i32
  }
  func.func @transform_4(%arg0: i32, %arg1: i32) -> (i32, i32) {
    %c0_i32 = arith.constant 0 : i32
    %c0_i32_0 = arith.constant 0 : i32
    %c0_i32_1 = arith.constant 0 : i32
    return %c0_i32, %c0_i32_0 : i32, i32
  }
  func.func @transform_5(%arg0: i32, %arg1: i32) -> (i32, i32, i32) {
    %c0_i32 = arith.constant 0 : i32
    %c0_i32_0 = arith.constant 0 : i32
    return %arg0, %arg1, %c0_i32 : i32, i32, i32
  }
  func.func @transform_6(%arg0: i32, %arg1: i32) -> (i32, i32, i32) {
    %c0_i32 = arith.constant 0 : i32
    %c0_i32_0 = arith.constant 0 : i32
    return %arg0, %arg1, %c0_i32 : i32, i32, i32
  }
}

module attributes {stable_mosaic.version = 11 : i64} {
  func.func @_mm_kernel(%arg0: i32, %arg1: i32, %arg2: memref<32x128xbf16, #tpu.memory_space<vmem>>, %arg3: memref<128x128xbf16, #tpu.memory_space<vmem>>, %arg4: memref<32x128xbf16, #tpu.memory_space<vmem>>, %arg5: memref<32x128xf32, #tpu.memory_space<vmem>>) attributes {dimension_semantics = [#tpu.dimension_semantics<parallel>, #tpu.dimension_semantics<arbitrary>], iteration_bounds = array<i64: 1, 1>, scalar_prefetch = 0 : i64, scratch_operands = 1 : i64, tpu.core_type = #tpu.core_type<tc>, window_params = [{transform_indices = @transform_0, window_bounds = array<i64: 32, 128>}, {transform_indices = @transform_1, window_bounds = array<i64: 128, 128>}, {transform_indices = @transform_2, window_bounds = array<i64: 32, 128>}]} {
    %c0_i32 = arith.constant 0 : i32
    %0 = arith.cmpi eq, %arg1, %c0_i32 : i32
    %1 = arith.extui %0 : i1 to i32
    %c0_i32_0 = arith.constant 0 : i32
    %2 = arith.cmpi ne, %1, %c0_i32_0 : i32
    scf.if %2 {
      %cst_10 = arith.constant 0.000000e+00 : f32
      %12 = vector.broadcast %cst_10 : f32 to vector<32x128xf32>
      %c0_11 = arith.constant 0 : index
      %c0_12 = arith.constant 0 : index
      %13 = vector.load %arg5[%c0_11, %c0_12] : memref<32x128xf32, #tpu.memory_space<vmem>>, vector<32x128xf32>
      tpu.vector_store %arg5[%c0_11, %c0_12], %12 {strides = array<i32>} : memref<32x128xf32, #tpu.memory_space<vmem>>, vector<32x128xf32>,
    } else {
    }
    %c0 = arith.constant 0 : index
    %c0_1 = arith.constant 0 : index
    %3 = vector.load %arg5[%c0, %c0_1] : memref<32x128xf32, #tpu.memory_space<vmem>>, vector<32x128xf32>
    %c0_2 = arith.constant 0 : index
    %c0_3 = arith.constant 0 : index
    %4 = vector.load %arg2[%c0_2, %c0_3] : memref<32x128xbf16, #tpu.memory_space<vmem>>, vector<32x128xbf16>
    %c0_4 = arith.constant 0 : index
    %c0_5 = arith.constant 0 : index
    %5 = vector.load %arg3[%c0_4, %c0_5] : memref<128x128xbf16, #tpu.memory_space<vmem>>, vector<128x128xbf16>
    %cst = arith.constant dense<0.000000e+00> : vector<32x128xf32>
    %6 = tpu.matmul %4, %5, %cst {dimension_numbers = #tpu.dot_dimension_numbers<[1], [0], [0], [1], [0, 0, 1, 1], [], []>} : vector<32x128xbf16>, vector<128x128xbf16>, vector<32x128xf32> -> vector<32x128xf32>
    %7 = arith.addf %3, %6 : vector<32x128xf32>
    %c0_6 = arith.constant 0 : index
    %c0_7 = arith.constant 0 : index
    %8 = vector.load %arg5[%c0_6, %c0_7] : memref<32x128xf32, #tpu.memory_space<vmem>>, vector<32x128xf32>
    tpu.vector_store %arg5[%c0_6, %c0_7], %7 {strides = array<i32>} : memref<32x128xf32, #tpu.memory_space<vmem>>, vector<32x128xf32>,
    %c0_i32_8 = arith.constant 0 : i32
    %9 = arith.cmpi eq, %arg1, %c0_i32_8 : i32
    %10 = arith.extui %9 : i1 to i32
    %c0_i32_9 = arith.constant 0 : i32
    %11 = arith.cmpi ne, %10, %c0_i32_9 : i32
    scf.if %11 {
      %c0_10 = arith.constant 0 : index
      %c0_11 = arith.constant 0 : index
      %12 = vector.load %arg5[%c0_10, %c0_11] : memref<32x128xf32, #tpu.memory_space<vmem>>, vector<32x128xf32>
      %13 = arith.truncf %12 : vector<32x128xf32> to vector<32x128xbf16>
      %c0_12 = arith.constant 0 : index
      %c0_13 = arith.constant 0 : index
      %14 = vector.load %arg4[%c0_12, %c0_13] : memref<32x128xbf16, #tpu.memory_space<vmem>>, vector<32x128xbf16>
      tpu.vector_store %arg4[%c0_12, %c0_13], %13 {strides = array<i32>} : memref<32x128xbf16, #tpu.memory_space<vmem>>, vector<32x128xbf16>,
    } else {
    }
    return
  }
  func.func @transform_0(%arg0: i32, %arg1: i32) -> (i32, i32) {
    %c0_i32 = arith.constant 0 : i32
    return %arg0, %arg1 : i32, i32
  }
  func.func @transform_1(%arg0: i32, %arg1: i32) -> (i32, i32) {
    %c0_i32 = arith.constant 0 : i32
    %c0_i32_0 = arith.constant 0 : i32
    return %arg1, %c0_i32 : i32, i32
  }
  func.func @transform_2(%arg0: i32, %arg1: i32) -> (i32, i32) {
    %c0_i32 = arith.constant 0 : i32
    %c0_i32_0 = arith.constant 0 : i32
    return %arg0, %c0_i32 : i32, i32
  }
}

module attributes {stable_mosaic.version = 11 : i64} {
  func.func @_mm_kernel(%arg0: i32, %arg1: i32, %arg2: memref<128x64xbf16, #tpu.memory_space<vmem>>, %arg3: memref<64x128xbf16, #tpu.memory_space<vmem>>, %arg4: memref<128x128xbf16, #tpu.memory_space<vmem>>, %arg5: memref<128x128xf32, #tpu.memory_space<vmem>>) attributes {dimension_semantics = [#tpu.dimension_semantics<parallel>, #tpu.dimension_semantics<arbitrary>], iteration_bounds = array<i64: 1, 1>, scalar_prefetch = 0 : i64, scratch_operands = 1 : i64, tpu.core_type = #tpu.core_type<tc>, window_params = [{transform_indices = @transform_0, window_bounds = array<i64: 128, 64>}, {transform_indices = @transform_1, window_bounds = array<i64: 64, 128>}, {transform_indices = @transform_2, window_bounds = array<i64: 128, 128>}]} {
    %c0_i32 = arith.constant 0 : i32
    %0 = arith.cmpi eq, %arg1, %c0_i32 : i32
    %1 = arith.extui %0 : i1 to i32
    %c0_i32_0 = arith.constant 0 : i32
    %2 = arith.cmpi ne, %1, %c0_i32_0 : i32
    scf.if %2 {
      %cst_10 = arith.constant 0.000000e+00 : f32
      %12 = vector.broadcast %cst_10 : f32 to vector<128x128xf32>
      %c0_11 = arith.constant 0 : index
      %c0_12 = arith.constant 0 : index
      %13 = vector.load %arg5[%c0_11, %c0_12] : memref<128x128xf32, #tpu.memory_space<vmem>>, vector<128x128xf32>
      tpu.vector_store %arg5[%c0_11, %c0_12], %12 {strides = array<i32>} : memref<128x128xf32, #tpu.memory_space<vmem>>, vector<128x128xf32>,
    } else {
    }
    %c0 = arith.constant 0 : index
    %c0_1 = arith.constant 0 : index
    %3 = vector.load %arg5[%c0, %c0_1] : memref<128x128xf32, #tpu.memory_space<vmem>>, vector<128x128xf32>
    %c0_2 = arith.constant 0 : index
    %c0_3 = arith.constant 0 : index
    %4 = vector.load %arg2[%c0_2, %c0_3] : memref<128x64xbf16, #tpu.memory_space<vmem>>, vector<128x64xbf16>
    %c0_4 = arith.constant 0 : index
    %c0_5 = arith.constant 0 : index
    %5 = vector.load %arg3[%c0_4, %c0_5] : memref<64x128xbf16, #tpu.memory_space<vmem>>, vector<64x128xbf16>
    %cst = arith.constant dense<0.000000e+00> : vector<128x128xf32>
    %6 = tpu.matmul %4, %5, %cst {dimension_numbers = #tpu.dot_dimension_numbers<[1], [0], [0], [1], [0, 0, 1, 1], [], []>} : vector<128x64xbf16>, vector<64x128xbf16>, vector<128x128xf32> -> vector<128x128xf32>
    %7 = arith.addf %3, %6 : vector<128x128xf32>
    %c0_6 = arith.constant 0 : index
    %c0_7 = arith.constant 0 : index
    %8 = vector.load %arg5[%c0_6, %c0_7] : memref<128x128xf32, #tpu.memory_space<vmem>>, vector<128x128xf32>
    tpu.vector_store %arg5[%c0_6, %c0_7], %7 {strides = array<i32>} : memref<128x128xf32, #tpu.memory_space<vmem>>, vector<128x128xf32>,
    %c0_i32_8 = arith.constant 0 : i32
    %9 = arith.cmpi eq, %arg1, %c0_i32_8 : i32
    %10 = arith.extui %9 : i1 to i32
    %c0_i32_9 = arith.constant 0 : i32
    %11 = arith.cmpi ne, %10, %c0_i32_9 : i32
    scf.if %11 {
      %c0_10 = arith.constant 0 : index
      %c0_11 = arith.constant 0 : index
      %12 = vector.load %arg5[%c0_10, %c0_11] : memref<128x128xf32, #tpu.memory_space<vmem>>, vector<128x128xf32>
      %13 = arith.truncf %12 : vector<128x128xf32> to vector<128x128xbf16>
      %c0_12 = arith.constant 0 : index
      %c0_13 = arith.constant 0 : index
      %14 = vector.load %arg4[%c0_12, %c0_13] : memref<128x128xbf16, #tpu.memory_space<vmem>>, vector<128x128xbf16>
      tpu.vector_store %arg4[%c0_12, %c0_13], %13 {strides = array<i32>} : memref<128x128xbf16, #tpu.memory_space<vmem>>, vector<128x128xbf16>,
    } else {
    }
    return
  }
  func.func @transform_0(%arg0: i32, %arg1: i32) -> (i32, i32) {
    %c0_i32 = arith.constant 0 : i32
    return %arg0, %arg1 : i32, i32
  }
  func.func @transform_1(%arg0: i32, %arg1: i32) -> (i32, i32) {
    %c0_i32 = arith.constant 0 : i32
    %c0_i32_0 = arith.constant 0 : i32
    return %arg1, %c0_i32 : i32, i32
  }
  func.func @transform_2(%arg0: i32, %arg1: i32) -> (i32, i32) {
    %c0_i32 = arith.constant 0 : i32
    %c0_i32_0 = arith.constant 0 : i32
    return %arg0, %c0_i32 : i32, i32
  }
}

module attributes {stable_mosaic.version = 11 : i64} {
  func.func @_mm_kernel(%arg0: i32, %arg1: i32, %arg2: memref<512x200xbf16, #tpu.memory_space<vmem>>, %arg3: memref<200x128xbf16, #tpu.memory_space<vmem>>, %arg4: memref<512x128xf32, #tpu.memory_space<vmem>>, %arg5: memref<512x128xf32, #tpu.memory_space<vmem>>) attributes {dimension_semantics = [#tpu.dimension_semantics<parallel>, #tpu.dimension_semantics<arbitrary>], iteration_bounds = array<i64: 1, 1>, scalar_prefetch = 0 : i64, scratch_operands = 1 : i64, tpu.core_type = #tpu.core_type<tc>, window_params = [{transform_indices = @transform_0, window_bounds = array<i64: 512, 200>}, {transform_indices = @transform_1, window_bounds = array<i64: 200, 128>}, {transform_indices = @transform_2, window_bounds = array<i64: 512, 128>}]} {
    %c0_i32 = arith.constant 0 : i32
    %0 = arith.cmpi eq, %arg1, %c0_i32 : i32
    %1 = arith.extui %0 : i1 to i32
    %c0_i32_0 = arith.constant 0 : i32
    %2 = arith.cmpi ne, %1, %c0_i32_0 : i32
    scf.if %2 {
      %cst_10 = arith.constant 0.000000e+00 : f32
      %12 = vector.broadcast %cst_10 : f32 to vector<512x128xf32>
      %c0_11 = arith.constant 0 : index
      %c0_12 = arith.constant 0 : index
      %13 = vector.load %arg5[%c0_11, %c0_12] : memref<512x128xf32, #tpu.memory_space<vmem>>, vector<512x128xf32>
      tpu.vector_store %arg5[%c0_11, %c0_12], %12 {strides = array<i32>} : memref<512x128xf32, #tpu.memory_space<vmem>>, vector<512x128xf32>,
    } else {
    }
    %c0 = arith.constant 0 : index
    %c0_1 = arith.constant 0 : index
    %3 = vector.load %arg5[%c0, %c0_1] : memref<512x128xf32, #tpu.memory_space<vmem>>, vector<512x128xf32>
    %c0_2 = arith.constant 0 : index
    %c0_3 = arith.constant 0 : index
    %4 = vector.load %arg2[%c0_2, %c0_3] : memref<512x200xbf16, #tpu.memory_space<vmem>>, vector<512x200xbf16>
    %c0_4 = arith.constant 0 : index
    %c0_5 = arith.constant 0 : index
    %5 = vector.load %arg3[%c0_4, %c0_5] : memref<200x128xbf16, #tpu.memory_space<vmem>>, vector<200x128xbf16>
    %cst = arith.constant dense<0.000000e+00> : vector<512x128xf32>
    %6 = tpu.matmul %4, %5, %cst {dimension_numbers = #tpu.dot_dimension_numbers<[1], [0], [0], [1], [0, 0, 1, 1], [], []>} : vector<512x200xbf16>, vector<200x128xbf16>, vector<512x128xf32> -> vector<512x128xf32>
    %7 = arith.addf %3, %6 : vector<512x128xf32>
    %c0_6 = arith.constant 0 : index
    %c0_7 = arith.constant 0 : index
    %8 = vector.load %arg5[%c0_6, %c0_7] : memref<512x128xf32, #tpu.memory_space<vmem>>, vector<512x128xf32>
    tpu.vector_store %arg5[%c0_6, %c0_7], %7 {strides = array<i32>} : memref<512x128xf32, #tpu.memory_space<vmem>>, vector<512x128xf32>,
    %c0_i32_8 = arith.constant 0 : i32
    %9 = arith.cmpi eq, %arg1, %c0_i32_8 : i32
    %10 = arith.extui %9 : i1 to i32
    %c0_i32_9 = arith.constant 0 : i32
    %11 = arith.cmpi ne, %10, %c0_i32_9 : i32
    scf.if %11 {
      %c0_10 = arith.constant 0 : index
      %c0_11 = arith.constant 0 : index
      %12 = vector.load %arg5[%c0_10, %c0_11] : memref<512x128xf32, #tpu.memory_space<vmem>>, vector<512x128xf32>
      %13 = math.tanh %12 : vector<512x128xf32>
      %c0_12 = arith.constant 0 : index
      %c0_13 = arith.constant 0 : index
      %14 = vector.load %arg4[%c0_12, %c0_13] : memref<512x128xf32, #tpu.memory_space<vmem>>, vector<512x128xf32>
      tpu.vector_store %arg4[%c0_12, %c0_13], %13 {strides = array<i32>} : memref<512x128xf32, #tpu.memory_space<vmem>>, vector<512x128xf32>,
    } else {
    }
    return
  }
  func.func @transform_0(%arg0: i32, %arg1: i32) -> (i32, i32) {
    %c0_i32 = arith.constant 0 : i32
    return %arg0, %arg1 : i32, i32
  }
  func.func @transform_1(%arg0: i32, %arg1: i32) -> (i32, i32) {
    %c0_i32 = arith.constant 0 : i32
    %c0_i32_0 = arith.constant 0 : i32
    return %arg1, %c0_i32 : i32, i32
  }
  func.func @transform_2(%arg0: i32, %arg1: i32) -> (i32, i32) {
    %c0_i32 = arith.constant 0 : i32
    %c0_i32_0 = arith.constant 0 : i32
    return %arg0, %c0_i32 : i32, i32
  }
}

</mosaic_0001>

<bundles_post_ra>
// kernel: generator_forward.34
= control target key start
LH: loop header
LB: loop body
LE: loop exit
PB: predicated region body
PF: predicated region fallthrough
CT: control target
= control target key end

     0   :  { %vm1504_vm0 = vcmask 1044480   ;;  %vm1505_vm1 = vcmask 1045504   ;;  %v3901_v12 = vmov 65535   ;;  %vm1407_vm2 = vcmask 220160   ;;  %s5303_s1 = inlined_call_operand.vmem [shape: bf16[539,128], index: 1, kind: input, shape index: {}]   ;;  %s5304_s0 = inlined_call_operand.vmem [shape: bf16[512,539], index: 0, kind: input, shape index: {}]   ;;  %s5305_s2 = inlined_call_operand.vmem [shape: bf16[512,128], index: 2, kind: output, shape index: {}]  }
   0x1   :  { %v3658_v0 = vld [vmem:[%s5303_s1 + $0x38] sm:$0xff]  ;;  %v3657_v1 = vld [vmem:[%s5303_s1 + $0x30] sm:$0xff]  ;;  %v3656_v2 = vld [vmem:[%s5303_s1 + $0x28] sm:$0xff]  ;;  %v1506_v13 = vsel %vm1504_vm0, 4294967295, %v3901_v12 }
   0x2   :  { %3876 = vmatpush.bf16.msra.mxu1 %v3658_v0  ;;  %3877 = vmatpush.bf16.msra.mxu2 %v3658_v0  ;;  %v3655_v3 = vld [vmem:[%s5303_s1 + $0x20] sm:$0xff]  ;;  %v3654_v4 = vld [vmem:[%s5303_s1 + $0x18] sm:$0xff]  ;;  %v3653_v5 = vld [vmem:[%s5303_s1 + $0x10] sm:$0xff]  ;;  %v1507_v23 = vsel %vm1505_vm1, %v1506_v13, 0 }
   0x3   :  { %3878 = vmatpush.bf16.msra.mxu3 %v3658_v0  ;;  %1511 = vmatpush.bf16.msra.mxu0 %v3658_v0  ;;  %v3652_v6 = vld [vmem:[%s5303_s1 + $0x8] sm:$0xff]  ;;  %v3651_v7 = vld [vmem:[%s5303_s1] sm:$0xff]  ;;  %v3533_v11 = vld [vmem:[%s5304_s0 + $0x150] sm:$0xf0] }
   0x4   :  { %v3457_v8 = vld [vmem:[%s5303_s1 + $0x108] sm:$0xf]  ;;  %v3684_v9 = vld [vmem:[%s5303_s1 + $0x108] sm:$0x30]  ;;  %v2845_v10 = vld [vmem:[%s5304_s0 + $0x140] sm:$0xf] }
   0x5   :  { %v3005_v14 = vld [vmem:[%s5304_s0 + $0x280] sm:$0xf]  ;;  %v3573_v15 = vld [vmem:[%s5304_s0 + $0x290] sm:$0xf0]  ;;  %v3458_v20 = vor.u32 %v3684_v9, %v3457_v8  ;;  %v3674_v21 = vld [vmem:[%s5303_s1 + $0xb8] sm:$0xff]  ;;  %v2846_v24 = vor.u32 %v3533_v11, %v2845_v10 }
   0x6   :  { %3879 = vmatpush.bf16.msra.mxu1 %v3657_v1  ;;  %3880 = vmatpush.bf16.msra.mxu2 %v3657_v1  ;;  %v3165_v16 = vld [vmem:[%s5304_s0 + $0x3c0] sm:$0xf]  ;;  %v3613_v17 = vld [vmem:[%s5304_s0 + $0x3d0] sm:$0xf0]  ;;  %v3682_v22 = vld [vmem:[%s5303_s1 + $0xf8] sm:$0xff]  ;;  %v3006_v25 = vor.u32 %v3573_v15, %v3005_v14 }
   0x7   :  { %3881 = vmatpush.bf16.msra.mxu3 %v3657_v1  ;;  %1512 = vmatpush.bf16.msra.mxu0 %v3657_v1  ;;  %v2685_v18 = vld [vmem:[%s5304_s0] sm:$0xf]  ;;  %v3493_v19 = vld [vmem:[%s5304_s0 + $0x10] sm:$0xf0]  ;;  %v3166_v26 = vor.u32 %v3613_v17, %v3165_v16  ;;  %v3666_v28 = vld [vmem:[%s5303_s1 + $0x78] sm:$0xff]  ;;  %v1509_v29 = vand.u32 %v3458_v20, %v1507_v23 }
   0x8   :  { %v2686_v27 = vor.u32 %v3493_v19, %v2685_v18  ;;  %v3673_v30 = vld [vmem:[%s5303_s1 + $0xb0] sm:$0xff]  ;;  %v3672_v33 = vld [vmem:[%s5303_s1 + $0xa8] sm:$0xff]  ;;  %v3538_v37 = vld [vmem:[%s5304_s0 + $0x178] sm:$0xf0] }
   0x9   :  { %v3681_v31 = vld [vmem:[%s5303_s1 + $0xf0] sm:$0xff]  ;;  %v3680_v34 = vld [vmem:[%s5303_s1 + $0xe8] sm:$0xff]  ;;  %v3578_v39 = vld [vmem:[%s5304_s0 + $0x2b8] sm:$0xf0] }
   0xa   :  { %3882 = vmatpush.bf16.msra.mxu1 %v3656_v2  ;;  %3883 = vmatpush.bf16.msra.mxu2 %v3656_v2  ;;  %v3665_v32 = vld [vmem:[%s5303_s1 + $0x70] sm:$0xff]  ;;  %v3664_v35 = vld [vmem:[%s5303_s1 + $0x68] sm:$0xff]  ;;  %v3618_v41 = vld [vmem:[%s5304_s0 + $0x3f8] sm:$0xf0] }
   0xb   :  { %3884 = vmatpush.bf16.msra.mxu3 %v3656_v2  ;;  %1513 = vmatpush.bf16.msra.mxu0 %v3656_v2  ;;  %v2865_v36 = vld [vmem:[%s5304_s0 + $0x168] sm:$0xf]  ;;  %v3498_v43 = vld [vmem:[%s5304_s0 + $0x38] sm:$0xf0]  ;;  %v3671_v48 = vld [vmem:[%s5303_s1 + $0xa0] sm:$0xff] }
   0xc   :  { %v3025_v38 = vld [vmem:[%s5304_s0 + $0x2a8] sm:$0xf]  ;;  %v2866_v44 = vor.u32 %v3538_v37, %v2865_v36  ;;  %v3679_v49 = vld [vmem:[%s5303_s1 + $0xe0] sm:$0xff]  ;;  %v2885_v51 = vld [vmem:[%s5304_s0 + $0x190] sm:$0xf] }
   0xd   :  { %v3185_v40 = vld [vmem:[%s5304_s0 + $0x3e8] sm:$0xf]  ;;  %v3026_v45 = vor.u32 %v3578_v39, %v3025_v38  ;;  %v3663_v50 = vld [vmem:[%s5303_s1 + $0x60] sm:$0xff]  ;;  %v3045_v53 = vld [vmem:[%s5304_s0 + $0x2d0] sm:$0xf] }
   0xe   :  { %3885 = vmatpush.bf16.msra.mxu1 %v3655_v3  ;;  %3886 = vmatpush.bf16.msra.mxu2 %v3655_v3  ;;  %v2705_v42 = vld [vmem:[%s5304_s0 + $0x28] sm:$0xf]  ;;  %v3186_v46 = vor.u32 %v3618_v41, %v3185_v40  ;;  %v3543_v52 = vld [vmem:[%s5304_s0 + $0x1a0] sm:$0xf0]  ;;  %v3205_v55 = vld [vmem:[%s5304_s0 + $0x410] sm:$0xf] }
   0xf   :  { %3887 = vmatpush.bf16.msra.mxu3 %v3655_v3  ;;  %1514 = vmatpush.bf16.msra.mxu0 %v3655_v3  ;;  %v2706_v47 = vor.u32 %v3498_v43, %v2705_v42  ;;  %v3583_v54 = vld [vmem:[%s5304_s0 + $0x2e0] sm:$0xf0]  ;;  %v2725_v57 = vld [vmem:[%s5304_s0 + $0x50] sm:$0xf]  ;;  %v2886_v59 = vor.u32 %v3543_v52, %v2885_v51  ;;  %v3670_v63 = vld [vmem:[%s5303_s1 + $0x98] sm:$0xff] }
  0x10   :  { %v3623_v56 = vld [vmem:[%s5304_s0 + $0x420] sm:$0xf0]  ;;  %v3046_v60 = vor.u32 %v3583_v54, %v3045_v53  ;;  %v3678_v0 = vld [vmem:[%s5303_s1 + $0xd8] sm:$0xff]  ;;  %v3628_v8 = vld [vmem:[%s5304_s0 + $0x448] sm:$0xf0] }
  0x11   :  { %v3503_v58 = vld [vmem:[%s5304_s0 + $0x60] sm:$0xf0]  ;;  %v3206_v61 = vor.u32 %v3623_v56, %v3205_v55  ;;  %v3662_v1 = vld [vmem:[%s5303_s1 + $0x58] sm:$0xff]  ;;  %v3508_v10 = vld [vmem:[%s5304_s0 + $0x88] sm:$0xf0] }
  0x12   :  { %3888 = vmatpush.bf16.msra.mxu1 %v3654_v4  ;;  %3889 = vmatpush.bf16.msra.mxu2 %v3654_v4  ;;  %v2726_v62 = vor.u32 %v3503_v58, %v2725_v57  ;;  %v3683_v2 = vld [vmem:[%s5303_s1 + $0x100] sm:$0xff]  ;;  %v2905_v3 = vld [vmem:[%s5304_s0 + $0x1b8] sm:$0xf]  ;;  %v3669_v15 = vld [vmem:[%s5303_s1 + $0x90] sm:$0xff] }
  0x13   :  { %3890 = vmatpush.bf16.msra.mxu3 %v3654_v4  ;;  %1515 = vmatpush.bf16.msra.mxu0 %v3654_v4  ;;  %v3548_v4 = vld [vmem:[%s5304_s0 + $0x1c8] sm:$0xf0]  ;;  %v2745_v9 = vld [vmem:[%s5304_s0 + $0x78] sm:$0xf]  ;;  %v3677_v16 = vld [vmem:[%s5303_s1 + $0xd0] sm:$0xff] }
  0x14   :  { %v2906_v11 = vor.u32 %v3548_v4, %v2905_v3  ;;  %v2746_v14 = vor.u32 %v3508_v10, %v2745_v9  ;;  %v3661_v17 = vld [vmem:[%s5303_s1 + $0x50] sm:$0xff]  ;;  %v2925_v18 = vld [vmem:[%s5304_s0 + $0x1e0] sm:$0xf]  ;;  %v3598_v36 = vld [vmem:[%s5304_s0 + $0x358] sm:$0xf0] }
  0x15   :  { %v3553_v19 = vld [vmem:[%s5304_s0 + $0x1f0] sm:$0xf0]  ;;  %v3085_v20 = vld [vmem:[%s5304_s0 + $0x320] sm:$0xf]  ;;  %v3265_v37 = vld [vmem:[%s5304_s0 + $0x488] sm:$0xf] }
  0x16   :  { %3891 = vmatpush.bf16.msra.mxu1 %v3653_v5  ;;  %3892 = vmatpush.bf16.msra.mxu2 %v3653_v5  ;;  %v3633_v23 = vld [vmem:[%s5304_s0 + $0x470] sm:$0xf0]  ;;  %v3638_v38 = vld [vmem:[%s5304_s0 + $0x498] sm:$0xf0]  ;;  %v2785_v39 = vld [vmem:[%s5304_s0 + $0xc8] sm:$0xf] }
  0x17   :  { %3893 = vmatpush.bf16.msra.mxu3 %v3653_v5  ;;  %1516 = vmatpush.bf16.msra.mxu0 %v3653_v5  ;;  %v3065_v5 = vld [vmem:[%s5304_s0 + $0x2f8] sm:$0xf]  ;;  %v3518_v40 = vld [vmem:[%s5304_s0 + $0xd8] sm:$0xf0]  ;;  %v3266_v43 = vor.u32 %v3638_v38, %v3265_v37  ;;  %v3603_v51 = vld [vmem:[%s5304_s0 + $0x380] sm:$0xf0] }
  0x18   :  { %v3285_v52 = vld [vmem:[%s5304_s0 + $0x4b0] sm:$0xf]  ;;  %v3643_v53 = vld [vmem:[%s5304_s0 + $0x4c0] sm:$0xf0]  ;;  %v3528_v3 = vld [vmem:[%s5304_s0 + $0x128] sm:$0xf0] }
  0x19   :  { %v2805_v54 = vld [vmem:[%s5304_s0 + $0xf0] sm:$0xf]  ;;  %v3523_v55 = vld [vmem:[%s5304_s0 + $0x100] sm:$0xf0]  ;;  %v3286_v58 = vor.u32 %v3643_v53, %v3285_v52  ;;  %v2687_v9 = vld [vmem:[%s5304_s0 + $0x14] sm:$0xf0] }
  0x1a   :  { %3894 = vmatpush.bf16.msra.mxu1 %v3652_v6  ;;  %3895 = vmatpush.bf16.msra.mxu2 %v3652_v6  ;;  %v2693_v10 = vld [vmem:[%s5304_s0 + $0x8] sm:$0xf]  ;;  %v2741_v52 = vld [vmem:[%s5304_s0 + $0x60] sm:$0xf]  ;;  %v3505_v53 = vld [vmem:[%s5304_s0 + $0x70] sm:$0xf0] }
  0x1b   :  { %3896 = vmatpush.bf16.msra.mxu3 %v3652_v6  ;;  %1517 = vmatpush.bf16.msra.mxu0 %v3652_v6  ;;  %v3588_v6 = vld [vmem:[%s5304_s0 + $0x308] sm:$0xf0] }
  0x1c   :  { %v3066_v12 = vor.u32 %v3588_v6, %v3065_v5 }
  0x1e   :  { %3897 = vmatpush.bf16.msra.mxu1 %v3651_v7  ;;  %3898 = vmatpush.bf16.msra.mxu2 %v3651_v7 }
  0x1f   :  { %3899 = vmatpush.bf16.msra.mxu3 %v3651_v7  ;;  %1518 = vmatpush.bf16.msra.mxu0 %v3651_v7  ;;  %v3225_v7 = vld [vmem:[%s5304_s0 + $0x438] sm:$0xf] }
  0x20   :  { %v3226_v13 = vor.u32 %v3628_v8, %v3225_v7  ;;  %v3491_v8 = vld [vmem:[%s5304_s0 + $0x4] sm:$0xf] }
  0x21   :  { %1559 = vmatmul.bf16.vlgmr.msra.gmra.mxu1 %v2846_v24  ;;  %1599 = vmatmul.bf16.vlgmr.msra.gmra.mxu2 %v3006_v25  ;;  %v2765_v24 = vld [vmem:[%s5304_s0 + $0xa0] sm:$0xf]  ;;  %v3513_v25 = vld [vmem:[%s5304_s0 + $0xb0] sm:$0xf0] }
  0x22   :  { %1849 = vmatpush.bf16.msrb.mxu2 %v3674_v21  ;;  %1639 = vmatmul.bf16.vlgmr.msra.gmra.mxu3 %v3166_v26  ;;  %v3593_v21 = vld [vmem:[%s5304_s0 + $0x330] sm:$0xf0]  ;;  %v2926_v26 = vor.u32 %v3553_v19, %v2925_v18 }
  0x23   :  { %2018 = vmatpush.bf16.msrb.mxu3 %v3682_v22  ;;  %1519 = vmatmul.bf16.vlgmr.msra.gmra.mxu0 %v2686_v27  ;;  %v3245_v22 = vld [vmem:[%s5304_s0 + $0x460] sm:$0xf]  ;;  %v3086_v27 = vor.u32 %v3593_v21, %v3085_v20 }
  0x24   :  { %1680 = vmatpush.bf16.msrb.mxu1 %v3666_v28  ;;  %2193 = vmatpush.bf16.msrb.mxu0 %v1509_v29  ;;  %v3246_v28 = vor.u32 %v3633_v23, %v3245_v22  ;;  %v2766_v29 = vor.u32 %v3513_v25, %v2765_v24 }
  0x26   :  { %1850 = vmatpush.bf16.msrb.mxu2 %v3673_v30  ;;  %v3668_v30 = vld [vmem:[%s5303_s1 + $0x88] sm:$0xff] }
  0x27   :  { %2019 = vmatpush.bf16.msrb.mxu3 %v3681_v31  ;;  %v3676_v31 = vld [vmem:[%s5303_s1 + $0xc8] sm:$0xff] }
  0x28   :  { %1681 = vmatpush.bf16.msrb.mxu1 %v3665_v32  ;;  %2194 = vmatpush.bf16.msrb.mxu0 %v3683_v2  ;;  %v3660_v32 = vld [vmem:[%s5303_s1 + $0x48] sm:$0xff]  ;;  %v2825_v2 = vld [vmem:[%s5304_s0 + $0x118] sm:$0xf] }
  0x29   :  { %v2826_v7 = vor.u32 %v3528_v3, %v2825_v2  ;;  %v3506_v2 = vld [vmem:[%s5304_s0 + $0x7c] sm:$0xf]  ;;  %v2747_v3 = vld [vmem:[%s5304_s0 + $0x8c] sm:$0xf0] }
  0x2a   :  { %1851 = vmatpush.bf16.msrb.mxu2 %v3672_v33  ;;  %v2945_v33 = vld [vmem:[%s5304_s0 + $0x208] sm:$0xf] }
  0x2b   :  { %2020 = vmatpush.bf16.msrb.mxu3 %v3680_v34  ;;  %v3558_v34 = vld [vmem:[%s5304_s0 + $0x218] sm:$0xf0] }
  0x2c   :  { %1682 = vmatpush.bf16.msrb.mxu1 %v3664_v35  ;;  %v3105_v35 = vld [vmem:[%s5304_s0 + $0x348] sm:$0xf]  ;;  %v2946_v41 = vor.u32 %v3558_v34, %v2945_v33  ;;  %v3500_v33 = vld [vmem:[%s5304_s0 + $0x48] sm:$0xf0] }
  0x2d   :  { %v3106_v42 = vor.u32 %v3598_v36, %v3105_v35 }
  0x2e   :  { %1852 = vmatpush.bf16.msrb.mxu2 %v3671_v48  ;;  %v2965_v48 = vld [vmem:[%s5304_s0 + $0x230] sm:$0xf] }
  0x2f   :  { %2021 = vmatpush.bf16.msrb.mxu3 %v3679_v49  ;;  %v3563_v49 = vld [vmem:[%s5304_s0 + $0x240] sm:$0xf0] }
  0x30   :  { %1683 = vmatpush.bf16.msrb.mxu1 %v3663_v50  ;;  %v3125_v50 = vld [vmem:[%s5304_s0 + $0x370] sm:$0xf]  ;;  %v2966_v56 = vor.u32 %v3563_v49, %v2965_v48  ;;  %v2733_v48 = vld [vmem:[%s5304_s0 + $0x58] sm:$0xf]  ;;  %v3504_v49 = vld [vmem:[%s5304_s0 + $0x68] sm:$0xf0] }
  0x31   :  { %1564 = vmatmul.bf16.gmra.mxu1 %v2866_v44  ;;  %1604 = vmatmul.bf16.gmra.mxu2 %v3026_v45  ;;  %v2786_v44 = vor.u32 %v3518_v40, %v2785_v39  ;;  %v3667_v45 = vld [vmem:[%s5303_s1 + $0x80] sm:$0xff]  ;;  %v3126_v57 = vor.u32 %v3603_v51, %v3125_v50  ;;  %v3502_v50 = vld [vmem:[%s5304_s0 + $0x5c] sm:$0xf]  ;;  %v2735_v51 = vld [vmem:[%s5304_s0 + $0x6c] sm:$0xf0] }
  0x32   :  { %1644 = vmatmul.bf16.gmra.mxu3 %v3186_v46  ;;  %1853 = vmatpush.bf16.msrb.mxu2 %v3670_v63  ;;  %v3675_v46 = vld [vmem:[%s5303_s1 + $0xc0] sm:$0xff]  ;;  %v3608_v63 = vld [vmem:[%s5304_s0 + $0x3a8] sm:$0xf0] }
  0x33   :  { %1524 = vmatmul.bf16.gmra.mxu0 %v2706_v47  ;;  %2022 = vmatpush.bf16.msrb.mxu3 %v3678_v0  ;;  %v3659_v47 = vld [vmem:[%s5303_s1 + $0x40] sm:$0xff]  ;;  %v3305_v0 = vld [vmem:[%s5304_s0 + $0x4d8] sm:$0xf] }
  0x34   :  { %1684 = vmatpush.bf16.msrb.mxu1 %v3662_v1  ;;  %v3648_v1 = vld [vmem:[%s5304_s0 + $0x4e8] sm:$0xf0] }
  0x35   :  { %v3306_v6 = vor.u32 %v3648_v1, %v3305_v0 }
  0x36   :  { %1854 = vmatpush.bf16.msrb.mxu2 %v3669_v15  ;;  %v3495_v15 = vld [vmem:[%s5304_s0 + $0x20] sm:$0xf0] }
  0x37   :  { %2023 = vmatpush.bf16.msrb.mxu3 %v3677_v16  ;;  %v2690_v16 = vor.u32 %v3491_v8, %v2687_v9  ;;  %v2761_v8 = vld [vmem:[%s5304_s0 + $0x88] sm:$0xf]  ;;  %v3510_v9 = vld [vmem:[%s5304_s0 + $0x98] sm:$0xf0] }
  0x38   :  { %1685 = vmatpush.bf16.msrb.mxu1 %v3661_v17 }
  0x3a   :  { %1855 = vmatpush.bf16.msrb.mxu2 %v3668_v30  ;;  %v3497_v30 = vld [vmem:[%s5304_s0 + $0x34] sm:$0xf] }
  0x3b   :  { %2024 = vmatpush.bf16.msrb.mxu3 %v3676_v31  ;;  %v2715_v31 = vld [vmem:[%s5304_s0 + $0x44] sm:$0xf0] }
  0x3c   :  { %1686 = vmatpush.bf16.msrb.mxu1 %v3660_v32  ;;  %v2721_v32 = vld [vmem:[%s5304_s0 + $0x38] sm:$0xf]  ;;  %v2718_v39 = vor.u32 %v3497_v30, %v2715_v31  ;;  %v2773_v30 = vld [vmem:[%s5304_s0 + $0xa8] sm:$0xf]  ;;  %v3514_v31 = vld [vmem:[%s5304_s0 + $0xb8] sm:$0xf0] }
  0x3d   :  { %v2722_v40 = vor.u32 %v3500_v33, %v2721_v32  ;;  %v3512_v32 = vld [vmem:[%s5304_s0 + $0xac] sm:$0xf]  ;;  %v2775_v33 = vld [vmem:[%s5304_s0 + $0xbc] sm:$0xf0] }
  0x3e   :  { %1856 = vmatpush.bf16.msrb.mxu2 %v3667_v45 }
  0x3f   :  { %2025 = vmatpush.bf16.msrb.mxu3 %v3675_v46  ;;  %v3501_v46 = vld [vmem:[%s5304_s0 + $0x54] sm:$0xf] }
  0x40   :  { %1687 = vmatpush.bf16.msrb.mxu1 %v3659_v47  ;;  %v2727_v47 = vld [vmem:[%s5304_s0 + $0x64] sm:$0xf0] }
  0x41   :  { %1569 = vmatmul.bf16.gmra.mxu1 %v2886_v59  ;;  %1609 = vmatmul.bf16.gmra.mxu2 %v3046_v60  ;;  %v2806_v59 = vor.u32 %v3523_v55, %v2805_v54  ;;  %v2985_v60 = vld [vmem:[%s5304_s0 + $0x258] sm:$0xf] }
  0x42   :  { %1649 = vmatmul.bf16.gmra.mxu3 %v3206_v61  ;;  %v3568_v61 = vld [vmem:[%s5304_s0 + $0x268] sm:$0xf0] }
  0x43   :  { %1529 = vmatmul.bf16.gmra.mxu0 %v2726_v62  ;;  %v3145_v62 = vld [vmem:[%s5304_s0 + $0x398] sm:$0xf]  ;;  %v2986_v4 = vor.u32 %v3568_v61, %v2985_v60  ;;  %v2742_v60 = vor.u32 %v3505_v53, %v2741_v52 }
  0x44   :  { %v3146_v5 = vor.u32 %v3608_v63, %v3145_v62 }
  0x51   :  { %1574 = vmatmul.bf16.gmra.mxu1 %v2906_v11  ;;  %1614 = vmatmul.bf16.gmra.mxu2 %v3066_v12  ;;  %v3494_v11 = vld [vmem:[%s5304_s0 + $0x18] sm:$0xf0]  ;;  %v3492_v12 = vld [vmem:[%s5304_s0 + $0xc] sm:$0xf] }
  0x52   :  { %1654 = vmatmul.bf16.gmra.mxu3 %v3226_v13  ;;  %v2695_v13 = vld [vmem:[%s5304_s0 + $0x1c] sm:$0xf0]  ;;  %v2694_v17 = vor.u32 %v3494_v11, %v2693_v10 }
  0x53   :  { %1534 = vmatmul.bf16.gmra.mxu0 %v2746_v14  ;;  %v2701_v14 = vld [vmem:[%s5304_s0 + $0x10] sm:$0xf]  ;;  %v2698_v19 = vor.u32 %v3492_v12, %v2695_v13  ;;  %v2750_v12 = vor.u32 %v3506_v2, %v2747_v3  ;;  %v3519_v3 = vld [vmem:[%s5304_s0 + $0xe0] sm:$0xf0] }
  0x54   :  { %v2702_v20 = vor.u32 %v3495_v15, %v2701_v14  ;;  %v2793_v2 = vld [vmem:[%s5304_s0 + $0xd0] sm:$0xf] }
  0x61   :  { %1579 = vmatmul.bf16.gmra.mxu1 %v2926_v26  ;;  %1619 = vmatmul.bf16.gmra.mxu2 %v3086_v27  ;;  %v3496_v26 = vld [vmem:[%s5304_s0 + $0x2c] sm:$0xf]  ;;  %v2707_v27 = vld [vmem:[%s5304_s0 + $0x3c] sm:$0xf0] }
  0x62   :  { %1659 = vmatmul.bf16.gmra.mxu3 %v3246_v28  ;;  %v2713_v28 = vld [vmem:[%s5304_s0 + $0x30] sm:$0xf]  ;;  %v2710_v36 = vor.u32 %v3496_v26, %v2707_v27 }
  0x63   :  { %1539 = vmatmul.bf16.gmra.mxu0 %v2766_v29  ;;  %v3499_v29 = vld [vmem:[%s5304_s0 + $0x40] sm:$0xf0] }
  0x64   :  { %v2714_v37 = vor.u32 %v3499_v29, %v2713_v28  ;;  %v3511_v28 = vld [vmem:[%s5304_s0 + $0xa4] sm:$0xf]  ;;  %v2767_v29 = vld [vmem:[%s5304_s0 + $0xb4] sm:$0xf0] }
  0x71   :  { %1584 = vmatmul.bf16.gmra.mxu1 %v2946_v41  ;;  %1624 = vmatmul.bf16.gmra.mxu2 %v3106_v42 }
  0x72   :  { %1664 = vmatmul.bf16.gmra.mxu3 %v3266_v43 }
  0x73   :  { %1544 = vmatmul.bf16.gmra.mxu0 %v2786_v44 }
  0x81   :  { %1589 = vmatmul.bf16.gmra.mxu1 %v2966_v56  ;;  %1629 = vmatmul.bf16.gmra.mxu2 %v3126_v57  ;;  %v2730_v56 = vor.u32 %v3501_v46, %v2727_v47  ;;  %v2734_v57 = vor.u32 %v3504_v49, %v2733_v48  ;;  %v2770_v46 = vor.u32 %v3511_v28, %v2767_v29 }
  0x82   :  { %1669 = vmatmul.bf16.gmra.mxu3 %v3286_v58  ;;  %v2774_v47 = vor.u32 %v3514_v31, %v2773_v30  ;;  %v2778_v49 = vor.u32 %v3512_v32, %v2775_v33 }
  0x83   :  { %1549 = vmatmul.bf16.gmra.mxu0 %v2806_v59  ;;  %v2738_v59 = vor.u32 %v3502_v50, %v2735_v51 }
  0x91   :  { %1594 = vmatmul.bf16.gmra.mxu1 %v2986_v4  ;;  %1634 = vmatmul.bf16.gmra.mxu2 %v3146_v5  ;;  %v2753_v4 = vld [vmem:[%s5304_s0 + $0x80] sm:$0xf]  ;;  %v3509_v5 = vld [vmem:[%s5304_s0 + $0x90] sm:$0xf0] }
  0x92   :  { %1674 = vmatmul.bf16.gmra.mxu3 %v3306_v6  ;;  %v3507_v6 = vld [vmem:[%s5304_s0 + $0x84] sm:$0xf]  ;;  %v2754_v13 = vor.u32 %v3509_v5, %v2753_v4  ;;  %v3517_v4 = vld [vmem:[%s5304_s0 + $0xd4] sm:$0xf]  ;;  %v2795_v5 = vld [vmem:[%s5304_s0 + $0xe4] sm:$0xf0] }
  0x93   :  { %1554 = vmatmul.bf16.gmra.mxu0 %v2826_v7  ;;  %v2755_v7 = vld [vmem:[%s5304_s0 + $0x94] sm:$0xf0] }
  0x94   :  { %v2758_v15 = vor.u32 %v3507_v6, %v2755_v7  ;;  %v2801_v6 = vld [vmem:[%s5304_s0 + $0xd8] sm:$0xf]  ;;  %v3520_v7 = vld [vmem:[%s5304_s0 + $0xe8] sm:$0xf0] }
  0x95   :  { %v2802_v28 = vor.u32 %v3520_v7, %v2801_v6 }
  0x9e   :  { %v4239_v18 = vpop.f32.mrf.mxu1 }
  0xa0   :  { %v4241_v21 = vpop.f32.mrf.mxu0 }
  0xa1   :  { %1688 = vmatmul.bf16.vlgmr.msrb.gmra.mxu1 %v2690_v16  ;;  %1857 = vmatmul.bf16.vlgmr.msrb.gmra.mxu2 %v2694_v17  ;;  %v2762_v16 = vor.u32 %v3510_v9, %v2761_v8 }
  0xa2   :  { %2026 = vmatmul.bf16.vlgmr.msrb.gmra.mxu3 %v2698_v19 }
  0xa3   :  { %3459 = vmatmul.msk.bf16.vlgmr.msrb.gmra.mxu0 %vm1407_vm2, %v2702_v20 }
  0xa4   :  { %v4244_v22 = vpop.f32.mrf.mxu2 }
  0xa5   :  { %v4246_v23 = vpop.f32.mrf.mxu3 }
  0xa6   :  { %5306 = vst [vmem:[#allocation3_spill] sm:$0xff] %v4246_v23  ;;  %v4248_v24 = vpop.f32.mrf.mxu1 }
  0xa8   :  { %v4250_v25 = vpop.f32.mrf.mxu0 }
  0xac   :  { %v4276_v34 = vpop.f32.mrf.mxu2 }
  0xad   :  { %v4278_v35 = vpop.f32.mrf.mxu3 }
  0xae   :  { %5307 = vst [vmem:[#allocation4_spill] sm:$0xff] %v4278_v35  ;;  %v4280_v38 = vpop.f32.mrf.mxu1 }
  0xb0   :  { %v4282_v41 = vpop.f32.mrf.mxu0 }
  0xb1   :  { %1693 = vmatmul.bf16.gmra.mxu1 %v2710_v36  ;;  %1862 = vmatmul.bf16.gmra.mxu2 %v2714_v37  ;;  %v2781_v36 = vld [vmem:[%s5304_s0 + $0xb0] sm:$0xf]  ;;  %v3515_v37 = vld [vmem:[%s5304_s0 + $0xc0] sm:$0xf0] }
  0xb2   :  { %2031 = vmatmul.bf16.gmra.mxu3 %v2718_v39  ;;  %v2782_v50 = vor.u32 %v3515_v37, %v2781_v36  ;;  %v3521_v36 = vld [vmem:[%s5304_s0 + $0xf4] sm:$0xf]  ;;  %v2807_v37 = vld [vmem:[%s5304_s0 + $0x104] sm:$0xf0] }
  0xb3   :  { %3460 = vmatmul.msk.bf16.gmra.mxu0 %vm1407_vm2, %v2722_v40 }
  0xb4   :  { %v4285_v42 = vpop.f32.mrf.mxu2 }
  0xb5   :  { %v4287_v43 = vpop.f32.mrf.mxu3 }
  0xb6   :  { %5308 = vst [vmem:[#allocation5_spill] sm:$0xff] %v4287_v43  ;;  %v4289_v44 = vpop.f32.mrf.mxu1 }
  0xb8   :  { %v4291_v45 = vpop.f32.mrf.mxu0 }
  0xbc   :  { %v4317_v54 = vpop.f32.mrf.mxu2 }
  0xbd   :  { %v4319_v55 = vpop.f32.mrf.mxu3 }
  0xbe   :  { %5309 = vst [vmem:[#allocation6_spill] sm:$0xff] %v4319_v55  ;;  %v4321_v58 = vpop.f32.mrf.mxu1 }
  0xc0   :  { %v4323_v61 = vpop.f32.mrf.mxu0 }
  0xc1   :  { %1698 = vmatmul.bf16.gmra.mxu1 %v2730_v56  ;;  %1867 = vmatmul.bf16.gmra.mxu2 %v2734_v57 }
  0xc2   :  { %2036 = vmatmul.bf16.gmra.mxu3 %v2738_v59  ;;  %v3516_v59 = vld [vmem:[%s5304_s0 + $0xcc] sm:$0xf] }
  0xc3   :  { %3461 = vmatmul.msk.bf16.gmra.mxu0 %vm1407_vm2, %v2742_v60  ;;  %v2787_v60 = vld [vmem:[%s5304_s0 + $0xdc] sm:$0xf0] }
  0xc4   :  { %v4326_v62 = vpop.f32.mrf.mxu2 }
  0xc5   :  { %v4328_v63 = vpop.f32.mrf.mxu3 }
  0xc6   :  { %5310 = vst [vmem:[#allocation7_spill] sm:$0xff] %v4328_v63  ;;  %v4330_v0 = vpop.f32.mrf.mxu1 }
  0xc8   :  { %v4332_v1 = vpop.f32.mrf.mxu0 }
  0xcc   :  { %v4358_v10 = vpop.f32.mrf.mxu2 }
  0xcd   :  { %v4360_v11 = vpop.f32.mrf.mxu3 }
  0xce   :  { %5311 = vst [vmem:[#allocation8_spill] sm:$0xff] %v4360_v11  ;;  %v4362_v14 = vpop.f32.mrf.mxu1 }
  0xd0   :  { %v4364_v17 = vpop.f32.mrf.mxu0 }
  0xd1   :  { %1703 = vmatmul.bf16.gmra.mxu1 %v2750_v12  ;;  %1872 = vmatmul.bf16.gmra.mxu2 %v2754_v13  ;;  %v2790_v12 = vor.u32 %v3516_v59, %v2787_v60  ;;  %v2794_v13 = vor.u32 %v3519_v3, %v2793_v2  ;;  %v2821_v59 = vld [vmem:[%s5304_s0 + $0x100] sm:$0xf]  ;;  %v3525_v60 = vld [vmem:[%s5304_s0 + $0x110] sm:$0xf0] }
  0xd2   :  { %2041 = vmatmul.bf16.gmra.mxu3 %v2758_v15 }
  0xd3   :  { %3462 = vmatmul.msk.bf16.gmra.mxu0 %vm1407_vm2, %v2762_v16  ;;  %v2798_v16 = vor.u32 %v3517_v4, %v2795_v5  ;;  %v2810_v4 = vor.u32 %v3521_v36, %v2807_v37  ;;  %v3526_v36 = vld [vmem:[%s5304_s0 + $0x11c] sm:$0xf]  ;;  %v2827_v37 = vld [vmem:[%s5304_s0 + $0x12c] sm:$0xf0] }
  0xd4   :  { %v4367_v19 = vpop.f32.mrf.mxu2 }
  0xd5   :  { %5312 = vst [vmem:[#allocation9_spill] sm:$0xff] %v4367_v19  ;;  %v4369_v20 = vpop.f32.mrf.mxu3 }
  0xd6   :  { %5313 = vst [vmem:[#allocation10_spill] sm:$0xff] %v4369_v20  ;;  %v4371_v26 = vpop.f32.mrf.mxu1 }
  0xd8   :  { %v4373_v27 = vpop.f32.mrf.mxu0 }
  0xdc   :  { %v4399_v39 = vpop.f32.mrf.mxu2 }
  0xdd   :  { %5314 = vst [vmem:[#allocation11_spill] sm:$0xff] %v4399_v39  ;;  %v4401_v40 = vpop.f32.mrf.mxu3 }
  0xde   :  { %5315 = vst [vmem:[#allocation12_spill] sm:$0xff] %v4401_v40  ;;  %v4403_v48 = vpop.f32.mrf.mxu1 }
  0xe0   :  { %v4405_v51 = vpop.f32.mrf.mxu0 }
  0xe1   :  { %1708 = vmatmul.bf16.gmra.mxu1 %v2770_v46  ;;  %1877 = vmatmul.bf16.gmra.mxu2 %v2774_v47  ;;  %v2813_v46 = vld [vmem:[%s5304_s0 + $0xf8] sm:$0xf]  ;;  %v3524_v47 = vld [vmem:[%s5304_s0 + $0x108] sm:$0xf0] }
  0xe2   :  { %2046 = vmatmul.bf16.gmra.mxu3 %v2778_v49  ;;  %v3522_v49 = vld [vmem:[%s5304_s0 + $0xfc] sm:$0xf]  ;;  %v2814_v5 = vor.u32 %v3524_v47, %v2813_v46  ;;  %v2833_v46 = vld [vmem:[%s5304_s0 + $0x120] sm:$0xf]  ;;  %v3529_v47 = vld [vmem:[%s5304_s0 + $0x130] sm:$0xf0] }
  0xe3   :  { %3463 = vmatmul.msk.bf16.gmra.mxu0 %vm1407_vm2, %v2782_v50  ;;  %v2815_v50 = vld [vmem:[%s5304_s0 + $0x10c] sm:$0xf0] }
  0xe4   :  { %v4408_v52 = vpop.f32.mrf.mxu2  ;;  %v2818_v7 = vor.u32 %v3522_v49, %v2815_v50  ;;  %v3527_v49 = vld [vmem:[%s5304_s0 + $0x124] sm:$0xf]  ;;  %v2835_v50 = vld [vmem:[%s5304_s0 + $0x134] sm:$0xf0] }
  0xe5   :  { %5316 = vst [vmem:[#allocation13_spill] sm:$0xff] %v4408_v52  ;;  %v4410_v53 = vpop.f32.mrf.mxu3 }
  0xe6   :  { %5317 = vst [vmem:[#allocation14_spill] sm:$0xff] %v4410_v53  ;;  %v4412_v56 = vpop.f32.mrf.mxu1 }
  0xe8   :  { %v4414_v57 = vpop.f32.mrf.mxu0 }
  0xec   :  { %v4440_v8 = vpop.f32.mrf.mxu2 }
  0xed   :  { %5318 = vst [vmem:[#allocation15_spill] sm:$0xff] %v4440_v8  ;;  %v4442_v9 = vpop.f32.mrf.mxu3 }
  0xee   :  { %5319 = vst [vmem:[#allocation16_spill] sm:$0xff] %v4442_v9  ;;  %v4444_v15 = vpop.f32.mrf.mxu1  ;;  %v2838_v9 = vor.u32 %v3527_v49, %v2835_v50  ;;  %v2861_v49 = vld [vmem:[%s5304_s0 + $0x150] sm:$0xf]  ;;  %v3535_v50 = vld [vmem:[%s5304_s0 + $0x160] sm:$0xf0] }
  0xef   :  { %v2862_v43 = vor.u32 %v3535_v50, %v2861_v49 }
  0xf0   :  { %v4446_v29 = vpop.f32.mrf.mxu0 }
  0xf1   :  { %1713 = vmatmul.bf16.gmra.mxu1 %v2790_v12  ;;  %1882 = vmatmul.bf16.gmra.mxu2 %v2794_v13  ;;  %v2822_v12 = vor.u32 %v3525_v60, %v2821_v59  ;;  %v2841_v59 = vld [vmem:[%s5304_s0 + $0x128] sm:$0xf]  ;;  %v3530_v60 = vld [vmem:[%s5304_s0 + $0x138] sm:$0xf0] }
  0xf2   :  { %2051 = vmatmul.bf16.gmra.mxu3 %v2798_v16  ;;  %v2842_v53 = vor.u32 %v3530_v60, %v2841_v59 }
  0xf3   :  { %3464 = vmatmul.msk.bf16.gmra.mxu0 %vm1407_vm2, %v2802_v28 }
  0xf4   :  { %v4449_v30 = vpop.f32.mrf.mxu2 }
  0xf5   :  { %5320 = vst [vmem:[#allocation17_spill] sm:$0xff] %v4449_v30  ;;  %v4451_v31 = vpop.f32.mrf.mxu3 }
  0xf6   :  { %5321 = vst [vmem:[#allocation18_spill] sm:$0xff] %v4451_v31  ;;  %v4453_v32 = vpop.f32.mrf.mxu1 }
  0xf8   :  { %v4455_v33 = vpop.f32.mrf.mxu0 }
  0xfc   :  { %v4481_v2 = vpop.f32.mrf.mxu2 }
  0xfd   :  { %5322 = vst [vmem:[#allocation19_spill] sm:$0xff] %v4481_v2  ;;  %v4483_v3 = vpop.f32.mrf.mxu3 }
  0xfe   :  { %5323 = vst [vmem:[#allocation20_spill] sm:$0xff] %v4483_v3  ;;  %v4485_v6 = vpop.f32.mrf.mxu1 }
 0x100   :  { %v4487_v13 = vpop.f32.mrf.mxu0 }
 0x101   :  { %1718 = vmatmul.bf16.gmra.mxu1 %v2810_v4  ;;  %1887 = vmatmul.bf16.gmra.mxu2 %v2814_v5 }
 0x102   :  { %2056 = vmatmul.bf16.gmra.mxu3 %v2818_v7  ;;  %v2830_v7 = vor.u32 %v3526_v36, %v2827_v37  ;;  %v3531_v36 = vld [vmem:[%s5304_s0 + $0x144] sm:$0xf]  ;;  %v2847_v37 = vld [vmem:[%s5304_s0 + $0x154] sm:$0xf0] }
 0x103   :  { %3465 = vmatmul.msk.bf16.gmra.mxu0 %vm1407_vm2, %v2822_v12  ;;  %v2834_v12 = vor.u32 %v3529_v47, %v2833_v46  ;;  %v3532_v46 = vld [vmem:[%s5304_s0 + $0x14c] sm:$0xf]  ;;  %v2855_v47 = vld [vmem:[%s5304_s0 + $0x15c] sm:$0xf0] }
 0x104   :  { %v4490_v16 = vpop.f32.mrf.mxu2  ;;  %v2858_v55 = vor.u32 %v3532_v46, %v2855_v47 }
 0x105   :  { %5324 = vst [vmem:[#allocation21_spill] sm:$0xff] %v4490_v16  ;;  %v4492_v28 = vpop.f32.mrf.mxu3 }
 0x106   :  { %5325 = vst [vmem:[#allocation22_spill] sm:$0xff] %v4492_v28  ;;  %v4494_v31 = vpop.f32.mrf.mxu1 }
 0x108   :  { %v4496_v3 = vpop.f32.mrf.mxu0 }
 0x10c   :  { %v4522_v4 = vpop.f32.mrf.mxu2 }
 0x10d   :  { %5326 = vst [vmem:[#allocation23_spill] sm:$0xff] %v4522_v4  ;;  %v4524_v5 = vpop.f32.mrf.mxu3 }
 0x10e   :  { %5327 = vst [vmem:[#allocation24_spill] sm:$0xff] %v4524_v5  ;;  %v4526_v28 = vpop.f32.mrf.mxu1 }
 0x110   :  { %v4528_v40 = vpop.f32.mrf.mxu0 }
 0x111   :  { %1723 = vmatmul.bf16.gmra.mxu1 %v2830_v7  ;;  %1892 = vmatmul.bf16.gmra.mxu2 %v2834_v12  ;;  %v2850_v7 = vor.u32 %v3531_v36, %v2847_v37  ;;  %v3536_v36 = vld [vmem:[%s5304_s0 + $0x16c] sm:$0xf]  ;;  %v2867_v37 = vld [vmem:[%s5304_s0 + $0x17c] sm:$0xf0] }
 0x112   :  { %2061 = vmatmul.bf16.gmra.mxu3 %v2838_v9  ;;  %v3534_v9 = vld [vmem:[%s5304_s0 + $0x158] sm:$0xf0]  ;;  %v2870_v50 = vor.u32 %v3536_v36, %v2867_v37 }
 0x113   :  { %3466 = vmatmul.msk.bf16.gmra.mxu0 %vm1407_vm2, %v2842_v53  ;;  %v2853_v53 = vld [vmem:[%s5304_s0 + $0x148] sm:$0xf] }
 0x114   :  { %v4531_v20 = vpop.f32.mrf.mxu2  ;;  %v2854_v12 = vor.u32 %v3534_v9, %v2853_v53  ;;  %v3540_v53 = vld [vmem:[%s5304_s0 + $0x188] sm:$0xf0] }
 0x115   :  { %5328 = vst [vmem:[#allocation25_spill] sm:$0xff] %v4531_v20  ;;  %v4533_v11 = vpop.f32.mrf.mxu3 }
 0x116   :  { %5329 = vst [vmem:[#allocation26_spill] sm:$0xff] %v4533_v11  ;;  %v4535_v63 = vpop.f32.mrf.mxu1 }
 0x118   :  { %v4537_v5 = vpop.f32.mrf.mxu0 }
 0x11c   :  { %v4563_v59 = vpop.f32.mrf.mxu2 }
 0x11d   :  { %5330 = vst [vmem:[#allocation27_spill] sm:$0xff] %v4563_v59  ;;  %v4565_v60 = vpop.f32.mrf.mxu3 }
 0x11e   :  { %5331 = vst [vmem:[#allocation28_spill] sm:$0xff] %v4565_v60  ;;  %v1689_v11 = vpop.f32.mrf.mxu1 }
 0x11f   :  { %v1690_v16 = vadd.f32 %v1689_v11, %v4241_v21  ;;  %v3537_v21 = vld [vmem:[%s5304_s0 + $0x174] sm:$0xf]  ;;  %v2875_v11 = vld [vmem:[%s5304_s0 + $0x184] sm:$0xf0] }
 0x120   :  { %v2196_v35 = vpop.f32.mrf.mxu0 }
 0x121   :  { %1728 = vmatmul.bf16.gmra.mxu1 %v2850_v7  ;;  %1897 = vmatmul.bf16.gmra.mxu2 %v2854_v12 }
 0x122   :  { %2066 = vmatmul.bf16.gmra.mxu3 %v2858_v55  ;;  %v2873_v55 = vld [vmem:[%s5304_s0 + $0x170] sm:$0xf] }
 0x123   :  { %3467 = vmatmul.msk.bf16.gmra.mxu0 %vm1407_vm2, %v2862_v43  ;;  %v3539_v43 = vld [vmem:[%s5304_s0 + $0x180] sm:$0xf0] }
 0x124   :  { %v1858_v23 = vpop.f32.mrf.mxu2  ;;  %v2874_v7 = vor.u32 %v3539_v43, %v2873_v55  ;;  %v3545_v43 = vld [vmem:[%s5304_s0 + $0x1b0] sm:$0xf0] }
 0x125   :  { %v2027_v20 = vpop.f32.mrf.mxu3  ;;  %v1859_v59 = vadd.f32 %v1858_v23, %v1690_v16  ;;  %v2881_v16 = vld [vmem:[%s5304_s0 + $0x178] sm:$0xf] }
 0x126   :  { %v1691_v4 = vpop.f32.mrf.mxu1 }
 0x127   :  { %v1692_v23 = vadd.f32 %v1691_v4, %v4250_v25  ;;  %v2028_v46 = vadd.f32 %v2027_v20, %v1859_v59  ;;  %v2878_v25 = vor.u32 %v3537_v21, %v2875_v11  ;;  %v2882_v4 = vor.u32 %v3540_v53, %v2881_v16 }
 0x128   :  { %v2198_v2 = vpop.f32.mrf.mxu0 }
 0x129   :  { %v2197_v8 = vadd.f32 %v2196_v35, %v2028_v46  ;;  %v3541_v35 = vld [vmem:[%s5304_s0 + $0x194] sm:$0xf] }
 0x12c   :  { %v1860_v9 = vpop.f32.mrf.mxu2 }
 0x12d   :  { %v1861_v47 = vadd.f32 %v1860_v9, %v1692_v23  ;;  %v2029_v49 = vpop.f32.mrf.mxu3 }
 0x12e   :  { %v1694_v12 = vpop.f32.mrf.mxu1 }
 0x12f   :  { %v2030_v60 = vadd.f32 %v2029_v49, %v1861_v47  ;;  %v1695_v36 = vadd.f32 %v1694_v12, %v4282_v41  ;;  %v3542_v41 = vld [vmem:[%s5304_s0 + $0x19c] sm:$0xf] }
 0x130   :  { %v2201_v30 = vpop.f32.mrf.mxu0 }
 0x131   :  { %v2199_v52 = vadd.f32 %v2198_v2, %v2030_v60  ;;  %1733 = vmatmul.bf16.gmra.mxu1 %v2870_v50  ;;  %1902 = vmatmul.bf16.gmra.mxu2 %v2874_v7  ;;  %v2887_v2 = vld [vmem:[%s5304_s0 + $0x1a4] sm:$0xf0]  ;;  %v2901_v60 = vld [vmem:[%s5304_s0 + $0x1a0] sm:$0xf] }
 0x132   :  { %2071 = vmatmul.bf16.gmra.mxu3 %v2878_v25  ;;  %v2890_v53 = vor.u32 %v3541_v35, %v2887_v2  ;;  %v2902_v47 = vor.u32 %v3545_v43, %v2901_v60  ;;  %v2913_v2 = vld [vmem:[%s5304_s0 + $0x1c0] sm:$0xf] }
 0x133   :  { %3468 = vmatmul.msk.bf16.gmra.mxu0 %vm1407_vm2, %v2882_v4  ;;  %v3688_v39 = vpack.c.bf16 %v2199_v52, %v2197_v8  ;;  %v2893_v52 = vld [vmem:[%s5304_s0 + $0x198] sm:$0xf]  ;;  %v2895_v8 = vld [vmem:[%s5304_s0 + $0x1ac] sm:$0xf0] }
 0x134   :  { %v1863_v19 = vpop.f32.mrf.mxu2 }
 0x135   :  { %3689 = vst [vmem:[%s5305_s2] sm:$0xff] %v3688_v39   ;;  %v2032_v20 = vpop.f32.mrf.mxu3  ;;  %v1864_v55 = vadd.f32 %v1863_v19, %v1695_v36  ;;  %v3544_v39 = vld [vmem:[%s5304_s0 + $0x1a8] sm:$0xf0] }
 0x136   :  { %v1696_v59 = vpop.f32.mrf.mxu1  ;;  %v2894_v9 = vor.u32 %v3544_v39, %v2893_v52  ;;  %v3549_v52 = vld [vmem:[%s5304_s0 + $0x1d0] sm:$0xf0] }
 0x137   :  { %v1697_v19 = vadd.f32 %v1696_v59, %v4291_v45  ;;  %v2033_v23 = vadd.f32 %v2032_v20, %v1864_v55  ;;  %v2898_v45 = vor.u32 %v3542_v41, %v2895_v8  ;;  %v2915_v41 = vld [vmem:[%s5304_s0 + $0x1d4] sm:$0xf0]  ;;  %v3550_v8 = vld [vmem:[%s5304_s0 + $0x1d8] sm:$0xf0] }
 0x138   :  { %v2203_v37 = vpop.f32.mrf.mxu0 }
 0x139   :  { %v2202_v7 = vadd.f32 %v2201_v30, %v2033_v23  ;;  %v3546_v30 = vld [vmem:[%s5304_s0 + $0x1bc] sm:$0xf] }
 0x13c   :  { %v1865_v21 = vpop.f32.mrf.mxu2 }
 0x13d   :  { %v1866_v11 = vadd.f32 %v1865_v21, %v1697_v19  ;;  %v2034_v16 = vpop.f32.mrf.mxu3  ;;  %v2921_v19 = vld [vmem:[%s5304_s0 + $0x1c8] sm:$0xf] }
 0x13e   :  { %v1699_v46 = vpop.f32.mrf.mxu1 }
 0x13f   :  { %v2035_v49 = vadd.f32 %v2034_v16, %v1866_v11  ;;  %v1700_v36 = vadd.f32 %v1699_v46, %v4323_v61  ;;  %v3547_v61 = vld [vmem:[%s5304_s0 + $0x1c4] sm:$0xf]  ;;  %v2914_v16 = vor.u32 %v3549_v52, %v2913_v2  ;;  %v2935_v2 = vld [vmem:[%s5304_s0 + $0x1fc] sm:$0xf0]  ;;  %v2941_v52 = vld [vmem:[%s5304_s0 + $0x1f0] sm:$0xf] }
 0x140   :  { %v2206_v50 = vpop.f32.mrf.mxu0 }
 0x141   :  { %v2204_v12 = vadd.f32 %v2203_v37, %v2035_v49  ;;  %1738 = vmatmul.bf16.gmra.mxu1 %v2890_v53  ;;  %1907 = vmatmul.bf16.gmra.mxu2 %v2894_v9  ;;  %v2907_v37 = vld [vmem:[%s5304_s0 + $0x1cc] sm:$0xf0]  ;;  %v2922_v9 = vor.u32 %v3550_v8, %v2921_v19 }
 0x142   :  { %2076 = vmatmul.bf16.gmra.mxu3 %v2898_v45  ;;  %v2910_v11 = vor.u32 %v3546_v30, %v2907_v37  ;;  %v3554_v30 = vld [vmem:[%s5304_s0 + $0x1f8] sm:$0xf0] }
 0x143   :  { %3469 = vmatmul.msk.bf16.gmra.mxu0 %vm1407_vm2, %v2902_v47  ;;  %v3693_v25 = vpack.c.bf16 %v2204_v12, %v2202_v7 }
 0x144   :  { %v1868_v4 = vpop.f32.mrf.mxu2 }
 0x145   :  { %3845 = vst [vmem:[%s5305_s2 + $0x8] sm:$0xff] %v3693_v25   ;;  %v2037_v20 = vpop.f32.mrf.mxu3  ;;  %v1869_v35 = vadd.f32 %v1868_v4, %v1700_v36 }
 0x146   :  { %v1701_v59 = vpop.f32.mrf.mxu1 }
 0x147   :  { %v1702_v39 = vadd.f32 %v1701_v59, %v4332_v1  ;;  %v2038_v43 = vadd.f32 %v2037_v20, %v1869_v35  ;;  %v2918_v1 = vor.u32 %v3547_v61, %v2915_v41  ;;  %v2933_v35 = vld [vmem:[%s5304_s0 + $0x1e8] sm:$0xf]  ;;  %v3555_v61 = vld [vmem:[%s5304_s0 + $0x200] sm:$0xf0] }
 0x148   :  { %v2208_v55 = vpop.f32.mrf.mxu0 }
 0x149   :  { %v2207_v47 = vadd.f32 %v2206_v50, %v2038_v43  ;;  %v3551_v50 = vld [vmem:[%s5304_s0 + $0x1e4] sm:$0xf]  ;;  %v2934_v43 = vor.u32 %v3554_v30, %v2933_v35  ;;  %v3560_v35 = vld [vmem:[%s5304_s0 + $0x228] sm:$0xf0] }
 0x14c   :  { %v1870_v60 = vpop.f32.mrf.mxu2 }
 0x14d   :  { %v1871_v21 = vadd.f32 %v1870_v60, %v1702_v39  ;;  %v2039_v23 = vpop.f32.mrf.mxu3 }
 0x14e   :  { %v1704_v53 = vpop.f32.mrf.mxu1 }
 0x14f   :  { %v2040_v46 = vadd.f32 %v2039_v23, %v1871_v21  ;;  %v1705_v20 = vadd.f32 %v1704_v53, %v4364_v17  ;;  %v3552_v17 = vld [vmem:[%s5304_s0 + $0x1ec] sm:$0xf]  ;;  %v2942_v23 = vor.u32 %v3555_v61, %v2941_v52 }
 0x150   :  { %v2211_v45 = vpop.f32.mrf.mxu0 }
 0x151   :  { %v2209_v49 = vadd.f32 %v2208_v55, %v2040_v46  ;;  %1743 = vmatmul.bf16.gmra.mxu1 %v2910_v11  ;;  %1912 = vmatmul.bf16.gmra.mxu2 %v2914_v16  ;;  %v2927_v55 = vld [vmem:[%s5304_s0 + $0x1f4] sm:$0xf0] }
 0x152   :  { %2081 = vmatmul.bf16.gmra.mxu3 %v2918_v1  ;;  %v2930_v60 = vor.u32 %v3551_v50, %v2927_v55  ;;  %v2955_v50 = vld [vmem:[%s5304_s0 + $0x224] sm:$0xf0]  ;;  %v2961_v55 = vld [vmem:[%s5304_s0 + $0x218] sm:$0xf] }
 0x153   :  { %3470 = vmatmul.msk.bf16.gmra.mxu0 %vm1407_vm2, %v2922_v9  ;;  %v3698_v7 = vpack.c.bf16 %v2209_v49, %v2207_v47 }
 0x154   :  { %v1873_v12 = vpop.f32.mrf.mxu2 }
 0x155   :  { %3846 = vst [vmem:[%s5305_s2 + $0x10] sm:$0xff] %v3698_v7   ;;  %v2042_v25 = vpop.f32.mrf.mxu3  ;;  %v1874_v36 = vadd.f32 %v1873_v12, %v1705_v20  ;;  %v2953_v20 = vld [vmem:[%s5304_s0 + $0x210] sm:$0xf] }
 0x156   :  { %v1706_v4 = vpop.f32.mrf.mxu1 }
 0x157   :  { %v1707_v37 = vadd.f32 %v1706_v4, %v4373_v27  ;;  %v2043_v41 = vadd.f32 %v2042_v25, %v1874_v36  ;;  %v2938_v27 = vor.u32 %v3552_v17, %v2935_v2  ;;  %v2947_v4 = vld [vmem:[%s5304_s0 + $0x21c] sm:$0xf0] }
 0x158   :  { %v2213_v59 = vpop.f32.mrf.mxu0 }
 0x159   :  { %v2212_v53 = vadd.f32 %v2211_v45, %v2043_v41  ;;  %v3556_v45 = vld [vmem:[%s5304_s0 + $0x20c] sm:$0xf]  ;;  %v2962_v41 = vor.u32 %v3560_v35, %v2961_v55 }
 0x15a   :  { %v2950_v52 = vor.u32 %v3556_v45, %v2947_v4  ;;  %v3565_v45 = vld [vmem:[%s5304_s0 + $0x250] sm:$0xf0] }
 0x15c   :  { %v1875_v39 = vpop.f32.mrf.mxu2 }
 0x15d   :  { %v1876_v19 = vadd.f32 %v1875_v39, %v1707_v37  ;;  %v2044_v8 = vpop.f32.mrf.mxu3 }
 0x15e   :  { %v1709_v21 = vpop.f32.mrf.mxu1 }
 0x15f   :  { %v2045_v11 = vadd.f32 %v2044_v8, %v1876_v19  ;;  %v1710_v7 = vadd.f32 %v1709_v21, %v4405_v51  ;;  %v3557_v51 = vld [vmem:[%s5304_s0 + $0x214] sm:$0xf] }
 0x160   :  { %v2216_v16 = vpop.f32.mrf.mxu0 }
 0x161   :  { %v2214_v1 = vadd.f32 %v2213_v59, %v2045_v11  ;;  %1748 = vmatmul.bf16.gmra.mxu1 %v2930_v60  ;;  %1917 = vmatmul.bf16.gmra.mxu2 %v2934_v43  ;;  %v3559_v59 = vld [vmem:[%s5304_s0 + $0x220] sm:$0xf0] }
 0x162   :  { %2086 = vmatmul.bf16.gmra.mxu3 %v2938_v27  ;;  %v2954_v61 = vor.u32 %v3559_v59, %v2953_v20 }
 0x163   :  { %3471 = vmatmul.msk.bf16.gmra.mxu0 %vm1407_vm2, %v2942_v23  ;;  %v3703_v9 = vpack.c.bf16 %v2214_v1, %v2212_v53 }
 0x164   :  { %v1878_v46 = vpop.f32.mrf.mxu2 }
 0x165   :  { %3847 = vst [vmem:[%s5305_s2 + $0x18] sm:$0xff] %v3703_v9   ;;  %v2047_v47 = vpop.f32.mrf.mxu3  ;;  %v1879_v25 = vadd.f32 %v1878_v46, %v1710_v7  ;;  %v2967_v46 = vld [vmem:[%s5304_s0 + $0x244] sm:$0xf0] }
 0x166   :  { %v1711_v49 = vpop.f32.mrf.mxu1 }
 0x167   :  { %v1712_v36 = vadd.f32 %v1711_v49, %v4414_v57  ;;  %v2048_v17 = vadd.f32 %v2047_v47, %v1879_v25  ;;  %v2958_v57 = vor.u32 %v3557_v51, %v2955_v50  ;;  %v2973_v47 = vld [vmem:[%s5304_s0 + $0x238] sm:$0xf]  ;;  %v3564_v49 = vld [vmem:[%s5304_s0 + $0x248] sm:$0xf0]  ;;  %v2981_v25 = vld [vmem:[%s5304_s0 + $0x240] sm:$0xf] }
 0x168   :  { %v2218_v12 = vpop.f32.mrf.mxu0  ;;  %v2974_v50 = vor.u32 %v3564_v49, %v2973_v47  ;;  %v2982_v35 = vor.u32 %v3565_v45, %v2981_v25 }
 0x169   :  { %v2217_v60 = vadd.f32 %v2216_v16, %v2048_v17  ;;  %v3561_v16 = vld [vmem:[%s5304_s0 + $0x234] sm:$0xf] }
 0x16c   :  { %v1880_v30 = vpop.f32.mrf.mxu2 }
 0x16d   :  { %v1881_v37 = vadd.f32 %v1880_v30, %v1712_v36  ;;  %v2049_v2 = vpop.f32.mrf.mxu3  ;;  %v2970_v36 = vor.u32 %v3561_v16, %v2967_v46 }
 0x16e   :  { %v1714_v39 = vpop.f32.mrf.mxu1 }
 0x16f   :  { %v2050_v19 = vadd.f32 %v2049_v2, %v1881_v37  ;;  %v1715_v53 = vadd.f32 %v1714_v39, %v4446_v29  ;;  %v3562_v29 = vld [vmem:[%s5304_s0 + $0x23c] sm:$0xf] }
 0x170   :  { %v2221_v8 = vpop.f32.mrf.mxu0 }
 0x171   :  { %v2219_v43 = vadd.f32 %v2218_v12, %v2050_v19  ;;  %1753 = vmatmul.bf16.gmra.mxu1 %v2950_v52  ;;  %1922 = vmatmul.bf16.gmra.mxu2 %v2954_v61  ;;  %v2975_v12 = vld [vmem:[%s5304_s0 + $0x24c] sm:$0xf0] }
 0x172   :  { %2091 = vmatmul.bf16.gmra.mxu3 %v2958_v57 }
 0x173   :  { %3472 = vmatmul.msk.bf16.gmra.mxu0 %vm1407_vm2, %v2962_v41  ;;  %v3708_v21 = vpack.c.bf16 %v2219_v43, %v2217_v60  ;;  %v2987_v43 = vld [vmem:[%s5304_s0 + $0x26c] sm:$0xf0] }
 0x174   :  { %v1883_v27 = vpop.f32.mrf.mxu2 }
 0x175   :  { %3848 = vst [vmem:[%s5305_s2 + $0x20] sm:$0xff] %v3708_v21   ;;  %v2052_v23 = vpop.f32.mrf.mxu3  ;;  %v1884_v9 = vadd.f32 %v1883_v27, %v1715_v53  ;;  %v2993_v21 = vld [vmem:[%s5304_s0 + $0x260] sm:$0xf]  ;;  %v3569_v27 = vld [vmem:[%s5304_s0 + $0x270] sm:$0xf0] }
 0x176   :  { %v1716_v11 = vpop.f32.mrf.mxu1  ;;  %v3001_v53 = vld [vmem:[%s5304_s0 + $0x268] sm:$0xf] }
 0x177   :  { %v1717_v7 = vadd.f32 %v1716_v11, %v4455_v33  ;;  %v2053_v20 = vadd.f32 %v2052_v23, %v1884_v9  ;;  %v2978_v33 = vor.u32 %v3562_v29, %v2975_v12  ;;  %v2995_v11 = vld [vmem:[%s5304_s0 + $0x274] sm:$0xf0]  ;;  %v2994_v29 = vor.u32 %v3569_v27, %v2993_v21 }
 0x178   :  { %v2223_v1 = vpop.f32.mrf.mxu0 }
 0x179   :  { %v2222_v37 = vadd.f32 %v2221_v8, %v2053_v20  ;;  %v3566_v8 = vld [vmem:[%s5304_s0 + $0x25c] sm:$0xf] }
 0x17a   :  { %v2990_v49 = vor.u32 %v3566_v8, %v2987_v43 }
 0x17c   :  { %v1885_v4 = vpop.f32.mrf.mxu2 }
 0x17d   :  { %v1886_v59 = vadd.f32 %v1885_v4, %v1717_v7  ;;  %v2054_v51 = vpop.f32.mrf.mxu3 }
 0x17e   :  { %v1719_v55 = vpop.f32.mrf.mxu1 }
 0x17f   :  { %v2055_v30 = vadd.f32 %v2054_v51, %v1886_v59  ;;  %v1720_v41 = vadd.f32 %v1719_v55, %v4487_v13  ;;  %v3567_v13 = vld [vmem:[%s5304_s0 + $0x264] sm:$0xf] }
 0x180   :  { %v2226_v17 = vpop.f32.mrf.mxu0 }
 0x181   :  { %v2224_v2 = vadd.f32 %v2223_v1, %v2055_v30  ;;  %1758 = vmatmul.bf16.gmra.mxu1 %v2970_v36  ;;  %1927 = vmatmul.bf16.gmra.mxu2 %v2974_v50  ;;  %v3570_v1 = vld [vmem:[%s5304_s0 + $0x278] sm:$0xf0]  ;;  %v3571_v30 = vld [vmem:[%s5304_s0 + $0x284] sm:$0xf] }
 0x182   :  { %2096 = vmatmul.bf16.gmra.mxu3 %v2978_v33  ;;  %v3002_v12 = vor.u32 %v3570_v1, %v3001_v53 }
 0x183   :  { %3473 = vmatmul.msk.bf16.gmra.mxu0 %vm1407_vm2, %v2982_v35  ;;  %v3713_v52 = vpack.c.bf16 %v2224_v2, %v2222_v37  ;;  %v3013_v37 = vld [vmem:[%s5304_s0 + $0x288] sm:$0xf]  ;;  %v3574_v2 = vld [vmem:[%s5304_s0 + $0x298] sm:$0xf0] }
 0x184   :  { %v1888_v61 = vpop.f32.mrf.mxu2  ;;  %v3014_v21 = vor.u32 %v3574_v2, %v3013_v37 }
 0x185   :  { %3849 = vst [vmem:[%s5305_s2 + $0x28] sm:$0xff] %v3713_v52   ;;  %v2057_v39 = vpop.f32.mrf.mxu3  ;;  %v1889_v60 = vadd.f32 %v1888_v61, %v1720_v41  ;;  %v3015_v61 = vld [vmem:[%s5304_s0 + $0x29c] sm:$0xf0] }
 0x186   :  { %v1721_v57 = vpop.f32.mrf.mxu1 }
 0x187   :  { %v1722_v23 = vadd.f32 %v1721_v57, %v4496_v3  ;;  %v2058_v16 = vadd.f32 %v2057_v39, %v1889_v60  ;;  %v2998_v3 = vor.u32 %v3567_v13, %v2995_v11  ;;  %v3021_v39 = vld [vmem:[%s5304_s0 + $0x290] sm:$0xf]  ;;  %v3575_v57 = vld [vmem:[%s5304_s0 + $0x2a0] sm:$0xf0] }
 0x188   :  { %v2228_v19 = vpop.f32.mrf.mxu0  ;;  %v3022_v13 = vor.u32 %v3575_v57, %v3021_v39 }
 0x189   :  { %v2227_v4 = vadd.f32 %v2226_v17, %v2058_v16  ;;  %v3007_v17 = vld [vmem:[%s5304_s0 + $0x294] sm:$0xf0] }
 0x18a   :  { %v3010_v43 = vor.u32 %v3571_v30, %v3007_v17 }
 0x18c   :  { %v1890_v9 = vpop.f32.mrf.mxu2 }
 0x18d   :  { %v1891_v46 = vadd.f32 %v1890_v9, %v1722_v23  ;;  %v2059_v47 = vpop.f32.mrf.mxu3 }
 0x18e   :  { %v1724_v7 = vpop.f32.mrf.mxu1 }
 0x18f   :  { %v2060_v25 = vadd.f32 %v2059_v47, %v1891_v46  ;;  %v1725_v55 = vadd.f32 %v1724_v7, %v4528_v40  ;;  %v3572_v40 = vld [vmem:[%s5304_s0 + $0x28c] sm:$0xf] }
 0x190   :  { %v2231_v45 = vpop.f32.mrf.mxu0 }
 0x191   :  { %v2229_v20 = vadd.f32 %v2228_v19, %v2060_v25  ;;  %1763 = vmatmul.bf16.gmra.mxu1 %v2990_v49  ;;  %1932 = vmatmul.bf16.gmra.mxu2 %v2994_v29  ;;  %v3033_v25 = vld [vmem:[%s5304_s0 + $0x2b0] sm:$0xf] }
 0x192   :  { %2101 = vmatmul.bf16.gmra.mxu3 %v2998_v3  ;;  %v3576_v3 = vld [vmem:[%s5304_s0 + $0x2ac] sm:$0xf] }
 0x193   :  { %3474 = vmatmul.msk.bf16.gmra.mxu0 %vm1407_vm2, %v3002_v12  ;;  %v3718_v59 = vpack.c.bf16 %v2229_v20, %v2227_v4  ;;  %v3027_v12 = vld [vmem:[%s5304_s0 + $0x2bc] sm:$0xf0]  ;;  %v3035_v20 = vld [vmem:[%s5304_s0 + $0x2c4] sm:$0xf0] }
 0x194   :  { %v1893_v51 = vpop.f32.mrf.mxu2 }
 0x195   :  { %3850 = vst [vmem:[%s5305_s2 + $0x30] sm:$0xff] %v3718_v59   ;;  %v2062_v36 = vpop.f32.mrf.mxu3  ;;  %v1894_v35 = vadd.f32 %v1893_v51, %v1725_v55  ;;  %v3041_v59 = vld [vmem:[%s5304_s0 + $0x2b8] sm:$0xf]  ;;  %v3580_v51 = vld [vmem:[%s5304_s0 + $0x2c8] sm:$0xf0] }
 0x196   :  { %v1726_v50 = vpop.f32.mrf.mxu1  ;;  %v3042_v37 = vor.u32 %v3580_v51, %v3041_v59 }
 0x197   :  { %v1727_v52 = vadd.f32 %v1726_v50, %v4537_v5  ;;  %v2063_v19 = vadd.f32 %v2062_v36, %v1894_v35  ;;  %v3018_v5 = vor.u32 %v3572_v40, %v3015_v61  ;;  %v3030_v35 = vor.u32 %v3576_v3, %v3027_v12 }
 0x198   :  { %v2233_v33 = vpop.f32.mrf.mxu0 }
 0x199   :  { %v2232_v53 = vadd.f32 %v2231_v45, %v2063_v19  ;;  %v3579_v45 = vld [vmem:[%s5304_s0 + $0x2c0] sm:$0xf0] }
 0x19a   :  { %v3034_v30 = vor.u32 %v3579_v45, %v3033_v25 }
 0x19c   :  { %v1895_v41 = vpop.f32.mrf.mxu2 }
 0x19d   :  { %v1896_v60 = vadd.f32 %v1895_v41, %v1727_v52  ;;  %v2064_v8 = vpop.f32.mrf.mxu3 }
 0x19e   :  { %v1729_v27 = vpop.f32.mrf.mxu1 }
 0x19f   :  { %v2065_v23 = vadd.f32 %v2064_v8, %v1896_v60  ;;  %v1730_v49 = vadd.f32 %v1729_v27, %v4239_v18  ;;  %v3577_v18 = vld [vmem:[%s5304_s0 + $0x2b4] sm:$0xf]  ;;  %v3047_v27 = vld [vmem:[%s5304_s0 + $0x2e4] sm:$0xf0] }
 0x1a0   :  { %v2236_v11 = vpop.f32.mrf.mxu0 }
 0x1a1   :  { %v2234_v1 = vadd.f32 %v2233_v33, %v2065_v23  ;;  %1768 = vmatmul.bf16.gmra.mxu1 %v3010_v43  ;;  %1937 = vmatmul.bf16.gmra.mxu2 %v3014_v21  ;;  %v3581_v21 = vld [vmem:[%s5304_s0 + $0x2d4] sm:$0xf] }
 0x1a2   :  { %2106 = vmatmul.bf16.gmra.mxu3 %v3018_v5  ;;  %v3053_v5 = vld [vmem:[%s5304_s0 + $0x2d8] sm:$0xf] }
 0x1a3   :  { %3475 = vmatmul.msk.bf16.gmra.mxu0 %vm1407_vm2, %v3022_v13  ;;  %v3723_v9 = vpack.c.bf16 %v2234_v1, %v2232_v53  ;;  %v3584_v13 = vld [vmem:[%s5304_s0 + $0x2e8] sm:$0xf0]  ;;  %v3061_v53 = vld [vmem:[%s5304_s0 + $0x2e0] sm:$0xf]  ;;  %v3585_v1 = vld [vmem:[%s5304_s0 + $0x2f0] sm:$0xf0] }
 0x1a4   :  { %v1898_v16 = vpop.f32.mrf.mxu2  ;;  %v3062_v3 = vor.u32 %v3585_v1, %v3061_v53 }
 0x1a5   :  { %3851 = vst [vmem:[%s5305_s2 + $0x38] sm:$0xff] %v3723_v9   ;;  %v2067_v46 = vpop.f32.mrf.mxu3  ;;  %v1899_v7 = vadd.f32 %v1898_v16, %v1730_v49  ;;  %v3050_v49 = vor.u32 %v3581_v21, %v3047_v27 }
 0x1a6   :  { %v1731_v47 = vpop.f32.mrf.mxu1 }
 0x1a7   :  { %v1732_v4 = vadd.f32 %v1731_v47, %v4248_v24  ;;  %v2068_v50 = vadd.f32 %v2067_v46, %v1899_v7  ;;  %v3038_v24 = vor.u32 %v3577_v18, %v3035_v20 }
 0x1a8   :  { %v2238_v29 = vpop.f32.mrf.mxu0 }
 0x1a9   :  { %v2237_v52 = vadd.f32 %v2236_v11, %v2068_v50  ;;  %v3055_v11 = vld [vmem:[%s5304_s0 + $0x2ec] sm:$0xf0] }
 0x1ac   :  { %v1900_v36 = vpop.f32.mrf.mxu2 }
 0x1ad   :  { %v1901_v55 = vadd.f32 %v1900_v36, %v1732_v4  ;;  %v2069_v33 = vpop.f32.mrf.mxu3 }
 0x1ae   :  { %v1734_v17 = vpop.f32.mrf.mxu1 }
 0x1af   :  { %v2070_v2 = vadd.f32 %v2069_v33, %v1901_v55  ;;  %v1735_v60 = vadd.f32 %v1734_v17, %v4280_v38  ;;  %v3582_v38 = vld [vmem:[%s5304_s0 + $0x2dc] sm:$0xf]  ;;  %v3589_v17 = vld [vmem:[%s5304_s0 + $0x310] sm:$0xf0] }
 0x1b0   :  { %v2241_v40 = vpop.f32.mrf.mxu0  ;;  %v3586_v33 = vld [vmem:[%s5304_s0 + $0x2fc] sm:$0xf] }
 0x1b1   :  { %v2239_v61 = vadd.f32 %v2238_v29, %v2070_v2  ;;  %1773 = vmatmul.bf16.gmra.mxu1 %v3030_v35  ;;  %1942 = vmatmul.bf16.gmra.mxu2 %v3034_v30  ;;  %v3054_v29 = vor.u32 %v3584_v13, %v3053_v5  ;;  %v3067_v35 = vld [vmem:[%s5304_s0 + $0x30c] sm:$0xf0]  ;;  %v3073_v30 = vld [vmem:[%s5304_s0 + $0x300] sm:$0xf]  ;;  %v3081_v2 = vld [vmem:[%s5304_s0 + $0x308] sm:$0xf] }
 0x1b2   :  { %2111 = vmatmul.bf16.gmra.mxu3 %v3038_v24 }
 0x1b3   :  { %3476 = vmatmul.msk.bf16.gmra.mxu0 %vm1407_vm2, %v3042_v37  ;;  %v3728_v39 = vpack.c.bf16 %v2239_v61, %v2237_v52  ;;  %v3075_v37 = vld [vmem:[%s5304_s0 + $0x314] sm:$0xf0] }
 0x1b4   :  { %v1903_v57 = vpop.f32.mrf.mxu2 }
 0x1b5   :  { %3852 = vst [vmem:[%s5305_s2 + $0x40] sm:$0xff] %v3728_v39   ;;  %v2072_v41 = vpop.f32.mrf.mxu3  ;;  %v1904_v43 = vadd.f32 %v1903_v57, %v1735_v60 }
 0x1b6   :  { %v1736_v19 = vpop.f32.mrf.mxu1 }
 0x1b7   :  { %v1737_v23 = vadd.f32 %v1736_v19, %v4289_v44  ;;  %v2073_v16 = vadd.f32 %v2072_v41, %v1904_v43  ;;  %v3058_v44 = vor.u32 %v3582_v38, %v3055_v11  ;;  %v3070_v41 = vor.u32 %v3586_v33, %v3067_v35 }
 0x1b8   :  { %v2243_v8 = vpop.f32.mrf.mxu0  ;;  %v3074_v19 = vor.u32 %v3589_v17, %v3073_v30 }
 0x1b9   :  { %v2242_v45 = vadd.f32 %v2241_v40, %v2073_v16  ;;  %v3590_v40 = vld [vmem:[%s5304_s0 + $0x318] sm:$0xf0]  ;;  %v3591_v16 = vld [vmem:[%s5304_s0 + $0x324] sm:$0xf] }
 0x1bc   :  { %v1905_v9 = vpop.f32.mrf.mxu2 }
 0x1bd   :  { %v1906_v46 = vadd.f32 %v1905_v9, %v1737_v23  ;;  %v2074_v47 = vpop.f32.mrf.mxu3 }
 0x1be   :  { %v1739_v7 = vpop.f32.mrf.mxu1 }
 0x1bf   :  { %v2075_v12 = vadd.f32 %v2074_v47, %v1906_v46  ;;  %v1740_v36 = vadd.f32 %v1739_v7, %v4321_v58  ;;  %v3587_v58 = vld [vmem:[%s5304_s0 + $0x304] sm:$0xf]  ;;  %v3087_v46 = vld [vmem:[%s5304_s0 + $0x334] sm:$0xf0]  ;;  %v3093_v47 = vld [vmem:[%s5304_s0 + $0x328] sm:$0xf] }
 0x1c0   :  { %v2246_v25 = vpop.f32.mrf.mxu0  ;;  %v3095_v7 = vld [vmem:[%s5304_s0 + $0x33c] sm:$0xf0] }
 0x1c1   :  { %v2244_v18 = vadd.f32 %v2243_v8, %v2075_v12  ;;  %1778 = vmatmul.bf16.gmra.mxu1 %v3050_v49  ;;  %1947 = vmatmul.bf16.gmra.mxu2 %v3054_v29  ;;  %v3082_v8 = vor.u32 %v3590_v40, %v3081_v2  ;;  %v3594_v49 = vld [vmem:[%s5304_s0 + $0x338] sm:$0xf0]  ;;  %v3596_v40 = vld [vmem:[%s5304_s0 + $0x34c] sm:$0xf] }
 0x1c2   :  { %2116 = vmatmul.bf16.gmra.mxu3 %v3058_v44  ;;  %v3101_v44 = vld [vmem:[%s5304_s0 + $0x330] sm:$0xf] }
 0x1c3   :  { %3477 = vmatmul.msk.bf16.gmra.mxu0 %vm1407_vm2, %v3062_v3  ;;  %v3733_v4 = vpack.c.bf16 %v2244_v18, %v2242_v45  ;;  %v3595_v3 = vld [vmem:[%s5304_s0 + $0x340] sm:$0xf0] }
 0x1c4   :  { %v1908_v20 = vpop.f32.mrf.mxu2 }
 0x1c5   :  { %3853 = vst [vmem:[%s5305_s2 + $0x48] sm:$0xff] %v3733_v4   ;;  %v2077_v59 = vpop.f32.mrf.mxu3  ;;  %v1909_v55 = vadd.f32 %v1908_v20, %v1740_v36  ;;  %v3090_v4 = vor.u32 %v3591_v16, %v3087_v46  ;;  %v3094_v20 = vor.u32 %v3594_v49, %v3093_v47 }
 0x1c6   :  { %v1741_v51 = vpop.f32.mrf.mxu1 }
 0x1c7   :  { %v1742_v24 = vadd.f32 %v1741_v51, %v4330_v0  ;;  %v2078_v61 = vadd.f32 %v2077_v59, %v1909_v55  ;;  %v3078_v0 = vor.u32 %v3587_v58, %v3075_v37  ;;  %v3102_v51 = vor.u32 %v3595_v3, %v3101_v44  ;;  %v3127_v44 = vld [vmem:[%s5304_s0 + $0x384] sm:$0xf0]  ;;  %v3133_v3 = vld [vmem:[%s5304_s0 + $0x378] sm:$0xf] }
 0x1c8   :  { %v2248_v50 = vpop.f32.mrf.mxu0 }
 0x1c9   :  { %v2247_v27 = vadd.f32 %v2246_v25, %v2078_v61  ;;  %v3113_v61 = vld [vmem:[%s5304_s0 + $0x350] sm:$0xf] }
 0x1cc   :  { %v1910_v52 = vpop.f32.mrf.mxu2 }
 0x1cd   :  { %v1911_v39 = vadd.f32 %v1910_v52, %v1742_v24  ;;  %v2079_v57 = vpop.f32.mrf.mxu3  ;;  %v3107_v52 = vld [vmem:[%s5304_s0 + $0x35c] sm:$0xf0] }
 0x1ce   :  { %v1744_v60 = vpop.f32.mrf.mxu1 }
 0x1cf   :  { %v2080_v43 = vadd.f32 %v2079_v57, %v1911_v39  ;;  %v1745_v53 = vadd.f32 %v1744_v60, %v4362_v14  ;;  %v3592_v14 = vld [vmem:[%s5304_s0 + $0x32c] sm:$0xf]  ;;  %v3599_v39 = vld [vmem:[%s5304_s0 + $0x360] sm:$0xf0] }
 0x1d0   :  { %v2251_v21 = vpop.f32.mrf.mxu0  ;;  %v3600_v60 = vld [vmem:[%s5304_s0 + $0x368] sm:$0xf0] }
 0x1d1   :  { %v2249_v5 = vadd.f32 %v2248_v50, %v2080_v43  ;;  %1783 = vmatmul.bf16.gmra.mxu1 %v3070_v41  ;;  %1952 = vmatmul.bf16.gmra.mxu2 %v3074_v19  ;;  %v3115_v41 = vld [vmem:[%s5304_s0 + $0x364] sm:$0xf0]  ;;  %v3121_v19 = vld [vmem:[%s5304_s0 + $0x358] sm:$0xf] }
 0x1d2   :  { %2121 = vmatmul.bf16.gmra.mxu3 %v3078_v0 }
 0x1d3   :  { %3478 = vmatmul.msk.bf16.gmra.mxu0 %vm1407_vm2, %v3082_v8  ;;  %v3738_v13 = vpack.c.bf16 %v2249_v5, %v2247_v27  ;;  %v3110_v27 = vor.u32 %v3596_v40, %v3107_v52  ;;  %v3114_v5 = vor.u32 %v3599_v39, %v3113_v61 }
 0x1d4   :  { %v1913_v38 = vpop.f32.mrf.mxu2 }
 0x1d5   :  { %3854 = vst [vmem:[%s5305_s2 + $0x50] sm:$0xff] %v3738_v13   ;;  %v2082_v23 = vpop.f32.mrf.mxu3  ;;  %v1914_v9 = vadd.f32 %v1913_v38, %v1745_v53  ;;  %v3122_v38 = vor.u32 %v3600_v60, %v3121_v19  ;;  %v3609_v19 = vld [vmem:[%s5304_s0 + $0x3b0] sm:$0xf0] }
 0x1d6   :  { %v1746_v11 = vpop.f32.mrf.mxu1 }
 0x1d7   :  { %v1747_v29 = vadd.f32 %v1746_v11, %v4371_v26  ;;  %v2083_v25 = vadd.f32 %v2082_v23, %v1914_v9  ;;  %v3098_v26 = vor.u32 %v3592_v14, %v3095_v7  ;;  %v3601_v7 = vld [vmem:[%s5304_s0 + $0x374] sm:$0xf] }
 0x1d8   :  { %v2253_v1 = vpop.f32.mrf.mxu0 }
 0x1d9   :  { %v2252_v55 = vadd.f32 %v2251_v21, %v2083_v25 }
 0x1dc   :  { %v1915_v12 = vpop.f32.mrf.mxu2 }
 0x1dd   :  { %v1916_v45 = vadd.f32 %v1915_v12, %v1747_v29  ;;  %v2084_v18 = vpop.f32.mrf.mxu3  ;;  %v3604_v12 = vld [vmem:[%s5304_s0 + $0x388] sm:$0xf0] }
 0x1de   :  { %v1749_v59 = vpop.f32.mrf.mxu1 }
 0x1df   :  { %v2085_v36 = vadd.f32 %v2084_v18, %v1916_v45  ;;  %v1750_v24 = vadd.f32 %v1749_v59, %v4403_v48  ;;  %v3597_v48 = vld [vmem:[%s5304_s0 + $0x354] sm:$0xf]  ;;  %v3135_v45 = vld [vmem:[%s5304_s0 + $0x38c] sm:$0xf0]  ;;  %v3141_v18 = vld [vmem:[%s5304_s0 + $0x380] sm:$0xf] }
 0x1e0   :  { %v2256_v50 = vpop.f32.mrf.mxu0 }
 0x1e1   :  { %v2254_v33 = vadd.f32 %v2253_v1, %v2085_v36  ;;  %1788 = vmatmul.bf16.gmra.mxu1 %v3090_v4  ;;  %1957 = vmatmul.bf16.gmra.mxu2 %v3094_v20  ;;  %v3605_v4 = vld [vmem:[%s5304_s0 + $0x390] sm:$0xf0]  ;;  %v3130_v36 = vor.u32 %v3601_v7, %v3127_v44 }
 0x1e2   :  { %2126 = vmatmul.bf16.gmra.mxu3 %v3098_v26 }
 0x1e3   :  { %3479 = vmatmul.msk.bf16.gmra.mxu0 %vm1407_vm2, %v3102_v51  ;;  %v3743_v35 = vpack.c.bf16 %v2254_v33, %v2252_v55  ;;  %v3142_v33 = vor.u32 %v3605_v4, %v3141_v18  ;;  %v3175_v18 = vld [vmem:[%s5304_s0 + $0x3dc] sm:$0xf0]  ;;  %v3181_v4 = vld [vmem:[%s5304_s0 + $0x3d0] sm:$0xf] }
 0x1e4   :  { %v1918_v30 = vpop.f32.mrf.mxu2 }
 0x1e5   :  { %3855 = vst [vmem:[%s5305_s2 + $0x58] sm:$0xff] %v3743_v35   ;;  %v2087_v17 = vpop.f32.mrf.mxu3  ;;  %v1919_v2 = vadd.f32 %v1918_v30, %v1750_v24 }
 0x1e6   :  { %v1751_v58 = vpop.f32.mrf.mxu1 }
 0x1e7   :  { %v1752_v57 = vadd.f32 %v1751_v58, %v4412_v56  ;;  %v2088_v8 = vadd.f32 %v2087_v17, %v1919_v2  ;;  %v3118_v56 = vor.u32 %v3597_v48, %v3115_v41  ;;  %v3606_v48 = vld [vmem:[%s5304_s0 + $0x39c] sm:$0xf]  ;;  %v3153_v41 = vld [vmem:[%s5304_s0 + $0x3a0] sm:$0xf] }
 0x1e8   :  { %v2258_v37 = vpop.f32.mrf.mxu0 }
 0x1e9   :  { %v2257_v53 = vadd.f32 %v2256_v50, %v2088_v8  ;;  %v3134_v50 = vor.u32 %v3604_v12, %v3133_v3  ;;  %v3161_v8 = vld [vmem:[%s5304_s0 + $0x3a8] sm:$0xf]  ;;  %v3611_v3 = vld [vmem:[%s5304_s0 + $0x3c4] sm:$0xf]  ;;  %v3167_v12 = vld [vmem:[%s5304_s0 + $0x3d4] sm:$0xf0] }
 0x1ec   :  { %v1920_v0 = vpop.f32.mrf.mxu2 }
 0x1ed   :  { %v1921_v43 = vadd.f32 %v1920_v0, %v1752_v57  ;;  %v2089_v21 = vpop.f32.mrf.mxu3  ;;  %v3147_v57 = vld [vmem:[%s5304_s0 + $0x3ac] sm:$0xf0]  ;;  %v3155_v0 = vld [vmem:[%s5304_s0 + $0x3b4] sm:$0xf0] }
 0x1ee   :  { %v1754_v13 = vpop.f32.mrf.mxu1 }
 0x1ef   :  { %v2090_v23 = vadd.f32 %v2089_v21, %v1921_v43  ;;  %v1755_v49 = vadd.f32 %v1754_v13, %v4444_v15  ;;  %v3602_v15 = vld [vmem:[%s5304_s0 + $0x37c] sm:$0xf] }
 0x1f0   :  { %v2261_v11 = vpop.f32.mrf.mxu0  ;;  %v3610_v43 = vld [vmem:[%s5304_s0 + $0x3b8] sm:$0xf0] }
 0x1f1   :  { %v2259_v1 = vadd.f32 %v2258_v37, %v2090_v23  ;;  %1793 = vmatmul.bf16.gmra.mxu1 %v3110_v27  ;;  %1962 = vmatmul.bf16.gmra.mxu2 %v3114_v5 }
 0x1f2   :  { %2131 = vmatmul.bf16.gmra.mxu3 %v3118_v56  ;;  %v3150_v56 = vor.u32 %v3606_v48, %v3147_v57  ;;  %v3616_v48 = vld [vmem:[%s5304_s0 + $0x3ec] sm:$0xf]  ;;  %v3187_v57 = vld [vmem:[%s5304_s0 + $0x3fc] sm:$0xf0] }
 0x1f3   :  { %3480 = vmatmul.msk.bf16.gmra.mxu0 %vm1407_vm2, %v3122_v38  ;;  %v3748_v9 = vpack.c.bf16 %v2259_v1, %v2257_v53  ;;  %v3154_v38 = vor.u32 %v3609_v19, %v3153_v41  ;;  %v3193_v41 = vld [vmem:[%s5304_s0 + $0x3f0] sm:$0xf]  ;;  %v3619_v19 = vld [vmem:[%s5304_s0 + $0x400] sm:$0xf0] }
 0x1f4   :  { %v1923_v16 = vpop.f32.mrf.mxu2 }
 0x1f5   :  { %3856 = vst [vmem:[%s5305_s2 + $0x60] sm:$0xff] %v3748_v9   ;;  %v2092_v46 = vpop.f32.mrf.mxu3  ;;  %v1924_v29 = vadd.f32 %v1923_v16, %v1755_v49 }
 0x1f6   :  { %v1756_v47 = vpop.f32.mrf.mxu1 }
 0x1f7   :  { %v1757_v25 = vadd.f32 %v1756_v47, %v4453_v32  ;;  %v2093_v59 = vadd.f32 %v2092_v46, %v1924_v29  ;;  %v3138_v32 = vor.u32 %v3602_v15, %v3135_v45  ;;  %v3173_v15 = vld [vmem:[%s5304_s0 + $0x3c8] sm:$0xf] }
 0x1f8   :  { %v2263_v14 = vpop.f32.mrf.mxu0 }
 0x1f9   :  { %v2262_v17 = vadd.f32 %v2261_v11, %v2093_v59  ;;  %v3162_v11 = vor.u32 %v3610_v43, %v3161_v8  ;;  %v3620_v8 = vld [vmem:[%s5304_s0 + $0x408] sm:$0xf0] }
 0x1fc   :  { %v1925_v20 = vpop.f32.mrf.mxu2 }
 0x1fd   :  { %v1926_v26 = vadd.f32 %v1925_v20, %v1757_v25  ;;  %v2094_v51 = vpop.f32.mrf.mxu3  ;;  %v3614_v25 = vld [vmem:[%s5304_s0 + $0x3d8] sm:$0xf0]  ;;  %v3615_v20 = vld [vmem:[%s5304_s0 + $0x3e0] sm:$0xf0] }
 0x1fe   :  { %v1759_v55 = vpop.f32.mrf.mxu1 }
 0x1ff   :  { %v2095_v35 = vadd.f32 %v2094_v51, %v1926_v26  ;;  %v1760_v52 = vadd.f32 %v1759_v55, %v4485_v6  ;;  %v3607_v6 = vld [vmem:[%s5304_s0 + $0x3a4] sm:$0xf]  ;;  %v3174_v55 = vor.u32 %v3614_v25, %v3173_v15  ;;  %v3215_v25 = vld [vmem:[%s5304_s0 + $0x42c] sm:$0xf0] }
 0x200   :  { %v2266_v30 = vpop.f32.mrf.mxu0 }
 0x201   :  { %v2264_v58 = vadd.f32 %v2263_v14, %v2095_v35  ;;  %1798 = vmatmul.bf16.gmra.mxu1 %v3130_v36  ;;  %1967 = vmatmul.bf16.gmra.mxu2 %v3134_v50  ;;  %v3170_v50 = vor.u32 %v3611_v3, %v3167_v12  ;;  %v3213_v3 = vld [vmem:[%s5304_s0 + $0x418] sm:$0xf]  ;;  %v3624_v12 = vld [vmem:[%s5304_s0 + $0x428] sm:$0xf0] }
 0x202   :  { %2136 = vmatmul.bf16.gmra.mxu3 %v3138_v32 }
 0x203   :  { %3481 = vmatmul.msk.bf16.gmra.mxu0 %vm1407_vm2, %v3142_v33  ;;  %v3753_v24 = vpack.c.bf16 %v2264_v58, %v2262_v17  ;;  %v3182_v33 = vor.u32 %v3615_v20, %v3181_v4 }
 0x204   :  { %v1928_v37 = vpop.f32.mrf.mxu2 }
 0x205   :  { %3857 = vst [vmem:[%s5305_s2 + $0x68] sm:$0xff] %v3753_v24   ;;  %v2097_v2 = vpop.f32.mrf.mxu3  ;;  %v1929_v39 = vadd.f32 %v1928_v37, %v1760_v52 }
 0x206   :  { %v1761_v40 = vpop.f32.mrf.mxu1 }
 0x207   :  { %v1762_v60 = vadd.f32 %v1761_v40, %v4494_v31  ;;  %v2098_v27 = vadd.f32 %v2097_v2, %v1929_v39  ;;  %v3158_v31 = vor.u32 %v3607_v6, %v3155_v0  ;;  %v3201_v0 = vld [vmem:[%s5304_s0 + $0x3f8] sm:$0xf] }
 0x208   :  { %v2268_v61 = vpop.f32.mrf.mxu0 }
 0x209   :  { %v2267_v9 = vadd.f32 %v2266_v30, %v2098_v27 }
 0x20c   :  { %v1930_v21 = vpop.f32.mrf.mxu2 }
 0x20d   :  { %v1931_v5 = vadd.f32 %v1930_v21, %v1762_v60  ;;  %v2099_v13 = vpop.f32.mrf.mxu3  ;;  %v3195_v60 = vld [vmem:[%s5304_s0 + $0x404] sm:$0xf0] }
 0x20e   :  { %v1764_v23 = vpop.f32.mrf.mxu1 }
 0x20f   :  { %v2100_v53 = vadd.f32 %v2099_v13, %v1931_v5  ;;  %v1765_v29 = vadd.f32 %v1764_v23, %v4526_v28  ;;  %v3612_v28 = vld [vmem:[%s5304_s0 + $0x3cc] sm:$0xf]  ;;  %v3190_v13 = vor.u32 %v3616_v48, %v3187_v57  ;;  %v3202_v23 = vor.u32 %v3620_v8, %v3201_v0  ;;  %v3235_v57 = vld [vmem:[%s5304_s0 + $0x454] sm:$0xf0] }
 0x210   :  { %v2271_v1 = vpop.f32.mrf.mxu0 }
 0x211   :  { %v2269_v16 = vadd.f32 %v2268_v61, %v2100_v53  ;;  %1803 = vmatmul.bf16.gmra.mxu1 %v3150_v56  ;;  %1972 = vmatmul.bf16.gmra.mxu2 %v3154_v38  ;;  %v3194_v56 = vor.u32 %v3619_v19, %v3193_v41  ;;  %v3241_v41 = vld [vmem:[%s5304_s0 + $0x448] sm:$0xf]  ;;  %v3630_v19 = vld [vmem:[%s5304_s0 + $0x458] sm:$0xf0] }
 0x212   :  { %2141 = vmatmul.bf16.gmra.mxu3 %v3158_v31 }
 0x213   :  { %3482 = vmatmul.msk.bf16.gmra.mxu0 %vm1407_vm2, %v3162_v11  ;;  %v3758_v46 = vpack.c.bf16 %v2269_v16, %v2267_v9 }
 0x214   :  { %v1933_v47 = vpop.f32.mrf.mxu2 }
 0x215   :  { %3858 = vst [vmem:[%s5305_s2 + $0x70] sm:$0xff] %v3758_v46   ;;  %v2102_v49 = vpop.f32.mrf.mxu3  ;;  %v1934_v44 = vadd.f32 %v1933_v47, %v1765_v29 }
 0x216   :  { %v1766_v14 = vpop.f32.mrf.mxu1 }
 0x217   :  { %v1767_v45 = vadd.f32 %v1766_v14, %v4535_v63  ;;  %v2103_v26 = vadd.f32 %v2102_v49, %v1934_v44  ;;  %v3178_v63 = vor.u32 %v3612_v28, %v3175_v18  ;;  %v3207_v44 = vld [vmem:[%s5304_s0 + $0x424] sm:$0xf0]  ;;  %v3221_v28 = vld [vmem:[%s5304_s0 + $0x420] sm:$0xf] }
 0x218   :  { %v2273_v7 = vpop.f32.mrf.mxu0 }
 0x219   :  { %v2272_v17 = vadd.f32 %v2271_v1, %v2103_v26 }
 0x21c   :  { %v1935_v59 = vpop.f32.mrf.mxu2 }
 0x21d   :  { %v1936_v51 = vadd.f32 %v1935_v59, %v1767_v45  ;;  %v2104_v36 = vpop.f32.mrf.mxu3  ;;  %v3625_v45 = vld [vmem:[%s5304_s0 + $0x430] sm:$0xf0] }
 0x21e   :  { %v1769_v32 = vpop.f32.mrf.mxu1 }
 0x21f   :  { %v2105_v35 = vadd.f32 %v2104_v36, %v1936_v51  ;;  %v1770_v52 = vadd.f32 %v1769_v32, %v4244_v22  ;;  %v3617_v22 = vld [vmem:[%s5304_s0 + $0x3f4] sm:$0xf]  ;;  %v3214_v51 = vor.u32 %v3624_v12, %v3213_v3  ;;  %v3255_v3 = vld [vmem:[%s5304_s0 + $0x47c] sm:$0xf0]  ;;  %v3261_v12 = vld [vmem:[%s5304_s0 + $0x470] sm:$0xf] }
 0x220   :  { %v2276_v30 = vpop.f32.mrf.mxu0 }
 0x221   :  { %v2274_v58 = vadd.f32 %v2273_v7, %v2105_v35  ;;  %1808 = vmatmul.bf16.gmra.mxu1 %v3170_v50  ;;  %1977 = vmatmul.bf16.gmra.mxu2 %v3174_v55  ;;  %v3621_v7 = vld [vmem:[%s5304_s0 + $0x414] sm:$0xf]  ;;  %v3222_v50 = vor.u32 %v3625_v45, %v3221_v28 }
 0x222   :  { %2146 = vmatmul.bf16.gmra.mxu3 %v3178_v63  ;;  %v3210_v26 = vor.u32 %v3621_v7, %v3207_v44  ;;  %v5333_v7 = vld [vmem:[#allocation11_spill] sm:$0xff] }
 0x223   :  { %3483 = vmatmul.msk.bf16.gmra.mxu0 %vm1407_vm2, %v3182_v33  ;;  %v3763_v24 = vpack.c.bf16 %v2274_v58, %v2272_v17 }
 0x224   :  { %v1938_v37 = vpop.f32.mrf.mxu2 }
 0x225   :  { %3859 = vst [vmem:[%s5305_s2 + $0x78] sm:$0xff] %v3763_v24   ;;  %v2107_v2 = vpop.f32.mrf.mxu3  ;;  %v1939_v39 = vadd.f32 %v1938_v37, %v1770_v52  ;;  %v3227_v52 = vld [vmem:[%s5304_s0 + $0x44c] sm:$0xf0] }
 0x226   :  { %v1771_v40 = vpop.f32.mrf.mxu1 }
 0x227   :  { %v1772_v6 = vadd.f32 %v1771_v40, %v4276_v34  ;;  %v2108_v21 = vadd.f32 %v2107_v2, %v1939_v39  ;;  %v3198_v34 = vor.u32 %v3617_v22, %v3195_v60  ;;  %v3626_v40 = vld [vmem:[%s5304_s0 + $0x43c] sm:$0xf]  ;;  %v3629_v39 = vld [vmem:[%s5304_s0 + $0x450] sm:$0xf0] }
 0x228   :  { %v2278_v61 = vpop.f32.mrf.mxu0  ;;  %v3230_v8 = vor.u32 %v3626_v40, %v3227_v52  ;;  %v3639_v40 = vld [vmem:[%s5304_s0 + $0x4a0] sm:$0xf0]  ;;  %v3637_v52 = vld [vmem:[%s5304_s0 + $0x494] sm:$0xf] }
 0x229   :  { %v2277_v53 = vadd.f32 %v2276_v30, %v2108_v21 }
 0x22c   :  { %v1940_v43 = vpop.f32.mrf.mxu2 }
 0x22d   :  { %v1941_v27 = vadd.f32 %v1940_v43, %v1772_v6  ;;  %v2109_v5 = vpop.f32.mrf.mxu3 }
 0x22e   :  { %v1774_v38 = vpop.f32.mrf.mxu1 }
 0x22f   :  { %v2110_v31 = vadd.f32 %v2109_v5, %v1941_v27  ;;  %v1775_v49 = vadd.f32 %v1774_v38, %v4285_v42  ;;  %v3622_v42 = vld [vmem:[%s5304_s0 + $0x41c] sm:$0xf]  ;;  %v3242_v27 = vor.u32 %v3630_v19, %v3241_v41 }
 0x230   :  { %v2281_v11 = vpop.f32.mrf.mxu0 }
 0x231   :  { %v2279_v1 = vadd.f32 %v2278_v61, %v2110_v31  ;;  %1813 = vmatmul.bf16.gmra.mxu1 %v3190_v13  ;;  %1982 = vmatmul.bf16.gmra.mxu2 %v3194_v56  ;;  %v3233_v61 = vld [vmem:[%s5304_s0 + $0x440] sm:$0xf] }
 0x232   :  { %2151 = vmatmul.bf16.gmra.mxu3 %v3198_v34  ;;  %v3234_v43 = vor.u32 %v3629_v39, %v3233_v61  ;;  %v5335_v61 = vld [vmem:[#allocation15_spill] sm:$0xff] }
 0x233   :  { %3484 = vmatmul.msk.bf16.gmra.mxu0 %vm1407_vm2, %v3202_v23  ;;  %v3768_v9 = vpack.c.bf16 %v2279_v1, %v2277_v53  ;;  %v5332_v53 = vld [vmem:[#allocation9_spill] sm:$0xff] }
 0x234   :  { %v1943_v16 = vpop.f32.mrf.mxu2 }
 0x235   :  { %3860 = vst [vmem:[%s5305_s2 + $0x80] sm:$0xff] %v3768_v9   ;;  %v2112_v46 = vpop.f32.mrf.mxu3  ;;  %v1944_v29 = vadd.f32 %v1943_v16, %v1775_v49  ;;  %v3253_v49 = vld [vmem:[%s5304_s0 + $0x468] sm:$0xf] }
 0x236   :  { %v1776_v47 = vpop.f32.mrf.mxu1 }
 0x237   :  { %v1777_v15 = vadd.f32 %v1776_v47, %v4317_v54  ;;  %v2113_v4 = vadd.f32 %v2112_v46, %v1944_v29  ;;  %v3218_v54 = vor.u32 %v3622_v42, %v3215_v25  ;;  %v3631_v46 = vld [vmem:[%s5304_s0 + $0x464] sm:$0xf]  ;;  %v3247_v47 = vld [vmem:[%s5304_s0 + $0x474] sm:$0xf0]  ;;  %v3632_v29 = vld [vmem:[%s5304_s0 + $0x46c] sm:$0xf] }
 0x238   :  { %v2283_v14 = vpop.f32.mrf.mxu0  ;;  %v3635_v42 = vld [vmem:[%s5304_s0 + $0x480] sm:$0xf0] }
 0x239   :  { %v2282_v63 = vadd.f32 %v2281_v11, %v2113_v4 }
 0x23c   :  { %v1945_v18 = vpop.f32.mrf.mxu2 }
 0x23d   :  { %v1946_v20 = vadd.f32 %v1945_v18, %v1777_v15  ;;  %v2114_v59 = vpop.f32.mrf.mxu3  ;;  %v3250_v18 = vor.u32 %v3631_v46, %v3247_v47  ;;  %v3293_v46 = vld [vmem:[%s5304_s0 + $0x4b8] sm:$0xf]  ;;  %v3644_v47 = vld [vmem:[%s5304_s0 + $0x4c8] sm:$0xf0] }
 0x23e   :  { %v1779_v36 = vpop.f32.mrf.mxu1 }
 0x23f   :  { %v2115_v55 = vadd.f32 %v2114_v59, %v1946_v20  ;;  %v1780_v24 = vadd.f32 %v1779_v36, %v4326_v62  ;;  %v3627_v62 = vld [vmem:[%s5304_s0 + $0x444] sm:$0xf]  ;;  %v3258_v59 = vor.u32 %v3632_v29, %v3255_v3  ;;  %v3645_v3 = vld [vmem:[%s5304_s0 + $0x4d0] sm:$0xf0] }
 0x240   :  { %v2286_v32 = vpop.f32.mrf.mxu0 }
 0x241   :  { %v2284_v33 = vadd.f32 %v2283_v14, %v2115_v55  ;;  %1818 = vmatmul.bf16.gmra.mxu1 %v3210_v26  ;;  %1987 = vmatmul.bf16.gmra.mxu2 %v3214_v51  ;;  %v3634_v14 = vld [vmem:[%s5304_s0 + $0x478] sm:$0xf0]  ;;  %v3262_v26 = vor.u32 %v3635_v42, %v3261_v12 }
 0x242   :  { %2156 = vmatmul.bf16.gmra.mxu3 %v3218_v54  ;;  %v3254_v4 = vor.u32 %v3634_v14, %v3253_v49  ;;  %v3642_v49 = vld [vmem:[%s5304_s0 + $0x4bc] sm:$0xf]  ;;  %v5337_v14 = vld [vmem:[#allocation19_spill] sm:$0xff] }
 0x243   :  { %3485 = vmatmul.msk.bf16.gmra.mxu0 %vm1407_vm2, %v3222_v50  ;;  %v3773_v35 = vpack.c.bf16 %v2284_v33, %v2282_v63 }
 0x244   :  { %v1948_v30 = vpop.f32.mrf.mxu2 }
 0x245   :  { %3861 = vst [vmem:[%s5305_s2 + $0x88] sm:$0xff] %v3773_v35   ;;  %v2117_v17 = vpop.f32.mrf.mxu3  ;;  %v1949_v2 = vadd.f32 %v1948_v30, %v1780_v24  ;;  %v5334_v35 = vld [vmem:[#allocation13_spill] sm:$0xff]  ;;  %v3636_v24 = vld [vmem:[%s5304_s0 + $0x48c] sm:$0xf] }
 0x246   :  { %v1781_v58 = vpop.f32.mrf.mxu1 }
 0x247   :  { %v1782_v48 = vadd.f32 %v1781_v58, %v4358_v10  ;;  %v2118_v6 = vadd.f32 %v2117_v17, %v1949_v2  ;;  %v3238_v10 = vor.u32 %v3627_v62, %v3235_v57  ;;  %v3273_v2 = vld [vmem:[%s5304_s0 + $0x490] sm:$0xf]  ;;  %v3275_v62 = vld [vmem:[%s5304_s0 + $0x4a4] sm:$0xf0]  ;;  %v3640_v57 = vld [vmem:[%s5304_s0 + $0x4a8] sm:$0xf0] }
 0x248   :  { %v2288_v37 = vpop.f32.mrf.mxu0 }
 0x249   :  { %v2287_v56 = vadd.f32 %v2286_v32, %v2118_v6 }
 0x24c   :  { %v1950_v22 = vpop.f32.mrf.mxu2 }
 0x24d   :  { %v1951_v60 = vadd.f32 %v1950_v22, %v1782_v48  ;;  %v2119_v0 = vpop.f32.mrf.mxu3  ;;  %v3281_v48 = vld [vmem:[%s5304_s0 + $0x498] sm:$0xf] }
 0x24e   :  { %v1784_v21 = vpop.f32.mrf.mxu1 }
 0x24f   :  { %v2120_v5 = vadd.f32 %v2119_v0, %v1951_v60  ;;  %v1785_v1 = vadd.f32 %v1784_v21, %v5332_v53  ;;  %v3274_v0 = vor.u32 %v3639_v40, %v3273_v2  ;;  %v3282_v21 = vor.u32 %v3640_v57, %v3281_v48  ;;  %v3647_v2 = vld [vmem:[%s5304_s0 + $0x4e4] sm:$0xf] }
 0x250   :  { %v2291_v13 = vpop.f32.mrf.mxu0  ;;  %v5339_v40 = vld [vmem:[#allocation23_spill] sm:$0xff] }
 0x251   :  { %v2289_v38 = vadd.f32 %v2288_v37, %v2120_v5  ;;  %1823 = vmatmul.bf16.gmra.mxu1 %v3230_v8  ;;  %1992 = vmatmul.bf16.gmra.mxu2 %v3234_v43  ;;  %v3267_v37 = vld [vmem:[%s5304_s0 + $0x49c] sm:$0xf0]  ;;  %v3278_v43 = vor.u32 %v3637_v52, %v3275_v62  ;;  %v3650_v62 = vld [vmem:[%s5304_s0 + $0x4f8] sm:$0xf0] }
 0x252   :  { %2161 = vmatmul.bf16.gmra.mxu3 %v3238_v10  ;;  %v3270_v60 = vor.u32 %v3636_v24, %v3267_v37  ;;  %v3313_v24 = vld [vmem:[%s5304_s0 + $0x4e0] sm:$0xf]  ;;  %v3649_v37 = vld [vmem:[%s5304_s0 + $0x4f0] sm:$0xf0] }
 0x253   :  { %3486 = vmatmul.msk.bf16.gmra.mxu0 %vm1407_vm2, %v3242_v27  ;;  %v3778_v34 = vpack.c.bf16 %v2289_v38, %v2287_v56 }
 0x254   :  { %v1953_v23 = vpop.f32.mrf.mxu2 }
 0x255   :  { %3862 = vst [vmem:[%s5305_s2 + $0x90] sm:$0xff] %v3778_v34   ;;  %v2122_v31 = vpop.f32.mrf.mxu3  ;;  %v1954_v16 = vadd.f32 %v1953_v23, %v1785_v1 }
 0x256   :  { %v1786_v11 = vpop.f32.mrf.mxu1 }
 0x257   :  { %v1787_v44 = vadd.f32 %v1786_v11, %v5333_v7  ;;  %v2123_v25 = vadd.f32 %v2122_v31, %v1954_v16  ;;  %v5336_v31 = vld [vmem:[#allocation17_spill] sm:$0xff]  ;;  %v3287_v16 = vld [vmem:[%s5304_s0 + $0x4c4] sm:$0xf0] }
 0x258   :  { %v2293_v9 = vpop.f32.mrf.mxu0  ;;  %v3295_v7 = vld [vmem:[%s5304_s0 + $0x4cc] sm:$0xf0] }
 0x259   :  { %v2292_v54 = vadd.f32 %v2291_v13, %v2123_v25 }
 0x25c   :  { %v1955_v15 = vpop.f32.mrf.mxu2 }
 0x25d   :  { %v1956_v28 = vadd.f32 %v1955_v15, %v1787_v44  ;;  %v2124_v45 = vpop.f32.mrf.mxu3  ;;  %v3301_v44 = vld [vmem:[%s5304_s0 + $0x4c0] sm:$0xf] }
 0x25e   :  { %v1789_v20 = vpop.f32.mrf.mxu1 }
 0x25f   :  { %v2125_v51 = vadd.f32 %v2124_v45, %v1956_v28  ;;  %v1790_v30 = vadd.f32 %v1789_v20, %v5334_v35  ;;  %v3294_v45 = vor.u32 %v3644_v47, %v3293_v46  ;;  %v3302_v20 = vor.u32 %v3645_v3, %v3301_v44 }
 0x260   :  { %v2296_v36 = vpop.f32.mrf.mxu0 }
 0x261   :  { %v2294_v50 = vadd.f32 %v2293_v9, %v2125_v51  ;;  %1828 = vmatmul.bf16.gmra.mxu1 %v3250_v18  ;;  %1997 = vmatmul.bf16.gmra.mxu2 %v3254_v4  ;;  %v3641_v9 = vld [vmem:[%s5304_s0 + $0x4b4] sm:$0xf]  ;;  %v3298_v4 = vor.u32 %v3642_v49, %v3295_v7 }
 0x262   :  { %2166 = vmatmul.bf16.gmra.mxu3 %v3258_v59  ;;  %v3290_v28 = vor.u32 %v3641_v9, %v3287_v16 }
 0x263   :  { %3487 = vmatmul.msk.bf16.gmra.mxu0 %vm1407_vm2, %v3262_v26  ;;  %v3783_v55 = vpack.c.bf16 %v2294_v50, %v2292_v54 }
 0x264   :  { %v1958_v32 = vpop.f32.mrf.mxu2 }
 0x265   :  { %3863 = vst [vmem:[%s5305_s2 + $0x98] sm:$0xff] %v3783_v55   ;;  %v2127_v63 = vpop.f32.mrf.mxu3  ;;  %v1959_v58 = vadd.f32 %v1958_v32, %v1790_v30 }
 0x266   :  { %v1791_v33 = vpop.f32.mrf.mxu1 }
 0x267   :  { %v1792_v39 = vadd.f32 %v1791_v33, %v5335_v61  ;;  %v2128_v19 = vadd.f32 %v2127_v63, %v1959_v58  ;;  %v5338_v63 = vld [vmem:[#allocation21_spill] sm:$0xff]  ;;  %v3315_v61 = vld [vmem:[%s5304_s0 + $0x4f4] sm:$0xf0] }
 0x268   :  { %v2298_v17 = vpop.f32.mrf.mxu0  ;;  %v3307_v58 = vld [vmem:[%s5304_s0 + $0x4ec] sm:$0xf0] }
 0x269   :  { %v2297_v5 = vadd.f32 %v2296_v36, %v2128_v19 }
 0x26c   :  { %v1960_v41 = vpop.f32.mrf.mxu2 }
 0x26d   :  { %v1961_v22 = vadd.f32 %v1960_v41, %v1792_v39  ;;  %v2129_v6 = vpop.f32.mrf.mxu3  ;;  %v3321_v39 = vld [vmem:[%s5304_s0 + $0x4e8] sm:$0xf] }
 0x26e   :  { %v1794_v8 = vpop.f32.mrf.mxu1 }
 0x26f   :  { %v2130_v10 = vadd.f32 %v2129_v6, %v1961_v22  ;;  %v1795_v11 = vadd.f32 %v1794_v8, %v5336_v31  ;;  %v3314_v6 = vor.u32 %v3649_v37, %v3313_v24  ;;  %v3322_v8 = vor.u32 %v3650_v62, %v3321_v39 }
 0x270   :  { %v2301_v27 = vpop.f32.mrf.mxu0 }
 0x271   :  { %v2299_v13 = vadd.f32 %v2298_v17, %v2130_v10  ;;  %1833 = vmatmul.bf16.gmra.mxu1 %v3270_v60  ;;  %2002 = vmatmul.bf16.gmra.mxu2 %v3274_v0  ;;  %v3646_v17 = vld [vmem:[%s5304_s0 + $0x4dc] sm:$0xf]  ;;  %v3318_v0 = vor.u32 %v3647_v2, %v3315_v61 }
 0x272   :  { %2171 = vmatmul.bf16.gmra.mxu3 %v3278_v43  ;;  %v3310_v22 = vor.u32 %v3646_v17, %v3307_v58  ;;  %v5344_v58 = vld [vmem:[#allocation5_spill] sm:$0xff] }
 0x273   :  { %3488 = vmatmul.msk.bf16.gmra.mxu0 %vm1407_vm2, %v3282_v21  ;;  %v3788_v56 = vpack.c.bf16 %v2299_v13, %v2297_v5 }
 0x274   :  { %v1963_v38 = vpop.f32.mrf.mxu2 }
 0x275   :  { %3864 = vst [vmem:[%s5305_s2 + $0xa0] sm:$0xff] %v3788_v56   ;;  %v2132_v34 = vpop.f32.mrf.mxu3  ;;  %v1964_v1 = vadd.f32 %v1963_v38, %v1795_v11 }
 0x276   :  { %v1796_v23 = vpop.f32.mrf.mxu1 }
 0x277   :  { %v1797_v29 = vadd.f32 %v1796_v23, %v5337_v14  ;;  %v2133_v42 = vadd.f32 %v2132_v34, %v1964_v1  ;;  %v5340_v34 = vld [vmem:[#allocation25_spill] sm:$0xff] }
 0x278   :  { %v2303_v53 = vpop.f32.mrf.mxu0 }
 0x279   :  { %v2302_v51 = vadd.f32 %v2301_v27, %v2133_v42 }
 0x27c   :  { %v1965_v12 = vpop.f32.mrf.mxu2 }
 0x27d   :  { %v1966_v15 = vadd.f32 %v1965_v12, %v1797_v29  ;;  %v2134_v25 = vpop.f32.mrf.mxu3 }
 0x27e   :  { %v1799_v18 = vpop.f32.mrf.mxu1 }
 0x27f   :  { %v2135_v59 = vadd.f32 %v2134_v25, %v1966_v15  ;;  %v1800_v33 = vadd.f32 %v1799_v18, %v5338_v63  ;;  %v5342_v25 = vld [vmem:[#allocation3_spill] sm:$0xff] }
 0x280   :  { %v2306_v26 = vpop.f32.mrf.mxu0 }
 0x281   :  { %v2304_v36 = vadd.f32 %v2303_v53, %v2135_v59  ;;  %1838 = vmatmul.bf16.gmra.mxu1 %v3290_v28  ;;  %2007 = vmatmul.bf16.gmra.mxu2 %v3294_v45  ;;  %v5341_v53 = vld [vmem:[#allocation27_spill] sm:$0xff] }
 0x282   :  { %2176 = vmatmul.bf16.gmra.mxu3 %v3298_v4  ;;  %v5343_v4 = vld [vmem:[#allocation4_spill] sm:$0xff] }
 0x283   :  { %3489 = vmatmul.msk.bf16.gmra.mxu0 %vm1407_vm2, %v3302_v20  ;;  %v3793_v54 = vpack.c.bf16 %v2304_v36, %v2302_v51 }
 0x284   :  { %v1968_v50 = vpop.f32.mrf.mxu2 }
 0x285   :  { %3865 = vst [vmem:[%s5305_s2 + $0xa8] sm:$0xff] %v3793_v54   ;;  %v2137_v55 = vpop.f32.mrf.mxu3  ;;  %v1969_v30 = vadd.f32 %v1968_v50, %v1800_v33 }
 0x286   :  { %v1801_v32 = vpop.f32.mrf.mxu1 }
 0x287   :  { %v1802_v52 = vadd.f32 %v1801_v32, %v5339_v40  ;;  %v2138_v57 = vadd.f32 %v2137_v55, %v1969_v30  ;;  %v5345_v40 = vld [vmem:[#allocation6_spill] sm:$0xff] }
 0x288   :  { %v2308_v35 = vpop.f32.mrf.mxu0 }
 0x289   :  { %v2307_v10 = vadd.f32 %v2306_v26, %v2138_v57 }
 0x28c   :  { %v1970_v48 = vpop.f32.mrf.mxu2 }
 0x28d   :  { %v1971_v41 = vadd.f32 %v1970_v48, %v1802_v52  ;;  %v2139_v19 = vpop.f32.mrf.mxu3 }
 0x28e   :  { %v1804_v60 = vpop.f32.mrf.mxu1 }
 0x28f   :  { %v2140_v43 = vadd.f32 %v2139_v19, %v1971_v41  ;;  %v1805_v23 = vadd.f32 %v1804_v60, %v5340_v34 }
 0x290   :  { %v2311_v21 = vpop.f32.mrf.mxu0 }
 0x291   :  { %v2309_v27 = vadd.f32 %v2308_v35, %v2140_v43  ;;  %1843 = vmatmul.bf16.gmra.mxu1 %v3310_v22  ;;  %2012 = vmatmul.bf16.gmra.mxu2 %v3314_v6 }
 0x292   :  { %2181 = vmatmul.bf16.gmra.mxu3 %v3318_v0 }
 0x293   :  { %3490 = vmatmul.msk.bf16.gmra.mxu0 %vm1407_vm2, %v3322_v8  ;;  %v3798_v5 = vpack.c.bf16 %v2309_v27, %v2307_v10 }
 0x294   :  { %v1973_v13 = vpop.f32.mrf.mxu2 }
 0x295   :  { %3866 = vst [vmem:[%s5305_s2 + $0xb0] sm:$0xff] %v3798_v5   ;;  %v2142_v56 = vpop.f32.mrf.mxu3  ;;  %v1974_v11 = vadd.f32 %v1973_v13, %v1805_v23  ;;  %v5347_v13 = vld [vmem:[#allocation8_spill] sm:$0xff] }
 0x296   :  { %v1806_v38 = vpop.f32.mrf.mxu1 }
 0x297   :  { %v1807_v1 = vadd.f32 %v1806_v38, %v5341_v53  ;;  %v2143_v16 = vadd.f32 %v2142_v56, %v1974_v11 }
 0x298   :  { %v2313_v31 = vpop.f32.mrf.mxu0 }
 0x299   :  { %v2312_v7 = vadd.f32 %v2311_v21, %v2143_v16  ;;  %v5346_v21 = vld [vmem:[#allocation7_spill] sm:$0xff] }
 0x29c   :  { %v1975_v9 = vpop.f32.mrf.mxu2 }
 0x29d   :  { %v1976_v46 = vadd.f32 %v1975_v9, %v1807_v1  ;;  %v2144_v47 = vpop.f32.mrf.mxu3 }
 0x29e   :  { %v1809_v49 = vpop.f32.mrf.mxu1 }
 0x29f   :  { %v2145_v14 = vadd.f32 %v2144_v47, %v1976_v46  ;;  %v1810_v28 = vadd.f32 %v1809_v49, %v5342_v25 }
 0x2a0   :  { %v2316_v29 = vpop.f32.mrf.mxu0 }
 0x2a1   :  { %v2314_v44 = vadd.f32 %v2313_v31, %v2145_v14 }
 0x2a3   :  { %v3803_v3 = vpack.c.bf16 %v2314_v44, %v2312_v7 }
 0x2a4   :  { %v1978_v12 = vpop.f32.mrf.mxu2 }
 0x2a5   :  { %3867 = vst [vmem:[%s5305_s2 + $0xb8] sm:$0xff] %v3803_v3   ;;  %v2147_v42 = vpop.f32.mrf.mxu3  ;;  %v1979_v18 = vadd.f32 %v1978_v12, %v1810_v28  ;;  %v5349_v12 = vld [vmem:[#allocation12_spill] sm:$0xff] }
 0x2a6   :  { %v1811_v15 = vpop.f32.mrf.mxu1 }
 0x2a7   :  { %v1812_v20 = vadd.f32 %v1811_v15, %v5343_v4  ;;  %v2148_v26 = vadd.f32 %v2147_v42, %v1979_v18 }
 0x2a8   :  { %v2318_v45 = vpop.f32.mrf.mxu0 }
 0x2a9   :  { %v2317_v32 = vadd.f32 %v2316_v29, %v2148_v26  ;;  %v5348_v29 = vld [vmem:[#allocation10_spill] sm:$0xff] }
 0x2ac   :  { %v1980_v59 = vpop.f32.mrf.mxu2 }
 0x2ad   :  { %v1981_v51 = vadd.f32 %v1980_v59, %v1812_v20  ;;  %v2149_v36 = vpop.f32.mrf.mxu3 }
 0x2ae   :  { %v1814_v54 = vpop.f32.mrf.mxu1 }
 0x2af   :  { %v2150_v50 = vadd.f32 %v2149_v36, %v1981_v51  ;;  %v1815_v24 = vadd.f32 %v1814_v54, %v5344_v58 }
 0x2b0   :  { %v2321_v55 = vpop.f32.mrf.mxu0 }
 0x2b1   :  { %v2319_v63 = vadd.f32 %v2318_v45, %v2150_v50 }
 0x2b3   :  { %v3808_v33 = vpack.c.bf16 %v2319_v63, %v2317_v32 }
 0x2b4   :  { %v1983_v35 = vpop.f32.mrf.mxu2 }
 0x2b5   :  { %3868 = vst [vmem:[%s5305_s2 + $0xc0] sm:$0xff] %v3808_v33   ;;  %v2152_v30 = vpop.f32.mrf.mxu3  ;;  %v1984_v2 = vadd.f32 %v1983_v35, %v1815_v24  ;;  %v5351_v35 = vld [vmem:[#allocation16_spill] sm:$0xff] }
 0x2b6   :  { %v1816_v17 = vpop.f32.mrf.mxu1 }
 0x2b7   :  { %v1817_v52 = vadd.f32 %v1816_v17, %v5345_v40  ;;  %v2153_v39 = vadd.f32 %v2152_v30, %v1984_v2 }
 0x2b8   :  { %v2323_v37 = vpop.f32.mrf.mxu0 }
 0x2b9   :  { %v2322_v22 = vadd.f32 %v2321_v55, %v2153_v39  ;;  %v5350_v55 = vld [vmem:[#allocation14_spill] sm:$0xff] }
 0x2bc   :  { %v1985_v61 = vpop.f32.mrf.mxu2 }
 0x2bd   :  { %v1986_v62 = vadd.f32 %v1985_v61, %v1817_v52  ;;  %v2154_v48 = vpop.f32.mrf.mxu3 }
 0x2be   :  { %v1819_v57 = vpop.f32.mrf.mxu1 }
 0x2bf   :  { %v2155_v41 = vadd.f32 %v2154_v48, %v1986_v62  ;;  %v1820_v10 = vadd.f32 %v1819_v57, %v5346_v21 }
 0x2c0   :  { %v2326_v19 = vpop.f32.mrf.mxu0 }
 0x2c1   :  { %v2324_v6 = vadd.f32 %v2323_v37, %v2155_v41 }
 0x2c3   :  { %v3813_v60 = vpack.c.bf16 %v2324_v6, %v2322_v22 }
 0x2c4   :  { %v1988_v0 = vpop.f32.mrf.mxu2 }
 0x2c5   :  { %3869 = vst [vmem:[%s5305_s2 + $0xc8] sm:$0xff] %v3813_v60   ;;  %v2157_v8 = vpop.f32.mrf.mxu3  ;;  %v1989_v5 = vadd.f32 %v1988_v0, %v1820_v10  ;;  %v5353_v0 = vld [vmem:[#allocation20_spill] sm:$0xff] }
 0x2c6   :  { %v1821_v43 = vpop.f32.mrf.mxu1 }
 0x2c7   :  { %v1822_v56 = vadd.f32 %v1821_v43, %v5347_v13  ;;  %v2158_v34 = vadd.f32 %v2157_v8, %v1989_v5 }
 0x2c8   :  { %v2328_v27 = vpop.f32.mrf.mxu0 }
 0x2c9   :  { %v2327_v9 = vadd.f32 %v2326_v19, %v2158_v34  ;;  %v5352_v19 = vld [vmem:[#allocation18_spill] sm:$0xff] }
 0x2cc   :  { %v1990_v38 = vpop.f32.mrf.mxu2 }
 0x2cd   :  { %v1991_v23 = vadd.f32 %v1990_v38, %v1822_v56  ;;  %v2159_v31 = vpop.f32.mrf.mxu3 }
 0x2ce   :  { %v1824_v11 = vpop.f32.mrf.mxu1 }
 0x2cf   :  { %v2160_v53 = vadd.f32 %v2159_v31, %v1991_v23  ;;  %v1825_v7 = vadd.f32 %v1824_v11, %v5348_v29 }
 0x2d0   :  { %v2331_v1 = vpop.f32.mrf.mxu0 }
 0x2d1   :  { %v2329_v16 = vadd.f32 %v2328_v27, %v2160_v53 }
 0x2d3   :  { %v3818_v46 = vpack.c.bf16 %v2329_v16, %v2327_v9 }
 0x2d4   :  { %v1993_v47 = vpop.f32.mrf.mxu2 }
 0x2d5   :  { %3870 = vst [vmem:[%s5305_s2 + $0xd0] sm:$0xff] %v3818_v46   ;;  %v2162_v49 = vpop.f32.mrf.mxu3  ;;  %v1994_v3 = vadd.f32 %v1993_v47, %v1825_v7  ;;  %v5355_v46 = vld [vmem:[#allocation24_spill] sm:$0xff] }
 0x2d6   :  { %v1826_v14 = vpop.f32.mrf.mxu1 }
 0x2d7   :  { %v1827_v42 = vadd.f32 %v1826_v14, %v5349_v12  ;;  %v2163_v25 = vadd.f32 %v2162_v49, %v1994_v3 }
 0x2d8   :  { %v2333_v44 = vpop.f32.mrf.mxu0 }
 0x2d9   :  { %v2332_v59 = vadd.f32 %v2331_v1, %v2163_v25  ;;  %v5354_v1 = vld [vmem:[#allocation22_spill] sm:$0xff] }
 0x2dc   :  { %v1995_v15 = vpop.f32.mrf.mxu2 }
 0x2dd   :  { %v1996_v28 = vadd.f32 %v1995_v15, %v1827_v42  ;;  %v2164_v45 = vpop.f32.mrf.mxu3 }
 0x2de   :  { %v1829_v18 = vpop.f32.mrf.mxu1 }
 0x2df   :  { %v2165_v4 = vadd.f32 %v2164_v45, %v1996_v28  ;;  %v1830_v32 = vadd.f32 %v1829_v18, %v5350_v55 }
 0x2e0   :  { %v2336_v20 = vpop.f32.mrf.mxu0 }
 0x2e1   :  { %v2334_v26 = vadd.f32 %v2333_v44, %v2165_v4  ;;  %v5356_v4 = vld [vmem:[#allocation26_spill] sm:$0xff] }
 0x2e3   :  { %v3823_v51 = vpack.c.bf16 %v2334_v26, %v2332_v59 }
 0x2e4   :  { %v1998_v36 = vpop.f32.mrf.mxu2 }
 0x2e5   :  { %3871 = vst [vmem:[%s5305_s2 + $0xd8] sm:$0xff] %v3823_v51   ;;  %v2167_v54 = vpop.f32.mrf.mxu3  ;;  %v1999_v33 = vadd.f32 %v1998_v36, %v1830_v32  ;;  %v5357_v51 = vld [vmem:[#allocation28_spill] sm:$0xff] }
 0x2e6   :  { %v1831_v50 = vpop.f32.mrf.mxu1 }
 0x2e7   :  { %v1832_v30 = vadd.f32 %v1831_v50, %v5351_v35  ;;  %v2168_v58 = vadd.f32 %v2167_v54, %v1999_v33 }
 0x2e8   :  { %v2338_v63 = vpop.f32.mrf.mxu0 }
 0x2e9   :  { %v2337_v61 = vadd.f32 %v2336_v20, %v2168_v58 }
 0x2ec   :  { %v2000_v17 = vpop.f32.mrf.mxu2 }
 0x2ed   :  { %v2001_v24 = vadd.f32 %v2000_v17, %v1832_v30  ;;  %v2169_v37 = vpop.f32.mrf.mxu3 }
 0x2ee   :  { %v1834_v2 = vpop.f32.mrf.mxu1 }
 0x2ef   :  { %v2170_v40 = vadd.f32 %v2169_v37, %v2001_v24  ;;  %v1835_v22 = vadd.f32 %v1834_v2, %v5352_v19 }
 0x2f0   :  { %v2341_v52 = vpop.f32.mrf.mxu0 }
 0x2f1   :  { %v2339_v39 = vadd.f32 %v2338_v63, %v2170_v40 }
 0x2f3   :  { %v3828_v62 = vpack.c.bf16 %v2339_v39, %v2337_v61 }
 0x2f4   :  { %v2003_v48 = vpop.f32.mrf.mxu2 }
 0x2f5   :  { %3872 = vst [vmem:[%s5305_s2 + $0xe0] sm:$0xff] %v3828_v62   ;;  %v2172_v57 = vpop.f32.mrf.mxu3  ;;  %v2004_v60 = vadd.f32 %v2003_v48, %v1835_v22 }
 0x2f6   :  { %v1836_v41 = vpop.f32.mrf.mxu1 }
 0x2f7   :  { %v1837_v8 = vadd.f32 %v1836_v41, %v5353_v0  ;;  %v2173_v21 = vadd.f32 %v2172_v57, %v2004_v60 }
 0x2f8   :  { %v2343_v6 = vpop.f32.mrf.mxu0 }
 0x2f9   :  { %v2342_v56 = vadd.f32 %v2341_v52, %v2173_v21 }
 0x2fc   :  { %v2005_v43 = vpop.f32.mrf.mxu2 }
 0x2fd   :  { %v2006_v10 = vadd.f32 %v2005_v43, %v1837_v8  ;;  %v2174_v27 = vpop.f32.mrf.mxu3 }
 0x2fe   :  { %v1839_v5 = vpop.f32.mrf.mxu1 }
 0x2ff   :  { %v2175_v13 = vadd.f32 %v2174_v27, %v2006_v10  ;;  %v1840_v9 = vadd.f32 %v1839_v5, %v5354_v1 }
 0x300   :  { %v2346_v34 = vpop.f32.mrf.mxu0 }
 0x301   :  { %v2344_v38 = vadd.f32 %v2343_v6, %v2175_v13 }
 0x303   :  { %v3833_v23 = vpack.c.bf16 %v2344_v38, %v2342_v56 }
 0x304   :  { %v2008_v31 = vpop.f32.mrf.mxu2 }
 0x305   :  { %3873 = vst [vmem:[%s5305_s2 + $0xe8] sm:$0xff] %v3833_v23   ;;  %v2177_v11 = vpop.f32.mrf.mxu3  ;;  %v2009_v16 = vadd.f32 %v2008_v31, %v1840_v9 }
 0x306   :  { %v1841_v53 = vpop.f32.mrf.mxu1 }
 0x307   :  { %v1842_v47 = vadd.f32 %v1841_v53, %v5355_v46  ;;  %v2178_v29 = vadd.f32 %v2177_v11, %v2009_v16 }
 0x308   :  { %v2348_v49 = vpop.f32.mrf.mxu0 }
 0x309   :  { %v2347_v42 = vadd.f32 %v2346_v34, %v2178_v29 }
 0x30c   :  { %v2010_v14 = vpop.f32.mrf.mxu2 }
 0x30d   :  { %v2011_v7 = vadd.f32 %v2010_v14, %v1842_v47  ;;  %v2179_v44 = vpop.f32.mrf.mxu3 }
 0x30e   :  { %v1844_v3 = vpop.f32.mrf.mxu1 }
 0x30f   :  { %v2180_v12 = vadd.f32 %v2179_v44, %v2011_v7  ;;  %v1845_v20 = vadd.f32 %v1844_v3, %v5356_v4 }
 0x310   :  { %v2351_v18 = vpop.f32.mrf.mxu0 }
 0x311   :  { %v2349_v15 = vadd.f32 %v2348_v49, %v2180_v12 }
 0x313   :  { %v3838_v25 = vpack.c.bf16 %v2349_v15, %v2347_v42 }
 0x314   :  { %v2013_v28 = vpop.f32.mrf.mxu2 }
 0x315   :  { %3874 = vst [vmem:[%s5305_s2 + $0xf0] sm:$0xff] %v3838_v25   ;;  %v2182_v45 = vpop.f32.mrf.mxu3  ;;  %v2014_v26 = vadd.f32 %v2013_v28, %v1845_v20 }
 0x316   :  { %v1846_v59 = vpop.f32.mrf.mxu1 }
 0x317   :  { %v1847_v36 = vadd.f32 %v1846_v59, %v5357_v51  ;;  %v2183_v50 = vadd.f32 %v2182_v45, %v2014_v26 }
 0x318   :  { %v2353_v33 = vpop.f32.mrf.mxu0 }
 0x319   :  { %v2352_v35 = vadd.f32 %v2351_v18, %v2183_v50 }
 0x31c   :  { %v2015_v54 = vpop.f32.mrf.mxu2 }
 0x31d   :  { %v2016_v55 = vadd.f32 %v2015_v54, %v1847_v36  ;;  %v2184_v32 = vpop.f32.mrf.mxu3 }
 0x31f   :  { %v2185_v63 = vadd.f32 %v2184_v32, %v2016_v55 }
 0x321   :  { %v2354_v30 = vadd.f32 %v2353_v33, %v2185_v63 }
 0x323   :  { %v3843_v17 = vpack.c.bf16 %v2354_v30, %v2352_v35 }
 0x325   :  { %3875 = vst [vmem:[%s5305_s2 + $0xf8] sm:$0xff] %v3843_v17  }

// kernel: generator_forward.35
= control target key start
LH: loop header
LB: loop body
LE: loop exit
PB: predicated region body
PF: predicated region fallthrough
CT: control target
= control target key end

     0   :  { %s666_s9 = smov 0   ;;  %s668_s10 = smov 0   ;;  %s798_s0 = inlined_call_operand.vmem [shape: bf16[2,256,8], index: 0, kind: input, shape index: {}]   ;;  %s799_s1 = inlined_call_operand.vmem [shape: f32[2,1,8], index: 1, kind: output, shape index: {0}]   ;;  %s800_s2 = inlined_call_operand.vmem [shape: f32[2,1,8], index: 2, kind: output, shape index: {1}]  }
   0x1   :  { %s670_s11 = smov 0  }
   0x2 LB: > { %s25_s12 = sadd.s32 1, %s644_s10  ;;  %p516_p0 = scmp.ge.s32.totalorder %s648_s11, 1  ;;  %s648_s11 = sphi %s670_s11, %s13_s11   ;;  %s644_s10 = sphi %s668_s10, %s802_s10   ;;  %s640_s9 = sphi %s666_s9, %s801_s9  }
   0x3   : > { %p27_p1 = scmp.ge.s32.totalorder %s25_s12, 2  ;;  %p134_p2 = scmp.lt.s32.totalorder %s648_s11, 3 }
   0x5   : > { %s804_s12 = smov (%p27_p1, %s25_s12), 0  ;;  %p135_p3 = pnand %p516_p0, %p134_p2 }
   0x6   : > { %p162_p4 = scmp.lt.s32.totalorder (!%p135_p3), %s640_s9, 1 }
   0x7   : > { %138 = sbr.rel (%p135_p3) target bundleno = 101 (0x65), region = 24 }
   0xc   : > { %s806_s9 = smov (!%p162_p4, %s640_s9), 1  ;;  %vm181_vm0 = vcmask 57344   ;;  %v650_v0 = vmov 0.0   ;;  %vm249_vm1 = vcmask 64512  }
   0xd   : > { %s521_s13 = sshll.u32 %s806_s9, 7  ;;  %s687_s16 = scalar_lea.vmem %s799_s1, %s806_s9 }
   0xe   : > { %182 = vst.msk [vmem:[%s687_s16] sm:$0x1] %vm181_vm0, %v650_v0  ;;  %s694_s19 = scalar_lea.vmem %s800_s2, %s806_s9  ;;  %s701_s22 = scalar_lea.vmem %s798_s0, %s521_s13 }
   0xf   : > { %183 = vst.msk [vmem:[%s694_s19] sm:$0x1] %vm181_vm0, %v650_v0  ;;  %v523_v1 = vld [vmem:[%s701_s22] sm:$0xff]   ;;  %v586_v2 = vld [vmem:[%s701_s22 + $0x8] sm:$0xff]   ;;  %v587_v6 = vld [vmem:[%s701_s22 + $0x10] sm:$0xff]  }
  0x10   : > { %v524_v3 = vunpack.c.l.bf16 %v523_v1  ;;  %v525_v4 = vunpack.c.h.bf16 %v523_v1  ;;  %v528_v5 = vunpack.c.l.bf16 %v586_v2  ;;  %v529_v7 = vunpack.c.h.bf16 %v586_v2  ;;  %v588_v14 = vld [vmem:[%s701_s22 + $0x18] sm:$0xff]   ;;  %v589_v21 = vld [vmem:[%s701_s22 + $0x20] sm:$0xff]   ;;  %v590_v31 = vld [vmem:[%s701_s22 + $0x28] sm:$0xff]  }
  0x11   : > { %v532_v12 = vunpack.c.l.bf16 %v587_v6  ;;  %v533_v16 = vunpack.c.h.bf16 %v587_v6  ;;  %v536_v19 = vunpack.c.l.bf16 %v588_v14  ;;  %v537_v23 = vunpack.c.h.bf16 %v588_v14  ;;  %v591_v44 = vld [vmem:[%s701_s22 + $0x30] sm:$0xff]   ;;  %v592_v57 = vld [vmem:[%s701_s22 + $0x38] sm:$0xff]   ;;  %v593_v6 = vld [vmem:[%s701_s22 + $0x40] sm:$0xff]  }
  0x12   : > { %v250_v8 = vsel %vm249_vm1, %v524_v3, 0.0  ;;  %v251_v9 = vsel %vm249_vm1, %v525_v4, 0.0  ;;  %v253_v10 = vsel %vm249_vm1, %v528_v5, 0.0  ;;  %v255_v13 = vsel %vm249_vm1, %v529_v7, 0.0 }
  0x13   : > { %v252_v11 = vadd.f32 %v251_v9, %v250_v8  ;;  %v257_v17 = vsel %vm249_vm1, %v532_v12, 0.0  ;;  %v259_v20 = vsel %vm249_vm1, %v533_v16, 0.0  ;;  %v261_v24 = vsel %vm249_vm1, %v536_v19, 0.0 }
  0x14   : > { %v323_v25 = vmul.f32 %v524_v3, %v524_v3  ;;  %v324_v27 = vmul.f32 %v525_v4, %v525_v4  ;;  %v325_v28 = vmul.f32 %v528_v5, %v528_v5  ;;  %v540_v29 = vunpack.c.l.bf16 %v589_v21 }
  0x15   : > { %v254_v15 = vadd.f32 %v253_v10, %v252_v11  ;;  %v263_v30 = vsel %vm249_vm1, %v537_v23, 0.0  ;;  %v326_v33 = vmul.f32 %v529_v7, %v529_v7  ;;  %v541_v34 = vunpack.c.h.bf16 %v589_v21 }
  0x16   : > { %v265_v35 = vsel %vm249_vm1, %v540_v29, 0.0  ;;  %v355_v36 = vsel %vm249_vm1, %v323_v25, 0.0  ;;  %v327_v38 = vmul.f32 %v532_v12, %v532_v12  ;;  %v356_v39 = vsel %vm249_vm1, %v324_v27, 0.0 }
  0x17   : > { %v256_v18 = vadd.f32 %v255_v13, %v254_v15  ;;  %v358_v40 = vsel %vm249_vm1, %v325_v28, 0.0  ;;  %v544_v41 = vunpack.c.l.bf16 %v590_v31  ;;  %v267_v42 = vsel %vm249_vm1, %v541_v34, 0.0 }
  0x18   : > { %v357_v43 = vadd.f32 %v356_v39, %v355_v36  ;;  %v328_v46 = vmul.f32 %v533_v16, %v533_v16  ;;  %v360_v47 = vsel %vm249_vm1, %v326_v33, 0.0  ;;  %v545_v48 = vunpack.c.h.bf16 %v590_v31 }
  0x19   : > { %v258_v22 = vadd.f32 %v257_v17, %v256_v18  ;;  %v269_v49 = vsel %vm249_vm1, %v544_v41, 0.0  ;;  %v329_v52 = vmul.f32 %v536_v19, %v536_v19  ;;  %v362_v53 = vsel %vm249_vm1, %v327_v38, 0.0  ;;  %v594_v19 = vld [vmem:[%s701_s22 + $0x48] sm:$0xff]  }
  0x1a   : > { %v359_v50 = vadd.f32 %v358_v40, %v357_v43  ;;  %v548_v54 = vunpack.c.l.bf16 %v591_v44  ;;  %v271_v55 = vsel %vm249_vm1, %v545_v48, 0.0  ;;  %v330_v59 = vmul.f32 %v537_v23, %v537_v23 }
  0x1b   : > { %v260_v26 = vadd.f32 %v259_v20, %v258_v22  ;;  %v364_v60 = vsel %vm249_vm1, %v328_v46, 0.0  ;;  %v549_v61 = vunpack.c.h.bf16 %v591_v44  ;;  %v331_v1 = vmul.f32 %v540_v29, %v540_v29 }
  0x1c   : > { %v361_v56 = vadd.f32 %v360_v47, %v359_v50  ;;  %v273_v62 = vsel %vm249_vm1, %v548_v54, 0.0  ;;  %v366_v2 = vsel %vm249_vm1, %v329_v52, 0.0  ;;  %v552_v3 = vunpack.c.l.bf16 %v592_v57 }
  0x1d   : > { %v262_v32 = vadd.f32 %v261_v24, %v260_v26  ;;  %v275_v4 = vsel %vm249_vm1, %v549_v61, 0.0  ;;  %v332_v8 = vmul.f32 %v541_v34, %v541_v34  ;;  %v368_v9 = vsel %vm249_vm1, %v330_v59, 0.0 }
  0x1e   : > { %v363_v63 = vadd.f32 %v362_v53, %v361_v56  ;;  %v553_v10 = vunpack.c.h.bf16 %v592_v57  ;;  %v277_v11 = vsel %vm249_vm1, %v552_v3, 0.0  ;;  %v333_v14 = vmul.f32 %v544_v41, %v544_v41 }
  0x1f   : > { %v264_v37 = vadd.f32 %v263_v30, %v262_v32  ;;  %v370_v15 = vsel %vm249_vm1, %v331_v1, 0.0  ;;  %v556_v16 = vunpack.c.l.bf16 %v593_v6  ;;  %v334_v21 = vmul.f32 %v545_v48, %v545_v48  ;;  %v595_v32 = vld [vmem:[%s701_s22 + $0x50] sm:$0xff]  }
  0x20   : > { %v365_v5 = vadd.f32 %v364_v60, %v363_v63  ;;  %v279_v17 = vsel %vm249_vm1, %v553_v10, 0.0  ;;  %v372_v22 = vsel %vm249_vm1, %v332_v8, 0.0  ;;  %v557_v23 = vunpack.c.h.bf16 %v593_v6 }
  0x21   : > { %v266_v45 = vadd.f32 %v265_v35, %v264_v37  ;;  %v281_v24 = vsel %vm249_vm1, %v556_v16, 0.0  ;;  %v335_v27 = vmul.f32 %v548_v54, %v548_v54  ;;  %v374_v28 = vsel %vm249_vm1, %v333_v14, 0.0 }
  0x22   : > { %v367_v12 = vadd.f32 %v366_v2, %v365_v5  ;;  %v560_v29 = vunpack.c.l.bf16 %v594_v19  ;;  %v283_v30 = vsel %vm249_vm1, %v557_v23, 0.0  ;;  %v336_v34 = vmul.f32 %v549_v61, %v549_v61 }
  0x23   : > { %v268_v51 = vadd.f32 %v267_v42, %v266_v45  ;;  %v376_v35 = vsel %vm249_vm1, %v334_v21, 0.0  ;;  %v561_v36 = vunpack.c.h.bf16 %v594_v19  ;;  %v337_v40 = vmul.f32 %v552_v3, %v552_v3  ;;  %v596_v45 = vld [vmem:[%s701_s22 + $0x58] sm:$0xff]  }
  0x24   : > { %v369_v18 = vadd.f32 %v368_v9, %v367_v12  ;;  %v285_v37 = vsel %vm249_vm1, %v560_v29, 0.0  ;;  %v378_v41 = vsel %vm249_vm1, %v335_v27, 0.0  ;;  %v564_v42 = vunpack.c.l.bf16 %v595_v32 }
  0x25   : > { %v270_v58 = vadd.f32 %v269_v49, %v268_v51  ;;  %v287_v43 = vsel %vm249_vm1, %v561_v36, 0.0  ;;  %v338_v47 = vmul.f32 %v553_v10, %v553_v10  ;;  %v380_v48 = vsel %vm249_vm1, %v336_v34, 0.0 }
  0x26   : > { %v371_v25 = vadd.f32 %v370_v15, %v369_v18  ;;  %v565_v49 = vunpack.c.h.bf16 %v595_v32  ;;  %v289_v50 = vsel %vm249_vm1, %v564_v42, 0.0  ;;  %v339_v53 = vmul.f32 %v556_v16, %v556_v16 }
  0x27   : > { %v272_v0 = vadd.f32 %v271_v55, %v270_v58  ;;  %v382_v54 = vsel %vm249_vm1, %v337_v40, 0.0  ;;  %v568_v55 = vunpack.c.l.bf16 %v596_v45  ;;  %v597_v58 = vld [vmem:[%s701_s22 + $0x60] sm:$0xff]   ;;  %v340_v60 = vmul.f32 %v557_v23, %v557_v23 }
  0x28   : > { %v373_v31 = vadd.f32 %v372_v22, %v371_v25  ;;  %v291_v56 = vsel %vm249_vm1, %v565_v49, 0.0  ;;  %v384_v61 = vsel %vm249_vm1, %v338_v47, 0.0  ;;  %v341_v2 = vmul.f32 %v560_v29, %v560_v29 }
  0x29   : > { %v274_v7 = vadd.f32 %v273_v62, %v272_v0  ;;  %v569_v62 = vunpack.c.h.bf16 %v596_v45  ;;  %v293_v63 = vsel %vm249_vm1, %v568_v55, 0.0  ;;  %v386_v3 = vsel %vm249_vm1, %v339_v53, 0.0 }
  0x2a   : > { %v375_v38 = vadd.f32 %v374_v28, %v373_v31  ;;  %v342_v9 = vmul.f32 %v561_v36, %v561_v36  ;;  %v388_v10 = vsel %vm249_vm1, %v340_v60, 0.0  ;;  %v343_v15 = vmul.f32 %v564_v42, %v564_v42 }
  0x2b   : > { %v276_v13 = vadd.f32 %v275_v4, %v274_v7  ;;  %v572_v4 = vunpack.c.l.bf16 %v597_v58  ;;  %v295_v5 = vsel %vm249_vm1, %v569_v62, 0.0  ;;  %v598_v7 = vld [vmem:[%s701_s22 + $0x68] sm:$0xff]   ;;  %v390_v16 = vsel %vm249_vm1, %v341_v2, 0.0 }
  0x2c   : > { %v377_v44 = vadd.f32 %v376_v35, %v375_v38  ;;  %v344_v22 = vmul.f32 %v565_v49, %v565_v49  ;;  %v392_v23 = vsel %vm249_vm1, %v342_v9, 0.0  ;;  %v345_v28 = vmul.f32 %v568_v55, %v568_v55 }
  0x2d   : > { %v278_v20 = vadd.f32 %v277_v11, %v276_v13  ;;  %v573_v11 = vunpack.c.h.bf16 %v597_v58  ;;  %v297_v12 = vsel %vm249_vm1, %v572_v4, 0.0  ;;  %v394_v29 = vsel %vm249_vm1, %v343_v15, 0.0 }
  0x2e   : > { %v379_v51 = vadd.f32 %v378_v41, %v377_v44  ;;  %v346_v35 = vmul.f32 %v569_v62, %v569_v62  ;;  %v396_v36 = vsel %vm249_vm1, %v344_v22, 0.0  ;;  %v347_v41 = vmul.f32 %v572_v4, %v572_v4 }
  0x2f   : > { %v280_v26 = vadd.f32 %v279_v17, %v278_v20  ;;  %v576_v17 = vunpack.c.l.bf16 %v598_v7  ;;  %v299_v18 = vsel %vm249_vm1, %v573_v11, 0.0  ;;  %v599_v20 = vld [vmem:[%s701_s22 + $0x70] sm:$0xff]   ;;  %v398_v42 = vsel %vm249_vm1, %v345_v28, 0.0  ;;  %v322_v28 = vld [vmem:[%s694_s19] sm:$0x1] }
  0x30   : > { %v381_v57 = vadd.f32 %v380_v48, %v379_v51  ;;  %v348_v47 = vmul.f32 %v573_v11, %v573_v11  ;;  %v400_v48 = vsel %vm249_vm1, %v346_v35, 0.0 }
  0x31   : > { %v282_v33 = vadd.f32 %v281_v24, %v280_v26  ;;  %v577_v24 = vunpack.c.h.bf16 %v598_v7  ;;  %v301_v25 = vsel %vm249_vm1, %v576_v17, 0.0  ;;  %v349_v53 = vmul.f32 %v576_v17, %v576_v17 }
  0x32   : > { %v383_v0 = vadd.f32 %v382_v54, %v381_v57  ;;  %v402_v54 = vsel %vm249_vm1, %v347_v41, 0.0 }
  0x33   : > { %v284_v39 = vadd.f32 %v283_v30, %v282_v33  ;;  %v580_v30 = vunpack.c.l.bf16 %v599_v20  ;;  %v303_v31 = vsel %vm249_vm1, %v577_v24, 0.0  ;;  %v600_v33 = vld [vmem:[%s701_s22 + $0x78] sm:$0xff]   ;;  %v350_v58 = vmul.f32 %v577_v24, %v577_v24 }
  0x34   : > { %v385_v6 = vadd.f32 %v384_v61, %v383_v0  ;;  %v585_v49 = vunpack.c.h.bf16 %v600_v33 }
  0x35   : > { %v286_v46 = vadd.f32 %v285_v37, %v284_v39  ;;  %v581_v37 = vunpack.c.h.bf16 %v599_v20  ;;  %v305_v38 = vsel %vm249_vm1, %v580_v30, 0.0  ;;  %v351_v62 = vmul.f32 %v580_v30, %v580_v30 }
  0x36   : > { %v387_v13 = vadd.f32 %v386_v3, %v385_v6  ;;  %v311_v55 = vsel %vm249_vm1, %v585_v49, 0.0  ;;  %v408_v3 = vsel %vm249_vm1, %v350_v58, 0.0 }
  0x37   : > { %v288_v52 = vadd.f32 %v287_v43, %v286_v46  ;;  %v584_v43 = vunpack.c.l.bf16 %v600_v33  ;;  %v307_v44 = vsel %vm249_vm1, %v581_v37, 0.0  ;;  %v352_v2 = vmul.f32 %v581_v37, %v581_v37 }
  0x38   : > { %v389_v19 = vadd.f32 %v388_v10, %v387_v13  ;;  %v410_v7 = vsel %vm249_vm1, %v351_v62, 0.0  ;;  %v354_v10 = vmul.f32 %v585_v49, %v585_v49 }
  0x39   : > { %v290_v59 = vadd.f32 %v289_v50, %v288_v52  ;;  %v309_v50 = vsel %vm249_vm1, %v584_v43, 0.0  ;;  %v353_v6 = vmul.f32 %v584_v43, %v584_v43  ;;  %v412_v11 = vsel %vm249_vm1, %v352_v2, 0.0 }
  0x3a   : > { %v391_v26 = vadd.f32 %v390_v16, %v389_v19  ;;  %v416_v17 = vsel %vm249_vm1, %v354_v10, 0.0 }
  0x3b   : > { %v292_v1 = vadd.f32 %v291_v56, %v290_v59  ;;  %v404_v59 = vsel %vm249_vm1, %v348_v47, 0.0 }
  0x3c   : > { %v393_v32 = vadd.f32 %v392_v23, %v391_v26 }
  0x3d   : > { %v294_v8 = vadd.f32 %v293_v63, %v292_v1  ;;  %v406_v63 = vsel %vm249_vm1, %v349_v53, 0.0 }
  0x3e   : > { %v395_v39 = vadd.f32 %v394_v29, %v393_v32 }
  0x3f   : > { %v296_v14 = vadd.f32 %v295_v5, %v294_v8 }
  0x40   : > { %v397_v45 = vadd.f32 %v396_v36, %v395_v39 }
  0x41   : > { %v298_v21 = vadd.f32 %v297_v12, %v296_v14  ;;  %v414_v14 = vsel %vm249_vm1, %v353_v6, 0.0 }
  0x42   : > { %v399_v51 = vadd.f32 %v398_v42, %v397_v45 }
  0x43   : > { %v300_v27 = vadd.f32 %v299_v18, %v298_v21  ;;  %v248_v18 = vld [vmem:[%s687_s16] sm:$0x1] }
  0x44   : > { %v401_v56 = vadd.f32 %v400_v48, %v399_v51 }
  0x45   : > { %v302_v34 = vadd.f32 %v301_v25, %v300_v27 }
  0x46   : > { %v403_v60 = vadd.f32 %v402_v54, %v401_v56 }
  0x47   : > { %v304_v40 = vadd.f32 %v303_v31, %v302_v34 }
  0x48   : > { %v405_v0 = vadd.f32 %v404_v59, %v403_v60 }
  0x49   : > { %v306_v46 = vadd.f32 %v305_v38, %v304_v40 }
  0x4a   : > { %v407_v4 = vadd.f32 %v406_v63, %v405_v0 }
  0x4b   : > { %v308_v52 = vadd.f32 %v307_v44, %v306_v46 }
  0x4c   : > { %v409_v8 = vadd.f32 %v408_v3, %v407_v4 }
  0x4d   : > { %v310_v57 = vadd.f32 %v309_v50, %v308_v52 }
  0x4e   : > { %v411_v12 = vadd.f32 %v410_v7, %v409_v8 }
  0x4f   : > { %v312_v61 = vadd.f32 %v311_v55, %v310_v57 }
  0x50   : > { %v413_v15 = vadd.f32 %v412_v11, %v411_v12 }
  0x51   : > { %v313_v1 = vrot.slane %v312_v61, 4 }
  0x52   : > { %v415_v19 = vadd.f32 %v414_v14, %v413_v15 }
  0x53   : > { %v314_v5 = vadd.f32 %v313_v1, %v312_v61 }
  0x54   : > { %v417_v21 = vadd.f32 %v416_v17, %v415_v19 }
  0x55   : > { %v315_v9 = vrot.slane %v314_v5, 2 }
  0x56   : > { %v418_v23 = vrot.slane %v417_v21, 4 }
  0x57   : > { %v316_v13 = vadd.f32 %v315_v9, %v314_v5 }
  0x58   : > { %v419_v24 = vadd.f32 %v418_v23, %v417_v21 }
  0x59   : > { %v317_v16 = vrot.slane %v316_v13, 1 }
  0x5a   : > { %v420_v25 = vrot.slane %v419_v24, 2 }
  0x5b   : > { %v318_v20 = vadd.f32 %v317_v16, %v316_v13 }
  0x5c   : > { %v421_v26 = vadd.f32 %v420_v25, %v419_v24 }
  0x5d   : > { %v319_v22 = vadd.f32 %v318_v20, %v248_v18 }
  0x5e   : > { %v422_v27 = vrot.slane %v421_v26, 1 }
  0x5f   : > { %321 = vst.msk [vmem:[%s687_s16] sm:$0x1] %vm181_vm0, %v319_v22 }
  0x60   : > { %v423_v29 = vadd.f32 %v422_v27, %v421_v26 }
  0x62   : > { %v424_v30 = vadd.f32 %v423_v29, %v322_v28 }
  0x64   : > { %425 = vst.msk [vmem:[%s694_s19] sm:$0x1] %vm181_vm0, %v424_v30 }
  0x65 PF: > { %s13_s11 = sadd.s32 1, %s648_s11   ;;  %s801_s9 = smov %s644_s10 }
  0x66   : > { %p10_p5 = scmp.ge.s32.totalorder %s13_s11, 4   ;;  %s802_s10 = smov %s804_s12 }
  0x68   :  { %12 = sbr.rel (!%p10_p5) target bundleno = 2 (0x2), region = 70 }

// kernel: generator_forward.36
= control target key start
LH: loop header
LB: loop body
LE: loop exit
PB: predicated region body
PF: predicated region fallthrough
CT: control target
= control target key end

     0   :  { %s891_s18 = smov 0   ;;  %s893_s19 = smov 0   ;;  %s1271_s0 = inlined_call_operand.vmem [shape: bf16[2,256,8], index: 0, kind: input, shape index: {}]   ;;  %s1272_s1 = inlined_call_operand.vmem [shape: f32[2,1,8], index: 1, kind: input, shape index: {}]   ;;  %s1273_s2 = inlined_call_operand.vmem [shape: f32[2,1,8], index: 2, kind: input, shape index: {}]   ;;  %s1274_s3 = inlined_call_operand.vmem [shape: f32[1,8], index: 3, kind: input, shape index: {}]   ;;  %s1275_s4 = inlined_call_operand.vmem [shape: f32[1,8], index: 4, kind: input, shape index: {}]   ;;  %s1276_s5 = inlined_call_operand.vmem [shape: bf16[2,256,8], index: 5, kind: output, shape index: {}]  }
   0x1   :  { %s895_s20 = smov 0  }
   0x2 LB: > { %s27_s21 = sadd.s32 1, %s855_s19  ;;  %p721_p0 = scmp.ge.s32.totalorder %s859_s20, 1  ;;  %s859_s20 = sphi %s895_s20, %s15_s20   ;;  %s855_s19 = sphi %s893_s19, %s1280_s19   ;;  %s851_s18 = sphi %s891_s18, %s1279_s18  }
   0x3   : > { %p29_p1 = scmp.ge.s32.totalorder %s27_s21, 2  ;;  %p224_p2 = scmp.lt.s32.totalorder %s859_s20, 3 }
   0x5   : > { %s1282_s21 = smov (%p29_p1, %s27_s21), 0  ;;  %p225_p3 = pnand %p721_p0, %p224_p2 }
   0x6   : > { %p267_p4 = scmp.lt.s32.totalorder (!%p225_p3), %s851_s18, 1 }
   0x7   : > { %228 = sbr.rel (%p225_p3) target bundleno = 91 (0x5b), region = 40 }
   0xc   : > { %s1284_s18 = smov (!%p267_p4, %s851_s18), 1  ;;  %vm579_vm3 = vcmask 60416  }
   0xd   : > { %s278_s24 = scalar_lea.vmem %s1272_s1, %s1284_s18  ;;  %s281_s27 = scalar_lea.vmem %s1273_s2, %s1284_s18 }
   0xe   : > { %v356_v0 = vld [vmem:[%s278_s24] sm:$0x1]  ;;  %s728_s28 = sshll.u32 %s1284_s18, 7 }
   0xf   : > { %v357_v1 = vmul.f32 0.00390625, %v356_v0  ;;  %v358_v2 = vld [vmem:[%s281_s27] sm:$0x1]  ;;  %s925_s6 = scalar_lea.vmem %s1271_s0, %s728_s28  ;;  %s1095_s13 = scalar_lea.vmem %s1276_s5, %s728_s28 }
  0x10   : > { %v359_v3 = vmul.f32 0.00390625, %v358_v2  ;;  %v731_v6 = vld [vmem:[%s925_s6] sm:$0xff]   ;;  %v794_v8 = vld [vmem:[%s925_s6 + $0x8] sm:$0xff]   ;;  %v795_v9 = vld [vmem:[%s925_s6 + $0x10] sm:$0xff]  }
  0x11   : > { %v360_v4 = vmul.f32 %v357_v1, %v357_v1  ;;  %v796_v10 = vld [vmem:[%s925_s6 + $0x18] sm:$0xff]   ;;  %v732_v11 = vunpack.c.l.bf16 %v731_v6  ;;  %v931_v12 = vperm.slane %v357_v1, 0  ;;  %v733_v13 = vunpack.c.h.bf16 %v731_v6  ;;  %v797_v14 = vld [vmem:[%s925_s6 + $0x20] sm:$0xff]   ;;  %v798_v17 = vld [vmem:[%s925_s6 + $0x28] sm:$0xff]  }
  0x12   : > { %v736_v15 = vunpack.c.l.bf16 %v794_v8  ;;  %v737_v16 = vunpack.c.h.bf16 %v794_v8  ;;  %v740_v18 = vunpack.c.l.bf16 %v795_v9  ;;  %v741_v19 = vunpack.c.h.bf16 %v795_v9  ;;  %v799_v21 = vld [vmem:[%s925_s6 + $0x30] sm:$0xff]   ;;  %v800_v33 = vld [vmem:[%s925_s6 + $0x38] sm:$0xff]   ;;  %v801_v38 = vld [vmem:[%s925_s6 + $0x40] sm:$0xff]  }
  0x13   : > { %v361_v5 = vsub.f32 %v359_v3, %v360_v4  ;;  %v744_v20 = vunpack.c.l.bf16 %v796_v10  ;;  %v745_v22 = vunpack.c.h.bf16 %v796_v10  ;;  %v748_v23 = vunpack.c.l.bf16 %v797_v14  ;;  %v802_v42 = vld [vmem:[%s925_s6 + $0x48] sm:$0xff]   ;;  %v803_v47 = vld [vmem:[%s925_s6 + $0x50] sm:$0xff]   ;;  %v804_v52 = vld [vmem:[%s925_s6 + $0x58] sm:$0xff]  }
  0x14   : > { %v937_v24 = vsub.f32 %v732_v11, %v931_v12  ;;  %v940_v25 = vsub.f32 %v733_v13, %v931_v12  ;;  %v749_v26 = vunpack.c.h.bf16 %v797_v14  ;;  %v752_v27 = vunpack.c.l.bf16 %v798_v17  ;;  %v805_v56 = vld [vmem:[%s925_s6 + $0x60] sm:$0xff]   ;;  %v806_v6 = vld [vmem:[%s925_s6 + $0x68] sm:$0xff]  }
  0x15   : > { %v397_v7 = vadd.f32 1e-05, %v361_v5  ;;  %v943_v29 = vsub.f32 %v736_v15, %v931_v12  ;;  %v946_v30 = vsub.f32 %v737_v16, %v931_v12  ;;  %v753_v31 = vunpack.c.h.bf16 %v798_v17  ;;  %v1015_v16 = vld [vmem:[%s925_s6 + $0x70] sm:$0xff]  }
  0x16   : > { %v756_v32 = vunpack.c.l.bf16 %v799_v21  ;;  %v950_v35 = vsub.f32 %v740_v18, %v931_v12  ;;  %v953_v36 = vsub.f32 %v741_v19, %v931_v12  ;;  %v956_v37 = vsub.f32 %v744_v20, %v931_v12 }
  0x17   : > { %835 = vrsqrt.f32 %v397_v7  ;;  %vm404_vm0 = vweird.f32 %v397_v7  ;;  %v960_v39 = vsub.f32 %v745_v22, %v931_v12  ;;  %v963_v40 = vsub.f32 %v748_v23, %v931_v12  ;;  %v1031_v22 = vld [vmem:[%s1274_s3] ss:$0 sm:$0xff] }
  0x18   : > { %v757_v41 = vunpack.c.h.bf16 %v799_v21  ;;  %v967_v44 = vsub.f32 %v749_v26, %v931_v12  ;;  %v970_v45 = vsub.f32 %v752_v27, %v931_v12  ;;  %v760_v46 = vunpack.c.l.bf16 %v800_v33 }
  0x19   : > { %v974_v48 = vsub.f32 %v753_v31, %v931_v12  ;;  %v977_v49 = vsub.f32 %v756_v32, %v931_v12  ;;  %v761_v50 = vunpack.c.h.bf16 %v800_v33  ;;  %v764_v51 = vunpack.c.l.bf16 %v801_v38 }
  0x1a   : > { %v765_v54 = vunpack.c.h.bf16 %v801_v38  ;;  %v768_v55 = vunpack.c.l.bf16 %v802_v42  ;;  %v982_v57 = vsub.f32 %v757_v41, %v931_v12  ;;  %v769_v58 = vunpack.c.h.bf16 %v802_v42  ;;  %v1058_v41 = vld [vmem:[%s1275_s4] ss:$0 sm:$0xff] }
  0x1b   : > { %v772_v59 = vunpack.c.l.bf16 %v803_v47  ;;  %v773_v60 = vunpack.c.h.bf16 %v803_v47  ;;  %v985_v62 = vsub.f32 %v760_v46, %v931_v12  ;;  %v776_v63 = vunpack.c.l.bf16 %v804_v52 }
  0x1c   : > { %v777_v0 = vunpack.c.h.bf16 %v804_v52  ;;  %v993_v2 = vsub.f32 %v761_v50, %v931_v12  ;;  %v996_v3 = vsub.f32 %v764_v51, %v931_v12  ;;  %v780_v4 = vunpack.c.l.bf16 %v805_v56 }
  0x1d   : > { %v836_v28 = vpop.eup %835  ;;  %v781_v5 = vunpack.c.h.bf16 %v805_v56  ;;  %v1000_v9 = vsub.f32 %v765_v54, %v931_v12  ;;  %v1003_v10 = vsub.f32 %v768_v55, %v931_v12  ;;  %v1006_v11 = vsub.f32 %v769_v58, %v931_v12 }
  0x1e   : > { %v399_v34 = vmul.f32 %v836_v28, %v397_v7  ;;  %vm405_vm1 = vweird.f32 %v836_v28  ;;  %v784_v7 = vunpack.c.l.bf16 %v806_v6  ;;  %v1009_v13 = vsub.f32 %v772_v59, %v931_v12 }
  0x1f   : > { %vm988_vm2 = vmor %vm404_vm0, %vm405_vm1  ;;  %v1012_v14 = vsub.f32 %v773_v60, %v931_v12  ;;  %v785_v15 = vunpack.c.h.bf16 %v806_v6  ;;  %v1020_v18 = vsub.f32 %v776_v63, %v931_v12  ;;  %v1023_v19 = vsub.f32 %v777_v0, %v931_v12 }
  0x20   : > { %v400_v43 = vmul.f32 %v836_v28, %v399_v34  ;;  %v788_v20 = vunpack.c.l.bf16 %v1015_v16  ;;  %v1034_v23 = vsub.f32 %v780_v4, %v931_v12  ;;  %v1037_v26 = vsub.f32 %v781_v5, %v931_v12 }
  0x21   : > { %v1040_v27 = vsub.f32 %v784_v7, %v931_v12  ;;  %v1046_v31 = vsub.f32 %v785_v15, %v931_v12  ;;  %v789_v33 = vunpack.c.h.bf16 %v1015_v16 }
  0x22   : > { %v401_v53 = vmul.f32 0.5, %v400_v43  ;;  %v1049_v32 = vsub.f32 %v788_v20, %v931_v12 }
  0x24   : > { %v402_v61 = vsub.f32 1.5, %v401_v53 }
  0x26   : > { %v403_v8 = vmul.f32 %v836_v28, %v402_v61 }
  0x28   : > { %v407_v17 = vsel %vm988_vm2, %v836_v28, %v403_v8  ;;  %v1043_v28 = vld [vmem:[%s925_s6 + $0x78] sm:$0xff]  }
  0x29   : > { %v1026_v21 = vperm.slane %v407_v17, 0  ;;  %v792_v34 = vunpack.c.l.bf16 %v1043_v28 }
  0x2b   : > { %v411_v38 = vmul.f32 %v1026_v21, %v937_v24  ;;  %v412_v42 = vmul.f32 %v1026_v21, %v940_v25  ;;  %v413_v43 = vmul.f32 %v1026_v21, %v943_v29  ;;  %v414_v46 = vmul.f32 %v1026_v21, %v946_v30 }
  0x2c   : > { %v415_v47 = vmul.f32 %v1026_v21, %v950_v35  ;;  %v416_v24 = vmul.f32 %v1026_v21, %v953_v36  ;;  %v417_v50 = vmul.f32 %v1026_v21, %v956_v37  ;;  %v418_v51 = vmul.f32 %v1026_v21, %v960_v39 }
  0x2d   : > { %v447_v25 = vmul.f32 %v1031_v22, %v411_v38  ;;  %v448_v52 = vmul.f32 %v1031_v22, %v412_v42  ;;  %v449_v29 = vmul.f32 %v1031_v22, %v413_v43  ;;  %v450_v30 = vmul.f32 %v1031_v22, %v414_v46 }
  0x2e   : > { %v451_v53 = vmul.f32 %v1031_v22, %v415_v47  ;;  %v452_v35 = vmul.f32 %v1031_v22, %v416_v24  ;;  %v453_v36 = vmul.f32 %v1031_v22, %v417_v50  ;;  %v454_v37 = vmul.f32 %v1031_v22, %v418_v51 }
  0x2f   : > { %v483_v54 = vadd.f32 %v1058_v41, %v447_v25  ;;  %v484_v39 = vadd.f32 %v1058_v41, %v448_v52  ;;  %v485_v55 = vadd.f32 %v1058_v41, %v449_v29  ;;  %v486_v56 = vadd.f32 %v1058_v41, %v450_v30 }
  0x30   : > { %v487_v58 = vadd.f32 %v1058_v41, %v451_v53  ;;  %v488_v59 = vadd.f32 %v1058_v41, %v452_v35  ;;  %v489_v60 = vadd.f32 %v1058_v41, %v453_v36  ;;  %v490_v61 = vadd.f32 %v1058_v41, %v454_v37 }
  0x31   : > { %v515_v63 = vmax.f32 %v483_v54, 0.0  ;;  %v516_v0 = vmax.f32 %v484_v39, 0.0  ;;  %v517_v1 = vmax.f32 %v485_v55, 0.0  ;;  %v518_v4 = vmax.f32 %v486_v56, 0.0 }
  0x32   : > { %v519_v5 = vmax.f32 %v487_v58, 0.0  ;;  %v520_v6 = vmax.f32 %v488_v59, 0.0  ;;  %v521_v8 = vmax.f32 %v489_v60, 0.0  ;;  %v522_v7 = vmax.f32 %v490_v61, 0.0 }
  0x33   : > { %v547_v15 = vpack.c.bf16 %v515_v63, %v515_v63  ;;  %v548_v17 = vpack.c.bf16 %v516_v0, %v516_v0  ;;  %v549_v20 = vpack.c.bf16 %v517_v1, %v517_v1  ;;  %v550_v38 = vpack.c.bf16 %v518_v4, %v518_v4 }
  0x34   : > { %v551_v42 = vpack.c.bf16 %v519_v5, %v519_v5  ;;  %v552_v43 = vpack.c.bf16 %v520_v6, %v520_v6  ;;  %v553_v46 = vpack.c.bf16 %v521_v8, %v521_v8  ;;  %v554_v47 = vpack.c.bf16 %v522_v7, %v522_v7 }
  0x35   : > { %580 = vst.msk [vmem:[%s1095_s13] sm:$0xf] %vm579_vm3, %v547_v15  ;;  %v419_v24 = vmul.f32 %v1026_v21, %v963_v40  ;;  %v420_v50 = vmul.f32 %v1026_v21, %v967_v44  ;;  %v421_v51 = vmul.f32 %v1026_v21, %v970_v45  ;;  %v422_v25 = vmul.f32 %v1026_v21, %v974_v48 }
  0x36   : > { %581 = vst.msk [vmem:[%s1095_s13 + $0x4] sm:$0xf] %vm579_vm3, %v548_v17  ;;  %v423_v52 = vmul.f32 %v1026_v21, %v977_v49  ;;  %v424_v29 = vmul.f32 %v1026_v21, %v982_v57  ;;  %v425_v40 = vmul.f32 %v1026_v21, %v985_v62  ;;  %v426_v44 = vmul.f32 %v1026_v21, %v993_v2 }
  0x37   : > { %582 = vst.msk [vmem:[%s1095_s13 + $0x8] sm:$0xf] %vm579_vm3, %v549_v20  ;;  %v455_v45 = vmul.f32 %v1031_v22, %v419_v24  ;;  %v456_v48 = vmul.f32 %v1031_v22, %v420_v50  ;;  %v457_v30 = vmul.f32 %v1031_v22, %v421_v51  ;;  %v458_v49 = vmul.f32 %v1031_v22, %v422_v25 }
  0x38   : > { %583 = vst.msk [vmem:[%s1095_s13 + $0xc] sm:$0xf] %vm579_vm3, %v550_v38  ;;  %v459_v57 = vmul.f32 %v1031_v22, %v423_v52  ;;  %v460_v62 = vmul.f32 %v1031_v22, %v424_v29  ;;  %v461_v2 = vmul.f32 %v1031_v22, %v425_v40  ;;  %v462_v53 = vmul.f32 %v1031_v22, %v426_v44 }
  0x39   : > { %584 = vst.msk [vmem:[%s1095_s13 + $0x10] sm:$0xf] %vm579_vm3, %v551_v42  ;;  %v491_v35 = vadd.f32 %v1058_v41, %v455_v45  ;;  %v492_v36 = vadd.f32 %v1058_v41, %v456_v48  ;;  %v493_v37 = vadd.f32 %v1058_v41, %v457_v30  ;;  %v494_v54 = vadd.f32 %v1058_v41, %v458_v49 }
  0x3a   : > { %585 = vst.msk [vmem:[%s1095_s13 + $0x14] sm:$0xf] %vm579_vm3, %v552_v43  ;;  %v495_v39 = vadd.f32 %v1058_v41, %v459_v57  ;;  %v496_v55 = vadd.f32 %v1058_v41, %v460_v62  ;;  %v497_v56 = vadd.f32 %v1058_v41, %v461_v2  ;;  %v498_v58 = vadd.f32 %v1058_v41, %v462_v53 }
  0x3b   : > { %586 = vst.msk [vmem:[%s1095_s13 + $0x18] sm:$0xf] %vm579_vm3, %v553_v46  ;;  %v523_v59 = vmax.f32 %v491_v35, 0.0  ;;  %v524_v60 = vmax.f32 %v492_v36, 0.0  ;;  %v525_v61 = vmax.f32 %v493_v37, 0.0  ;;  %v526_v63 = vmax.f32 %v494_v54, 0.0 }
  0x3c   : > { %587 = vst.msk [vmem:[%s1095_s13 + $0x1c] sm:$0xf] %vm579_vm3, %v554_v47  ;;  %v527_v0 = vmax.f32 %v495_v39, 0.0  ;;  %v528_v1 = vmax.f32 %v496_v55, 0.0  ;;  %v529_v4 = vmax.f32 %v497_v56, 0.0  ;;  %v530_v5 = vmax.f32 %v498_v58, 0.0 }
  0x3d   : > { %v555_v6 = vpack.c.bf16 %v523_v59, %v523_v59  ;;  %v556_v8 = vpack.c.bf16 %v524_v60, %v524_v60  ;;  %v557_v7 = vpack.c.bf16 %v525_v61, %v525_v61  ;;  %v558_v15 = vpack.c.bf16 %v526_v63, %v526_v63 }
  0x3e   : > { %v559_v17 = vpack.c.bf16 %v527_v0, %v527_v0  ;;  %v560_v20 = vpack.c.bf16 %v528_v1, %v528_v1  ;;  %v561_v38 = vpack.c.bf16 %v529_v4, %v529_v4  ;;  %v562_v42 = vpack.c.bf16 %v530_v5, %v530_v5 }
  0x3f   : > { %588 = vst.msk [vmem:[%s1095_s13 + $0x20] sm:$0xf] %vm579_vm3, %v555_v6  ;;  %v427_v43 = vmul.f32 %v1026_v21, %v996_v3  ;;  %v428_v46 = vmul.f32 %v1026_v21, %v1000_v9  ;;  %v429_v47 = vmul.f32 %v1026_v21, %v1003_v10  ;;  %v430_v24 = vmul.f32 %v1026_v21, %v1006_v11 }
  0x40   : > { %589 = vst.msk [vmem:[%s1095_s13 + $0x24] sm:$0xf] %vm579_vm3, %v556_v8  ;;  %v431_v50 = vmul.f32 %v1026_v21, %v1009_v13  ;;  %v432_v51 = vmul.f32 %v1026_v21, %v1012_v14  ;;  %v433_v3 = vmul.f32 %v1026_v21, %v1020_v18  ;;  %v434_v9 = vmul.f32 %v1026_v21, %v1023_v19 }
  0x41   : > { %590 = vst.msk [vmem:[%s1095_s13 + $0x28] sm:$0xf] %vm579_vm3, %v557_v7  ;;  %v463_v10 = vmul.f32 %v1031_v22, %v427_v43  ;;  %v464_v11 = vmul.f32 %v1031_v22, %v428_v46  ;;  %v465_v25 = vmul.f32 %v1031_v22, %v429_v47  ;;  %v466_v13 = vmul.f32 %v1031_v22, %v430_v24 }
  0x42   : > { %591 = vst.msk [vmem:[%s1095_s13 + $0x2c] sm:$0xf] %vm579_vm3, %v558_v15  ;;  %v467_v14 = vmul.f32 %v1031_v22, %v431_v50  ;;  %v468_v18 = vmul.f32 %v1031_v22, %v432_v51  ;;  %v469_v19 = vmul.f32 %v1031_v22, %v433_v3  ;;  %v470_v52 = vmul.f32 %v1031_v22, %v434_v9 }
  0x43   : > { %592 = vst.msk [vmem:[%s1095_s13 + $0x30] sm:$0xf] %vm579_vm3, %v559_v17  ;;  %v499_v29 = vadd.f32 %v1058_v41, %v463_v10  ;;  %v500_v40 = vadd.f32 %v1058_v41, %v464_v11  ;;  %v501_v44 = vadd.f32 %v1058_v41, %v465_v25  ;;  %v502_v45 = vadd.f32 %v1058_v41, %v466_v13 }
  0x44   : > { %593 = vst.msk [vmem:[%s1095_s13 + $0x34] sm:$0xf] %vm579_vm3, %v560_v20  ;;  %v503_v48 = vadd.f32 %v1058_v41, %v467_v14  ;;  %v504_v30 = vadd.f32 %v1058_v41, %v468_v18  ;;  %v505_v49 = vadd.f32 %v1058_v41, %v469_v19  ;;  %v506_v57 = vadd.f32 %v1058_v41, %v470_v52 }
  0x45   : > { %594 = vst.msk [vmem:[%s1095_s13 + $0x38] sm:$0xf] %vm579_vm3, %v561_v38  ;;  %v531_v62 = vmax.f32 %v499_v29, 0.0  ;;  %v532_v2 = vmax.f32 %v500_v40, 0.0  ;;  %v533_v53 = vmax.f32 %v501_v44, 0.0  ;;  %v534_v35 = vmax.f32 %v502_v45, 0.0 }
  0x46   : > { %595 = vst.msk [vmem:[%s1095_s13 + $0x3c] sm:$0xf] %vm579_vm3, %v562_v42  ;;  %v535_v36 = vmax.f32 %v503_v48, 0.0  ;;  %v536_v37 = vmax.f32 %v504_v30, 0.0  ;;  %v537_v54 = vmax.f32 %v505_v49, 0.0  ;;  %v538_v39 = vmax.f32 %v506_v57, 0.0 }
  0x47   : > { %v563_v55 = vpack.c.bf16 %v531_v62, %v531_v62  ;;  %v564_v56 = vpack.c.bf16 %v532_v2, %v532_v2  ;;  %v565_v58 = vpack.c.bf16 %v533_v53, %v533_v53  ;;  %v566_v59 = vpack.c.bf16 %v534_v35, %v534_v35 }
  0x48   : > { %v567_v60 = vpack.c.bf16 %v535_v36, %v535_v36  ;;  %v568_v61 = vpack.c.bf16 %v536_v37, %v536_v37  ;;  %v569_v63 = vpack.c.bf16 %v537_v54, %v537_v54  ;;  %v570_v0 = vpack.c.bf16 %v538_v39, %v538_v39 }
  0x49   : > { %596 = vst.msk [vmem:[%s1095_s13 + $0x40] sm:$0xf] %vm579_vm3, %v563_v55  ;;  %v435_v1 = vmul.f32 %v1026_v21, %v1034_v23  ;;  %v436_v4 = vmul.f32 %v1026_v21, %v1037_v26  ;;  %v437_v5 = vmul.f32 %v1026_v21, %v1040_v27  ;;  %v438_v6 = vmul.f32 %v1026_v21, %v1046_v31 }
  0x4a   : > { %597 = vst.msk [vmem:[%s1095_s13 + $0x44] sm:$0xf] %vm579_vm3, %v564_v56  ;;  %v439_v8 = vmul.f32 %v1026_v21, %v1049_v32  ;;  %v394_v7 = vsub.f32 %v789_v33, %v931_v12  ;;  %v395_v23 = vsub.f32 %v792_v34, %v931_v12  ;;  %v793_v26 = vunpack.c.h.bf16 %v1043_v28 }
  0x4b   : > { %598 = vst.msk [vmem:[%s1095_s13 + $0x48] sm:$0xf] %vm579_vm3, %v565_v58  ;;  %v471_v27 = vmul.f32 %v1031_v22, %v435_v1  ;;  %v472_v31 = vmul.f32 %v1031_v22, %v436_v4  ;;  %v473_v15 = vmul.f32 %v1031_v22, %v437_v5  ;;  %v474_v32 = vmul.f32 %v1031_v22, %v438_v6 }
  0x4c   : > { %599 = vst.msk [vmem:[%s1095_s13 + $0x4c] sm:$0xf] %vm579_vm3, %v566_v59  ;;  %v475_v16 = vmul.f32 %v1031_v22, %v439_v8  ;;  %v440_v33 = vmul.f32 %v1026_v21, %v394_v7  ;;  %v441_v28 = vmul.f32 %v1026_v21, %v395_v23  ;;  %v396_v34 = vsub.f32 %v793_v26, %v931_v12 }
  0x4d   : > { %600 = vst.msk [vmem:[%s1095_s13 + $0x50] sm:$0xf] %vm579_vm3, %v567_v60  ;;  %v507_v17 = vadd.f32 %v1058_v41, %v471_v27  ;;  %v508_v20 = vadd.f32 %v1058_v41, %v472_v31  ;;  %v509_v38 = vadd.f32 %v1058_v41, %v473_v15  ;;  %v510_v42 = vadd.f32 %v1058_v41, %v474_v32 }
  0x4e   : > { %601 = vst.msk [vmem:[%s1095_s13 + $0x54] sm:$0xf] %vm579_vm3, %v568_v61  ;;  %v511_v43 = vadd.f32 %v1058_v41, %v475_v16  ;;  %v476_v46 = vmul.f32 %v1031_v22, %v440_v33  ;;  %v477_v47 = vmul.f32 %v1031_v22, %v441_v28  ;;  %v442_v12 = vmul.f32 %v1026_v21, %v396_v34 }
  0x4f   : > { %602 = vst.msk [vmem:[%s1095_s13 + $0x58] sm:$0xf] %vm579_vm3, %v569_v63  ;;  %v539_v24 = vmax.f32 %v507_v17, 0.0  ;;  %v540_v50 = vmax.f32 %v508_v20, 0.0  ;;  %v541_v51 = vmax.f32 %v509_v38, 0.0  ;;  %v542_v3 = vmax.f32 %v510_v42, 0.0 }
  0x50   : > { %603 = vst.msk [vmem:[%s1095_s13 + $0x5c] sm:$0xf] %vm579_vm3, %v570_v0  ;;  %v543_v9 = vmax.f32 %v511_v43, 0.0  ;;  %v512_v10 = vadd.f32 %v1058_v41, %v476_v46  ;;  %v513_v11 = vadd.f32 %v1058_v41, %v477_v47  ;;  %v478_v25 = vmul.f32 %v1031_v22, %v442_v12 }
  0x51   : > { %v571_v21 = vpack.c.bf16 %v539_v24, %v539_v24  ;;  %v572_v13 = vpack.c.bf16 %v540_v50, %v540_v50  ;;  %v573_v14 = vpack.c.bf16 %v541_v51, %v541_v51  ;;  %v574_v18 = vpack.c.bf16 %v542_v3, %v542_v3 }
  0x52   : > { %v544_v19 = vmax.f32 %v512_v10, 0.0  ;;  %v545_v52 = vmax.f32 %v513_v11, 0.0  ;;  %v514_v29 = vadd.f32 %v1058_v41, %v478_v25  ;;  %v575_v40 = vpack.c.bf16 %v543_v9, %v543_v9 }
  0x53   : > { %604 = vst.msk [vmem:[%s1095_s13 + $0x60] sm:$0xf] %vm579_vm3, %v571_v21 }
  0x54   : > { %605 = vst.msk [vmem:[%s1095_s13 + $0x64] sm:$0xf] %vm579_vm3, %v572_v13  ;;  %v576_v44 = vpack.c.bf16 %v544_v19, %v544_v19  ;;  %v546_v45 = vmax.f32 %v514_v29, 0.0  ;;  %v577_v22 = vpack.c.bf16 %v545_v52, %v545_v52 }
  0x55   : > { %606 = vst.msk [vmem:[%s1095_s13 + $0x68] sm:$0xf] %vm579_vm3, %v573_v14 }
  0x56   : > { %607 = vst.msk [vmem:[%s1095_s13 + $0x6c] sm:$0xf] %vm579_vm3, %v574_v18  ;;  %v578_v48 = vpack.c.bf16 %v546_v45, %v546_v45 }
  0x57   : > { %608 = vst.msk [vmem:[%s1095_s13 + $0x70] sm:$0xf] %vm579_vm3, %v575_v40 }
  0x58   : > { %609 = vst.msk [vmem:[%s1095_s13 + $0x74] sm:$0xf] %vm579_vm3, %v576_v44 }
  0x59   : > { %610 = vst.msk [vmem:[%s1095_s13 + $0x78] sm:$0xf] %vm579_vm3, %v577_v22 }
  0x5a   : > { %611 = vst.msk [vmem:[%s1095_s13 + $0x7c] sm:$0xf] %vm579_vm3, %v578_v48 }
  0x5b PF: > { %s15_s20 = sadd.s32 1, %s859_s20   ;;  %s1279_s18 = smov %s855_s19 }
  0x5c   : > { %p12_p5 = scmp.ge.s32.totalorder %s15_s20, 4   ;;  %s1280_s19 = smov %s1282_s21 }
  0x5e   :  { %14 = sbr.rel (!%p12_p5) target bundleno = 2 (0x2), region = 76 }

// kernel: generator_forward.37
= control target key start
LH: loop header
LB: loop body
LE: loop exit
PB: predicated region body
PF: predicated region fallthrough
CT: control target
= control target key end

     0   :  { %s549_s1 = inlined_call_operand.vmem [shape: bf16[128,128], index: 1, kind: input, shape index: {}]   ;;  %s550_s0 = inlined_call_operand.vmem [shape: bf16[128,128], index: 0, kind: input, shape index: {}]   ;;  %s551_s2 = inlined_call_operand.vmem [shape: bf16[128,128], index: 2, kind: output, shape index: {}]  }
   0x1   :  { %v390_v0 = vld [vmem:[%s549_s1 + $0x38] sm:$0xff]  ;;  %v389_v1 = vld [vmem:[%s549_s1 + $0x30] sm:$0xff]  ;;  %v388_v2 = vld [vmem:[%s549_s1 + $0x28] sm:$0xff] }
   0x2   :  { %175 = vmatpush.bf16.msra.mxu0 %v390_v0  ;;  %438 = vmatpush.bf16.msra.mxu1 %v390_v0  ;;  %v387_v3 = vld [vmem:[%s549_s1 + $0x20] sm:$0xff]  ;;  %v386_v4 = vld [vmem:[%s549_s1 + $0x18] sm:$0xff]  ;;  %v385_v5 = vld [vmem:[%s549_s1 + $0x10] sm:$0xff] }
   0x3   :  { %439 = vmatpush.bf16.msra.mxu2 %v390_v0  ;;  %440 = vmatpush.bf16.msra.mxu3 %v390_v0  ;;  %v384_v6 = vld [vmem:[%s549_s1 + $0x8] sm:$0xff]  ;;  %v383_v7 = vld [vmem:[%s549_s1] sm:$0xff]  ;;  %v377_v9 = vld [vmem:[%s550_s0 + $0x10] sm:$0xff] }
   0x4   :  { %v375_v8 = vld [vmem:[%s550_s0] sm:$0xff]  ;;  %v381_v11 = vld [vmem:[%s550_s0 + $0x30] sm:$0xff]  ;;  %v376_v12 = vld [vmem:[%s550_s0 + $0x8] sm:$0xff] }
   0x5   :  { %v379_v10 = vld [vmem:[%s550_s0 + $0x20] sm:$0xff]  ;;  %v378_v13 = vld [vmem:[%s550_s0 + $0x18] sm:$0xff]  ;;  %v380_v14 = vld [vmem:[%s550_s0 + $0x28] sm:$0xff] }
   0x6   :  { %176 = vmatpush.bf16.msra.mxu0 %v389_v1  ;;  %441 = vmatpush.bf16.msra.mxu1 %v389_v1  ;;  %v382_v15 = vld [vmem:[%s550_s0 + $0x38] sm:$0xff] }
   0x7   :  { %442 = vmatpush.bf16.msra.mxu2 %v389_v1  ;;  %443 = vmatpush.bf16.msra.mxu3 %v389_v1 }
   0xa   :  { %177 = vmatpush.bf16.msra.mxu0 %v388_v2  ;;  %444 = vmatpush.bf16.msra.mxu1 %v388_v2 }
   0xb   :  { %445 = vmatpush.bf16.msra.mxu2 %v388_v2  ;;  %446 = vmatpush.bf16.msra.mxu3 %v388_v2 }
   0xe   :  { %178 = vmatpush.bf16.msra.mxu0 %v387_v3  ;;  %447 = vmatpush.bf16.msra.mxu1 %v387_v3 }
   0xf   :  { %448 = vmatpush.bf16.msra.mxu2 %v387_v3  ;;  %449 = vmatpush.bf16.msra.mxu3 %v387_v3 }
  0x12   :  { %179 = vmatpush.bf16.msra.mxu0 %v386_v4  ;;  %450 = vmatpush.bf16.msra.mxu1 %v386_v4 }
  0x13   :  { %451 = vmatpush.bf16.msra.mxu2 %v386_v4  ;;  %452 = vmatpush.bf16.msra.mxu3 %v386_v4 }
  0x16   :  { %180 = vmatpush.bf16.msra.mxu0 %v385_v5  ;;  %453 = vmatpush.bf16.msra.mxu1 %v385_v5 }
  0x17   :  { %454 = vmatpush.bf16.msra.mxu2 %v385_v5  ;;  %455 = vmatpush.bf16.msra.mxu3 %v385_v5 }
  0x1a   :  { %181 = vmatpush.bf16.msra.mxu0 %v384_v6  ;;  %456 = vmatpush.bf16.msra.mxu1 %v384_v6 }
  0x1b   :  { %457 = vmatpush.bf16.msra.mxu2 %v384_v6  ;;  %458 = vmatpush.bf16.msra.mxu3 %v384_v6 }
  0x1e   :  { %182 = vmatpush.bf16.msra.mxu0 %v383_v7  ;;  %459 = vmatpush.bf16.msra.mxu1 %v383_v7 }
  0x1f   :  { %460 = vmatpush.bf16.msra.mxu2 %v383_v7  ;;  %461 = vmatpush.bf16.msra.mxu3 %v383_v7 }
  0x21   :  { %183 = vmatmul.bf16.vlgmr.msra.gmra.mxu0 %v375_v8  ;;  %193 = vmatmul.bf16.vlgmr.msra.gmra.mxu1 %v377_v9 }
  0x22   :  { %203 = vmatmul.bf16.vlgmr.msra.gmra.mxu2 %v379_v10  ;;  %213 = vmatmul.bf16.vlgmr.msra.gmra.mxu3 %v381_v11 }
  0x31   :  { %188 = vmatmul.bf16.gmra.mxu0 %v376_v12  ;;  %198 = vmatmul.bf16.gmra.mxu1 %v378_v13 }
  0x32   :  { %208 = vmatmul.bf16.gmra.mxu2 %v380_v14  ;;  %218 = vmatmul.bf16.gmra.mxu3 %v382_v15 }
  0x9e   :  { %v184_v16 = vpop.f32.mrf.mxu0  ;;  %v194_v17 = vpop.f32.mrf.mxu1 }
  0xa5   :  { %v204_v18 = vpop.f32.mrf.mxu2  ;;  %v214_v19 = vpop.f32.mrf.mxu3 }
  0xa6   :  { %v186_v20 = vpop.f32.mrf.mxu0  ;;  %v196_v21 = vpop.f32.mrf.mxu1 }
  0xa7   :  { %v394_v22 = vpack.c.bf16 %v186_v20, %v184_v16  ;;  %v404_v23 = vpack.c.bf16 %v196_v21, %v194_v17 }
  0xa9   :  { %395 = vst [vmem:[%s551_s2] sm:$0xff] %v394_v22  }
  0xaa   :  { %432 = vst [vmem:[%s551_s2 + $0x10] sm:$0xff] %v404_v23  }
  0xad   :  { %v206_v24 = vpop.f32.mrf.mxu2  ;;  %v216_v25 = vpop.f32.mrf.mxu3 }
  0xae   :  { %v414_v26 = vpack.c.bf16 %v206_v24, %v204_v18  ;;  %v424_v27 = vpack.c.bf16 %v216_v25, %v214_v19  ;;  %v189_v28 = vpop.f32.mrf.mxu0  ;;  %v199_v29 = vpop.f32.mrf.mxu1 }
  0xb0   :  { %434 = vst [vmem:[%s551_s2 + $0x20] sm:$0xff] %v414_v26  }
  0xb1   :  { %436 = vst [vmem:[%s551_s2 + $0x30] sm:$0xff] %v424_v27  }
  0xb5   :  { %v209_v30 = vpop.f32.mrf.mxu2  ;;  %v219_v31 = vpop.f32.mrf.mxu3 }
  0xb6   :  { %v191_v32 = vpop.f32.mrf.mxu0  ;;  %v201_v33 = vpop.f32.mrf.mxu1 }
  0xb7   :  { %v399_v34 = vpack.c.bf16 %v191_v32, %v189_v28  ;;  %v409_v35 = vpack.c.bf16 %v201_v33, %v199_v29 }
  0xb9   :  { %431 = vst [vmem:[%s551_s2 + $0x8] sm:$0xff] %v399_v34  }
  0xba   :  { %433 = vst [vmem:[%s551_s2 + $0x18] sm:$0xff] %v409_v35  }
  0xbd   :  { %v211_v36 = vpop.f32.mrf.mxu2  ;;  %v221_v37 = vpop.f32.mrf.mxu3 }
  0xbe   :  { %v419_v38 = vpack.c.bf16 %v211_v36, %v209_v30  ;;  %v429_v39 = vpack.c.bf16 %v221_v37, %v219_v31 }
  0xc0   :  { %435 = vst [vmem:[%s551_s2 + $0x28] sm:$0xff] %v419_v38  }
  0xc1   :  { %437 = vst [vmem:[%s551_s2 + $0x38] sm:$0xff] %v429_v39  }

// kernel: generator_forward.38
= control target key start
LH: loop header
LB: loop body
LE: loop exit
PB: predicated region body
PF: predicated region fallthrough
CT: control target
= control target key end

     0   :  { %s438_s9 = smov 0   ;;  %s440_s10 = smov 0   ;;  %s504_s0 = inlined_call_operand.vmem [shape: bf16[2,64,16], index: 0, kind: input, shape index: {}]   ;;  %s505_s1 = inlined_call_operand.vmem [shape: f32[2,1,16], index: 1, kind: output, shape index: {0}]   ;;  %s506_s2 = inlined_call_operand.vmem [shape: f32[2,1,16], index: 2, kind: output, shape index: {1}]  }
   0x1   :  { %s442_s11 = smov 0  }
   0x2 LB: > { %s25_s12 = sadd.s32 1, %s416_s10  ;;  %p348_p0 = scmp.ge.s32.totalorder %s420_s11, 1  ;;  %s420_s11 = sphi %s442_s11, %s13_s11   ;;  %s416_s10 = sphi %s440_s10, %s508_s10   ;;  %s412_s9 = sphi %s438_s9, %s507_s9  }
   0x3   : > { %p27_p1 = scmp.ge.s32.totalorder %s25_s12, 2  ;;  %p134_p2 = scmp.lt.s32.totalorder %s420_s11, 3 }
   0x5   : > { %s510_s12 = smov (%p27_p1, %s25_s12), 0  ;;  %p135_p3 = pnand %p348_p0, %p134_p2 }
   0x6   : > { %p162_p4 = scmp.lt.s32.totalorder (!%p135_p3), %s412_s9, 1 }
   0x7   : > { %138 = sbr.rel (%p135_p3) target bundleno = 51 (0x33), region = 24 }
   0xc   : > { %s512_s9 = smov (!%p162_p4, %s412_s9), 1  ;;  %vm181_vm0 = vcmask 122880   ;;  %v422_v0 = vmov 0.0   ;;  %vm201_vm1 = vcmask 130048  }
   0xd   : > { %s353_s13 = sshll.u32 %s512_s9, 5  ;;  %s459_s16 = scalar_lea.vmem %s505_s1, %s512_s9 }
   0xe   : > { %s169_s19 = scalar_lea.vmem %s504_s0, %s353_s13  ;;  %182 = vst.msk [vmem:[%s459_s16] sm:$0x1] %vm181_vm0, %v422_v0  ;;  %s469_s22 = scalar_lea.vmem %s506_s2, %s512_s9 }
   0xf   : > { %v355_v1 = vld [vmem:[%s169_s19] sm:$0xff]   ;;  %v370_v2 = vld [vmem:[%s169_s19 + $0x8] sm:$0xff]   ;;  %v371_v3 = vld [vmem:[%s169_s19 + $0x10] sm:$0xff]   ;;  %183 = vst.msk [vmem:[%s469_s22] sm:$0x1] %vm181_vm0, %v422_v0 }
  0x10   : > { %v356_v4 = vunpack.c.l.bf16 %v355_v1  ;;  %v357_v5 = vunpack.c.h.bf16 %v355_v1  ;;  %v360_v6 = vunpack.c.l.bf16 %v370_v2  ;;  %v361_v7 = vunpack.c.h.bf16 %v370_v2  ;;  %v372_v9 = vld [vmem:[%s169_s19 + $0x18] sm:$0xff]  }
  0x11   : > { %v364_v8 = vunpack.c.l.bf16 %v371_v3  ;;  %v365_v13 = vunpack.c.h.bf16 %v371_v3  ;;  %v368_v19 = vunpack.c.l.bf16 %v372_v9  ;;  %v369_v29 = vunpack.c.h.bf16 %v372_v9 }
  0x12   : > { %v202_v10 = vsel %vm201_vm1, %v356_v4, 0.0  ;;  %v203_v11 = vsel %vm201_vm1, %v357_v5, 0.0  ;;  %v205_v12 = vsel %vm201_vm1, %v360_v6, 0.0  ;;  %v207_v15 = vsel %vm201_vm1, %v361_v7, 0.0 }
  0x13   : > { %v204_v14 = vadd.f32 %v203_v11, %v202_v10  ;;  %v227_v16 = vmul.f32 %v356_v4, %v356_v4  ;;  %v228_v17 = vmul.f32 %v357_v5, %v357_v5  ;;  %v229_v18 = vmul.f32 %v360_v6, %v360_v6 }
  0x14   : > { %v209_v21 = vsel %vm201_vm1, %v364_v8, 0.0  ;;  %v230_v22 = vmul.f32 %v361_v7, %v361_v7  ;;  %v231_v23 = vmul.f32 %v364_v8, %v364_v8  ;;  %v211_v30 = vsel %vm201_vm1, %v365_v13, 0.0 }
  0x15   : > { %v206_v20 = vadd.f32 %v205_v12, %v204_v14  ;;  %v235_v24 = vsel %vm201_vm1, %v227_v16, 0.0  ;;  %v236_v25 = vsel %vm201_vm1, %v228_v17, 0.0  ;;  %v238_v26 = vsel %vm201_vm1, %v229_v18, 0.0  ;;  %v200_v59 = vld [vmem:[%s459_s16] sm:$0x1] }
  0x16   : > { %v237_v28 = vadd.f32 %v236_v25, %v235_v24  ;;  %v232_v31 = vmul.f32 %v365_v13, %v365_v13  ;;  %v240_v32 = vsel %vm201_vm1, %v230_v22, 0.0  ;;  %v213_v35 = vsel %vm201_vm1, %v368_v19, 0.0  ;;  %v226_v0 = vld [vmem:[%s469_s22] sm:$0x1] }
  0x17   : > { %v208_v27 = vadd.f32 %v207_v15, %v206_v20  ;;  %v233_v36 = vmul.f32 %v368_v19, %v368_v19  ;;  %v242_v37 = vsel %vm201_vm1, %v231_v23, 0.0  ;;  %v215_v40 = vsel %vm201_vm1, %v369_v29, 0.0 }
  0x18   : > { %v239_v34 = vadd.f32 %v238_v26, %v237_v28  ;;  %v234_v41 = vmul.f32 %v369_v29, %v369_v29  ;;  %v244_v42 = vsel %vm201_vm1, %v232_v31, 0.0 }
  0x19   : > { %v210_v33 = vadd.f32 %v209_v21, %v208_v27  ;;  %v246_v45 = vsel %vm201_vm1, %v233_v36, 0.0 }
  0x1a   : > { %v241_v39 = vadd.f32 %v240_v32, %v239_v34  ;;  %v248_v48 = vsel %vm201_vm1, %v234_v41, 0.0 }
  0x1b   : > { %v212_v38 = vadd.f32 %v211_v30, %v210_v33 }
  0x1c   : > { %v243_v44 = vadd.f32 %v242_v37, %v241_v39 }
  0x1d   : > { %v214_v43 = vadd.f32 %v213_v35, %v212_v38 }
  0x1e   : > { %v245_v47 = vadd.f32 %v244_v42, %v243_v44 }
  0x1f   : > { %v216_v46 = vadd.f32 %v215_v40, %v214_v43 }
  0x20   : > { %v247_v50 = vadd.f32 %v246_v45, %v245_v47 }
  0x21   : > { %v217_v49 = vrot.slane %v216_v46, 4 }
  0x22   : > { %v249_v52 = vadd.f32 %v248_v48, %v247_v50 }
  0x23   : > { %v218_v51 = vadd.f32 %v217_v49, %v216_v46 }
  0x24   : > { %v250_v54 = vrot.slane %v249_v52, 4 }
  0x25   : > { %v219_v53 = vrot.slane %v218_v51, 2 }
  0x26   : > { %v251_v56 = vadd.f32 %v250_v54, %v249_v52 }
  0x27   : > { %v220_v55 = vadd.f32 %v219_v53, %v218_v51 }
  0x28   : > { %v252_v58 = vrot.slane %v251_v56, 2 }
  0x29   : > { %v221_v57 = vrot.slane %v220_v55, 1 }
  0x2a   : > { %v253_v61 = vadd.f32 %v252_v58, %v251_v56 }
  0x2b   : > { %v222_v60 = vadd.f32 %v221_v57, %v220_v55 }
  0x2c   : > { %v254_v63 = vrot.slane %v253_v61, 1 }
  0x2d   : > { %v223_v62 = vadd.f32 %v222_v60, %v200_v59 }
  0x2e   : > { %v255_v1 = vadd.f32 %v254_v63, %v253_v61 }
  0x2f   : > { %225 = vst.msk [vmem:[%s459_s16] sm:$0x1] %vm181_vm0, %v223_v62 }
  0x30   : > { %v256_v2 = vadd.f32 %v255_v1, %v226_v0 }
  0x32   : > { %257 = vst.msk [vmem:[%s469_s22] sm:$0x1] %vm181_vm0, %v256_v2 }
  0x33 PF: > { %s13_s11 = sadd.s32 1, %s420_s11   ;;  %s507_s9 = smov %s416_s10 }
  0x34   : > { %p10_p5 = scmp.ge.s32.totalorder %s13_s11, 4   ;;  %s508_s10 = smov %s510_s12 }
  0x36   :  { %12 = sbr.rel (!%p10_p5) target bundleno = 2 (0x2), region = 70 }

// kernel: generator_forward.39
= control target key start
LH: loop header
LB: loop body
LE: loop exit
PB: predicated region body
PF: predicated region fallthrough
CT: control target
= control target key end

     0   :  { %s615_s18 = smov 0   ;;  %s617_s19 = smov 0   ;;  %s677_s0 = inlined_call_operand.vmem [shape: bf16[2,64,16], index: 0, kind: input, shape index: {}]   ;;  %s678_s1 = inlined_call_operand.vmem [shape: f32[2,1,16], index: 1, kind: input, shape index: {}]   ;;  %s679_s2 = inlined_call_operand.vmem [shape: f32[2,1,16], index: 2, kind: input, shape index: {}]   ;;  %s680_s3 = inlined_call_operand.vmem [shape: f32[1,16], index: 3, kind: input, shape index: {}]   ;;  %s681_s4 = inlined_call_operand.vmem [shape: f32[1,16], index: 4, kind: input, shape index: {}]   ;;  %s682_s5 = inlined_call_operand.vmem [shape: bf16[2,64,16], index: 5, kind: output, shape index: {}]  }
   0x1   :  { %s619_s20 = smov 0  }
   0x2 LB: > { %s27_s21 = sadd.s32 1, %s579_s19  ;;  %p505_p0 = scmp.ge.s32.totalorder %s583_s20, 1  ;;  %s583_s20 = sphi %s619_s20, %s15_s20   ;;  %s579_s19 = sphi %s617_s19, %s684_s19   ;;  %s575_s18 = sphi %s615_s18, %s683_s18  }
   0x3   : > { %p29_p1 = scmp.ge.s32.totalorder %s27_s21, 2  ;;  %p224_p2 = scmp.lt.s32.totalorder %s583_s20, 3 }
   0x5   : > { %s686_s21 = smov (%p29_p1, %s27_s21), 0  ;;  %p225_p3 = pnand %p505_p0, %p224_p2 }
   0x6   : > { %p267_p4 = scmp.lt.s32.totalorder (!%p225_p3), %s575_s18, 1 }
   0x7   : > { %228 = sbr.rel (%p225_p3) target bundleno = 61 (0x3d), region = 40 }
   0xc   : > { %s688_s18 = smov (!%p267_p4, %s575_s18), 1  ;;  %v557_v36 = vld [vmem:[%s680_s3] ss:$0 sm:$0xff]  ;;  %vm387_vm3 = vcmask 125952  }
   0xd   : > { %s278_s24 = scalar_lea.vmem %s678_s1, %s688_s18  ;;  %s281_s27 = scalar_lea.vmem %s679_s2, %s688_s18  ;;  %v558_v38 = vld [vmem:[%s681_s4] ss:$0 sm:$0xff] }
   0xe   : > { %v308_v0 = vld [vmem:[%s278_s24] sm:$0x1]  ;;  %s512_s28 = sshll.u32 %s688_s18, 5 }
   0xf   : > { %v309_v1 = vmul.f32 0.015625, %v308_v0  ;;  %v310_v2 = vld [vmem:[%s281_s27] sm:$0x1]  ;;  %s274_s6 = scalar_lea.vmem %s677_s0, %s512_s28  ;;  %s290_s13 = scalar_lea.vmem %s682_s5, %s512_s28 }
  0x10   : > { %v311_v3 = vmul.f32 0.015625, %v310_v2  ;;  %v515_v8 = vld [vmem:[%s274_s6] sm:$0xff]   ;;  %v530_v11 = vld [vmem:[%s274_s6 + $0x8] sm:$0xff]   ;;  %v531_v12 = vld [vmem:[%s274_s6 + $0x10] sm:$0xff]  }
  0x11   : > { %v312_v4 = vmul.f32 %v309_v1, %v309_v1  ;;  %v516_v13 = vunpack.c.l.bf16 %v515_v8  ;;  %v532_v14 = vld [vmem:[%s274_s6 + $0x18] sm:$0xff]   ;;  %v315_v15 = vperm.slane %v309_v1, 0  ;;  %v517_v17 = vunpack.c.h.bf16 %v515_v8 }
  0x12   : > { %v520_v18 = vunpack.c.l.bf16 %v530_v11  ;;  %v521_v19 = vunpack.c.h.bf16 %v530_v11  ;;  %v524_v20 = vunpack.c.l.bf16 %v531_v12  ;;  %v525_v22 = vunpack.c.h.bf16 %v531_v12 }
  0x13   : > { %v313_v5 = vsub.f32 %v311_v3, %v312_v4  ;;  %v528_v23 = vunpack.c.l.bf16 %v532_v14  ;;  %v529_v24 = vunpack.c.h.bf16 %v532_v14  ;;  %v317_v25 = vsub.f32 %v516_v13, %v315_v15 }
  0x14   : > { %v318_v27 = vsub.f32 %v517_v17, %v315_v15  ;;  %v319_v28 = vsub.f32 %v520_v18, %v315_v15  ;;  %v320_v29 = vsub.f32 %v521_v19, %v315_v15  ;;  %v321_v30 = vsub.f32 %v524_v20, %v315_v15 }
  0x15   : > { %v325_v6 = vadd.f32 1e-05, %v313_v5  ;;  %v322_v32 = vsub.f32 %v525_v22, %v315_v15  ;;  %v323_v33 = vsub.f32 %v528_v23, %v315_v15  ;;  %v324_v34 = vsub.f32 %v529_v24, %v315_v15 }
  0x17   : > { %559 = vrsqrt.f32 %v325_v6  ;;  %vm332_vm0 = vweird.f32 %v325_v6 }
  0x1d   : > { %v560_v7 = vpop.eup %559 }
  0x1e   : > { %v327_v9 = vmul.f32 %v560_v7, %v325_v6  ;;  %vm333_vm1 = vweird.f32 %v560_v7 }
  0x1f   : > { %vm334_vm2 = vmor %vm332_vm0, %vm333_vm1 }
  0x20   : > { %v328_v10 = vmul.f32 %v560_v7, %v327_v9 }
  0x22   : > { %v329_v16 = vmul.f32 0.5, %v328_v10 }
  0x24   : > { %v330_v21 = vsub.f32 1.5, %v329_v16 }
  0x26   : > { %v331_v26 = vmul.f32 %v560_v7, %v330_v21 }
  0x28   : > { %v335_v31 = vsel %vm334_vm2, %v560_v7, %v331_v26 }
  0x29   : > { %v337_v35 = vperm.slane %v335_v31, 0 }
  0x2b   : > { %v339_v37 = vmul.f32 %v337_v35, %v317_v25  ;;  %v340_v39 = vmul.f32 %v337_v35, %v318_v27  ;;  %v341_v40 = vmul.f32 %v337_v35, %v319_v28  ;;  %v342_v41 = vmul.f32 %v337_v35, %v320_v29 }
  0x2c   : > { %v343_v42 = vmul.f32 %v337_v35, %v321_v30  ;;  %v344_v43 = vmul.f32 %v337_v35, %v322_v32  ;;  %v345_v44 = vmul.f32 %v337_v35, %v323_v33  ;;  %v346_v45 = vmul.f32 %v337_v35, %v324_v34 }
  0x2d   : > { %v351_v46 = vmul.f32 %v557_v36, %v339_v37  ;;  %v352_v47 = vmul.f32 %v557_v36, %v340_v39  ;;  %v353_v48 = vmul.f32 %v557_v36, %v341_v40  ;;  %v354_v49 = vmul.f32 %v557_v36, %v342_v41 }
  0x2e   : > { %v355_v50 = vmul.f32 %v557_v36, %v343_v42  ;;  %v356_v51 = vmul.f32 %v557_v36, %v344_v43  ;;  %v357_v52 = vmul.f32 %v557_v36, %v345_v44  ;;  %v358_v53 = vmul.f32 %v557_v36, %v346_v45 }
  0x2f   : > { %v363_v54 = vadd.f32 %v558_v38, %v351_v46  ;;  %v364_v55 = vadd.f32 %v558_v38, %v352_v47  ;;  %v365_v56 = vadd.f32 %v558_v38, %v353_v48  ;;  %v366_v57 = vadd.f32 %v558_v38, %v354_v49 }
  0x30   : > { %v367_v58 = vadd.f32 %v558_v38, %v355_v50  ;;  %v368_v59 = vadd.f32 %v558_v38, %v356_v51  ;;  %v369_v60 = vadd.f32 %v558_v38, %v357_v52  ;;  %v370_v61 = vadd.f32 %v558_v38, %v358_v53 }
  0x31   : > { %v371_v62 = vmax.f32 %v363_v54, 0.0  ;;  %v372_v63 = vmax.f32 %v364_v55, 0.0  ;;  %v373_v0 = vmax.f32 %v365_v56, 0.0  ;;  %v374_v1 = vmax.f32 %v366_v57, 0.0 }
  0x32   : > { %v375_v2 = vmax.f32 %v367_v58, 0.0  ;;  %v376_v3 = vmax.f32 %v368_v59, 0.0  ;;  %v377_v7 = vmax.f32 %v369_v60, 0.0  ;;  %v378_v9 = vmax.f32 %v370_v61, 0.0 }
  0x33   : > { %v379_v4 = vpack.c.bf16 %v371_v62, %v371_v62  ;;  %v380_v5 = vpack.c.bf16 %v372_v63, %v372_v63  ;;  %v381_v6 = vpack.c.bf16 %v373_v0, %v373_v0  ;;  %v382_v8 = vpack.c.bf16 %v374_v1, %v374_v1 }
  0x34   : > { %v383_v10 = vpack.c.bf16 %v375_v2, %v375_v2  ;;  %v384_v11 = vpack.c.bf16 %v376_v3, %v376_v3  ;;  %v385_v12 = vpack.c.bf16 %v377_v7, %v377_v7  ;;  %v386_v13 = vpack.c.bf16 %v378_v9, %v378_v9 }
  0x35   : > { %388 = vst.msk [vmem:[%s290_s13] sm:$0xf] %vm387_vm3, %v379_v4 }
  0x36   : > { %389 = vst.msk [vmem:[%s290_s13 + $0x4] sm:$0xf] %vm387_vm3, %v380_v5 }
  0x37   : > { %390 = vst.msk [vmem:[%s290_s13 + $0x8] sm:$0xf] %vm387_vm3, %v381_v6 }
  0x38   : > { %391 = vst.msk [vmem:[%s290_s13 + $0xc] sm:$0xf] %vm387_vm3, %v382_v8 }
  0x39   : > { %392 = vst.msk [vmem:[%s290_s13 + $0x10] sm:$0xf] %vm387_vm3, %v383_v10 }
  0x3a   : > { %393 = vst.msk [vmem:[%s290_s13 + $0x14] sm:$0xf] %vm387_vm3, %v384_v11 }
  0x3b   : > { %394 = vst.msk [vmem:[%s290_s13 + $0x18] sm:$0xf] %vm387_vm3, %v385_v12 }
  0x3c   : > { %395 = vst.msk [vmem:[%s290_s13 + $0x1c] sm:$0xf] %vm387_vm3, %v386_v13 }
  0x3d PF: > { %s15_s20 = sadd.s32 1, %s583_s20   ;;  %s683_s18 = smov %s579_s19 }
  0x3e   : > { %p12_p5 = scmp.ge.s32.totalorder %s15_s20, 4   ;;  %s684_s19 = smov %s686_s21 }
  0x40   :  { %14 = sbr.rel (!%p12_p5) target bundleno = 2 (0x2), region = 76 }

// kernel: generator_forward.41
= control target key start
LH: loop header
LB: loop body
LE: loop exit
PB: predicated region body
PF: predicated region fallthrough
CT: control target
= control target key end

     0   :  { %s381_s9 = smov 0   ;;  %s383_s10 = smov 0   ;;  %s431_s0 = inlined_call_operand.vmem [shape: bf16[2,16,32], index: 0, kind: input, shape index: {}]   ;;  %s432_s1 = inlined_call_operand.vmem [shape: f32[2,1,32], index: 1, kind: output, shape index: {0}]   ;;  %s433_s2 = inlined_call_operand.vmem [shape: f32[2,1,32], index: 2, kind: output, shape index: {1}]  }
   0x1   :  { %s385_s11 = smov 0  }
   0x2 LB: > { %s25_s12 = sadd.s32 1, %s359_s10  ;;  %p306_p0 = scmp.ge.s32.totalorder %s363_s11, 1  ;;  %s363_s11 = sphi %s385_s11, %s13_s11   ;;  %s359_s10 = sphi %s383_s10, %s435_s10   ;;  %s355_s9 = sphi %s381_s9, %s434_s9  }
   0x3   : > { %p27_p1 = scmp.ge.s32.totalorder %s25_s12, 2  ;;  %p134_p2 = scmp.lt.s32.totalorder %s363_s11, 3 }
   0x5   : > { %s437_s12 = smov (%p27_p1, %s25_s12), 0  ;;  %p135_p3 = pnand %p306_p0, %p134_p2 }
   0x6   : > { %p162_p4 = scmp.lt.s32.totalorder (!%p135_p3), %s355_s9, 1 }
   0x7   : > { %138 = sbr.rel (%p135_p3) target bundleno = 38 (0x26), region = 24 }
   0xc   : > { %s439_s9 = smov (!%p162_p4, %s355_s9), 1  ;;  %vm181_vm0 = vcmask 253952   ;;  %v365_v0 = vmov 0.0   ;;  %vm189_vm1 = vcmask 261120  }
   0xd   : > { %s311_s13 = sshll.u32 %s439_s9, 3  ;;  %s402_s16 = scalar_lea.vmem %s432_s1, %s439_s9 }
   0xe   : > { %s169_s19 = scalar_lea.vmem %s431_s0, %s311_s13  ;;  %182 = vst.msk [vmem:[%s402_s16] sm:$0x1] %vm181_vm0, %v365_v0  ;;  %s412_s22 = scalar_lea.vmem %s433_s2, %s439_s9 }
   0xf   : > { %v313_v1 = vld [vmem:[%s169_s19] sm:$0xff]   ;;  %183 = vst.msk [vmem:[%s412_s22] sm:$0x1] %vm181_vm0, %v365_v0 }
  0x10   : > { %v314_v2 = vunpack.c.l.bf16 %v313_v1  ;;  %v315_v3 = vunpack.c.h.bf16 %v313_v1 }
  0x12   : > { %v190_v4 = vsel %vm189_vm1, %v314_v2, 0.0  ;;  %v191_v5 = vsel %vm189_vm1, %v315_v3, 0.0  ;;  %v203_v6 = vmul.f32 %v314_v2, %v314_v2  ;;  %v204_v7 = vmul.f32 %v315_v3, %v315_v3 }
  0x13   : > { %v192_v8 = vadd.f32 %v191_v5, %v190_v4 }
  0x14   : > { %v205_v9 = vsel %vm189_vm1, %v203_v6, 0.0  ;;  %v206_v10 = vsel %vm189_vm1, %v204_v7, 0.0 }
  0x15   : > { %v193_v11 = vrot.slane %v192_v8, 4  ;;  %v207_v12 = vadd.f32 %v206_v10, %v205_v9  ;;  %v188_v21 = vld [vmem:[%s402_s16] sm:$0x1] }
  0x16   : > { %v202_v24 = vld [vmem:[%s412_s22] sm:$0x1] }
  0x17   : > { %v194_v13 = vadd.f32 %v193_v11, %v192_v8  ;;  %v208_v14 = vrot.slane %v207_v12, 4 }
  0x19   : > { %v195_v15 = vrot.slane %v194_v13, 2  ;;  %v209_v16 = vadd.f32 %v208_v14, %v207_v12 }
  0x1b   : > { %v196_v17 = vadd.f32 %v195_v15, %v194_v13  ;;  %v210_v18 = vrot.slane %v209_v16, 2 }
  0x1d   : > { %v197_v19 = vrot.slane %v196_v17, 1  ;;  %v211_v20 = vadd.f32 %v210_v18, %v209_v16 }
  0x1f   : > { %v198_v22 = vadd.f32 %v197_v19, %v196_v17  ;;  %v212_v23 = vrot.slane %v211_v20, 1 }
  0x21   : > { %v199_v25 = vadd.f32 %v198_v22, %v188_v21  ;;  %v213_v26 = vadd.f32 %v212_v23, %v211_v20 }
  0x23   : > { %201 = vst.msk [vmem:[%s402_s16] sm:$0x1] %vm181_vm0, %v199_v25  ;;  %v214_v27 = vadd.f32 %v213_v26, %v202_v24 }
  0x25   : > { %215 = vst.msk [vmem:[%s412_s22] sm:$0x1] %vm181_vm0, %v214_v27 }
  0x26 PF: > { %s13_s11 = sadd.s32 1, %s363_s11   ;;  %s434_s9 = smov %s359_s10 }
  0x27   : > { %p10_p5 = scmp.ge.s32.totalorder %s13_s11, 4   ;;  %s435_s10 = smov %s437_s12 }
  0x29   :  { %12 = sbr.rel (!%p10_p5) target bundleno = 2 (0x2), region = 70 }

// kernel: generator_forward.42
= control target key start
LH: loop header
LB: loop body
LE: loop exit
PB: predicated region body
PF: predicated region fallthrough
CT: control target
= control target key end

     0   :  { %s546_s18 = smov 0   ;;  %s548_s19 = smov 0   ;;  %s600_s0 = inlined_call_operand.vmem [shape: bf16[2,16,32], index: 0, kind: input, shape index: {}]   ;;  %s601_s1 = inlined_call_operand.vmem [shape: f32[2,1,32], index: 1, kind: input, shape index: {}]   ;;  %s602_s2 = inlined_call_operand.vmem [shape: f32[2,1,32], index: 2, kind: input, shape index: {}]   ;;  %s603_s3 = inlined_call_operand.vmem [shape: f32[1,32], index: 3, kind: input, shape index: {}]   ;;  %s604_s4 = inlined_call_operand.vmem [shape: f32[1,32], index: 4, kind: input, shape index: {}]   ;;  %s605_s5 = inlined_call_operand.vmem [shape: bf16[2,16,32], index: 5, kind: output, shape index: {}]  }
   0x1   :  { %s550_s20 = smov 0  }
   0x2 LB: > { %s27_s21 = sadd.s32 1, %s510_s19  ;;  %p451_p0 = scmp.ge.s32.totalorder %s514_s20, 1  ;;  %s514_s20 = sphi %s550_s20, %s15_s20   ;;  %s510_s19 = sphi %s548_s19, %s607_s19   ;;  %s506_s18 = sphi %s546_s18, %s606_s18  }
   0x3   : > { %p29_p1 = scmp.ge.s32.totalorder %s27_s21, 2  ;;  %p224_p2 = scmp.lt.s32.totalorder %s514_s20, 3 }
   0x5   : > { %s609_s21 = smov (%p29_p1, %s27_s21), 0  ;;  %p225_p3 = pnand %p451_p0, %p224_p2 }
   0x6   : > { %p267_p4 = scmp.lt.s32.totalorder (!%p225_p3), %s506_s18, 1 }
   0x7   : > { %228 = sbr.rel (%p225_p3) target bundleno = 55 (0x37), region = 40 }
   0xc   : > { %s611_s18 = smov (!%p267_p4, %s506_s18), 1  ;;  %v488_v21 = vld [vmem:[%s603_s3] ss:$0 sm:$0xff]  ;;  %vm339_vm3 = vcmask 257024  }
   0xd   : > { %s278_s24 = scalar_lea.vmem %s601_s1, %s611_s18  ;;  %s281_s27 = scalar_lea.vmem %s602_s2, %s611_s18  ;;  %v489_v23 = vld [vmem:[%s604_s4] ss:$0 sm:$0xff] }
   0xe   : > { %v296_v0 = vld [vmem:[%s278_s24] sm:$0x1]  ;;  %s458_s28 = sshll.u32 %s611_s18, 3 }
   0xf   : > { %v297_v1 = vmul.f32 0.0625, %v296_v0  ;;  %v298_v2 = vld [vmem:[%s281_s27] sm:$0x1]  ;;  %s274_s6 = scalar_lea.vmem %s600_s0, %s458_s28  ;;  %s290_s13 = scalar_lea.vmem %s605_s5, %s458_s28 }
  0x10   : > { %v299_v3 = vmul.f32 0.0625, %v298_v2  ;;  %v461_v9 = vld [vmem:[%s274_s6] sm:$0xff]  }
  0x11   : > { %v300_v4 = vmul.f32 %v297_v1, %v297_v1  ;;  %v462_v12 = vunpack.c.l.bf16 %v461_v9  ;;  %v463_v13 = vunpack.c.h.bf16 %v461_v9  ;;  %v303_v14 = vperm.slane %v297_v1, 0 }
  0x13   : > { %v301_v5 = vsub.f32 %v299_v3, %v300_v4  ;;  %v305_v17 = vsub.f32 %v462_v12, %v303_v14  ;;  %v306_v18 = vsub.f32 %v463_v13, %v303_v14 }
  0x15   : > { %v307_v6 = vadd.f32 1e-05, %v301_v5 }
  0x17   : > { %490 = vrsqrt.f32 %v307_v6  ;;  %vm314_vm0 = vweird.f32 %v307_v6 }
  0x1d   : > { %v491_v7 = vpop.eup %490 }
  0x1e   : > { %v309_v8 = vmul.f32 %v491_v7, %v307_v6  ;;  %vm315_vm1 = vweird.f32 %v491_v7 }
  0x1f   : > { %vm316_vm2 = vmor %vm314_vm0, %vm315_vm1 }
  0x20   : > { %v310_v10 = vmul.f32 %v491_v7, %v309_v8 }
  0x22   : > { %v311_v11 = vmul.f32 0.5, %v310_v10 }
  0x24   : > { %v312_v15 = vsub.f32 1.5, %v311_v11 }
  0x26   : > { %v313_v16 = vmul.f32 %v491_v7, %v312_v15 }
  0x28   : > { %v317_v19 = vsel %vm316_vm2, %v491_v7, %v313_v16 }
  0x29   : > { %v319_v20 = vperm.slane %v317_v19, 0 }
  0x2b   : > { %v321_v22 = vmul.f32 %v319_v20, %v305_v17  ;;  %v322_v24 = vmul.f32 %v319_v20, %v306_v18 }
  0x2d   : > { %v327_v25 = vmul.f32 %v488_v21, %v321_v22  ;;  %v328_v26 = vmul.f32 %v488_v21, %v322_v24 }
  0x2f   : > { %v333_v27 = vadd.f32 %v489_v23, %v327_v25  ;;  %v334_v28 = vadd.f32 %v489_v23, %v328_v26 }
  0x31   : > { %v335_v29 = vmax.f32 %v333_v27, 0.0  ;;  %v336_v30 = vmax.f32 %v334_v28, 0.0 }
  0x33   : > { %v337_v31 = vpack.c.bf16 %v335_v29, %v335_v29  ;;  %v338_v32 = vpack.c.bf16 %v336_v30, %v336_v30 }
  0x35   : > { %340 = vst.msk [vmem:[%s290_s13] sm:$0xf] %vm339_vm3, %v337_v31 }
  0x36   : > { %341 = vst.msk [vmem:[%s290_s13 + $0x4] sm:$0xf] %vm339_vm3, %v338_v32 }
  0x37 PF: > { %s15_s20 = sadd.s32 1, %s514_s20   ;;  %s606_s18 = smov %s510_s19 }
  0x38   : > { %p12_p5 = scmp.ge.s32.totalorder %s15_s20, 4   ;;  %s607_s19 = smov %s609_s21 }
  0x3a   :  { %14 = sbr.rel (!%p12_p5) target bundleno = 2 (0x2), region = 76 }

// kernel: generator_forward.40
= control target key start
LH: loop header
LB: loop body
LE: loop exit
PB: predicated region body
PF: predicated region fallthrough
CT: control target
= control target key end

     0   :  { %s460_s1 = inlined_call_operand.vmem [shape: bf16[256,128], index: 1, kind: input, shape index: {}]   ;;  %s461_s0 = inlined_call_operand.vmem [shape: bf16[32,256], index: 0, kind: input, shape index: {}]   ;;  %s462_s2 = inlined_call_operand.vmem [shape: bf16[32,128], index: 2, kind: output, shape index: {}]  }
   0x1   :  { %v331_v0 = vld [vmem:[%s460_s1 + $0x38] sm:$0xff]  ;;  %v330_v2 = vld [vmem:[%s460_s1 + $0x30] sm:$0xff]  ;;  %v329_v4 = vld [vmem:[%s460_s1 + $0x28] sm:$0xff] }
   0x2   :  { %v339_v1 = vld [vmem:[%s460_s1 + $0x78] sm:$0xff]  ;;  %175 = vmatpush.bf16.msra.mxu0 %v331_v0  ;;  %351 = vmatpush.bf16.msra.mxu2 %v331_v0  ;;  %v338_v3 = vld [vmem:[%s460_s1 + $0x70] sm:$0xff]  ;;  %v337_v5 = vld [vmem:[%s460_s1 + $0x68] sm:$0xff] }
   0x3   :  { %194 = vmatpush.bf16.msra.mxu1 %v339_v1  ;;  %359 = vmatpush.bf16.msra.mxu3 %v339_v1  ;;  %v328_v6 = vld [vmem:[%s460_s1 + $0x20] sm:$0xff]  ;;  %v327_v8 = vld [vmem:[%s460_s1 + $0x18] sm:$0xff]  ;;  %v326_v10 = vld [vmem:[%s460_s1 + $0x10] sm:$0xff] }
   0x4   :  { %v336_v7 = vld [vmem:[%s460_s1 + $0x60] sm:$0xff]  ;;  %v335_v9 = vld [vmem:[%s460_s1 + $0x58] sm:$0xff]  ;;  %v334_v11 = vld [vmem:[%s460_s1 + $0x50] sm:$0xff] }
   0x5   :  { %v325_v12 = vld [vmem:[%s460_s1 + $0x8] sm:$0xff]  ;;  %v324_v14 = vld [vmem:[%s460_s1] sm:$0xff]  ;;  %v250_v18 = vld [vmem:[%s461_s0 + $0x10] sm:$0xf] }
   0x6   :  { %176 = vmatpush.bf16.msra.mxu0 %v330_v2  ;;  %352 = vmatpush.bf16.msra.mxu2 %v330_v2  ;;  %v333_v13 = vld [vmem:[%s460_s1 + $0x48] sm:$0xff]  ;;  %v332_v15 = vld [vmem:[%s460_s1 + $0x40] sm:$0xff]  ;;  %v323_v19 = vld [vmem:[%s461_s0 + $0x14] sm:$0xf0] }
   0x7   :  { %195 = vmatpush.bf16.msra.mxu1 %v338_v3  ;;  %360 = vmatpush.bf16.msra.mxu3 %v338_v3  ;;  %v242_v16 = vld [vmem:[%s461_s0] sm:$0xf]  ;;  %v321_v17 = vld [vmem:[%s461_s0 + $0x4] sm:$0xf0]  ;;  %v320_v20 = vld [vmem:[%s461_s0 + $0x4] sm:$0xf]  ;;  %v251_v25 = vor.u32 %v323_v19, %v250_v18 }
   0x8   :  { %v244_v21 = vld [vmem:[%s461_s0 + $0x8] sm:$0xf0]  ;;  %v322_v22 = vld [vmem:[%s461_s0 + $0x14] sm:$0xf]  ;;  %v252_v23 = vld [vmem:[%s461_s0 + $0x18] sm:$0xf0]  ;;  %v243_v24 = vor.u32 %v321_v17, %v242_v16 }
   0x9   :  { %v247_v26 = vor.u32 %v320_v20, %v244_v21  ;;  %v255_v27 = vor.u32 %v322_v22, %v252_v23 }
   0xa   :  { %177 = vmatpush.bf16.msra.mxu0 %v329_v4  ;;  %353 = vmatpush.bf16.msra.mxu2 %v329_v4 }
   0xb   :  { %196 = vmatpush.bf16.msra.mxu1 %v337_v5  ;;  %361 = vmatpush.bf16.msra.mxu3 %v337_v5 }
   0xe   :  { %178 = vmatpush.bf16.msra.mxu0 %v328_v6  ;;  %354 = vmatpush.bf16.msra.mxu2 %v328_v6 }
   0xf   :  { %197 = vmatpush.bf16.msra.mxu1 %v336_v7  ;;  %362 = vmatpush.bf16.msra.mxu3 %v336_v7 }
  0x12   :  { %179 = vmatpush.bf16.msra.mxu0 %v327_v8  ;;  %355 = vmatpush.bf16.msra.mxu2 %v327_v8 }
  0x13   :  { %198 = vmatpush.bf16.msra.mxu1 %v335_v9  ;;  %363 = vmatpush.bf16.msra.mxu3 %v335_v9 }
  0x16   :  { %180 = vmatpush.bf16.msra.mxu0 %v326_v10  ;;  %356 = vmatpush.bf16.msra.mxu2 %v326_v10 }
  0x17   :  { %199 = vmatpush.bf16.msra.mxu1 %v334_v11  ;;  %364 = vmatpush.bf16.msra.mxu3 %v334_v11 }
  0x1a   :  { %181 = vmatpush.bf16.msra.mxu0 %v325_v12  ;;  %357 = vmatpush.bf16.msra.mxu2 %v325_v12 }
  0x1b   :  { %200 = vmatpush.bf16.msra.mxu1 %v333_v13  ;;  %365 = vmatpush.bf16.msra.mxu3 %v333_v13 }
  0x1e   :  { %182 = vmatpush.bf16.msra.mxu0 %v324_v14  ;;  %358 = vmatpush.bf16.msra.mxu2 %v324_v14 }
  0x1f   :  { %201 = vmatpush.bf16.msra.mxu1 %v332_v15  ;;  %366 = vmatpush.bf16.msra.mxu3 %v332_v15 }
  0x21   :  { %183 = vmatmul.bf16.vlgmr.msra.gmra.mxu0 %v243_v24  ;;  %188 = vmatmul.bf16.vlgmr.msra.gmra.mxu2 %v251_v25 }
  0x22   :  { %202 = vmatmul.bf16.vlgmr.msra.gmra.mxu1 %v247_v26  ;;  %207 = vmatmul.bf16.vlgmr.msra.gmra.mxu3 %v255_v27 }
  0x9e   :  { %v184_v28 = vpop.f32.mrf.mxu0 }
  0x9f   :  { %v203_v29 = vpop.f32.mrf.mxu1 }
  0xa0   :  { %v204_v34 = vadd.f32 %v203_v29, %v184_v28 }
  0xa4   :  { %v189_v30 = vpop.f32.mrf.mxu2 }
  0xa5   :  { %v208_v31 = vpop.f32.mrf.mxu3 }
  0xa6   :  { %v186_v32 = vpop.f32.mrf.mxu0  ;;  %v209_v39 = vadd.f32 %v208_v31, %v189_v30 }
  0xa7   :  { %v205_v33 = vpop.f32.mrf.mxu1 }
  0xa8   :  { %v206_v35 = vadd.f32 %v205_v33, %v186_v32 }
  0xaa   :  { %v343_v36 = vpack.c.bf16 %v206_v35, %v204_v34 }
  0xac   :  { %344 = vst [vmem:[%s462_s2] sm:$0xff] %v343_v36   ;;  %v191_v37 = vpop.f32.mrf.mxu2 }
  0xad   :  { %v210_v38 = vpop.f32.mrf.mxu3 }
  0xae   :  { %v211_v40 = vadd.f32 %v210_v38, %v191_v37 }
  0xb0   :  { %v348_v41 = vpack.c.bf16 %v211_v40, %v209_v39 }
  0xb2   :  { %350 = vst [vmem:[%s462_s2 + $0x8] sm:$0xff] %v348_v41  }

// kernel: generator_forward.48
= control target key start
LH: loop header
LB: loop body
LE: loop exit
PB: predicated region body
PF: predicated region fallthrough
CT: control target
= control target key end

     0   :  { %s643_s21 = smov 0   ;;  %s645_s22 = smov 0   ;;  %s696_s0 = inlined_call_operand.vmem [shape: bf16[2,16,32], index: 0, kind: input, shape index: {}]   ;;  %s697_s1 = inlined_call_operand.vmem [shape: f32[2,1,32], index: 1, kind: input, shape index: {}]   ;;  %s698_s2 = inlined_call_operand.vmem [shape: f32[2,1,32], index: 2, kind: input, shape index: {}]   ;;  %s699_s3 = inlined_call_operand.vmem [shape: f32[1,32], index: 3, kind: input, shape index: {}]   ;;  %s700_s4 = inlined_call_operand.vmem [shape: f32[1,32], index: 4, kind: input, shape index: {}]   ;;  %s701_s5 = inlined_call_operand.vmem [shape: bf16[2,16,32], index: 5, kind: input, shape index: {}]   ;;  %s702_s6 = inlined_call_operand.vmem [shape: bf16[2,16,32], index: 6, kind: output, shape index: {}]  }
   0x1   :  { %s647_s23 = smov 0  }
   0x2 LB: > { %s28_s24 = sadd.s32 1, %s602_s22  ;;  %p536_p0 = scmp.ge.s32.totalorder %s606_s23, 1  ;;  %s606_s23 = sphi %s647_s23, %s16_s23   ;;  %s602_s22 = sphi %s645_s22, %s704_s22   ;;  %s598_s21 = sphi %s643_s21, %s703_s21  }
   0x3   : > { %p30_p1 = scmp.ge.s32.totalorder %s28_s24, 2  ;;  %p266_p2 = scmp.lt.s32.totalorder %s606_s23, 3 }
   0x5   : > { %s706_s24 = smov (%p30_p1, %s28_s24), 0  ;;  %p267_p3 = pnand %p536_p0, %p266_p2 }
   0x6   : > { %p320_p4 = scmp.lt.s32.totalorder (!%p267_p3), %s598_s21, 1 }
   0x7   : > { %270 = sbr.rel (%p267_p3) target bundleno = 55 (0x37), region = 44 }
   0xc   : > { %s708_s21 = smov (!%p320_p4, %s598_s21), 1  ;;  %v580_v21 = vld [vmem:[%s699_s3] ss:$0 sm:$0xff]  ;;  %vm406_vm3 = vcmask 257024  }
   0xd   : > { %s331_s27 = scalar_lea.vmem %s697_s1, %s708_s21  ;;  %s334_s30 = scalar_lea.vmem %s698_s2, %s708_s21  ;;  %v581_v24 = vld [vmem:[%s700_s4] ss:$0 sm:$0xff] }
   0xe   : > { %v359_v0 = vld [vmem:[%s331_s27] sm:$0x1]  ;;  %s667_s7 = sshll.u32 %s708_s21, 3 }
   0xf   : > { %v360_v1 = vmul.f32 0.0625, %v359_v0  ;;  %v361_v2 = vld [vmem:[%s334_s30] sm:$0x1]  ;;  %s327_s10 = scalar_lea.vmem %s696_s0, %s667_s7  ;;  %s343_s13 = scalar_lea.vmem %s701_s5, %s667_s7 }
  0x10   : > { %v362_v3 = vmul.f32 0.0625, %v361_v2  ;;  %v549_v9 = vld [vmem:[%s327_s10] sm:$0xff]   ;;  %s353_s20 = scalar_lea.vmem %s702_s6, %s667_s7 }
  0x11   : > { %v363_v4 = vmul.f32 %v360_v1, %v360_v1  ;;  %v550_v12 = vunpack.c.l.bf16 %v549_v9  ;;  %v551_v13 = vunpack.c.h.bf16 %v549_v9  ;;  %v366_v14 = vperm.slane %v360_v1, 0  ;;  %v553_v22 = vld [vmem:[%s343_s13] sm:$0xff]  }
  0x12   : > { %v554_v27 = vunpack.c.l.bf16 %v553_v22  ;;  %v555_v29 = vunpack.c.h.bf16 %v553_v22 }
  0x13   : > { %v364_v5 = vsub.f32 %v362_v3, %v363_v4  ;;  %v368_v17 = vsub.f32 %v550_v12, %v366_v14  ;;  %v369_v18 = vsub.f32 %v551_v13, %v366_v14 }
  0x15   : > { %v370_v6 = vadd.f32 1e-05, %v364_v5 }
  0x17   : > { %582 = vrsqrt.f32 %v370_v6  ;;  %vm377_vm0 = vweird.f32 %v370_v6 }
  0x1d   : > { %v583_v7 = vpop.eup %582 }
  0x1e   : > { %v372_v8 = vmul.f32 %v583_v7, %v370_v6  ;;  %vm378_vm1 = vweird.f32 %v583_v7 }
  0x1f   : > { %vm379_vm2 = vmor %vm377_vm0, %vm378_vm1 }
  0x20   : > { %v373_v10 = vmul.f32 %v583_v7, %v372_v8 }
  0x22   : > { %v374_v11 = vmul.f32 0.5, %v373_v10 }
  0x24   : > { %v375_v15 = vsub.f32 1.5, %v374_v11 }
  0x26   : > { %v376_v16 = vmul.f32 %v583_v7, %v375_v15 }
  0x28   : > { %v380_v19 = vsel %vm379_vm2, %v583_v7, %v376_v16 }
  0x29   : > { %v382_v20 = vperm.slane %v380_v19, 0 }
  0x2b   : > { %v384_v23 = vmul.f32 %v382_v20, %v368_v17  ;;  %v385_v25 = vmul.f32 %v382_v20, %v369_v18 }
  0x2d   : > { %v390_v26 = vmul.f32 %v580_v21, %v384_v23  ;;  %v391_v28 = vmul.f32 %v580_v21, %v385_v25 }
  0x2f   : > { %v396_v30 = vadd.f32 %v581_v24, %v390_v26  ;;  %v397_v31 = vadd.f32 %v581_v24, %v391_v28 }
  0x31   : > { %v402_v32 = vadd.f32 %v554_v27, %v396_v30  ;;  %v403_v33 = vadd.f32 %v555_v29, %v397_v31 }
  0x33   : > { %v404_v34 = vpack.c.bf16 %v402_v32, %v402_v32  ;;  %v405_v35 = vpack.c.bf16 %v403_v33, %v403_v33 }
  0x35   : > { %407 = vst.msk [vmem:[%s353_s20] sm:$0xf] %vm406_vm3, %v404_v34 }
  0x36   : > { %408 = vst.msk [vmem:[%s353_s20 + $0x4] sm:$0xf] %vm406_vm3, %v405_v35 }
  0x37 PF: > { %s16_s23 = sadd.s32 1, %s606_s23   ;;  %s703_s21 = smov %s602_s22 }
  0x38   : > { %p13_p5 = scmp.ge.s32.totalorder %s16_s23, 4   ;;  %s704_s22 = smov %s706_s24 }
  0x3a   :  { %15 = sbr.rel (!%p13_p5) target bundleno = 2 (0x2), region = 83 }

// kernel: generator_forward.43
= control target key start
LH: loop header
LB: loop body
LE: loop exit
PB: predicated region body
PF: predicated region fallthrough
CT: control target
= control target key end

     0   :  { %vm206_vm0 = vcmask 261120   ;;  %s551_s1 = inlined_call_operand.vmem [shape: bf16[288,128], index: 1, kind: input, shape index: {}]   ;;  %s552_s0 = inlined_call_operand.vmem [shape: bf16[32,288], index: 0, kind: input, shape index: {}]   ;;  %s553_s2 = inlined_call_operand.vmem [shape: bf16[32,128], index: 2, kind: output, shape index: {}]  }
   0x1   :  { %v408_v0 = vld [vmem:[%s551_s1 + $0x38] sm:$0xff]  ;;  %v407_v2 = vld [vmem:[%s551_s1 + $0x30] sm:$0xff]  ;;  %v418_v4 = vld [vmem:[%s551_s1 + $0x88] sm:$0xff] }
   0x2   :  { %v416_v1 = vld [vmem:[%s551_s1 + $0x78] sm:$0xff]  ;;  %213 = vmatpush.bf16.msra.mxu0 %v408_v0  ;;  %v415_v3 = vld [vmem:[%s551_s1 + $0x70] sm:$0xff]  ;;  %430 = vmatpush.bf16.msra.mxu3 %v408_v0  ;;  %v417_v5 = vld [vmem:[%s551_s1 + $0x80] sm:$0xff] }
   0x3   :  { %232 = vmatpush.bf16.msra.mxu1 %v416_v1  ;;  %257 = vmatpush.bf16.msra.mxu2 %v418_v4  ;;  %v307_v6 = vld [vmem:[%s552_s0 + $0x8] sm:$0xf]  ;;  %v397_v7 = vld [vmem:[%s552_s0 + $0x10] sm:$0xf0]  ;;  %v405_v11 = vld [vmem:[%s551_s1 + $0x20] sm:$0xff] }
   0x4   :  { %v406_v8 = vld [vmem:[%s551_s1 + $0x28] sm:$0xff]  ;;  %v308_v10 = vor.u32 %v397_v7, %v307_v6  ;;  %v413_v12 = vld [vmem:[%s551_s1 + $0x60] sm:$0xff]  ;;  %v404_v13 = vld [vmem:[%s551_s1 + $0x18] sm:$0xff] }
   0x5   :  { %v414_v9 = vld [vmem:[%s551_s1 + $0x68] sm:$0xff]  ;;  %v412_v14 = vld [vmem:[%s551_s1 + $0x58] sm:$0xff]  ;;  %v403_v15 = vld [vmem:[%s551_s1 + $0x10] sm:$0xff] }
   0x6   :  { %214 = vmatpush.bf16.msra.mxu0 %v407_v2  ;;  %431 = vmatpush.bf16.msra.mxu3 %v407_v2  ;;  %v411_v16 = vld [vmem:[%s551_s1 + $0x50] sm:$0xff]  ;;  %v319_v17 = vld [vmem:[%s552_s0 + $0x20] sm:$0xf]  ;;  %v400_v18 = vld [vmem:[%s552_s0 + $0x28] sm:$0xf0] }
   0x7   :  { %233 = vmatpush.bf16.msra.mxu1 %v415_v3  ;;  %258 = vmatpush.bf16.msra.mxu2 %v417_v5  ;;  %v402_v19 = vld [vmem:[%s551_s1 + $0x8] sm:$0xff]  ;;  %v320_v21 = vor.u32 %v400_v18, %v319_v17  ;;  %v401_v22 = vld [vmem:[%s551_s1] sm:$0xff]  ;;  %v301_v27 = vld [vmem:[%s552_s0 + $0xc] sm:$0xf0] }
   0x8   :  { %v410_v20 = vld [vmem:[%s551_s1 + $0x48] sm:$0xff]  ;;  %v409_v23 = vld [vmem:[%s551_s1 + $0x40] sm:$0xff]  ;;  %v311_v28 = vld [vmem:[%s552_s0 + $0x18] sm:$0xf] }
   0x9   :  { %v299_v24 = vld [vmem:[%s552_s0] sm:$0xf]  ;;  %v396_v25 = vld [vmem:[%s552_s0 + $0x8] sm:$0xf0]  ;;  %v395_v26 = vld [vmem:[%s552_s0 + $0x4] sm:$0xf] }
   0xa   :  { %215 = vmatpush.bf16.msra.mxu0 %v406_v8  ;;  %432 = vmatpush.bf16.msra.mxu3 %v406_v8  ;;  %v399_v29 = vld [vmem:[%s552_s0 + $0x20] sm:$0xf0]  ;;  %v300_v30 = vor.u32 %v396_v25, %v299_v24  ;;  %v304_v31 = vor.u32 %v395_v26, %v301_v27  ;;  %v398_v33 = vld [vmem:[%s552_s0 + $0x1c] sm:$0xf]  ;;  %v313_v34 = vld [vmem:[%s552_s0 + $0x24] sm:$0xf0] }
   0xb   :  { %234 = vmatpush.bf16.msra.mxu1 %v414_v9  ;;  %393 = vmatmul.msk.bf16.vlgmr.msra.gmra.mxu2 %vm206_vm0, %v308_v10  ;;  %v312_v32 = vor.u32 %v399_v29, %v311_v28  ;;  %v316_v35 = vor.u32 %v398_v33, %v313_v34 }
   0xe   :  { %216 = vmatpush.bf16.msra.mxu0 %v405_v11  ;;  %433 = vmatpush.bf16.msra.mxu3 %v405_v11 }
   0xf   :  { %235 = vmatpush.bf16.msra.mxu1 %v413_v12 }
  0x12   :  { %217 = vmatpush.bf16.msra.mxu0 %v404_v13  ;;  %434 = vmatpush.bf16.msra.mxu3 %v404_v13 }
  0x13   :  { %236 = vmatpush.bf16.msra.mxu1 %v412_v14 }
  0x16   :  { %218 = vmatpush.bf16.msra.mxu0 %v403_v15  ;;  %435 = vmatpush.bf16.msra.mxu3 %v403_v15 }
  0x17   :  { %237 = vmatpush.bf16.msra.mxu1 %v411_v16 }
  0x1a   :  { %219 = vmatpush.bf16.msra.mxu0 %v402_v19  ;;  %436 = vmatpush.bf16.msra.mxu3 %v402_v19 }
  0x1b   :  { %238 = vmatpush.bf16.msra.mxu1 %v410_v20  ;;  %394 = vmatmul.msk.bf16.gmra.mxu2 %vm206_vm0, %v320_v21 }
  0x1e   :  { %220 = vmatpush.bf16.msra.mxu0 %v401_v22  ;;  %437 = vmatpush.bf16.msra.mxu3 %v401_v22 }
  0x1f   :  { %239 = vmatpush.bf16.msra.mxu1 %v409_v23 }
  0x21   :  { %221 = vmatmul.bf16.vlgmr.msra.gmra.mxu0 %v300_v30  ;;  %226 = vmatmul.bf16.vlgmr.msra.gmra.mxu3 %v312_v32 }
  0x22   :  { %240 = vmatmul.bf16.vlgmr.msra.gmra.mxu1 %v304_v31 }
  0x32   :  { %245 = vmatmul.bf16.gmra.mxu1 %v316_v35 }
  0x8e   :  { %v260_v36 = vpop.f32.mrf.mxu2 }
  0x96   :  { %v262_v39 = vpop.f32.mrf.mxu2 }
  0x9e   :  { %v222_v37 = vpop.f32.mrf.mxu0  ;;  %v265_v48 = vpop.f32.mrf.mxu2 }
  0x9f   :  { %v241_v38 = vpop.f32.mrf.mxu1 }
  0xa0   :  { %v242_v40 = vadd.f32 %v241_v38, %v222_v37 }
  0xa2   :  { %v261_v44 = vadd.f32 %v260_v36, %v242_v40 }
  0xa4   :  { %v227_v47 = vpop.f32.mrf.mxu3 }
  0xa6   :  { %v224_v41 = vpop.f32.mrf.mxu0  ;;  %v267_v54 = vpop.f32.mrf.mxu2 }
  0xa7   :  { %v243_v42 = vpop.f32.mrf.mxu1 }
  0xa8   :  { %v244_v43 = vadd.f32 %v243_v42, %v224_v41 }
  0xaa   :  { %v263_v45 = vadd.f32 %v262_v39, %v244_v43 }
  0xac   :  { %v422_v46 = vpack.c.bf16 %v263_v45, %v261_v44  ;;  %v229_v51 = vpop.f32.mrf.mxu3 }
  0xae   :  { %423 = vst [vmem:[%s553_s2] sm:$0xff] %v422_v46  }
  0xaf   :  { %v246_v49 = vpop.f32.mrf.mxu1 }
  0xb0   :  { %v247_v50 = vadd.f32 %v246_v49, %v227_v47 }
  0xb2   :  { %v266_v55 = vadd.f32 %v265_v48, %v247_v50 }
  0xb7   :  { %v248_v52 = vpop.f32.mrf.mxu1 }
  0xb8   :  { %v249_v53 = vadd.f32 %v248_v52, %v229_v51 }
  0xba   :  { %v268_v56 = vadd.f32 %v267_v54, %v249_v53 }
  0xbc   :  { %v427_v57 = vpack.c.bf16 %v268_v56, %v266_v55 }
  0xbe   :  { %429 = vst [vmem:[%s553_s2 + $0x8] sm:$0xff] %v427_v57  }

// kernel: generator_forward.55
= control target key start
LH: loop header
LB: loop body
LE: loop exit
PB: predicated region body
PF: predicated region fallthrough
CT: control target
= control target key end

     0   :  { %s269_s1 = inlined_call_operand.vmem [shape: bf16[128,128], index: 1, kind: input, shape index: {}]   ;;  %s270_s0 = inlined_call_operand.vmem [shape: bf16[32,128], index: 0, kind: input, shape index: {}]   ;;  %s271_s2 = inlined_call_operand.vmem [shape: bf16[32,128], index: 2, kind: output, shape index: {}]  }
   0x1   :  { %v198_v0 = vld [vmem:[%s269_s1 + $0x38] sm:$0xff]  ;;  %v197_v1 = vld [vmem:[%s269_s1 + $0x30] sm:$0xff]  ;;  %v196_v2 = vld [vmem:[%s269_s1 + $0x28] sm:$0xff] }
   0x2   :  { %103 = vmatpush.bf16.msra.mxu0 %v198_v0  ;;  %210 = vmatpush.bf16.msra.mxu1 %v198_v0  ;;  %v195_v3 = vld [vmem:[%s269_s1 + $0x20] sm:$0xff]  ;;  %v194_v4 = vld [vmem:[%s269_s1 + $0x18] sm:$0xff]  ;;  %v193_v5 = vld [vmem:[%s269_s1 + $0x10] sm:$0xff] }
   0x3   :  { %v192_v6 = vld [vmem:[%s269_s1 + $0x8] sm:$0xff]  ;;  %v191_v7 = vld [vmem:[%s269_s1] sm:$0xff] }
   0x4   :  { %v189_v8 = vld [vmem:[%s270_s0] sm:$0xff]  ;;  %v190_v9 = vld [vmem:[%s270_s0 + $0x8] sm:$0xff] }
   0x6   :  { %104 = vmatpush.bf16.msra.mxu0 %v197_v1  ;;  %211 = vmatpush.bf16.msra.mxu1 %v197_v1 }
   0xa   :  { %105 = vmatpush.bf16.msra.mxu0 %v196_v2  ;;  %212 = vmatpush.bf16.msra.mxu1 %v196_v2 }
   0xe   :  { %106 = vmatpush.bf16.msra.mxu0 %v195_v3  ;;  %213 = vmatpush.bf16.msra.mxu1 %v195_v3 }
  0x12   :  { %107 = vmatpush.bf16.msra.mxu0 %v194_v4  ;;  %214 = vmatpush.bf16.msra.mxu1 %v194_v4 }
  0x16   :  { %108 = vmatpush.bf16.msra.mxu0 %v193_v5  ;;  %215 = vmatpush.bf16.msra.mxu1 %v193_v5 }
  0x1a   :  { %109 = vmatpush.bf16.msra.mxu0 %v192_v6  ;;  %216 = vmatpush.bf16.msra.mxu1 %v192_v6 }
  0x1e   :  { %110 = vmatpush.bf16.msra.mxu0 %v191_v7  ;;  %217 = vmatpush.bf16.msra.mxu1 %v191_v7 }
  0x21   :  { %111 = vmatmul.bf16.vlgmr.msra.gmra.mxu0 %v189_v8  ;;  %116 = vmatmul.bf16.vlgmr.msra.gmra.mxu1 %v190_v9 }
  0x9e   :  { %v112_v10 = vpop.f32.mrf.mxu0  ;;  %v117_v11 = vpop.f32.mrf.mxu1 }
  0xa6   :  { %v114_v12 = vpop.f32.mrf.mxu0  ;;  %v119_v13 = vpop.f32.mrf.mxu1 }
  0xa7   :  { %v202_v14 = vpack.c.bf16 %v114_v12, %v112_v10  ;;  %v207_v15 = vpack.c.bf16 %v119_v13, %v117_v11 }
  0xa9   :  { %203 = vst [vmem:[%s271_s2] sm:$0xff] %v202_v14  }
  0xaa   :  { %209 = vst [vmem:[%s271_s2 + $0x8] sm:$0xff] %v207_v15  }

// kernel: generator_forward.61
= control target key start
LH: loop header
LB: loop body
LE: loop exit
PB: predicated region body
PF: predicated region fallthrough
CT: control target
= control target key end

     0   :  { %vm136_vm0 = vcmask 523264   ;;  %s507_s1 = inlined_call_operand.vmem [shape: bf16[64,128], index: 1, kind: input, shape index: {}]   ;;  %s508_s0 = inlined_call_operand.vmem [shape: bf16[128,64], index: 0, kind: input, shape index: {}]   ;;  %s509_s2 = inlined_call_operand.vmem [shape: bf16[128,128], index: 2, kind: output, shape index: {}]  }
   0x1   :  { %v364_v0 = vld [vmem:[%s507_s1 + $0x18] sm:$0xff]  ;;  %v363_v1 = vld [vmem:[%s507_s1 + $0x10] sm:$0xff]  ;;  %v362_v2 = vld [vmem:[%s507_s1 + $0x8] sm:$0xff] }
   0x2   :  { %165 = vmatpush.bf16.msra.mxu0 %v364_v0  ;;  %412 = vmatpush.bf16.msra.mxu1 %v364_v0  ;;  %v361_v3 = vld [vmem:[%s507_s1] sm:$0xff]  ;;  %v355_v5 = vld [vmem:[%s508_s0 + $0x10] sm:$0xff]  ;;  %v354_v8 = vld [vmem:[%s508_s0 + $0x8] sm:$0xff] }
   0x3   :  { %413 = vmatpush.bf16.msra.mxu2 %v364_v0  ;;  %414 = vmatpush.bf16.msra.mxu3 %v364_v0  ;;  %v353_v4 = vld [vmem:[%s508_s0] sm:$0xff]  ;;  %v359_v7 = vld [vmem:[%s508_s0 + $0x30] sm:$0xff]  ;;  %v356_v9 = vld [vmem:[%s508_s0 + $0x18] sm:$0xff] }
   0x4   :  { %v357_v6 = vld [vmem:[%s508_s0 + $0x20] sm:$0xff]  ;;  %v358_v10 = vld [vmem:[%s508_s0 + $0x28] sm:$0xff]  ;;  %v360_v11 = vld [vmem:[%s508_s0 + $0x38] sm:$0xff] }
   0x6   :  { %166 = vmatpush.bf16.msra.mxu0 %v363_v1  ;;  %415 = vmatpush.bf16.msra.mxu1 %v363_v1 }
   0x7   :  { %416 = vmatpush.bf16.msra.mxu2 %v363_v1  ;;  %417 = vmatpush.bf16.msra.mxu3 %v363_v1 }
   0xa   :  { %167 = vmatpush.bf16.msra.mxu0 %v362_v2  ;;  %418 = vmatpush.bf16.msra.mxu1 %v362_v2 }
   0xb   :  { %419 = vmatpush.bf16.msra.mxu2 %v362_v2  ;;  %420 = vmatpush.bf16.msra.mxu3 %v362_v2 }
   0xe   :  { %168 = vmatpush.bf16.msra.mxu0 %v361_v3  ;;  %421 = vmatpush.bf16.msra.mxu1 %v361_v3 }
   0xf   :  { %422 = vmatpush.bf16.msra.mxu2 %v361_v3  ;;  %423 = vmatpush.bf16.msra.mxu3 %v361_v3 }
  0x11   :  { %345 = vmatmul.msk.bf16.vlgmr.msra.gmra.mxu0 %vm136_vm0, %v353_v4  ;;  %347 = vmatmul.msk.bf16.vlgmr.msra.gmra.mxu1 %vm136_vm0, %v355_v5 }
  0x12   :  { %349 = vmatmul.msk.bf16.vlgmr.msra.gmra.mxu2 %vm136_vm0, %v357_v6  ;;  %351 = vmatmul.msk.bf16.vlgmr.msra.gmra.mxu3 %vm136_vm0, %v359_v7 }
  0x21   :  { %346 = vmatmul.msk.bf16.gmra.mxu0 %vm136_vm0, %v354_v8  ;;  %348 = vmatmul.msk.bf16.gmra.mxu1 %vm136_vm0, %v356_v9 }
  0x22   :  { %350 = vmatmul.msk.bf16.gmra.mxu2 %vm136_vm0, %v358_v10  ;;  %352 = vmatmul.msk.bf16.gmra.mxu3 %vm136_vm0, %v360_v11 }
  0x8e   :  { %v170_v12 = vpop.f32.mrf.mxu0  ;;  %v180_v13 = vpop.f32.mrf.mxu1 }
  0x95   :  { %v190_v14 = vpop.f32.mrf.mxu2  ;;  %v200_v15 = vpop.f32.mrf.mxu3 }
  0x96   :  { %v172_v16 = vpop.f32.mrf.mxu0  ;;  %v182_v17 = vpop.f32.mrf.mxu1 }
  0x97   :  { %v368_v18 = vpack.c.bf16 %v172_v16, %v170_v12  ;;  %v378_v19 = vpack.c.bf16 %v182_v17, %v180_v13 }
  0x99   :  { %369 = vst [vmem:[%s509_s2] sm:$0xff] %v368_v18  }
  0x9a   :  { %406 = vst [vmem:[%s509_s2 + $0x10] sm:$0xff] %v378_v19  }
  0x9d   :  { %v192_v20 = vpop.f32.mrf.mxu2  ;;  %v202_v21 = vpop.f32.mrf.mxu3 }
  0x9e   :  { %v388_v22 = vpack.c.bf16 %v192_v20, %v190_v14  ;;  %v398_v23 = vpack.c.bf16 %v202_v21, %v200_v15  ;;  %v175_v24 = vpop.f32.mrf.mxu0  ;;  %v185_v25 = vpop.f32.mrf.mxu1 }
  0xa0   :  { %408 = vst [vmem:[%s509_s2 + $0x20] sm:$0xff] %v388_v22  }
  0xa1   :  { %410 = vst [vmem:[%s509_s2 + $0x30] sm:$0xff] %v398_v23  }
  0xa5   :  { %v195_v26 = vpop.f32.mrf.mxu2  ;;  %v205_v27 = vpop.f32.mrf.mxu3 }
  0xa6   :  { %v177_v28 = vpop.f32.mrf.mxu0  ;;  %v187_v29 = vpop.f32.mrf.mxu1 }
  0xa7   :  { %v373_v30 = vpack.c.bf16 %v177_v28, %v175_v24  ;;  %v383_v31 = vpack.c.bf16 %v187_v29, %v185_v25 }
  0xa9   :  { %405 = vst [vmem:[%s509_s2 + $0x8] sm:$0xff] %v373_v30  }
  0xaa   :  { %407 = vst [vmem:[%s509_s2 + $0x18] sm:$0xff] %v383_v31  }
  0xad   :  { %v197_v32 = vpop.f32.mrf.mxu2  ;;  %v207_v33 = vpop.f32.mrf.mxu3 }
  0xae   :  { %v393_v34 = vpack.c.bf16 %v197_v32, %v195_v26  ;;  %v403_v35 = vpack.c.bf16 %v207_v33, %v205_v27 }
  0xb0   :  { %409 = vst [vmem:[%s509_s2 + $0x28] sm:$0xff] %v393_v34  }
  0xb1   :  { %411 = vst [vmem:[%s509_s2 + $0x38] sm:$0xff] %v403_v35  }

// kernel: generator_forward.67
= control target key start
LH: loop header
LB: loop body
LE: loop exit
PB: predicated region body
PF: predicated region fallthrough
CT: control target
= control target key end

     0   :  { %vm693_vm0 = vcmask 1043456   ;;  %vm596_vm1 = vcmask 588800   ;;  %s2583_s1 = inlined_call_operand.vmem [shape: bf16[200,128], index: 1, kind: input, shape index: {}]   ;;  %s2584_s0 = inlined_call_operand.vmem [shape: bf16[512,200], index: 0, kind: input, shape index: {}]   ;;  %s2585_s2 = inlined_call_operand.vmem [shape: f32[512,128], index: 2, kind: output, shape index: {}]  }
   0x1   :  { %v1769_v0 = vld [vmem:[%s2583_s1 + $0x38] sm:$0xff]  ;;  %v232_v1 = vld [vmem:[%s2583_s1 + $0x60] sm:$0xf]  ;;  %v1768_v3 = vld [vmem:[%s2583_s1 + $0x30] sm:$0xff] }
   0x2   :  { %v570_v2 = vunpack.c.l.b16 %v232_v1  ;;  %697 = vmatpush.bf16.msra.mxu0 %v1769_v0  ;;  %1774 = vmatpush.bf16.msra.mxu2 %v1769_v0  ;;  %v1773_v6 = vld [vmem:[%s2583_s1 + $0x58] sm:$0xff]  ;;  %v1767_v7 = vld [vmem:[%s2583_s1 + $0x28] sm:$0xff]  ;;  %v1772_v8 = vld [vmem:[%s2583_s1 + $0x50] sm:$0xff] }
   0x3   :  { %v1766_v9 = vld [vmem:[%s2583_s1 + $0x20] sm:$0xff]  ;;  %v1771_v10 = vld [vmem:[%s2583_s1 + $0x48] sm:$0xff]  ;;  %v1765_v11 = vld [vmem:[%s2583_s1 + $0x18] sm:$0xff] }
   0x4   :  { %v583_v4 = vpack.c.b16 %v570_v2, %v570_v2  ;;  %v1770_v12 = vld [vmem:[%s2583_s1 + $0x40] sm:$0xff]  ;;  %v1764_v13 = vld [vmem:[%s2583_s1 + $0x10] sm:$0xff]  ;;  %v1366_v15 = vld [vmem:[%s2584_s0 + $0x8] sm:$0xf0] }
   0x5   :  { %v1698_v14 = vld [vmem:[%s2584_s0 + $0x4] sm:$0xf]  ;;  %v1732_v16 = vld [vmem:[%s2584_s0 + $0x114] sm:$0xf]  ;;  %v1502_v17 = vld [vmem:[%s2584_s0 + $0x118] sm:$0xf0] }
   0x6   :  { %v695_v5 = vsel %vm693_vm0, %v583_v4, 0  ;;  %698 = vmatpush.bf16.msra.mxu0 %v1768_v3  ;;  %1775 = vmatpush.bf16.msra.mxu2 %v1768_v3  ;;  %v1369_v18 = vor.u32 %v1698_v14, %v1366_v15  ;;  %v1763_v19 = vld [vmem:[%s2583_s1 + $0x8] sm:$0xff]  ;;  %v1505_v20 = vor.u32 %v1732_v16, %v1502_v17  ;;  %v1762_v21 = vld [vmem:[%s2583_s1] sm:$0xff]  ;;  %v1700_v28 = vld [vmem:[%s2584_s0 + $0x14] sm:$0xf] }
   0x7   :  { %869 = vmatpush.bf16.msra.mxu1 %v695_v5  ;;  %1782 = vmatpush.bf16.msra.mxu3 %v695_v5  ;;  %v1364_v22 = vld [vmem:[%s2584_s0] sm:$0xf]  ;;  %v1699_v23 = vld [vmem:[%s2584_s0 + $0x4] sm:$0xf0]  ;;  %v1374_v29 = vld [vmem:[%s2584_s0 + $0x18] sm:$0xf0] }
   0x8   :  { %v1492_v24 = vld [vmem:[%s2584_s0 + $0x100] sm:$0xf]  ;;  %v1731_v25 = vld [vmem:[%s2584_s0 + $0x104] sm:$0xf0]  ;;  %v1365_v26 = vor.u32 %v1699_v23, %v1364_v22  ;;  %v1734_v30 = vld [vmem:[%s2584_s0 + $0x124] sm:$0xf]  ;;  %v1377_v32 = vor.u32 %v1700_v28, %v1374_v29 }
   0x9   :  { %v1493_v27 = vor.u32 %v1731_v25, %v1492_v24  ;;  %v1510_v31 = vld [vmem:[%s2584_s0 + $0x128] sm:$0xf0]  ;;  %v1372_v34 = vld [vmem:[%s2584_s0 + $0x10] sm:$0xf]  ;;  %v1701_v35 = vld [vmem:[%s2584_s0 + $0x14] sm:$0xf0] }
   0xa   :  { %699 = vmatpush.bf16.msra.mxu0 %v1767_v7  ;;  %1776 = vmatpush.bf16.msra.mxu2 %v1767_v7  ;;  %v1513_v33 = vor.u32 %v1734_v30, %v1510_v31  ;;  %v1500_v36 = vld [vmem:[%s2584_s0 + $0x110] sm:$0xf]  ;;  %v1733_v37 = vld [vmem:[%s2584_s0 + $0x114] sm:$0xf0]  ;;  %v1373_v38 = vor.u32 %v1701_v35, %v1372_v34  ;;  %v1702_v40 = vld [vmem:[%s2584_s0 + $0x24] sm:$0xf] }
   0xb   :  { %870 = vmatpush.bf16.msra.mxu1 %v1773_v6  ;;  %1783 = vmatpush.bf16.msra.mxu3 %v1773_v6  ;;  %v1501_v39 = vor.u32 %v1733_v37, %v1500_v36  ;;  %v1382_v41 = vld [vmem:[%s2584_s0 + $0x28] sm:$0xf0]  ;;  %v1736_v42 = vld [vmem:[%s2584_s0 + $0x134] sm:$0xf]  ;;  %v1518_v43 = vld [vmem:[%s2584_s0 + $0x138] sm:$0xf0] }
   0xc   :  { %v1385_v44 = vor.u32 %v1702_v40, %v1382_v41  ;;  %v1521_v45 = vor.u32 %v1736_v42, %v1518_v43  ;;  %v1380_v46 = vld [vmem:[%s2584_s0 + $0x20] sm:$0xf]  ;;  %v1703_v47 = vld [vmem:[%s2584_s0 + $0x24] sm:$0xf0]  ;;  %v1704_v52 = vld [vmem:[%s2584_s0 + $0x34] sm:$0xf] }
   0xd   :  { %v1508_v48 = vld [vmem:[%s2584_s0 + $0x120] sm:$0xf]  ;;  %v1735_v49 = vld [vmem:[%s2584_s0 + $0x124] sm:$0xf0]  ;;  %v1381_v50 = vor.u32 %v1703_v47, %v1380_v46  ;;  %v1390_v53 = vld [vmem:[%s2584_s0 + $0x38] sm:$0xf0] }
   0xe   :  { %700 = vmatpush.bf16.msra.mxu0 %v1766_v9  ;;  %1777 = vmatpush.bf16.msra.mxu2 %v1766_v9  ;;  %v1509_v51 = vor.u32 %v1735_v49, %v1508_v48  ;;  %v1738_v54 = vld [vmem:[%s2584_s0 + $0x144] sm:$0xf]  ;;  %v1526_v55 = vld [vmem:[%s2584_s0 + $0x148] sm:$0xf0]  ;;  %v1393_v56 = vor.u32 %v1704_v52, %v1390_v53  ;;  %v1388_v58 = vld [vmem:[%s2584_s0 + $0x30] sm:$0xf] }
   0xf   :  { %871 = vmatpush.bf16.msra.mxu1 %v1772_v8  ;;  %1784 = vmatpush.bf16.msra.mxu3 %v1772_v8  ;;  %v1529_v57 = vor.u32 %v1738_v54, %v1526_v55  ;;  %v1705_v59 = vld [vmem:[%s2584_s0 + $0x34] sm:$0xf0]  ;;  %v1516_v60 = vld [vmem:[%s2584_s0 + $0x130] sm:$0xf]  ;;  %v1706_v0 = vld [vmem:[%s2584_s0 + $0x44] sm:$0xf] }
  0x10   :  { %v1737_v61 = vld [vmem:[%s2584_s0 + $0x134] sm:$0xf0]  ;;  %v1389_v62 = vor.u32 %v1705_v59, %v1388_v58  ;;  %v1398_v1 = vld [vmem:[%s2584_s0 + $0x48] sm:$0xf0]  ;;  %v1740_v2 = vld [vmem:[%s2584_s0 + $0x154] sm:$0xf] }
  0x11   :  { %v1517_v63 = vor.u32 %v1737_v61, %v1516_v60  ;;  %v1534_v3 = vld [vmem:[%s2584_s0 + $0x158] sm:$0xf0]  ;;  %v1401_v4 = vor.u32 %v1706_v0, %v1398_v1  ;;  %v1396_v6 = vld [vmem:[%s2584_s0 + $0x40] sm:$0xf]  ;;  %v1707_v7 = vld [vmem:[%s2584_s0 + $0x44] sm:$0xf0] }
  0x12   :  { %701 = vmatpush.bf16.msra.mxu0 %v1765_v11  ;;  %1778 = vmatpush.bf16.msra.mxu2 %v1765_v11  ;;  %v1537_v5 = vor.u32 %v1740_v2, %v1534_v3  ;;  %v1524_v8 = vld [vmem:[%s2584_s0 + $0x140] sm:$0xf]  ;;  %v1739_v9 = vld [vmem:[%s2584_s0 + $0x144] sm:$0xf0]  ;;  %v1742_v14 = vld [vmem:[%s2584_s0 + $0x164] sm:$0xf] }
  0x13   :  { %872 = vmatpush.bf16.msra.mxu1 %v1771_v10  ;;  %1785 = vmatpush.bf16.msra.mxu3 %v1771_v10  ;;  %v1397_v10 = vor.u32 %v1707_v7, %v1396_v6  ;;  %v1525_v11 = vor.u32 %v1739_v9, %v1524_v8  ;;  %v1542_v15 = vld [vmem:[%s2584_s0 + $0x168] sm:$0xf0]  ;;  %v1710_v24 = vld [vmem:[%s2584_s0 + $0x64] sm:$0xf]  ;;  %v1412_v30 = vld [vmem:[%s2584_s0 + $0x60] sm:$0xf] }
  0x14   :  { %v1545_v17 = vor.u32 %v1742_v14, %v1542_v15  ;;  %v1414_v25 = vld [vmem:[%s2584_s0 + $0x68] sm:$0xf0]  ;;  %v1711_v31 = vld [vmem:[%s2584_s0 + $0x64] sm:$0xf0]  ;;  %v1712_v36 = vld [vmem:[%s2584_s0 + $0x74] sm:$0xf] }
  0x15   :  { %v1417_v28 = vor.u32 %v1710_v24, %v1414_v25  ;;  %v1413_v34 = vor.u32 %v1711_v31, %v1412_v30  ;;  %v1422_v37 = vld [vmem:[%s2584_s0 + $0x78] sm:$0xf0]  ;;  %v1420_v42 = vld [vmem:[%s2584_s0 + $0x70] sm:$0xf]  ;;  %v1713_v43 = vld [vmem:[%s2584_s0 + $0x74] sm:$0xf0] }
  0x16   :  { %702 = vmatpush.bf16.msra.mxu0 %v1764_v13  ;;  %1779 = vmatpush.bf16.msra.mxu2 %v1764_v13  ;;  %v1406_v13 = vld [vmem:[%s2584_s0 + $0x58] sm:$0xf0]  ;;  %v1425_v40 = vor.u32 %v1712_v36, %v1422_v37  ;;  %v1421_v46 = vor.u32 %v1713_v43, %v1420_v42  ;;  %v1714_v48 = vld [vmem:[%s2584_s0 + $0x84] sm:$0xf]  ;;  %v1430_v49 = vld [vmem:[%s2584_s0 + $0x88] sm:$0xf0] }
  0x17   :  { %873 = vmatpush.bf16.msra.mxu1 %v1770_v12  ;;  %1786 = vmatpush.bf16.msra.mxu3 %v1770_v12  ;;  %v1708_v12 = vld [vmem:[%s2584_s0 + $0x54] sm:$0xf]  ;;  %v1433_v52 = vor.u32 %v1714_v48, %v1430_v49  ;;  %v1428_v55 = vld [vmem:[%s2584_s0 + $0x80] sm:$0xf]  ;;  %v1747_v58 = vld [vmem:[%s2584_s0 + $0x184] sm:$0xf0] }
  0x18   :  { %v1409_v16 = vor.u32 %v1708_v12, %v1406_v13  ;;  %v1716_v1 = vld [vmem:[%s2584_s0 + $0x94] sm:$0xf]  ;;  %v1438_v2 = vld [vmem:[%s2584_s0 + $0x98] sm:$0xf0]  ;;  %v1750_v3 = vld [vmem:[%s2584_s0 + $0x1a4] sm:$0xf] }
  0x19   :  { %v1441_v6 = vor.u32 %v1716_v1, %v1438_v2  ;;  %v1436_v13 = vld [vmem:[%s2584_s0 + $0x90] sm:$0xf]  ;;  %v1717_v14 = vld [vmem:[%s2584_s0 + $0x94] sm:$0xf0]  ;;  %v1718_v25 = vld [vmem:[%s2584_s0 + $0xa4] sm:$0xf] }
  0x1a   :  { %1666 = vmatmul.msk.bf16.vlgmr.msra.gmra.mxu1 %vm596_vm1, %v1369_v18  ;;  %703 = vmatpush.bf16.msra.mxu0 %v1763_v19  ;;  %v1404_v18 = vld [vmem:[%s2584_s0 + $0x50] sm:$0xf] }
  0x1b   :  { %1683 = vmatmul.msk.bf16.vlgmr.msra.gmra.mxu3 %vm596_vm1, %v1505_v20  ;;  %1780 = vmatpush.bf16.msra.mxu2 %v1763_v19  ;;  %v1709_v19 = vld [vmem:[%s2584_s0 + $0x54] sm:$0xf0]  ;;  %v1532_v20 = vld [vmem:[%s2584_s0 + $0x150] sm:$0xf] }
  0x1c   :  { %v1405_v22 = vor.u32 %v1709_v19, %v1404_v18  ;;  %v1564_v15 = vld [vmem:[%s2584_s0 + $0x190] sm:$0xf]  ;;  %v1437_v18 = vor.u32 %v1717_v14, %v1436_v13 }
  0x1d   :  { %v1452_v2 = vld [vmem:[%s2584_s0 + $0xb0] sm:$0xf] }
  0x1e   :  { %704 = vmatpush.bf16.msra.mxu0 %v1762_v21 }
  0x1f   :  { %1781 = vmatpush.bf16.msra.mxu2 %v1762_v21  ;;  %v1741_v21 = vld [vmem:[%s2584_s0 + $0x154] sm:$0xf0] }
  0x20   :  { %v1533_v23 = vor.u32 %v1741_v21, %v1532_v20 }
  0x21   :  { %705 = vmatmul.bf16.vlgmr.msra.gmra.mxu0 %v1365_v26  ;;  %v1744_v26 = vld [vmem:[%s2584_s0 + $0x174] sm:$0xf] }
  0x22   :  { %785 = vmatmul.bf16.vlgmr.msra.gmra.mxu2 %v1493_v27  ;;  %v1550_v27 = vld [vmem:[%s2584_s0 + $0x178] sm:$0xf0] }
  0x23   :  { %v1553_v29 = vor.u32 %v1744_v26, %v1550_v27  ;;  %v1446_v26 = vld [vmem:[%s2584_s0 + $0xa8] sm:$0xf0]  ;;  %v1752_v27 = vld [vmem:[%s2584_s0 + $0x1b4] sm:$0xf] }
  0x24   :  { %v1449_v30 = vor.u32 %v1718_v25, %v1446_v26 }
  0x2a   :  { %1667 = vmatmul.msk.bf16.gmra.mxu1 %vm596_vm1, %v1377_v32  ;;  %v1540_v32 = vld [vmem:[%s2584_s0 + $0x160] sm:$0xf] }
  0x2b   :  { %1684 = vmatmul.msk.bf16.gmra.mxu3 %vm596_vm1, %v1513_v33  ;;  %v1743_v33 = vld [vmem:[%s2584_s0 + $0x164] sm:$0xf0] }
  0x2c   :  { %v1541_v35 = vor.u32 %v1743_v33, %v1540_v32 }
  0x31   :  { %710 = vmatmul.bf16.gmra.mxu0 %v1373_v38  ;;  %v1746_v38 = vld [vmem:[%s2584_s0 + $0x184] sm:$0xf] }
  0x32   :  { %790 = vmatmul.bf16.gmra.mxu2 %v1501_v39  ;;  %v1558_v39 = vld [vmem:[%s2584_s0 + $0x188] sm:$0xf0] }
  0x33   :  { %v1561_v41 = vor.u32 %v1746_v38, %v1558_v39  ;;  %v1444_v38 = vld [vmem:[%s2584_s0 + $0xa0] sm:$0xf]  ;;  %v1719_v39 = vld [vmem:[%s2584_s0 + $0xa4] sm:$0xf0] }
  0x34   :  { %v1445_v43 = vor.u32 %v1719_v39, %v1444_v38 }
  0x3a   :  { %1668 = vmatmul.msk.bf16.gmra.mxu1 %vm596_vm1, %v1385_v44  ;;  %v1548_v44 = vld [vmem:[%s2584_s0 + $0x170] sm:$0xf] }
  0x3b   :  { %1685 = vmatmul.msk.bf16.gmra.mxu3 %vm596_vm1, %v1521_v45  ;;  %v1745_v45 = vld [vmem:[%s2584_s0 + $0x174] sm:$0xf0] }
  0x3c   :  { %v1549_v47 = vor.u32 %v1745_v45, %v1548_v44 }
  0x41   :  { %715 = vmatmul.bf16.gmra.mxu0 %v1381_v50  ;;  %v1748_v50 = vld [vmem:[%s2584_s0 + $0x194] sm:$0xf] }
  0x42   :  { %795 = vmatmul.bf16.gmra.mxu2 %v1509_v51  ;;  %v1566_v51 = vld [vmem:[%s2584_s0 + $0x198] sm:$0xf0] }
  0x43   :  { %v1569_v54 = vor.u32 %v1748_v50, %v1566_v51 }
  0x4a   :  { %1669 = vmatmul.msk.bf16.gmra.mxu1 %vm596_vm1, %v1393_v56  ;;  %v1715_v56 = vld [vmem:[%s2584_s0 + $0x84] sm:$0xf0] }
  0x4b   :  { %1686 = vmatmul.msk.bf16.gmra.mxu3 %vm596_vm1, %v1529_v57  ;;  %v1556_v57 = vld [vmem:[%s2584_s0 + $0x180] sm:$0xf]  ;;  %v1429_v59 = vor.u32 %v1715_v56, %v1428_v55  ;;  %v1590_v55 = vld [vmem:[%s2584_s0 + $0x1c8] sm:$0xf0] }
  0x51   :  { %720 = vmatmul.bf16.gmra.mxu0 %v1389_v62 }
  0x52   :  { %800 = vmatmul.bf16.gmra.mxu2 %v1517_v63  ;;  %v1557_v63 = vor.u32 %v1747_v58, %v1556_v57 }
  0x5a   :  { %1670 = vmatmul.msk.bf16.gmra.mxu1 %vm596_vm1, %v1401_v4  ;;  %v1574_v4 = vld [vmem:[%s2584_s0 + $0x1a8] sm:$0xf0] }
  0x5b   :  { %1687 = vmatmul.msk.bf16.gmra.mxu3 %vm596_vm1, %v1537_v5 }
  0x61   :  { %725 = vmatmul.bf16.gmra.mxu0 %v1397_v10  ;;  %v1577_v10 = vor.u32 %v1750_v3, %v1574_v4  ;;  %v1721_v3 = vld [vmem:[%s2584_s0 + $0xb4] sm:$0xf0]  ;;  %v1580_v4 = vld [vmem:[%s2584_s0 + $0x1b0] sm:$0xf] }
  0x62   :  { %805 = vmatmul.bf16.gmra.mxu2 %v1525_v11 }
  0x6a   :  { %1671 = vmatmul.msk.bf16.gmra.mxu1 %vm596_vm1, %v1409_v16  ;;  %v1749_v16 = vld [vmem:[%s2584_s0 + $0x194] sm:$0xf0] }
  0x6b   :  { %1688 = vmatmul.msk.bf16.gmra.mxu3 %vm596_vm1, %v1545_v17 }
  0x71   :  { %730 = vmatmul.bf16.gmra.mxu0 %v1405_v22  ;;  %v1565_v22 = vor.u32 %v1749_v16, %v1564_v15 }
  0x72   :  { %810 = vmatmul.bf16.gmra.mxu2 %v1533_v23 }
  0x7a   :  { %1672 = vmatmul.msk.bf16.gmra.mxu1 %vm596_vm1, %v1417_v28  ;;  %v1582_v28 = vld [vmem:[%s2584_s0 + $0x1b8] sm:$0xf0] }
  0x7b   :  { %1689 = vmatmul.msk.bf16.gmra.mxu3 %vm596_vm1, %v1553_v29 }
  0x81   :  { %735 = vmatmul.bf16.gmra.mxu0 %v1413_v34 }
  0x82   :  { %815 = vmatmul.bf16.gmra.mxu2 %v1541_v35  ;;  %v1585_v35 = vor.u32 %v1752_v27, %v1582_v28 }
  0x8a   :  { %1673 = vmatmul.msk.bf16.gmra.mxu1 %vm596_vm1, %v1425_v40  ;;  %v1572_v40 = vld [vmem:[%s2584_s0 + $0x1a0] sm:$0xf] }
  0x8b   :  { %1690 = vmatmul.msk.bf16.gmra.mxu3 %vm596_vm1, %v1561_v41  ;;  %v1751_v41 = vld [vmem:[%s2584_s0 + $0x1a4] sm:$0xf0] }
  0x8c   :  { %v1573_v49 = vor.u32 %v1751_v41, %v1572_v40 }
  0x91   :  { %740 = vmatmul.bf16.gmra.mxu0 %v1421_v46 }
  0x92   :  { %820 = vmatmul.bf16.gmra.mxu2 %v1549_v47 }
  0x97   :  { %v875_v53 = vpop.f32.mrf.mxu1 }
  0x9a   :  { %1674 = vmatmul.msk.bf16.gmra.mxu1 %vm596_vm1, %v1433_v52  ;;  %v1720_v52 = vld [vmem:[%s2584_s0 + $0xb4] sm:$0xf] }
  0x9b   :  { %1691 = vmatmul.msk.bf16.gmra.mxu3 %vm596_vm1, %v1569_v54  ;;  %v1754_v54 = vld [vmem:[%s2584_s0 + $0x1c4] sm:$0xf] }
  0x9e   :  { %v960_v60 = vpop.f32.mrf.mxu3  ;;  %v706_v62 = vpop.f32.mrf.mxu0 }
  0x9f   :  { %v877_v61 = vpop.f32.mrf.mxu1  ;;  %v876_v0 = vadd.f32 %v875_v53, %v706_v62  ;;  %v1454_v53 = vld [vmem:[%s2584_s0 + $0xb8] sm:$0xf0] }
  0xa0   :  { %v1457_v57 = vor.u32 %v1720_v52, %v1454_v53 }
  0xa1   :  { %1787 = vtanh.f32 %v876_v0  ;;  %745 = vmatmul.bf16.gmra.mxu0 %v1429_v59 }
  0xa2   :  { %825 = vmatmul.bf16.gmra.mxu2 %v1557_v63  ;;  %v1593_v63 = vor.u32 %v1754_v54, %v1590_v55 }
  0xa5   :  { %v2215_v5 = vpop.f32.mrf.mxu2 }
  0xa6   :  { %v962_v7 = vpop.f32.mrf.mxu3  ;;  %v708_v9 = vpop.f32.mrf.mxu0 }
  0xa7   :  { %v880_v8 = vpop.f32.mrf.mxu1  ;;  %v1788_v11 = vpop.eup %1787  ;;  %v878_v12 = vadd.f32 %v877_v61, %v708_v9 }
  0xa8   :  { %1294 = vst [vmem:[%s2585_s2] sm:$0xff] %v1788_v11 }
  0xa9   :  { %1789 = vtanh.f32 %v878_v12 }
  0xaa   :  { %1675 = vmatmul.msk.bf16.gmra.mxu1 %vm596_vm1, %v1441_v6  ;;  %v1753_v6 = vld [vmem:[%s2584_s0 + $0x1b4] sm:$0xf0] }
  0xab   :  { %1692 = vmatmul.msk.bf16.gmra.mxu3 %vm596_vm1, %v1577_v10  ;;  %v1581_v14 = vor.u32 %v1753_v6, %v1580_v4 }
  0xad   :  { %v2234_v17 = vpop.f32.mrf.mxu2 }
  0xae   :  { %v965_v19 = vpop.f32.mrf.mxu3  ;;  %v711_v21 = vpop.f32.mrf.mxu0 }
  0xaf   :  { %v882_v20 = vpop.f32.mrf.mxu1  ;;  %v1790_v23 = vpop.eup %1789  ;;  %v881_v24 = vadd.f32 %v880_v8, %v711_v21  ;;  %v1453_v8 = vor.u32 %v1721_v3, %v1452_v2  ;;  %v1598_v21 = vld [vmem:[%s2584_s0 + $0x1d8] sm:$0xf0] }
  0xb0   :  { %1295 = vst [vmem:[%s2585_s2 + $0x8] sm:$0xff] %v1790_v23 }
  0xb1   :  { %1791 = vtanh.f32 %v881_v24  ;;  %750 = vmatmul.bf16.gmra.mxu0 %v1437_v18  ;;  %v1722_v18 = vld [vmem:[%s2584_s0 + $0xc4] sm:$0xf] }
  0xb2   :  { %830 = vmatmul.bf16.gmra.mxu2 %v1565_v22 }
  0xb5   :  { %v791_v29 = vpop.f32.mrf.mxu2 }
  0xb6   :  { %v967_v31 = vpop.f32.mrf.mxu3  ;;  %v961_v32 = vadd.f32 %v960_v60, %v791_v29  ;;  %v713_v34 = vpop.f32.mrf.mxu0 }
  0xb7   :  { %v885_v33 = vpop.f32.mrf.mxu1  ;;  %v1792_v36 = vpop.eup %1791  ;;  %v883_v37 = vadd.f32 %v882_v20, %v713_v34  ;;  %v1756_v20 = vld [vmem:[%s2584_s0 + $0x1d4] sm:$0xf]  ;;  %v1588_v34 = vld [vmem:[%s2584_s0 + $0x1c0] sm:$0xf] }
  0xb8   :  { %1296 = vst [vmem:[%s2585_s2 + $0x10] sm:$0xff] %v1792_v36  ;;  %1793 = vtanh.f32 %v961_v32  ;;  %v1601_v29 = vor.u32 %v1756_v20, %v1598_v21  ;;  %v1460_v32 = vld [vmem:[%s2584_s0 + $0xc0] sm:$0xf] }
  0xb9   :  { %1795 = vtanh.f32 %v883_v37 }
  0xba   :  { %1676 = vmatmul.msk.bf16.gmra.mxu1 %vm596_vm1, %v1449_v30 }
  0xbb   :  { %1693 = vmatmul.msk.bf16.gmra.mxu3 %vm596_vm1, %v1585_v35  ;;  %v1755_v35 = vld [vmem:[%s2584_s0 + $0x1c4] sm:$0xf0] }
  0xbd   :  { %v793_v42 = vpop.f32.mrf.mxu2 }
  0xbe   :  { %v970_v44 = vpop.f32.mrf.mxu3  ;;  %v1794_v45 = vpop.eup %1793  ;;  %v963_v46 = vadd.f32 %v962_v7, %v793_v42 }
  0xbf   :  { %v887_v47 = vpop.f32.mrf.mxu1  ;;  %v716_v48 = vpop.f32.mrf.mxu0  ;;  %1328 = vst [vmem:[%s2585_s2 + $0x110] sm:$0xff] %v1794_v45 }
  0xc0   :  { %v1796_v50 = vpop.eup %1795  ;;  %v886_v51 = vadd.f32 %v885_v33, %v716_v48  ;;  %1797 = vtanh.f32 %v963_v46  ;;  %v1723_v33 = vld [vmem:[%s2584_s0 + $0xc4] sm:$0xf0]  ;;  %v1724_v46 = vld [vmem:[%s2584_s0 + $0xd4] sm:$0xf]  ;;  %v1758_v48 = vld [vmem:[%s2584_s0 + $0x1e4] sm:$0xf] }
  0xc1   :  { %1297 = vst [vmem:[%s2585_s2 + $0x18] sm:$0xff] %v1796_v50  ;;  %755 = vmatmul.bf16.gmra.mxu0 %v1445_v43  ;;  %v1461_v37 = vor.u32 %v1723_v33, %v1460_v32  ;;  %v1589_v43 = vor.u32 %v1755_v35, %v1588_v34 }
  0xc2   :  { %1799 = vtanh.f32 %v886_v51  ;;  %835 = vmatmul.bf16.gmra.mxu2 %v1573_v49  ;;  %v1606_v49 = vld [vmem:[%s2584_s0 + $0x1e8] sm:$0xf0] }
  0xc5   :  { %v796_v56 = vpop.f32.mrf.mxu2 }
  0xc6   :  { %v972_v58 = vpop.f32.mrf.mxu3  ;;  %v1798_v59 = vpop.eup %1797  ;;  %v966_v60 = vadd.f32 %v965_v19, %v796_v56  ;;  %v1462_v19 = vld [vmem:[%s2584_s0 + $0xc8] sm:$0xf0] }
  0xc7   :  { %v890_v61 = vpop.f32.mrf.mxu1  ;;  %v718_v62 = vpop.f32.mrf.mxu0  ;;  %1329 = vst [vmem:[%s2585_s2 + $0x118] sm:$0xff] %v1798_v59  ;;  %v1465_v23 = vor.u32 %v1722_v18, %v1462_v19 }
  0xc8   :  { %v1800_v0 = vpop.eup %1799  ;;  %v888_v1 = vadd.f32 %v887_v47, %v718_v62  ;;  %1801 = vtanh.f32 %v966_v60  ;;  %v1470_v47 = vld [vmem:[%s2584_s0 + $0xd8] sm:$0xf0]  ;;  %v1468_v60 = vld [vmem:[%s2584_s0 + $0xd0] sm:$0xf] }
  0xc9   :  { %1298 = vst [vmem:[%s2585_s2 + $0x20] sm:$0xff] %v1800_v0  ;;  %v1473_v51 = vor.u32 %v1724_v46, %v1470_v47  ;;  %v1596_v62 = vld [vmem:[%s2584_s0 + $0x1d0] sm:$0xf] }
  0xca   :  { %1803 = vtanh.f32 %v888_v1  ;;  %1677 = vmatmul.msk.bf16.gmra.mxu1 %vm596_vm1, %v1457_v57  ;;  %v1609_v57 = vor.u32 %v1758_v48, %v1606_v49 }
  0xcb   :  { %1694 = vmatmul.msk.bf16.gmra.mxu3 %vm596_vm1, %v1593_v63  ;;  %v1757_v63 = vld [vmem:[%s2584_s0 + $0x1d4] sm:$0xf0] }
  0xcd   :  { %v798_v7 = vpop.f32.mrf.mxu2 }
  0xce   :  { %v975_v9 = vpop.f32.mrf.mxu3  ;;  %v1802_v10 = vpop.eup %1801  ;;  %v968_v11 = vadd.f32 %v967_v31, %v798_v7 }
  0xcf   :  { %v892_v12 = vpop.f32.mrf.mxu1  ;;  %v721_v13 = vpop.f32.mrf.mxu0  ;;  %1330 = vst [vmem:[%s2585_s2 + $0x120] sm:$0xff] %v1802_v10 }
  0xd0   :  { %v1804_v15 = vpop.eup %1803  ;;  %v891_v16 = vadd.f32 %v890_v61, %v721_v13  ;;  %1805 = vtanh.f32 %v968_v11  ;;  %v1725_v61 = vld [vmem:[%s2584_s0 + $0xd4] sm:$0xf0]  ;;  %v1726_v11 = vld [vmem:[%s2584_s0 + $0xe4] sm:$0xf]  ;;  %v1760_v13 = vld [vmem:[%s2584_s0 + $0x1f4] sm:$0xf] }
  0xd1   :  { %1299 = vst [vmem:[%s2585_s2 + $0x28] sm:$0xff] %v1804_v15  ;;  %760 = vmatmul.bf16.gmra.mxu0 %v1453_v8  ;;  %v1469_v1 = vor.u32 %v1725_v61, %v1468_v60  ;;  %v1597_v8 = vor.u32 %v1757_v63, %v1596_v62 }
  0xd2   :  { %1807 = vtanh.f32 %v891_v16  ;;  %840 = vmatmul.bf16.gmra.mxu2 %v1581_v14  ;;  %v1614_v14 = vld [vmem:[%s2584_s0 + $0x1f8] sm:$0xf0] }
  0xd5   :  { %v801_v22 = vpop.f32.mrf.mxu2 }
  0xd6   :  { %v977_v24 = vpop.f32.mrf.mxu3  ;;  %v1806_v25 = vpop.eup %1805  ;;  %v971_v26 = vadd.f32 %v970_v44, %v801_v22 }
  0xd7   :  { %v895_v27 = vpop.f32.mrf.mxu1  ;;  %v723_v28 = vpop.f32.mrf.mxu0  ;;  %1331 = vst [vmem:[%s2585_s2 + $0x128] sm:$0xff] %v1806_v25 }
  0xd8   :  { %v1808_v30 = vpop.eup %1807  ;;  %v893_v31 = vadd.f32 %v892_v12, %v723_v28  ;;  %1809 = vtanh.f32 %v971_v26  ;;  %v1478_v12 = vld [vmem:[%s2584_s0 + $0xe8] sm:$0xf0]  ;;  %v1476_v26 = vld [vmem:[%s2584_s0 + $0xe0] sm:$0xf] }
  0xd9   :  { %1300 = vst [vmem:[%s2585_s2 + $0x30] sm:$0xff] %v1808_v30  ;;  %v1481_v16 = vor.u32 %v1726_v11, %v1478_v12  ;;  %v1604_v28 = vld [vmem:[%s2584_s0 + $0x1e0] sm:$0xf] }
  0xda   :  { %1811 = vtanh.f32 %v893_v31  ;;  %1678 = vmatmul.msk.bf16.gmra.mxu1 %vm596_vm1, %v1465_v23  ;;  %v1617_v23 = vor.u32 %v1760_v13, %v1614_v14 }
  0xdb   :  { %1695 = vmatmul.msk.bf16.gmra.mxu3 %vm596_vm1, %v1601_v29  ;;  %v1759_v29 = vld [vmem:[%s2584_s0 + $0x1e4] sm:$0xf0] }
  0xdd   :  { %v803_v36 = vpop.f32.mrf.mxu2 }
  0xde   :  { %v980_v38 = vpop.f32.mrf.mxu3  ;;  %v1810_v39 = vpop.eup %1809  ;;  %v973_v40 = vadd.f32 %v972_v58, %v803_v36 }
  0xdf   :  { %v897_v41 = vpop.f32.mrf.mxu1  ;;  %v726_v42 = vpop.f32.mrf.mxu0  ;;  %1332 = vst [vmem:[%s2585_s2 + $0x130] sm:$0xff] %v1810_v39 }
  0xe0   :  { %v1812_v44 = vpop.eup %1811  ;;  %v896_v45 = vadd.f32 %v895_v27, %v726_v42  ;;  %1813 = vtanh.f32 %v973_v40  ;;  %v1727_v27 = vld [vmem:[%s2584_s0 + $0xe4] sm:$0xf0]  ;;  %v1728_v40 = vld [vmem:[%s2584_s0 + $0xf4] sm:$0xf] }
  0xe1   :  { %1301 = vst [vmem:[%s2585_s2 + $0x38] sm:$0xff] %v1812_v44  ;;  %765 = vmatmul.bf16.gmra.mxu0 %v1461_v37  ;;  %v1477_v31 = vor.u32 %v1727_v27, %v1476_v26  ;;  %v1605_v37 = vor.u32 %v1759_v29, %v1604_v28 }
  0xe2   :  { %1815 = vtanh.f32 %v896_v45  ;;  %845 = vmatmul.bf16.gmra.mxu2 %v1589_v43 }
  0xe5   :  { %v806_v50 = vpop.f32.mrf.mxu2 }
  0xe6   :  { %v982_v52 = vpop.f32.mrf.mxu3  ;;  %v1814_v53 = vpop.eup %1813  ;;  %v976_v54 = vadd.f32 %v975_v9, %v806_v50 }
  0xe7   :  { %v900_v55 = vpop.f32.mrf.mxu1  ;;  %v728_v56 = vpop.f32.mrf.mxu0  ;;  %1333 = vst [vmem:[%s2585_s2 + $0x138] sm:$0xff] %v1814_v53  ;;  %v1612_v53 = vld [vmem:[%s2584_s0 + $0x1f0] sm:$0xf] }
  0xe8   :  { %v1816_v58 = vpop.eup %1815  ;;  %v898_v59 = vadd.f32 %v897_v41, %v728_v56  ;;  %1817 = vtanh.f32 %v976_v54  ;;  %v1486_v41 = vld [vmem:[%s2584_s0 + $0xf8] sm:$0xf0]  ;;  %v1761_v54 = vld [vmem:[%s2584_s0 + $0x1f4] sm:$0xf0] }
  0xe9   :  { %1302 = vst [vmem:[%s2585_s2 + $0x40] sm:$0xff] %v1816_v58  ;;  %v1489_v43 = vor.u32 %v1728_v40, %v1486_v41  ;;  %v1613_v62 = vor.u32 %v1761_v54, %v1612_v53 }
  0xea   :  { %1819 = vtanh.f32 %v898_v59  ;;  %1679 = vmatmul.msk.bf16.gmra.mxu1 %vm596_vm1, %v1473_v51  ;;  %v1484_v51 = vld [vmem:[%s2584_s0 + $0xf0] sm:$0xf] }
  0xeb   :  { %1696 = vmatmul.msk.bf16.gmra.mxu3 %vm596_vm1, %v1609_v57 }
  0xed   :  { %v808_v0 = vpop.f32.mrf.mxu2 }
  0xee   :  { %v985_v2 = vpop.f32.mrf.mxu3  ;;  %v1818_v3 = vpop.eup %1817  ;;  %v978_v4 = vadd.f32 %v977_v24, %v808_v0 }
  0xef   :  { %v902_v6 = vpop.f32.mrf.mxu1  ;;  %v731_v7 = vpop.f32.mrf.mxu0  ;;  %1334 = vst [vmem:[%s2585_s2 + $0x140] sm:$0xff] %v1818_v3 }
  0xf0   :  { %v1820_v9 = vpop.eup %1819  ;;  %v901_v10 = vadd.f32 %v900_v55, %v731_v7  ;;  %1821 = vtanh.f32 %v978_v4 }
  0xf1   :  { %1303 = vst [vmem:[%s2585_s2 + $0x48] sm:$0xff] %v1820_v9  ;;  %770 = vmatmul.bf16.gmra.mxu0 %v1469_v1  ;;  %v1730_v1 = vld [vmem:[%s2584_s0 + $0x104] sm:$0xf] }
  0xf2   :  { %1823 = vtanh.f32 %v901_v10  ;;  %850 = vmatmul.bf16.gmra.mxu2 %v1597_v8 }
  0xf5   :  { %v811_v15 = vpop.f32.mrf.mxu2 }
  0xf6   :  { %v987_v18 = vpop.f32.mrf.mxu3  ;;  %v1822_v19 = vpop.eup %1821  ;;  %v981_v20 = vadd.f32 %v980_v38, %v811_v15 }
  0xf7   :  { %v905_v21 = vpop.f32.mrf.mxu1  ;;  %v733_v22 = vpop.f32.mrf.mxu0  ;;  %1335 = vst [vmem:[%s2585_s2 + $0x148] sm:$0xff] %v1822_v19 }
  0xf8   :  { %v1824_v24 = vpop.eup %1823  ;;  %v903_v25 = vadd.f32 %v902_v6, %v733_v22  ;;  %1825 = vtanh.f32 %v981_v20 }
  0xf9   :  { %1304 = vst [vmem:[%s2585_s2 + $0x50] sm:$0xff] %v1824_v24 }
  0xfa   :  { %1827 = vtanh.f32 %v903_v25  ;;  %1680 = vmatmul.msk.bf16.gmra.mxu1 %vm596_vm1, %v1481_v16 }
  0xfb   :  { %1697 = vmatmul.msk.bf16.gmra.mxu3 %vm596_vm1, %v1617_v23 }
  0xfd   :  { %v813_v30 = vpop.f32.mrf.mxu2 }
  0xfe   :  { %v990_v32 = vpop.f32.mrf.mxu3  ;;  %v1826_v33 = vpop.eup %1825  ;;  %v983_v34 = vadd.f32 %v982_v52, %v813_v30  ;;  %v1729_v52 = vld [vmem:[%s2584_s0 + $0xf4] sm:$0xf0] }
  0xff   :  { %v907_v35 = vpop.f32.mrf.mxu1  ;;  %v736_v36 = vpop.f32.mrf.mxu0  ;;  %1336 = vst [vmem:[%s2585_s2 + $0x150] sm:$0xff] %v1826_v33  ;;  %v1485_v56 = vor.u32 %v1729_v52, %v1484_v51 }
 0x100   :  { %v1828_v38 = vpop.eup %1827  ;;  %v906_v39 = vadd.f32 %v905_v21, %v736_v36  ;;  %1829 = vtanh.f32 %v983_v34 }
 0x101   :  { %1305 = vst [vmem:[%s2585_s2 + $0x58] sm:$0xff] %v1828_v38  ;;  %775 = vmatmul.bf16.gmra.mxu0 %v1477_v31 }
 0x102   :  { %1831 = vtanh.f32 %v906_v39  ;;  %855 = vmatmul.bf16.gmra.mxu2 %v1605_v37 }
 0x105   :  { %v816_v42 = vpop.f32.mrf.mxu2 }
 0x106   :  { %v992_v44 = vpop.f32.mrf.mxu3  ;;  %v1830_v45 = vpop.eup %1829  ;;  %v986_v46 = vadd.f32 %v985_v2, %v816_v42  ;;  %v1494_v2 = vld [vmem:[%s2584_s0 + $0x108] sm:$0xf0] }
 0x107   :  { %v910_v47 = vpop.f32.mrf.mxu1  ;;  %v738_v48 = vpop.f32.mrf.mxu0  ;;  %1337 = vst [vmem:[%s2585_s2 + $0x158] sm:$0xff] %v1830_v45  ;;  %v1497_v4 = vor.u32 %v1730_v1, %v1494_v2 }
 0x108   :  { %v1832_v49 = vpop.eup %1831  ;;  %v908_v50 = vadd.f32 %v907_v35, %v738_v48  ;;  %1833 = vtanh.f32 %v986_v46 }
 0x109   :  { %1306 = vst [vmem:[%s2585_s2 + $0x60] sm:$0xff] %v1832_v49 }
 0x10a   :  { %1835 = vtanh.f32 %v908_v50  ;;  %1681 = vmatmul.msk.bf16.gmra.mxu1 %vm596_vm1, %v1489_v43 }
 0x10d   :  { %v818_v55 = vpop.f32.mrf.mxu2 }
 0x10e   :  { %v995_v57 = vpop.f32.mrf.mxu3  ;;  %v1834_v58 = vpop.eup %1833  ;;  %v988_v59 = vadd.f32 %v987_v18, %v818_v55 }
 0x10f   :  { %v912_v60 = vpop.f32.mrf.mxu1  ;;  %v741_v61 = vpop.f32.mrf.mxu0  ;;  %1338 = vst [vmem:[%s2585_s2 + $0x160] sm:$0xff] %v1834_v58 }
 0x110   :  { %v1836_v63 = vpop.eup %1835  ;;  %v911_v0 = vadd.f32 %v910_v47, %v741_v61  ;;  %1837 = vtanh.f32 %v988_v59 }
 0x111   :  { %1307 = vst [vmem:[%s2585_s2 + $0x68] sm:$0xff] %v1836_v63  ;;  %780 = vmatmul.bf16.gmra.mxu0 %v1485_v56 }
 0x112   :  { %1839 = vtanh.f32 %v911_v0  ;;  %860 = vmatmul.bf16.gmra.mxu2 %v1613_v62 }
 0x115   :  { %v821_v3 = vpop.f32.mrf.mxu2 }
 0x116   :  { %v997_v6 = vpop.f32.mrf.mxu3  ;;  %v1838_v7 = vpop.eup %1837  ;;  %v991_v8 = vadd.f32 %v990_v32, %v821_v3 }
 0x117   :  { %v915_v9 = vpop.f32.mrf.mxu1  ;;  %v743_v10 = vpop.f32.mrf.mxu0  ;;  %1339 = vst [vmem:[%s2585_s2 + $0x168] sm:$0xff] %v1838_v7 }
 0x118   :  { %v1840_v11 = vpop.eup %1839  ;;  %v913_v12 = vadd.f32 %v912_v60, %v743_v10  ;;  %1841 = vtanh.f32 %v991_v8 }
 0x119   :  { %1308 = vst [vmem:[%s2585_s2 + $0x70] sm:$0xff] %v1840_v11 }
 0x11a   :  { %1843 = vtanh.f32 %v913_v12  ;;  %1682 = vmatmul.msk.bf16.gmra.mxu1 %vm596_vm1, %v1497_v4 }
 0x11d   :  { %v823_v13 = vpop.f32.mrf.mxu2 }
 0x11e   :  { %v1000_v14 = vpop.f32.mrf.mxu3  ;;  %v1842_v15 = vpop.eup %1841  ;;  %v993_v16 = vadd.f32 %v992_v44, %v823_v13 }
 0x11f   :  { %v917_v18 = vpop.f32.mrf.mxu1  ;;  %v746_v19 = vpop.f32.mrf.mxu0  ;;  %1340 = vst [vmem:[%s2585_s2 + $0x170] sm:$0xff] %v1842_v15 }
 0x120   :  { %v1844_v20 = vpop.eup %1843  ;;  %v916_v21 = vadd.f32 %v915_v9, %v746_v19  ;;  %1845 = vtanh.f32 %v993_v16 }
 0x121   :  { %1309 = vst [vmem:[%s2585_s2 + $0x78] sm:$0xff] %v1844_v20 }
 0x122   :  { %1847 = vtanh.f32 %v916_v21 }
 0x125   :  { %v826_v22 = vpop.f32.mrf.mxu2 }
 0x126   :  { %v1002_v23 = vpop.f32.mrf.mxu3  ;;  %v1846_v24 = vpop.eup %1845  ;;  %v996_v25 = vadd.f32 %v995_v57, %v826_v22 }
 0x127   :  { %v920_v26 = vpop.f32.mrf.mxu1  ;;  %v748_v27 = vpop.f32.mrf.mxu0  ;;  %1341 = vst [vmem:[%s2585_s2 + $0x178] sm:$0xff] %v1846_v24 }
 0x128   :  { %v1848_v28 = vpop.eup %1847  ;;  %v918_v29 = vadd.f32 %v917_v18, %v748_v27  ;;  %1849 = vtanh.f32 %v996_v25 }
 0x129   :  { %1310 = vst [vmem:[%s2585_s2 + $0x80] sm:$0xff] %v1848_v28 }
 0x12a   :  { %1851 = vtanh.f32 %v918_v29 }
 0x12d   :  { %v828_v30 = vpop.f32.mrf.mxu2 }
 0x12e   :  { %v1850_v31 = vpop.eup %1849  ;;  %v998_v32 = vadd.f32 %v997_v6, %v828_v30  ;;  %v1005_v37 = vpop.f32.mrf.mxu3 }
 0x12f   :  { %v922_v33 = vpop.f32.mrf.mxu1  ;;  %v751_v34 = vpop.f32.mrf.mxu0  ;;  %1342 = vst [vmem:[%s2585_s2 + $0x180] sm:$0xff] %v1850_v31 }
 0x130   :  { %v1852_v35 = vpop.eup %1851  ;;  %v921_v36 = vadd.f32 %v920_v26, %v751_v34  ;;  %1853 = vtanh.f32 %v998_v32 }
 0x131   :  { %1311 = vst [vmem:[%s2585_s2 + $0x88] sm:$0xff] %v1852_v35 }
 0x132   :  { %1855 = vtanh.f32 %v921_v36 }
 0x135   :  { %v831_v38 = vpop.f32.mrf.mxu2 }
 0x136   :  { %v1854_v39 = vpop.eup %1853  ;;  %v1001_v40 = vadd.f32 %v1000_v14, %v831_v38  ;;  %v1007_v45 = vpop.f32.mrf.mxu3 }
 0x137   :  { %v925_v41 = vpop.f32.mrf.mxu1  ;;  %v753_v42 = vpop.f32.mrf.mxu0  ;;  %1343 = vst [vmem:[%s2585_s2 + $0x188] sm:$0xff] %v1854_v39 }
 0x138   :  { %v1856_v43 = vpop.eup %1855  ;;  %v923_v44 = vadd.f32 %v922_v33, %v753_v42  ;;  %1857 = vtanh.f32 %v1001_v40 }
 0x139   :  { %1312 = vst [vmem:[%s2585_s2 + $0x90] sm:$0xff] %v1856_v43 }
 0x13a   :  { %1859 = vtanh.f32 %v923_v44 }
 0x13d   :  { %v833_v46 = vpop.f32.mrf.mxu2 }
 0x13e   :  { %v1858_v47 = vpop.eup %1857  ;;  %v1003_v48 = vadd.f32 %v1002_v23, %v833_v46  ;;  %v1010_v53 = vpop.f32.mrf.mxu3 }
 0x13f   :  { %v927_v49 = vpop.f32.mrf.mxu1  ;;  %v756_v50 = vpop.f32.mrf.mxu0  ;;  %1344 = vst [vmem:[%s2585_s2 + $0x190] sm:$0xff] %v1858_v47 }
 0x140   :  { %v1860_v51 = vpop.eup %1859  ;;  %v926_v52 = vadd.f32 %v925_v41, %v756_v50  ;;  %1861 = vtanh.f32 %v1003_v48 }
 0x141   :  { %1313 = vst [vmem:[%s2585_s2 + $0x98] sm:$0xff] %v1860_v51 }
 0x142   :  { %1863 = vtanh.f32 %v926_v52 }
 0x145   :  { %v836_v54 = vpop.f32.mrf.mxu2 }
 0x146   :  { %v1862_v55 = vpop.eup %1861  ;;  %v1006_v56 = vadd.f32 %v1005_v37, %v836_v54  ;;  %v1012_v62 = vpop.f32.mrf.mxu3 }
 0x147   :  { %v930_v57 = vpop.f32.mrf.mxu1  ;;  %v758_v58 = vpop.f32.mrf.mxu0  ;;  %1345 = vst [vmem:[%s2585_s2 + $0x198] sm:$0xff] %v1862_v55 }
 0x148   :  { %v1864_v59 = vpop.eup %1863  ;;  %v928_v60 = vadd.f32 %v927_v49, %v758_v58  ;;  %1865 = vtanh.f32 %v1006_v56 }
 0x149   :  { %1314 = vst [vmem:[%s2585_s2 + $0xa0] sm:$0xff] %v1864_v59 }
 0x14a   :  { %1867 = vtanh.f32 %v928_v60 }
 0x14d   :  { %v838_v61 = vpop.f32.mrf.mxu2 }
 0x14e   :  { %v1866_v63 = vpop.eup %1865  ;;  %v1008_v0 = vadd.f32 %v1007_v45, %v838_v61  ;;  %v1015_v13 = vpop.f32.mrf.mxu3 }
 0x14f   :  { %v932_v1 = vpop.f32.mrf.mxu1  ;;  %v761_v2 = vpop.f32.mrf.mxu0  ;;  %1346 = vst [vmem:[%s2585_s2 + $0x1a0] sm:$0xff] %v1866_v63 }
 0x150   :  { %v1868_v3 = vpop.eup %1867  ;;  %v931_v4 = vadd.f32 %v930_v57, %v761_v2  ;;  %1869 = vtanh.f32 %v1008_v0 }
 0x151   :  { %1315 = vst [vmem:[%s2585_s2 + $0xa8] sm:$0xff] %v1868_v3 }
 0x152   :  { %1871 = vtanh.f32 %v931_v4 }
 0x155   :  { %v841_v6 = vpop.f32.mrf.mxu2 }
 0x156   :  { %v1870_v7 = vpop.eup %1869  ;;  %v1011_v8 = vadd.f32 %v1010_v53, %v841_v6  ;;  %v1017_v22 = vpop.f32.mrf.mxu3 }
 0x157   :  { %v935_v9 = vpop.f32.mrf.mxu1  ;;  %v763_v10 = vpop.f32.mrf.mxu0  ;;  %1347 = vst [vmem:[%s2585_s2 + $0x1a8] sm:$0xff] %v1870_v7 }
 0x158   :  { %v1872_v11 = vpop.eup %1871  ;;  %v933_v12 = vadd.f32 %v932_v1, %v763_v10  ;;  %1873 = vtanh.f32 %v1011_v8 }
 0x159   :  { %1316 = vst [vmem:[%s2585_s2 + $0xb0] sm:$0xff] %v1872_v11 }
 0x15a   :  { %1875 = vtanh.f32 %v933_v12 }
 0x15d   :  { %v843_v14 = vpop.f32.mrf.mxu2 }
 0x15e   :  { %v1874_v15 = vpop.eup %1873  ;;  %v1013_v16 = vadd.f32 %v1012_v62, %v843_v14  ;;  %v1020_v30 = vpop.f32.mrf.mxu3 }
 0x15f   :  { %v937_v18 = vpop.f32.mrf.mxu1  ;;  %v766_v19 = vpop.f32.mrf.mxu0  ;;  %1348 = vst [vmem:[%s2585_s2 + $0x1b0] sm:$0xff] %v1874_v15 }
 0x160   :  { %v1876_v20 = vpop.eup %1875  ;;  %v936_v21 = vadd.f32 %v935_v9, %v766_v19  ;;  %1877 = vtanh.f32 %v1013_v16 }
 0x161   :  { %1317 = vst [vmem:[%s2585_s2 + $0xb8] sm:$0xff] %v1876_v20 }
 0x162   :  { %1879 = vtanh.f32 %v936_v21 }
 0x165   :  { %v846_v23 = vpop.f32.mrf.mxu2 }
 0x166   :  { %v1878_v24 = vpop.eup %1877  ;;  %v1016_v25 = vadd.f32 %v1015_v13, %v846_v23  ;;  %v1022_v39 = vpop.f32.mrf.mxu3 }
 0x167   :  { %v940_v26 = vpop.f32.mrf.mxu1  ;;  %v768_v27 = vpop.f32.mrf.mxu0  ;;  %1349 = vst [vmem:[%s2585_s2 + $0x1b8] sm:$0xff] %v1878_v24 }
 0x168   :  { %v1880_v28 = vpop.eup %1879  ;;  %v938_v29 = vadd.f32 %v937_v18, %v768_v27  ;;  %1881 = vtanh.f32 %v1016_v25 }
 0x169   :  { %1318 = vst [vmem:[%s2585_s2 + $0xc0] sm:$0xff] %v1880_v28 }
 0x16a   :  { %1883 = vtanh.f32 %v938_v29 }
 0x16d   :  { %v848_v31 = vpop.f32.mrf.mxu2 }
 0x16e   :  { %v1882_v32 = vpop.eup %1881  ;;  %v1018_v33 = vadd.f32 %v1017_v22, %v848_v31  ;;  %v1025_v52 = vpop.f32.mrf.mxu3 }
 0x16f   :  { %v942_v34 = vpop.f32.mrf.mxu1  ;;  %v771_v35 = vpop.f32.mrf.mxu0  ;;  %1350 = vst [vmem:[%s2585_s2 + $0x1c0] sm:$0xff] %v1882_v32 }
 0x170   :  { %v1884_v36 = vpop.eup %1883  ;;  %v941_v37 = vadd.f32 %v940_v26, %v771_v35  ;;  %1885 = vtanh.f32 %v1018_v33 }
 0x171   :  { %1319 = vst [vmem:[%s2585_s2 + $0xc8] sm:$0xff] %v1884_v36 }
 0x172   :  { %1887 = vtanh.f32 %v941_v37 }
 0x175   :  { %v851_v38 = vpop.f32.mrf.mxu2 }
 0x176   :  { %v1886_v40 = vpop.eup %1885  ;;  %v1021_v41 = vadd.f32 %v1020_v30, %v851_v38  ;;  %v1027_v61 = vpop.f32.mrf.mxu3 }
 0x177   :  { %v945_v42 = vpop.f32.mrf.mxu1  ;;  %v773_v43 = vpop.f32.mrf.mxu0  ;;  %1351 = vst [vmem:[%s2585_s2 + $0x1c8] sm:$0xff] %v1886_v40 }
 0x178   :  { %v1888_v44 = vpop.eup %1887  ;;  %v943_v45 = vadd.f32 %v942_v34, %v773_v43  ;;  %1889 = vtanh.f32 %v1021_v41 }
 0x179   :  { %1320 = vst [vmem:[%s2585_s2 + $0xd0] sm:$0xff] %v1888_v44 }
 0x17a   :  { %1891 = vtanh.f32 %v943_v45 }
 0x17d   :  { %v853_v46 = vpop.f32.mrf.mxu2 }
 0x17e   :  { %v1890_v47 = vpop.eup %1889  ;;  %v1023_v48 = vadd.f32 %v1022_v39, %v853_v46  ;;  %v1030_v6 = vpop.f32.mrf.mxu3 }
 0x17f   :  { %v947_v49 = vpop.f32.mrf.mxu1  ;;  %v776_v50 = vpop.f32.mrf.mxu0  ;;  %1352 = vst [vmem:[%s2585_s2 + $0x1d0] sm:$0xff] %v1890_v47 }
 0x180   :  { %v1892_v51 = vpop.eup %1891  ;;  %v946_v53 = vadd.f32 %v945_v42, %v776_v50  ;;  %1893 = vtanh.f32 %v1023_v48 }
 0x181   :  { %1321 = vst [vmem:[%s2585_s2 + $0xd8] sm:$0xff] %v1892_v51 }
 0x182   :  { %1895 = vtanh.f32 %v946_v53 }
 0x185   :  { %v856_v54 = vpop.f32.mrf.mxu2 }
 0x186   :  { %v1894_v55 = vpop.eup %1893  ;;  %v1026_v56 = vadd.f32 %v1025_v52, %v856_v54  ;;  %v1032_v15 = vpop.f32.mrf.mxu3 }
 0x187   :  { %v950_v57 = vpop.f32.mrf.mxu1  ;;  %v778_v58 = vpop.f32.mrf.mxu0  ;;  %1353 = vst [vmem:[%s2585_s2 + $0x1d8] sm:$0xff] %v1894_v55 }
 0x188   :  { %v1896_v59 = vpop.eup %1895  ;;  %v948_v60 = vadd.f32 %v947_v49, %v778_v58  ;;  %1897 = vtanh.f32 %v1026_v56 }
 0x189   :  { %1322 = vst [vmem:[%s2585_s2 + $0xe0] sm:$0xff] %v1896_v59 }
 0x18a   :  { %1899 = vtanh.f32 %v948_v60 }
 0x18d   :  { %v858_v62 = vpop.f32.mrf.mxu2 }
 0x18e   :  { %v1898_v63 = vpop.eup %1897  ;;  %v1028_v0 = vadd.f32 %v1027_v61, %v858_v62 }
 0x18f   :  { %v952_v1 = vpop.f32.mrf.mxu1  ;;  %v781_v2 = vpop.f32.mrf.mxu0  ;;  %1354 = vst [vmem:[%s2585_s2 + $0x1e0] sm:$0xff] %v1898_v63 }
 0x190   :  { %v1900_v3 = vpop.eup %1899  ;;  %v951_v4 = vadd.f32 %v950_v57, %v781_v2  ;;  %1901 = vtanh.f32 %v1028_v0 }
 0x191   :  { %1323 = vst [vmem:[%s2585_s2 + $0xe8] sm:$0xff] %v1900_v3 }
 0x192   :  { %1903 = vtanh.f32 %v951_v4 }
 0x195   :  { %v861_v7 = vpop.f32.mrf.mxu2 }
 0x196   :  { %v1902_v8 = vpop.eup %1901  ;;  %v1031_v9 = vadd.f32 %v1030_v6, %v861_v7 }
 0x197   :  { %v955_v10 = vpop.f32.mrf.mxu1  ;;  %v783_v11 = vpop.f32.mrf.mxu0  ;;  %1355 = vst [vmem:[%s2585_s2 + $0x1e8] sm:$0xff] %v1902_v8 }
 0x198   :  { %v1904_v12 = vpop.eup %1903  ;;  %v956_v13 = vadd.f32 %v955_v10, %v2215_v5  ;;  %v953_v14 = vadd.f32 %v952_v1, %v783_v11  ;;  %1905 = vtanh.f32 %v1031_v9 }
 0x199   :  { %1324 = vst [vmem:[%s2585_s2 + $0xf0] sm:$0xff] %v1904_v12 }
 0x19a   :  { %1907 = vtanh.f32 %v956_v13 }
 0x19b   :  { %1909 = vtanh.f32 %v953_v14 }
 0x19d   :  { %v863_v16 = vpop.f32.mrf.mxu2 }
 0x19e   :  { %v1906_v18 = vpop.eup %1905  ;;  %v1033_v19 = vadd.f32 %v1032_v15, %v863_v16 }
 0x19f   :  { %v957_v20 = vpop.f32.mrf.mxu1  ;;  %1356 = vst [vmem:[%s2585_s2 + $0x1f0] sm:$0xff] %v1906_v18 }
 0x1a0   :  { %v1908_v21 = vpop.eup %1907  ;;  %v958_v5 = vadd.f32 %v957_v20, %v2234_v17  ;;  %1911 = vtanh.f32 %v1033_v19 }
 0x1a1   :  { %v1910_v22 = vpop.eup %1909  ;;  %1326 = vst [vmem:[%s2585_s2 + $0x100] sm:$0xff] %v1908_v21 }
 0x1a2   :  { %1325 = vst [vmem:[%s2585_s2 + $0xf8] sm:$0xff] %v1910_v22  ;;  %1913 = vtanh.f32 %v958_v5 }
 0x1a6   :  { %v1912_v23 = vpop.eup %1911 }
 0x1a7   :  { %1357 = vst [vmem:[%s2585_s2 + $0x1f8] sm:$0xff] %v1912_v23 }
 0x1a8   :  { %v1914_v24 = vpop.eup %1913 }
 0x1a9   :  { %1327 = vst [vmem:[%s2585_s2 + $0x108] sm:$0xff] %v1914_v24 }

</bundles_post_ra>
